<compile_context>
chip_gen: v7x
topology: tpu7x:2x2x1
jax: 0.10.0
libtpu: 0.0.40
codegen_flags: <defaults>
</compile_context>

<pallas_src>
import functools
import math

import jax
import jax.numpy as jnp
from jax import lax
from jax.experimental import pallas as pl
from jax.experimental.pallas import tpu as pltpu

NEG_INF = -1e30        # additive mask value, kept in fp32 everywhere
LN_EPS = 1e-5          # PyTorch LayerNorm default eps


def _round_up(x, m):
    return (x + m - 1) // m * m


# Fixed ordering of the (stacked) parameter tensors fed to the fused kernel.
PARAM_ORDER = (
    # encoder layers (stacked on a leading n_layers axis)
    "enc_w_qkv", "enc_b_qkv", "enc_w_o", "enc_b_o", "enc_ln1_g", "enc_ln1_b",
    "enc_w1", "enc_b1", "enc_w2", "enc_b2", "enc_ln2_g", "enc_ln2_b",
    # encoder final norm
    "enc_norm_g", "enc_norm_b",
    # decoder layers (stacked)
    "dec_sa_w_qkv", "dec_sa_b_qkv", "dec_sa_w_o", "dec_sa_b_o",
    "dec_ln1_g", "dec_ln1_b",
    "dec_ca_w_q", "dec_ca_b_q", "dec_ca_w_kv", "dec_ca_b_kv",
    "dec_ca_w_o", "dec_ca_b_o", "dec_ln2_g", "dec_ln2_b",
    "dec_w1", "dec_b1", "dec_w2", "dec_b2", "dec_ln3_g", "dec_ln3_b",
    # decoder final norm
    "dec_norm_g", "dec_norm_b",
    # output projection (vocab padded to a multiple of 128 lanes)
    "out_w", "out_b",
)


# --------------------------------------------------------------------------
# In-kernel helpers (traced inside the fused Pallas kernel)
# --------------------------------------------------------------------------
def _layernorm(y, g, b):
    mu = jnp.mean(y, axis=-1, keepdims=True)
    c = y - mu
    var = jnp.mean(c * c, axis=-1, keepdims=True)
    return c * lax.rsqrt(var + LN_EPS) * g + b


def _attention(q, k, v, bias2d, *, scale, n_heads):
    """All heads in one batched contraction.  q: (Lq, D), k/v: (Lk, D) fp32,
    bias2d broadcastable to (Lq, Lk) fp32.  Returns (Lq, D) fp32."""
    Lq, D = q.shape
    Lk = k.shape[0]
    Dh = D // n_heads
    # One reshape + transpose per tensor instead of H 8-lane slices.
    qh = q.reshape(Lq, n_heads, Dh).transpose(1, 0, 2).astype(jnp.bfloat16)
    kh = k.reshape(Lk, n_heads, Dh).transpose(1, 0, 2).astype(jnp.bfloat16)
    vh = v.reshape(Lk, n_heads, Dh).transpose(1, 0, 2).astype(jnp.bfloat16)
    # (H, Lq, Lk) scores with H as the dot_general batch dim; fp32 accumulation.
    s = jnp.einsum("hqd,hkd->hqk", qh, kh, preferred_element_type=jnp.float32)
    s = s * scale + bias2d[None]                       # additive mask in fp32
    m = jnp.max(s, axis=-1, keepdims=True)
    p = jnp.exp(s - m)
    p = p / jnp.sum(p, axis=-1, keepdims=True)         # exact softmax normalization
    o = jnp.einsum("hqk,hkd->hqd", p.astype(jnp.bfloat16), vh,
                   preferred_element_type=jnp.float32)  # (H, Lq, Dh)
    return o.transpose(1, 0, 2).reshape(Lq, D)


def _mha_block(x, q, k, v, bias2d, wo, bo, g, beta, *, scale, n_heads):
    """Attention + single out-projection + residual + LayerNorm (all fp32 state)."""
    attn = _attention(q, k, v, bias2d, scale=scale, n_heads=n_heads)
    proj = jnp.dot(attn.astype(jnp.bfloat16), wo,
                   preferred_element_type=jnp.float32) + bo
    return _layernorm(x + proj, g, beta)


def _ffn_chunked(x, w1_ref, b1_ref, w2_ref, b2_ref, layer, f_chunk):
    """linear1 + ReLU + linear2 without materializing the full (L, F) hidden:
    the F axis is processed in f_chunk-wide column blocks streamed from the
    (stacked) weight refs."""
    L, D = x.shape
    F = w1_ref.shape[-1]
    xb = x.astype(jnp.bfloat16)
    acc = jnp.zeros((L, D), jnp.float32)
    for cs in range(0, F, f_chunk):
        ce = min(cs + f_chunk, F)
        h = jnp.dot(xb, w1_ref[layer, :, cs:ce],
                    preferred_element_type=jnp.float32) + b1_ref[layer, :, cs:ce]
        h = jnp.maximum(h, 0.0)                         # ReLU in fp32
        acc = acc + jnp.dot(h.astype(jnp.bfloat16), w2_ref[layer, cs:ce, :],
                            preferred_element_type=jnp.float32)
    return acc + b2_ref[layer]


# --------------------------------------------------------------------------
# The single fused kernel: one grid step = one batch element, full forward pass
# --------------------------------------------------------------------------
def _fused_transformer_kernel(*refs, n_heads, n_layers, scale, f_chunk):
    (src_ref, tgt_ref, src_am_ref, tgt_am_ref,
     src_kb_ref, tgt_kb_ref, mem_kb_ref) = refs[:7]
    o_ref = refs[-1]
    prm = dict(zip(PARAM_ORDER, refs[7:-1]))

    D = src_ref.shape[-1]
    src_bias = src_am_ref[...] + src_kb_ref[0]          # (S, S) fp32
    tgt_bias = tgt_am_ref[...] + tgt_kb_ref[0]          # (T, T) fp32
    mem_bias = mem_kb_ref[0]                            # (1, S) fp32

    # ------------------------- encoder -------------------------
    x = src_ref[0].astype(jnp.float32)                  # (S, D) fp32 residual stream
    for l in range(n_layers):
        qkv = jnp.dot(x.astype(jnp.bfloat16), prm["enc_w_qkv"][l],
                      preferred_element_type=jnp.float32) + prm["enc_b_qkv"][l]
        x = _mha_block(x, qkv[:, :D], qkv[:, D:2 * D], qkv[:, 2 * D:], src_bias,
                       prm["enc_w_o"][l], prm["enc_b_o"][l],
                       prm["enc_ln1_g"][l], prm["enc_ln1_b"][l],
                       scale=scale, n_heads=n_heads)
        f = _ffn_chunked(x, prm["enc_w1"], prm["enc_b1"],
                         prm["enc_w2"], prm["enc_b2"], l, f_chunk)
        x = _layernorm(x + f, prm["enc_ln2_g"][l], prm["enc_ln2_b"][l])
    mem = _layernorm(x, prm["enc_norm_g"][...], prm["enc_norm_b"][...])

    # ------------------------- decoder -------------------------
    y = tgt_ref[0].astype(jnp.float32)                  # (T, D)
    for l in range(n_layers):
        # masked self-attention
        qkv = jnp.dot(y.astype(jnp.bfloat16), prm["dec_sa_w_qkv"][l],
                      preferred_element_type=jnp.float32) + prm["dec_sa_b_qkv"][l]
        y = _mha_block(y, qkv[:, :D], qkv[:, D:2 * D], qkv[:, 2 * D:], tgt_bias,
                       prm["dec_sa_w_o"][l], prm["dec_sa_b_o"][l],
                       prm["dec_ln1_g"][l], prm["dec_ln1_b"][l],
                       scale=scale, n_heads=n_heads)
        # cross-attention over the (in-register) encoder memory of this batch elem
        q = jnp.dot(y.astype(jnp.bfloat16), prm["dec_ca_w_q"][l],
                    preferred_element_type=jnp.float32) + prm["dec_ca_b_q"][l]
        kv = jnp.dot(mem.astype(jnp.bfloat16), prm["dec_ca_w_kv"][l],
                     preferred_element_type=jnp.float32) + prm["dec_ca_b_kv"][l]
        y = _mha_block(y, q, kv[:, :D], kv[:, D:], mem_bias,
                       prm["dec_ca_w_o"][l], prm["dec_ca_b_o"][l],
                       prm["dec_ln2_g"][l], prm["dec_ln2_b"][l],
                       scale=scale, n_heads=n_heads)
        # feed-forward
        f = _ffn_chunked(y, prm["dec_w1"], prm["dec_b1"],
                         prm["dec_w2"], prm["dec_b2"], l, f_chunk)
        y = _layernorm(y + f, prm["dec_ln3_g"][l], prm["dec_ln3_b"][l])
    y = _layernorm(y, prm["dec_norm_g"][...], prm["dec_norm_b"][...])

    # final projection to the 128-lane-padded vocab (only lane-dense store)
    logits = jnp.dot(y.astype(jnp.bfloat16), prm["out_w"][...],
                     preferred_element_type=jnp.float32) + prm["out_b"][...]
    o_ref[0] = logits


# --------------------------------------------------------------------------
# pallas_call wrapper (the whole forward pass is ONE call, gridded over batch)
# --------------------------------------------------------------------------
def py_transformer_forward(params, src, tgt, src_mask, tgt_mask,
                           src_key_padding_mask, tgt_key_padding_mask,
                           memory_key_padding_mask=None, *,
                           n_heads, n_layers, label_v, f_chunk=512):
    # TODO(synk): nn.Transformer's internal dropout is treated as eval-mode identity.
    emb = params["embedding"]                           # (V, D) bf16
    src_e = jnp.transpose(emb[src], (1, 0, 2))          # (N, S, D) bf16
    tgt_e = jnp.transpose(emb[tgt], (1, 0, 2))          # (N, T, D) bf16
    N, S, D = src_e.shape
    T = tgt_e.shape[1]
    Vp = params["out_w"].shape[1]
    scale = 1.0 / math.sqrt(D // n_heads)

    def attn_bias(mask, L):
        if mask is None:
            return jnp.zeros((L, L), jnp.float32)
        if mask.dtype == jnp.bool_:                     # bool attn_mask -> 0 / -inf
            return jnp.where(mask, NEG_INF, 0.0).astype(jnp.float32)
        return mask.astype(jnp.float32)                 # additive float mask

    def kpm_bias(kpm, Lk):
        if kpm is None:
            return jnp.zeros((N, 1, Lk), jnp.float32)
        return jnp.where(kpm, NEG_INF, 0.0).astype(jnp.float32)[:, None, :]

    src_amask = attn_bias(src_mask, S)
    tgt_amask = attn_bias(tgt_mask, T)
    src_kbias = kpm_bias(src_key_padding_mask, S)
    tgt_kbias = kpm_bias(tgt_key_padding_mask, T)
    mem_kbias = kpm_bias(memory_key_padding_mask, S)

    ordered_params = [params[k] for k in PARAM_ORDER]

    def const_spec(a):
        # full-array block with a constant index_map: DMA'd once, reused by all
        # grid steps (weights are grid-invariant).
        return pl.BlockSpec(a.shape, lambda n, _nd=a.ndim: (0,) * _nd)

    in_specs = [
        pl.BlockSpec((1, S, D), lambda n: (n, 0, 0)),   # src embeddings
        pl.BlockSpec((1, T, D), lambda n: (n, 0, 0)),   # tgt embeddings
        pl.BlockSpec((S, S), lambda n: (0, 0)),         # src attn mask (additive)
        pl.BlockSpec((T, T), lambda n: (0, 0)),         # tgt attn mask (additive)
        pl.BlockSpec((1, 1, S), lambda n: (n, 0, 0)),   # src key-padding bias
        pl.BlockSpec((1, 1, T), lambda n: (n, 0, 0)),   # tgt key-padding bias
        pl.BlockSpec((1, 1, S), lambda n: (n, 0, 0)),   # memory key-padding bias
    ] + [const_spec(a) for a in ordered_params]

    kern = functools.partial(_fused_transformer_kernel, n_heads=n_heads,
                             n_layers=n_layers, scale=scale, f_chunk=f_chunk)

    # TODO(synk): for long sequences, tile attention over Lq/Lk with online softmax
    # and row-tile the FFN instead of holding full per-batch activations per step.
    logits = pl.pallas_call(
        kern,
        grid=(N,),                                      # >= 2 steps -> both v7x TCs
        in_specs=in_specs,
        out_specs=pl.BlockSpec((1, T, Vp), lambda n: (n, 0, 0)),
        out_shape=jax.ShapeDtypeStruct((N, T, Vp), jnp.float32),
        compiler_params=pltpu.CompilerParams(
            dimension_semantics=("parallel",)),
    )(src_e, tgt_e, src_amask, tgt_amask, src_kbias, tgt_kbias, mem_kbias,
      *ordered_params)

    # tiny post-processing: drop vocab padding, return (T, N, V) batch_first=False
    return jnp.transpose(logits[..., :label_v], (1, 0, 2))


# --------------------------------------------------------------------------
# Deterministic parameter initialization (synthetic; shapes match the module)
# --------------------------------------------------------------------------
def init_params(key, src_v_size, label_v_size, d_model, n_layers, d_ff):
    keys = iter(jax.random.split(key, 256))
    D, F, nl = d_model, d_ff, n_layers

    def w(shape, scale=0.05):                           # matmul weights in bf16
        return (scale * jax.random.normal(next(keys), shape,
                                          dtype=jnp.float32)).astype(jnp.bfloat16)

    def b(shape, scale=0.05):                           # biases stay fp32
        return scale * jax.random.normal(next(keys), shape, dtype=jnp.float32)

    ones = lambda s: jnp.ones(s, jnp.float32)
    zeros = lambda s: jnp.zeros(s, jnp.float32)

    p = {}
    # encoder layers (stacked on leading n_layers axis)
    p["enc_w_qkv"] = w((nl, D, 3 * D)); p["enc_b_qkv"] = b((nl, 1, 3 * D))
    p["enc_w_o"] = w((nl, D, D));       p["enc_b_o"] = b((nl, 1, D))
    p["enc_ln1_g"] = ones((nl, 1, D));  p["enc_ln1_b"] = zeros((nl, 1, D))
    p["enc_w1"] = w((nl, D, F));        p["enc_b1"] = b((nl, 1, F))
    p["enc_w2"] = w((nl, F, D));        p["enc_b2"] = b((nl, 1, D))
    p["enc_ln2_g"] = ones((nl, 1, D));  p["enc_ln2_b"] = zeros((nl, 1, D))
    p["enc_norm_g"] = ones((1, D));     p["enc_norm_b"] = zeros((1, D))
    # decoder layers (stacked)
    p["dec_sa_w_qkv"] = w((nl, D, 3 * D)); p["dec_sa_b_qkv"] = b((nl, 1, 3 * D))
    p["dec_sa_w_o"] = w((nl, D, D));       p["dec_sa_b_o"] = b((nl, 1, D))
    p["dec_ln1_g"] = ones((nl, 1, D));     p["dec_ln1_b"] = zeros((nl, 1, D))
    p["dec_ca_w_q"] = w((nl, D, D));       p["dec_ca_b_q"] = b((nl, 1, D))
    p["dec_ca_w_kv"] = w((nl, D, 2 * D));  p["dec_ca_b_kv"] = b((nl, 1, 2 * D))
    p["dec_ca_w_o"] = w((nl, D, D));       p["dec_ca_b_o"] = b((nl, 1, D))
    p["dec_ln2_g"] = ones((nl, 1, D));     p["dec_ln2_b"] = zeros((nl, 1, D))
    p["dec_w1"] = w((nl, D, F));           p["dec_b1"] = b((nl, 1, F))
    p["dec_w2"] = w((nl, F, D));           p["dec_b2"] = b((nl, 1, D))
    p["dec_ln3_g"] = ones((nl, 1, D));     p["dec_ln3_b"] = zeros((nl, 1, D))
    p["dec_norm_g"] = ones((1, D));        p["dec_norm_b"] = zeros((1, D))
    # output projection padded to a lane-dense vocab (multiple of 128)
    v_pad = _round_up(label_v_size, 128)
    wv = 0.05 * jax.random.normal(next(keys), (D, label_v_size), dtype=jnp.float32)
    bv = 0.05 * jax.random.normal(next(keys), (1, label_v_size), dtype=jnp.float32)
    p["out_w"] = (jnp.zeros((D, v_pad), jnp.float32)
                  .at[:, :label_v_size].set(wv).astype(jnp.bfloat16))
    p["out_b"] = jnp.zeros((1, v_pad), jnp.float32).at[:, :label_v_size].set(bv)
    # embedding table
    p["embedding"] = jax.random.normal(next(keys), (src_v_size, D),
                                       dtype=jnp.float32).astype(jnp.bfloat16)
    return p


if __name__ == "__main__":
    SRC_V, LABEL_V = 50, 40
    D_MODEL, N_LAYERS, N_HEADS = 32, 2, 4
    D_FF = 2048                       # nn.Transformer default dim_feedforward
    S, T, N = 8, 6, 2

    root = jax.random.PRNGKey(0)
    k_param, k_src, k_tgt = jax.random.split(root, 3)
    params = init_params(k_param, SRC_V, LABEL_V, D_MODEL, N_LAYERS, D_FF)

    src = jax.random.randint(k_src, (S, N), 0, SRC_V, dtype=jnp.int32)
    tgt = jax.random.randint(k_tgt, (T, N), 0, SRC_V, dtype=jnp.int32)

    src_mask = jnp.zeros((S, S), jnp.float32)                          # no src masking
    tgt_mask = jnp.triu(jnp.full((T, T), NEG_INF, jnp.float32), k=1)   # causal mask
    src_kpm = jnp.zeros((N, S), bool).at[1, S - 1].set(True)           # pad last src token, batch 1
    tgt_kpm = jnp.zeros((N, T), bool)

    fwd = jax.jit(functools.partial(py_transformer_forward,
                                    n_heads=N_HEADS, n_layers=N_LAYERS,
                                    label_v=LABEL_V))
    logits = fwd(params, src, tgt, src_mask, tgt_mask, src_kpm, tgt_kpm, None)
    logits = jax.block_until_ready(logits)
    assert logits.shape == (T, N, LABEL_V)
    assert bool(jnp.all(jnp.isfinite(logits)))
    print("KERNEL_OK")
</pallas_src>

<mosaic_0001>
module attributes {stable_mosaic.version = 11 : i64} {
  func.func @_fused_transformer_kernel(%arg0: i32, %arg1: memref<1x8x32xbf16, #tpu.memory_space<vmem>>, %arg2: memref<1x6x32xbf16, #tpu.memory_space<vmem>>, %arg3: memref<8x8xf32, #tpu.memory_space<vmem>>, %arg4: memref<6x6xf32, #tpu.memory_space<vmem>>, %arg5: memref<1x1x8xf32, #tpu.memory_space<vmem>>, %arg6: memref<1x1x6xf32, #tpu.memory_space<vmem>>, %arg7: memref<1x1x8xf32, #tpu.memory_space<vmem>>, %arg8: memref<2x32x96xbf16, #tpu.memory_space<vmem>>, %arg9: memref<2x1x96xf32, #tpu.memory_space<vmem>>, %arg10: memref<2x32x32xbf16, #tpu.memory_space<vmem>>, %arg11: memref<2x1x32xf32, #tpu.memory_space<vmem>>, %arg12: memref<2x1x32xf32, #tpu.memory_space<vmem>>, %arg13: memref<2x1x32xf32, #tpu.memory_space<vmem>>, %arg14: memref<2x32x2048xbf16, #tpu.memory_space<vmem>>, %arg15: memref<2x1x2048xf32, #tpu.memory_space<vmem>>, %arg16: memref<2x2048x32xbf16, #tpu.memory_space<vmem>>, %arg17: memref<2x1x32xf32, #tpu.memory_space<vmem>>, %arg18: memref<2x1x32xf32, #tpu.memory_space<vmem>>, %arg19: memref<2x1x32xf32, #tpu.memory_space<vmem>>, %arg20: memref<1x32xf32, #tpu.memory_space<vmem>>, %arg21: memref<1x32xf32, #tpu.memory_space<vmem>>, %arg22: memref<2x32x96xbf16, #tpu.memory_space<vmem>>, %arg23: memref<2x1x96xf32, #tpu.memory_space<vmem>>, %arg24: memref<2x32x32xbf16, #tpu.memory_space<vmem>>, %arg25: memref<2x1x32xf32, #tpu.memory_space<vmem>>, %arg26: memref<2x1x32xf32, #tpu.memory_space<vmem>>, %arg27: memref<2x1x32xf32, #tpu.memory_space<vmem>>, %arg28: memref<2x32x32xbf16, #tpu.memory_space<vmem>>, %arg29: memref<2x1x32xf32, #tpu.memory_space<vmem>>, %arg30: memref<2x32x64xbf16, #tpu.memory_space<vmem>>, %arg31: memref<2x1x64xf32, #tpu.memory_space<vmem>>, %arg32: memref<2x32x32xbf16, #tpu.memory_space<vmem>>, %arg33: memref<2x1x32xf32, #tpu.memory_space<vmem>>, %arg34: memref<2x1x32xf32, #tpu.memory_space<vmem>>, %arg35: memref<2x1x32xf32, #tpu.memory_space<vmem>>, %arg36: memref<2x32x2048xbf16, #tpu.memory_space<vmem>>, %arg37: memref<2x1x2048xf32, #tpu.memory_space<vmem>>, %arg38: memref<2x2048x32xbf16, #tpu.memory_space<vmem>>, %arg39: memref<2x1x32xf32, #tpu.memory_space<vmem>>, %arg40: memref<2x1x32xf32, #tpu.memory_space<vmem>>, %arg41: memref<2x1x32xf32, #tpu.memory_space<vmem>>, %arg42: memref<1x32xf32, #tpu.memory_space<vmem>>, %arg43: memref<1x32xf32, #tpu.memory_space<vmem>>, %arg44: memref<32x128xbf16, #tpu.memory_space<vmem>>, %arg45: memref<1x128xf32, #tpu.memory_space<vmem>>, %arg46: memref<1x6x128xf32, #tpu.memory_space<vmem>>) attributes {dimension_semantics = [#tpu.dimension_semantics<parallel>], iteration_bounds = array<i64: 2>, scalar_prefetch = 0 : i64, scratch_operands = 0 : i64, tpu.core_type = #tpu.core_type<tc>, window_params = [{transform_indices = @transform_0, window_bounds = array<i64: 1, 8, 32>}, {transform_indices = @transform_1, window_bounds = array<i64: 1, 6, 32>}, {pipeline_mode = #tpu.pipeline_mode<synchronous>, transform_indices = @transform_2, window_bounds = array<i64: 8, 8>}, {pipeline_mode = #tpu.pipeline_mode<synchronous>, transform_indices = @transform_3, window_bounds = array<i64: 6, 6>}, {transform_indices = @transform_4, window_bounds = array<i64: 1, 1, 8>}, {transform_indices = @transform_5, window_bounds = array<i64: 1, 1, 6>}, {transform_indices = @transform_6, window_bounds = array<i64: 1, 1, 8>}, {pipeline_mode = #tpu.pipeline_mode<synchronous>, transform_indices = @transform_7, window_bounds = array<i64: 2, 32, 96>}, {pipeline_mode = #tpu.pipeline_mode<synchronous>, transform_indices = @transform_8, window_bounds = array<i64: 2, 1, 96>}, {pipeline_mode = #tpu.pipeline_mode<synchronous>, transform_indices = @transform_9, window_bounds = array<i64: 2, 32, 32>}, {pipeline_mode = #tpu.pipeline_mode<synchronous>, transform_indices = @transform_10, window_bounds = array<i64: 2, 1, 32>}, {pipeline_mode = #tpu.pipeline_mode<synchronous>, transform_indices = @transform_11, window_bounds = array<i64: 2, 1, 32>}, {pipeline_mode = #tpu.pipeline_mode<synchronous>, transform_indices = @transform_12, window_bounds = array<i64: 2, 1, 32>}, {pipeline_mode = #tpu.pipeline_mode<synchronous>, transform_indices = @transform_13, window_bounds = array<i64: 2, 32, 2048>}, {pipeline_mode = #tpu.pipeline_mode<synchronous>, transform_indices = @transform_14, window_bounds = array<i64: 2, 1, 2048>}, {pipeline_mode = #tpu.pipeline_mode<synchronous>, transform_indices = @transform_15, window_bounds = array<i64: 2, 2048, 32>}, {pipeline_mode = #tpu.pipeline_mode<synchronous>, transform_indices = @transform_16, window_bounds = array<i64: 2, 1, 32>}, {pipeline_mode = #tpu.pipeline_mode<synchronous>, transform_indices = @transform_17, window_bounds = array<i64: 2, 1, 32>}, {pipeline_mode = #tpu.pipeline_mode<synchronous>, transform_indices = @transform_18, window_bounds = array<i64: 2, 1, 32>}, {pipeline_mode = #tpu.pipeline_mode<synchronous>, transform_indices = @transform_19, window_bounds = array<i64: 1, 32>}, {pipeline_mode = #tpu.pipeline_mode<synchronous>, transform_indices = @transform_20, window_bounds = array<i64: 1, 32>}, {pipeline_mode = #tpu.pipeline_mode<synchronous>, transform_indices = @transform_21, window_bounds = array<i64: 2, 32, 96>}, {pipeline_mode = #tpu.pipeline_mode<synchronous>, transform_indices = @transform_22, window_bounds = array<i64: 2, 1, 96>}, {pipeline_mode = #tpu.pipeline_mode<synchronous>, transform_indices = @transform_23, window_bounds = array<i64: 2, 32, 32>}, {pipeline_mode = #tpu.pipeline_mode<synchronous>, transform_indices = @transform_24, window_bounds = array<i64: 2, 1, 32>}, {pipeline_mode = #tpu.pipeline_mode<synchronous>, transform_indices = @transform_25, window_bounds = array<i64: 2, 1, 32>}, {pipeline_mode = #tpu.pipeline_mode<synchronous>, transform_indices = @transform_26, window_bounds = array<i64: 2, 1, 32>}, {pipeline_mode = #tpu.pipeline_mode<synchronous>, transform_indices = @transform_27, window_bounds = array<i64: 2, 32, 32>}, {pipeline_mode = #tpu.pipeline_mode<synchronous>, transform_indices = @transform_28, window_bounds = array<i64: 2, 1, 32>}, {pipeline_mode = #tpu.pipeline_mode<synchronous>, transform_indices = @transform_29, window_bounds = array<i64: 2, 32, 64>}, {pipeline_mode = #tpu.pipeline_mode<synchronous>, transform_indices = @transform_30, window_bounds = array<i64: 2, 1, 64>}, {pipeline_mode = #tpu.pipeline_mode<synchronous>, transform_indices = @transform_31, window_bounds = array<i64: 2, 32, 32>}, {pipeline_mode = #tpu.pipeline_mode<synchronous>, transform_indices = @transform_32, window_bounds = array<i64: 2, 1, 32>}, {pipeline_mode = #tpu.pipeline_mode<synchronous>, transform_indices = @transform_33, window_bounds = array<i64: 2, 1, 32>}, {pipeline_mode = #tpu.pipeline_mode<synchronous>, transform_indices = @transform_34, window_bounds = array<i64: 2, 1, 32>}, {pipeline_mode = #tpu.pipeline_mode<synchronous>, transform_indices = @transform_35, window_bounds = array<i64: 2, 32, 2048>}, {pipeline_mode = #tpu.pipeline_mode<synchronous>, transform_indices = @transform_36, window_bounds = array<i64: 2, 1, 2048>}, {pipeline_mode = #tpu.pipeline_mode<synchronous>, transform_indices = @transform_37, window_bounds = array<i64: 2, 2048, 32>}, {pipeline_mode = #tpu.pipeline_mode<synchronous>, transform_indices = @transform_38, window_bounds = array<i64: 2, 1, 32>}, {pipeline_mode = #tpu.pipeline_mode<synchronous>, transform_indices = @transform_39, window_bounds = array<i64: 2, 1, 32>}, {pipeline_mode = #tpu.pipeline_mode<synchronous>, transform_indices = @transform_40, window_bounds = array<i64: 2, 1, 32>}, {pipeline_mode = #tpu.pipeline_mode<synchronous>, transform_indices = @transform_41, window_bounds = array<i64: 1, 32>}, {pipeline_mode = #tpu.pipeline_mode<synchronous>, transform_indices = @transform_42, window_bounds = array<i64: 1, 32>}, {pipeline_mode = #tpu.pipeline_mode<synchronous>, transform_indices = @transform_43, window_bounds = array<i64: 32, 128>}, {pipeline_mode = #tpu.pipeline_mode<synchronous>, transform_indices = @transform_44, window_bounds = array<i64: 1, 128>}, {transform_indices = @transform_45, window_bounds = array<i64: 1, 6, 128>}]} {
    %c0 = arith.constant 0 : index
    %c0_0 = arith.constant 0 : index
    %0 = vector.load %arg3[%c0, %c0_0] : memref<8x8xf32, #tpu.memory_space<vmem>>, vector<8x8xf32>
    %c0_1 = arith.constant 0 : index
    %c0_2 = arith.constant 0 : index
    %c0_3 = arith.constant 0 : index
    %1 = vector.load %arg5[%c0_1, %c0_2, %c0_3] : memref<1x1x8xf32, #tpu.memory_space<vmem>>, vector<1x1x8xf32>
    %2 = vector.shape_cast %1 : vector<1x1x8xf32> to vector<1x8xf32>
    %3 = vector.broadcast %2 : vector<1x8xf32> to vector<8x8xf32>
    %4 = arith.addf %0, %3 : vector<8x8xf32>
    %c0_4 = arith.constant 0 : index
    %c0_5 = arith.constant 0 : index
    %5 = vector.load %arg4[%c0_4, %c0_5] : memref<6x6xf32, #tpu.memory_space<vmem>>, vector<6x6xf32>
    %c0_6 = arith.constant 0 : index
    %c0_7 = arith.constant 0 : index
    %c0_8 = arith.constant 0 : index
    %6 = vector.load %arg6[%c0_6, %c0_7, %c0_8] : memref<1x1x6xf32, #tpu.memory_space<vmem>>, vector<1x1x6xf32>
    %7 = vector.shape_cast %6 : vector<1x1x6xf32> to vector<1x6xf32>
    %8 = vector.broadcast %7 : vector<1x6xf32> to vector<6x6xf32>
    %9 = arith.addf %5, %8 : vector<6x6xf32>
    %c0_9 = arith.constant 0 : index
    %c0_10 = arith.constant 0 : index
    %c0_11 = arith.constant 0 : index
    %10 = vector.load %arg7[%c0_9, %c0_10, %c0_11] : memref<1x1x8xf32, #tpu.memory_space<vmem>>, vector<1x1x8xf32>
    %11 = vector.shape_cast %10 : vector<1x1x8xf32> to vector<1x8xf32>
    %c0_12 = arith.constant 0 : index
    %c0_13 = arith.constant 0 : index
    %c0_14 = arith.constant 0 : index
    %12 = vector.load %arg1[%c0_12, %c0_13, %c0_14] : memref<1x8x32xbf16, #tpu.memory_space<vmem>>, vector<1x8x32xbf16>
    %13 = vector.shape_cast %12 : vector<1x8x32xbf16> to vector<8x32xbf16>
    %14 = arith.extf %13 : vector<8x32xbf16> to vector<8x32xf32>
    %15 = arith.truncf %14 : vector<8x32xf32> to vector<8x32xbf16>
    %c0_15 = arith.constant 0 : index
    %c0_16 = arith.constant 0 : index
    %c0_17 = arith.constant 0 : index
    %16 = vector.load %arg8[%c0_15, %c0_16, %c0_17] : memref<2x32x96xbf16, #tpu.memory_space<vmem>>, vector<1x32x96xbf16>
    %17 = vector.shape_cast %16 : vector<1x32x96xbf16> to vector<32x96xbf16>
    %cst = arith.constant dense<0.000000e+00> : vector<8x96xf32>
    %18 = tpu.matmul %15, %17, %cst {dimension_numbers = #tpu.dot_dimension_numbers<[1], [0], [0], [1], [0, 0, 1, 1], [], []>} : vector<8x32xbf16>, vector<32x96xbf16>, vector<8x96xf32> -> vector<8x96xf32>
    %c0_18 = arith.constant 0 : index
    %c0_19 = arith.constant 0 : index
    %c0_20 = arith.constant 0 : index
    %19 = vector.load %arg9[%c0_18, %c0_19, %c0_20] : memref<2x1x96xf32, #tpu.memory_space<vmem>>, vector<1x1x96xf32>
    %20 = vector.shape_cast %19 : vector<1x1x96xf32> to vector<1x96xf32>
    %21 = vector.broadcast %20 : vector<1x96xf32> to vector<8x96xf32>
    %22 = arith.addf %18, %21 : vector<8x96xf32>
    %23 = vector.extract_strided_slice %22 {offsets = [0, 0], sizes = [8, 32], strides = [1, 1]} : vector<8x96xf32> to vector<8x32xf32>
    %24 = vector.extract_strided_slice %22 {offsets = [0, 32], sizes = [8, 32], strides = [1, 1]} : vector<8x96xf32> to vector<8x32xf32>
    %25 = vector.extract_strided_slice %22 {offsets = [0, 64], sizes = [8, 32], strides = [1, 1]} : vector<8x96xf32> to vector<8x32xf32>
    %c0_21 = arith.constant 0 : index
    %c0_22 = arith.constant 0 : index
    %c0_23 = arith.constant 0 : index
    %26 = vector.load %arg10[%c0_21, %c0_22, %c0_23] : memref<2x32x32xbf16, #tpu.memory_space<vmem>>, vector<1x32x32xbf16>
    %27 = vector.shape_cast %26 : vector<1x32x32xbf16> to vector<32x32xbf16>
    %c0_24 = arith.constant 0 : index
    %c0_25 = arith.constant 0 : index
    %c0_26 = arith.constant 0 : index
    %28 = vector.load %arg11[%c0_24, %c0_25, %c0_26] : memref<2x1x32xf32, #tpu.memory_space<vmem>>, vector<1x1x32xf32>
    %29 = vector.shape_cast %28 : vector<1x1x32xf32> to vector<1x32xf32>
    %c0_27 = arith.constant 0 : index
    %c0_28 = arith.constant 0 : index
    %c0_29 = arith.constant 0 : index
    %30 = vector.load %arg12[%c0_27, %c0_28, %c0_29] : memref<2x1x32xf32, #tpu.memory_space<vmem>>, vector<1x1x32xf32>
    %31 = vector.shape_cast %30 : vector<1x1x32xf32> to vector<1x32xf32>
    %c0_30 = arith.constant 0 : index
    %c0_31 = arith.constant 0 : index
    %c0_32 = arith.constant 0 : index
    %32 = vector.load %arg13[%c0_30, %c0_31, %c0_32] : memref<2x1x32xf32, #tpu.memory_space<vmem>>, vector<1x1x32xf32>
    %33 = vector.shape_cast %32 : vector<1x1x32xf32> to vector<1x32xf32>
    %34 = vector.shape_cast %23 : vector<8x32xf32> to vector<8x4x8xf32>
    %35 = tpu.transpose %34, [1, 0, 2] : vector<8x4x8xf32> -> vector<4x8x8xf32>
    %36 = arith.truncf %35 : vector<4x8x8xf32> to vector<4x8x8xbf16>
    %37 = vector.shape_cast %24 : vector<8x32xf32> to vector<8x4x8xf32>
    %38 = tpu.transpose %37, [1, 0, 2] : vector<8x4x8xf32> -> vector<4x8x8xf32>
    %39 = arith.truncf %38 : vector<4x8x8xf32> to vector<4x8x8xbf16>
    %40 = vector.shape_cast %25 : vector<8x32xf32> to vector<8x4x8xf32>
    %41 = tpu.transpose %40, [1, 0, 2] : vector<8x4x8xf32> -> vector<4x8x8xf32>
    %42 = arith.truncf %41 : vector<4x8x8xf32> to vector<4x8x8xbf16>
    "tpu.trace_start"() <{level = 10 : i32, message = "hqd,hkd->hqk"}> : () -> ()
    %cst_33 = arith.constant dense<0.000000e+00> : vector<4x8x8xf32>
    %43 = tpu.matmul %36, %39, %cst_33 {dimension_numbers = #tpu.dot_dimension_numbers<[2], [2], [1], [1], [0, 0, 0, 1, 1, 1], [0], [0]>} : vector<4x8x8xbf16>, vector<4x8x8xbf16>, vector<4x8x8xf32> -> vector<4x8x8xf32>
    "tpu.trace_stop"() : () -> ()
    %cst_34 = arith.constant 0.353553385 : f32
    %44 = vector.broadcast %cst_34 : f32 to vector<4x8x8xf32>
    %45 = arith.mulf %43, %44 : vector<4x8x8xf32>
    %46 = vector.shape_cast %4 : vector<8x8xf32> to vector<1x8x8xf32>
    %47 = vector.broadcast %46 : vector<1x8x8xf32> to vector<4x8x8xf32>
    %48 = arith.addf %45, %47 : vector<4x8x8xf32>
    %cst_35 = arith.constant dense<0xFF800000> : vector<4x8xf32>
    %49 = vector.multi_reduction <maximumf>, %48, %cst_35 [2] : vector<4x8x8xf32> to vector<4x8xf32>
    %50 = vector.shape_cast %49 : vector<4x8xf32> to vector<4x8x1xf32>
    %51 = vector.broadcast %50 : vector<4x8x1xf32> to vector<4x8x8xf32>
    %52 = arith.subf %48, %51 : vector<4x8x8xf32>
    %53 = math.exp %52 : vector<4x8x8xf32>
    %cst_36 = arith.constant dense<0.000000e+00> : vector<4x8xf32>
    %54 = vector.multi_reduction <add>, %53, %cst_36 [2] : vector<4x8x8xf32> to vector<4x8xf32>
    %55 = vector.shape_cast %54 : vector<4x8xf32> to vector<4x8x1xf32>
    %56 = vector.broadcast %55 : vector<4x8x1xf32> to vector<4x8x8xf32>
    %57 = arith.divf %53, %56 : vector<4x8x8xf32>
    %58 = arith.truncf %57 : vector<4x8x8xf32> to vector<4x8x8xbf16>
    "tpu.trace_start"() <{level = 10 : i32, message = "hqk,hkd->hqd"}> : () -> ()
    %cst_37 = arith.constant dense<0.000000e+00> : vector<4x8x8xf32>
    %59 = tpu.matmul %58, %42, %cst_37 {dimension_numbers = #tpu.dot_dimension_numbers<[2], [1], [1], [2], [0, 0, 0, 1, 1, 2], [0], [0]>} : vector<4x8x8xbf16>, vector<4x8x8xbf16>, vector<4x8x8xf32> -> vector<4x8x8xf32>
    "tpu.trace_stop"() : () -> ()
    %60 = tpu.transpose %59, [1, 0, 2] : vector<4x8x8xf32> -> vector<8x4x8xf32>
    %61 = vector.shape_cast %60 : vector<8x4x8xf32> to vector<8x32xf32>
    %62 = arith.truncf %61 : vector<8x32xf32> to vector<8x32xbf16>
    %cst_38 = arith.constant dense<0.000000e+00> : vector<8x32xf32>
    %63 = tpu.matmul %62, %27, %cst_38 {dimension_numbers = #tpu.dot_dimension_numbers<[1], [0], [0], [1], [0, 0, 1, 1], [], []>} : vector<8x32xbf16>, vector<32x32xbf16>, vector<8x32xf32> -> vector<8x32xf32>
    %64 = vector.broadcast %29 : vector<1x32xf32> to vector<8x32xf32>
    %65 = arith.addf %63, %64 : vector<8x32xf32>
    %66 = arith.addf %14, %65 : vector<8x32xf32>
    %cst_39 = arith.constant dense<0.000000e+00> : vector<8xf32>
    %67 = vector.multi_reduction <add>, %66, %cst_39 [1] : vector<8x32xf32> to vector<8xf32>
    %68 = vector.shape_cast %67 : vector<8xf32> to vector<8x1xf32>
    %cst_40 = arith.constant 3.200000e+01 : f32
    %69 = vector.broadcast %cst_40 : f32 to vector<8x1xf32>
    %70 = arith.divf %68, %69 : vector<8x1xf32>
    %71 = vector.broadcast %70 : vector<8x1xf32> to vector<8x32xf32>
    %72 = arith.subf %66, %71 : vector<8x32xf32>
    %73 = arith.mulf %72, %72 : vector<8x32xf32>
    %cst_41 = arith.constant dense<0.000000e+00> : vector<8xf32>
    %74 = vector.multi_reduction <add>, %73, %cst_41 [1] : vector<8x32xf32> to vector<8xf32>
    %75 = vector.shape_cast %74 : vector<8xf32> to vector<8x1xf32>
    %cst_42 = arith.constant 3.200000e+01 : f32
    %76 = vector.broadcast %cst_42 : f32 to vector<8x1xf32>
    %77 = arith.divf %75, %76 : vector<8x1xf32>
    %cst_43 = arith.constant 9.99999974E-6 : f32
    %78 = vector.broadcast %cst_43 : f32 to vector<8x1xf32>
    %79 = arith.addf %77, %78 : vector<8x1xf32>
    %80 = math.rsqrt %79 : vector<8x1xf32>
    %81 = vector.broadcast %80 : vector<8x1xf32> to vector<8x32xf32>
    %82 = arith.mulf %72, %81 : vector<8x32xf32>
    %83 = vector.broadcast %31 : vector<1x32xf32> to vector<8x32xf32>
    %84 = arith.mulf %82, %83 : vector<8x32xf32>
    %85 = vector.broadcast %33 : vector<1x32xf32> to vector<8x32xf32>
    %86 = arith.addf %84, %85 : vector<8x32xf32>
    %87 = arith.truncf %86 : vector<8x32xf32> to vector<8x32xbf16>
    %cst_44 = arith.constant 0.000000e+00 : f32
    %88 = vector.broadcast %cst_44 : f32 to vector<8x32xf32>
    %c0_45 = arith.constant 0 : index
    %c0_46 = arith.constant 0 : index
    %c0_47 = arith.constant 0 : index
    %89 = vector.load %arg14[%c0_45, %c0_46, %c0_47] : memref<2x32x2048xbf16, #tpu.memory_space<vmem>>, vector<1x32x512xbf16>
    %90 = vector.shape_cast %89 : vector<1x32x512xbf16> to vector<32x512xbf16>
    %cst_48 = arith.constant dense<0.000000e+00> : vector<8x512xf32>
    %91 = tpu.matmul %87, %90, %cst_48 {dimension_numbers = #tpu.dot_dimension_numbers<[1], [0], [0], [1], [0, 0, 1, 1], [], []>} : vector<8x32xbf16>, vector<32x512xbf16>, vector<8x512xf32> -> vector<8x512xf32>
    %c0_49 = arith.constant 0 : index
    %c0_50 = arith.constant 0 : index
    %c0_51 = arith.constant 0 : index
    %92 = vector.load %arg15[%c0_49, %c0_50, %c0_51] : memref<2x1x2048xf32, #tpu.memory_space<vmem>>, vector<1x1x512xf32>
    %93 = vector.shape_cast %92 : vector<1x1x512xf32> to vector<1x512xf32>
    %94 = vector.broadcast %93 : vector<1x512xf32> to vector<8x512xf32>
    %95 = arith.addf %91, %94 : vector<8x512xf32>
    %cst_52 = arith.constant 0.000000e+00 : f32
    %96 = vector.broadcast %cst_52 : f32 to vector<8x512xf32>
    %97 = arith.maximumf %95, %96 : vector<8x512xf32>
    %98 = arith.truncf %97 : vector<8x512xf32> to vector<8x512xbf16>
    %c0_53 = arith.constant 0 : index
    %c0_54 = arith.constant 0 : index
    %c0_55 = arith.constant 0 : index
    %99 = vector.load %arg16[%c0_53, %c0_54, %c0_55] : memref<2x2048x32xbf16, #tpu.memory_space<vmem>>, vector<1x512x32xbf16>
    %100 = vector.shape_cast %99 : vector<1x512x32xbf16> to vector<512x32xbf16>
    %cst_56 = arith.constant dense<0.000000e+00> : vector<8x32xf32>
    %101 = tpu.matmul %98, %100, %cst_56 {dimension_numbers = #tpu.dot_dimension_numbers<[1], [0], [0], [1], [0, 0, 1, 1], [], []>} : vector<8x512xbf16>, vector<512x32xbf16>, vector<8x32xf32> -> vector<8x32xf32>
    %102 = arith.addf %88, %101 : vector<8x32xf32>
    %c0_57 = arith.constant 0 : index
    %c0_58 = arith.constant 0 : index
    %c512 = arith.constant 512 : index
    %103 = vector.load %arg14[%c0_57, %c0_58, %c512] : memref<2x32x2048xbf16, #tpu.memory_space<vmem>>, vector<1x32x512xbf16>
    %104 = vector.shape_cast %103 : vector<1x32x512xbf16> to vector<32x512xbf16>
    %cst_59 = arith.constant dense<0.000000e+00> : vector<8x512xf32>
    %105 = tpu.matmul %87, %104, %cst_59 {dimension_numbers = #tpu.dot_dimension_numbers<[1], [0], [0], [1], [0, 0, 1, 1], [], []>} : vector<8x32xbf16>, vector<32x512xbf16>, vector<8x512xf32> -> vector<8x512xf32>
    %c0_60 = arith.constant 0 : index
    %c0_61 = arith.constant 0 : index
    %c512_62 = arith.constant 512 : index
    %106 = vector.load %arg15[%c0_60, %c0_61, %c512_62] : memref<2x1x2048xf32, #tpu.memory_space<vmem>>, vector<1x1x512xf32>
    %107 = vector.shape_cast %106 : vector<1x1x512xf32> to vector<1x512xf32>
    %108 = vector.broadcast %107 : vector<1x512xf32> to vector<8x512xf32>
    %109 = arith.addf %105, %108 : vector<8x512xf32>
    %cst_63 = arith.constant 0.000000e+00 : f32
    %110 = vector.broadcast %cst_63 : f32 to vector<8x512xf32>
    %111 = arith.maximumf %109, %110 : vector<8x512xf32>
    %112 = arith.truncf %111 : vector<8x512xf32> to vector<8x512xbf16>
    %c0_64 = arith.constant 0 : index
    %c512_65 = arith.constant 512 : index
    %c0_66 = arith.constant 0 : index
    %113 = vector.load %arg16[%c0_64, %c512_65, %c0_66] : memref<2x2048x32xbf16, #tpu.memory_space<vmem>>, vector<1x512x32xbf16>
    %114 = vector.shape_cast %113 : vector<1x512x32xbf16> to vector<512x32xbf16>
    %cst_67 = arith.constant dense<0.000000e+00> : vector<8x32xf32>
    %115 = tpu.matmul %112, %114, %cst_67 {dimension_numbers = #tpu.dot_dimension_numbers<[1], [0], [0], [1], [0, 0, 1, 1], [], []>} : vector<8x512xbf16>, vector<512x32xbf16>, vector<8x32xf32> -> vector<8x32xf32>
    %116 = arith.addf %102, %115 : vector<8x32xf32>
    %c0_68 = arith.constant 0 : index
    %c0_69 = arith.constant 0 : index
    %c1024 = arith.constant 1024 : index
    %117 = vector.load %arg14[%c0_68, %c0_69, %c1024] : memref<2x32x2048xbf16, #tpu.memory_space<vmem>>, vector<1x32x512xbf16>
    %118 = vector.shape_cast %117 : vector<1x32x512xbf16> to vector<32x512xbf16>
    %cst_70 = arith.constant dense<0.000000e+00> : vector<8x512xf32>
    %119 = tpu.matmul %87, %118, %cst_70 {dimension_numbers = #tpu.dot_dimension_numbers<[1], [0], [0], [1], [0, 0, 1, 1], [], []>} : vector<8x32xbf16>, vector<32x512xbf16>, vector<8x512xf32> -> vector<8x512xf32>
    %c0_71 = arith.constant 0 : index
    %c0_72 = arith.constant 0 : index
    %c1024_73 = arith.constant 1024 : index
    %120 = vector.load %arg15[%c0_71, %c0_72, %c1024_73] : memref<2x1x2048xf32, #tpu.memory_space<vmem>>, vector<1x1x512xf32>
    %121 = vector.shape_cast %120 : vector<1x1x512xf32> to vector<1x512xf32>
    %122 = vector.broadcast %121 : vector<1x512xf32> to vector<8x512xf32>
    %123 = arith.addf %119, %122 : vector<8x512xf32>
    %cst_74 = arith.constant 0.000000e+00 : f32
    %124 = vector.broadcast %cst_74 : f32 to vector<8x512xf32>
    %125 = arith.maximumf %123, %124 : vector<8x512xf32>
    %126 = arith.truncf %125 : vector<8x512xf32> to vector<8x512xbf16>
    %c0_75 = arith.constant 0 : index
    %c1024_76 = arith.constant 1024 : index
    %c0_77 = arith.constant 0 : index
    %127 = vector.load %arg16[%c0_75, %c1024_76, %c0_77] : memref<2x2048x32xbf16, #tpu.memory_space<vmem>>, vector<1x512x32xbf16>
    %128 = vector.shape_cast %127 : vector<1x512x32xbf16> to vector<512x32xbf16>
    %cst_78 = arith.constant dense<0.000000e+00> : vector<8x32xf32>
    %129 = tpu.matmul %126, %128, %cst_78 {dimension_numbers = #tpu.dot_dimension_numbers<[1], [0], [0], [1], [0, 0, 1, 1], [], []>} : vector<8x512xbf16>, vector<512x32xbf16>, vector<8x32xf32> -> vector<8x32xf32>
    %130 = arith.addf %116, %129 : vector<8x32xf32>
    %c0_79 = arith.constant 0 : index
    %c0_80 = arith.constant 0 : index
    %c1536 = arith.constant 1536 : index
    %131 = vector.load %arg14[%c0_79, %c0_80, %c1536] : memref<2x32x2048xbf16, #tpu.memory_space<vmem>>, vector<1x32x512xbf16>
    %132 = vector.shape_cast %131 : vector<1x32x512xbf16> to vector<32x512xbf16>
    %cst_81 = arith.constant dense<0.000000e+00> : vector<8x512xf32>
    %133 = tpu.matmul %87, %132, %cst_81 {dimension_numbers = #tpu.dot_dimension_numbers<[1], [0], [0], [1], [0, 0, 1, 1], [], []>} : vector<8x32xbf16>, vector<32x512xbf16>, vector<8x512xf32> -> vector<8x512xf32>
    %c0_82 = arith.constant 0 : index
    %c0_83 = arith.constant 0 : index
    %c1536_84 = arith.constant 1536 : index
    %134 = vector.load %arg15[%c0_82, %c0_83, %c1536_84] : memref<2x1x2048xf32, #tpu.memory_space<vmem>>, vector<1x1x512xf32>
    %135 = vector.shape_cast %134 : vector<1x1x512xf32> to vector<1x512xf32>
    %136 = vector.broadcast %135 : vector<1x512xf32> to vector<8x512xf32>
    %137 = arith.addf %133, %136 : vector<8x512xf32>
    %cst_85 = arith.constant 0.000000e+00 : f32
    %138 = vector.broadcast %cst_85 : f32 to vector<8x512xf32>
    %139 = arith.maximumf %137, %138 : vector<8x512xf32>
    %140 = arith.truncf %139 : vector<8x512xf32> to vector<8x512xbf16>
    %c0_86 = arith.constant 0 : index
    %c1536_87 = arith.constant 1536 : index
    %c0_88 = arith.constant 0 : index
    %141 = vector.load %arg16[%c0_86, %c1536_87, %c0_88] : memref<2x2048x32xbf16, #tpu.memory_space<vmem>>, vector<1x512x32xbf16>
    %142 = vector.shape_cast %141 : vector<1x512x32xbf16> to vector<512x32xbf16>
    %cst_89 = arith.constant dense<0.000000e+00> : vector<8x32xf32>
    %143 = tpu.matmul %140, %142, %cst_89 {dimension_numbers = #tpu.dot_dimension_numbers<[1], [0], [0], [1], [0, 0, 1, 1], [], []>} : vector<8x512xbf16>, vector<512x32xbf16>, vector<8x32xf32> -> vector<8x32xf32>
    %144 = arith.addf %130, %143 : vector<8x32xf32>
    %c0_90 = arith.constant 0 : index
    %c0_91 = arith.constant 0 : index
    %c0_92 = arith.constant 0 : index
    %145 = vector.load %arg17[%c0_90, %c0_91, %c0_92] : memref<2x1x32xf32, #tpu.memory_space<vmem>>, vector<1x1x32xf32>
    %146 = vector.shape_cast %145 : vector<1x1x32xf32> to vector<1x32xf32>
    %147 = vector.broadcast %146 : vector<1x32xf32> to vector<8x32xf32>
    %148 = arith.addf %144, %147 : vector<8x32xf32>
    %149 = arith.addf %86, %148 : vector<8x32xf32>
    %c0_93 = arith.constant 0 : index
    %c0_94 = arith.constant 0 : index
    %c0_95 = arith.constant 0 : index
    %150 = vector.load %arg18[%c0_93, %c0_94, %c0_95] : memref<2x1x32xf32, #tpu.memory_space<vmem>>, vector<1x1x32xf32>
    %151 = vector.shape_cast %150 : vector<1x1x32xf32> to vector<1x32xf32>
    %c0_96 = arith.constant 0 : index
    %c0_97 = arith.constant 0 : index
    %c0_98 = arith.constant 0 : index
    %152 = vector.load %arg19[%c0_96, %c0_97, %c0_98] : memref<2x1x32xf32, #tpu.memory_space<vmem>>, vector<1x1x32xf32>
    %153 = vector.shape_cast %152 : vector<1x1x32xf32> to vector<1x32xf32>
    %cst_99 = arith.constant dense<0.000000e+00> : vector<8xf32>
    %154 = vector.multi_reduction <add>, %149, %cst_99 [1] : vector<8x32xf32> to vector<8xf32>
    %155 = vector.shape_cast %154 : vector<8xf32> to vector<8x1xf32>
    %cst_100 = arith.constant 3.200000e+01 : f32
    %156 = vector.broadcast %cst_100 : f32 to vector<8x1xf32>
    %157 = arith.divf %155, %156 : vector<8x1xf32>
    %158 = vector.broadcast %157 : vector<8x1xf32> to vector<8x32xf32>
    %159 = arith.subf %149, %158 : vector<8x32xf32>
    %160 = arith.mulf %159, %159 : vector<8x32xf32>
    %cst_101 = arith.constant dense<0.000000e+00> : vector<8xf32>
    %161 = vector.multi_reduction <add>, %160, %cst_101 [1] : vector<8x32xf32> to vector<8xf32>
    %162 = vector.shape_cast %161 : vector<8xf32> to vector<8x1xf32>
    %cst_102 = arith.constant 3.200000e+01 : f32
    %163 = vector.broadcast %cst_102 : f32 to vector<8x1xf32>
    %164 = arith.divf %162, %163 : vector<8x1xf32>
    %cst_103 = arith.constant 9.99999974E-6 : f32
    %165 = vector.broadcast %cst_103 : f32 to vector<8x1xf32>
    %166 = arith.addf %164, %165 : vector<8x1xf32>
    %167 = math.rsqrt %166 : vector<8x1xf32>
    %168 = vector.broadcast %167 : vector<8x1xf32> to vector<8x32xf32>
    %169 = arith.mulf %159, %168 : vector<8x32xf32>
    %170 = vector.broadcast %151 : vector<1x32xf32> to vector<8x32xf32>
    %171 = arith.mulf %169, %170 : vector<8x32xf32>
    %172 = vector.broadcast %153 : vector<1x32xf32> to vector<8x32xf32>
    %173 = arith.addf %171, %172 : vector<8x32xf32>
    %174 = arith.truncf %173 : vector<8x32xf32> to vector<8x32xbf16>
    %c1 = arith.constant 1 : index
    %c0_104 = arith.constant 0 : index
    %c0_105 = arith.constant 0 : index
    %175 = vector.load %arg8[%c1, %c0_104, %c0_105] : memref<2x32x96xbf16, #tpu.memory_space<vmem>>, vector<1x32x96xbf16>
    %176 = vector.shape_cast %175 : vector<1x32x96xbf16> to vector<32x96xbf16>
    %cst_106 = arith.constant dense<0.000000e+00> : vector<8x96xf32>
    %177 = tpu.matmul %174, %176, %cst_106 {dimension_numbers = #tpu.dot_dimension_numbers<[1], [0], [0], [1], [0, 0, 1, 1], [], []>} : vector<8x32xbf16>, vector<32x96xbf16>, vector<8x96xf32> -> vector<8x96xf32>
    %c1_107 = arith.constant 1 : index
    %c0_108 = arith.constant 0 : index
    %c0_109 = arith.constant 0 : index
    %178 = vector.load %arg9[%c1_107, %c0_108, %c0_109] : memref<2x1x96xf32, #tpu.memory_space<vmem>>, vector<1x1x96xf32>
    %179 = vector.shape_cast %178 : vector<1x1x96xf32> to vector<1x96xf32>
    %180 = vector.broadcast %179 : vector<1x96xf32> to vector<8x96xf32>
    %181 = arith.addf %177, %180 : vector<8x96xf32>
    %182 = vector.extract_strided_slice %181 {offsets = [0, 0], sizes = [8, 32], strides = [1, 1]} : vector<8x96xf32> to vector<8x32xf32>
    %183 = vector.extract_strided_slice %181 {offsets = [0, 32], sizes = [8, 32], strides = [1, 1]} : vector<8x96xf32> to vector<8x32xf32>
    %184 = vector.extract_strided_slice %181 {offsets = [0, 64], sizes = [8, 32], strides = [1, 1]} : vector<8x96xf32> to vector<8x32xf32>
    %c1_110 = arith.constant 1 : index
    %c0_111 = arith.constant 0 : index
    %c0_112 = arith.constant 0 : index
    %185 = vector.load %arg10[%c1_110, %c0_111, %c0_112] : memref<2x32x32xbf16, #tpu.memory_space<vmem>>, vector<1x32x32xbf16>
    %186 = vector.shape_cast %185 : vector<1x32x32xbf16> to vector<32x32xbf16>
    %c1_113 = arith.constant 1 : index
    %c0_114 = arith.constant 0 : index
    %c0_115 = arith.constant 0 : index
    %187 = vector.load %arg11[%c1_113, %c0_114, %c0_115] : memref<2x1x32xf32, #tpu.memory_space<vmem>>, vector<1x1x32xf32>
    %188 = vector.shape_cast %187 : vector<1x1x32xf32> to vector<1x32xf32>
    %c1_116 = arith.constant 1 : index
    %c0_117 = arith.constant 0 : index
    %c0_118 = arith.constant 0 : index
    %189 = vector.load %arg12[%c1_116, %c0_117, %c0_118] : memref<2x1x32xf32, #tpu.memory_space<vmem>>, vector<1x1x32xf32>
    %190 = vector.shape_cast %189 : vector<1x1x32xf32> to vector<1x32xf32>
    %c1_119 = arith.constant 1 : index
    %c0_120 = arith.constant 0 : index
    %c0_121 = arith.constant 0 : index
    %191 = vector.load %arg13[%c1_119, %c0_120, %c0_121] : memref<2x1x32xf32, #tpu.memory_space<vmem>>, vector<1x1x32xf32>
    %192 = vector.shape_cast %191 : vector<1x1x32xf32> to vector<1x32xf32>
    %193 = vector.shape_cast %182 : vector<8x32xf32> to vector<8x4x8xf32>
    %194 = tpu.transpose %193, [1, 0, 2] : vector<8x4x8xf32> -> vector<4x8x8xf32>
    %195 = arith.truncf %194 : vector<4x8x8xf32> to vector<4x8x8xbf16>
    %196 = vector.shape_cast %183 : vector<8x32xf32> to vector<8x4x8xf32>
    %197 = tpu.transpose %196, [1, 0, 2] : vector<8x4x8xf32> -> vector<4x8x8xf32>
    %198 = arith.truncf %197 : vector<4x8x8xf32> to vector<4x8x8xbf16>
    %199 = vector.shape_cast %184 : vector<8x32xf32> to vector<8x4x8xf32>
    %200 = tpu.transpose %199, [1, 0, 2] : vector<8x4x8xf32> -> vector<4x8x8xf32>
    %201 = arith.truncf %200 : vector<4x8x8xf32> to vector<4x8x8xbf16>
    "tpu.trace_start"() <{level = 10 : i32, message = "hqd,hkd->hqk"}> : () -> ()
    %cst_122 = arith.constant dense<0.000000e+00> : vector<4x8x8xf32>
    %202 = tpu.matmul %195, %198, %cst_122 {dimension_numbers = #tpu.dot_dimension_numbers<[2], [2], [1], [1], [0, 0, 0, 1, 1, 1], [0], [0]>} : vector<4x8x8xbf16>, vector<4x8x8xbf16>, vector<4x8x8xf32> -> vector<4x8x8xf32>
    "tpu.trace_stop"() : () -> ()
    %cst_123 = arith.constant 0.353553385 : f32
    %203 = vector.broadcast %cst_123 : f32 to vector<4x8x8xf32>
    %204 = arith.mulf %202, %203 : vector<4x8x8xf32>
    %205 = vector.shape_cast %4 : vector<8x8xf32> to vector<1x8x8xf32>
    %206 = vector.broadcast %205 : vector<1x8x8xf32> to vector<4x8x8xf32>
    %207 = arith.addf %204, %206 : vector<4x8x8xf32>
    %cst_124 = arith.constant dense<0xFF800000> : vector<4x8xf32>
    %208 = vector.multi_reduction <maximumf>, %207, %cst_124 [2] : vector<4x8x8xf32> to vector<4x8xf32>
    %209 = vector.shape_cast %208 : vector<4x8xf32> to vector<4x8x1xf32>
    %210 = vector.broadcast %209 : vector<4x8x1xf32> to vector<4x8x8xf32>
    %211 = arith.subf %207, %210 : vector<4x8x8xf32>
    %212 = math.exp %211 : vector<4x8x8xf32>
    %cst_125 = arith.constant dense<0.000000e+00> : vector<4x8xf32>
    %213 = vector.multi_reduction <add>, %212, %cst_125 [2] : vector<4x8x8xf32> to vector<4x8xf32>
    %214 = vector.shape_cast %213 : vector<4x8xf32> to vector<4x8x1xf32>
    %215 = vector.broadcast %214 : vector<4x8x1xf32> to vector<4x8x8xf32>
    %216 = arith.divf %212, %215 : vector<4x8x8xf32>
    %217 = arith.truncf %216 : vector<4x8x8xf32> to vector<4x8x8xbf16>
    "tpu.trace_start"() <{level = 10 : i32, message = "hqk,hkd->hqd"}> : () -> ()
    %cst_126 = arith.constant dense<0.000000e+00> : vector<4x8x8xf32>
    %218 = tpu.matmul %217, %201, %cst_126 {dimension_numbers = #tpu.dot_dimension_numbers<[2], [1], [1], [2], [0, 0, 0, 1, 1, 2], [0], [0]>} : vector<4x8x8xbf16>, vector<4x8x8xbf16>, vector<4x8x8xf32> -> vector<4x8x8xf32>
    "tpu.trace_stop"() : () -> ()
    %219 = tpu.transpose %218, [1, 0, 2] : vector<4x8x8xf32> -> vector<8x4x8xf32>
    %220 = vector.shape_cast %219 : vector<8x4x8xf32> to vector<8x32xf32>
    %221 = arith.truncf %220 : vector<8x32xf32> to vector<8x32xbf16>
    %cst_127 = arith.constant dense<0.000000e+00> : vector<8x32xf32>
    %222 = tpu.matmul %221, %186, %cst_127 {dimension_numbers = #tpu.dot_dimension_numbers<[1], [0], [0], [1], [0, 0, 1, 1], [], []>} : vector<8x32xbf16>, vector<32x32xbf16>, vector<8x32xf32> -> vector<8x32xf32>
    %223 = vector.broadcast %188 : vector<1x32xf32> to vector<8x32xf32>
    %224 = arith.addf %222, %223 : vector<8x32xf32>
    %225 = arith.addf %173, %224 : vector<8x32xf32>
    %cst_128 = arith.constant dense<0.000000e+00> : vector<8xf32>
    %226 = vector.multi_reduction <add>, %225, %cst_128 [1] : vector<8x32xf32> to vector<8xf32>
    %227 = vector.shape_cast %226 : vector<8xf32> to vector<8x1xf32>
    %cst_129 = arith.constant 3.200000e+01 : f32
    %228 = vector.broadcast %cst_129 : f32 to vector<8x1xf32>
    %229 = arith.divf %227, %228 : vector<8x1xf32>
    %230 = vector.broadcast %229 : vector<8x1xf32> to vector<8x32xf32>
    %231 = arith.subf %225, %230 : vector<8x32xf32>
    %232 = arith.mulf %231, %231 : vector<8x32xf32>
    %cst_130 = arith.constant dense<0.000000e+00> : vector<8xf32>
    %233 = vector.multi_reduction <add>, %232, %cst_130 [1] : vector<8x32xf32> to vector<8xf32>
    %234 = vector.shape_cast %233 : vector<8xf32> to vector<8x1xf32>
    %cst_131 = arith.constant 3.200000e+01 : f32
    %235 = vector.broadcast %cst_131 : f32 to vector<8x1xf32>
    %236 = arith.divf %234, %235 : vector<8x1xf32>
    %cst_132 = arith.constant 9.99999974E-6 : f32
    %237 = vector.broadcast %cst_132 : f32 to vector<8x1xf32>
    %238 = arith.addf %236, %237 : vector<8x1xf32>
    %239 = math.rsqrt %238 : vector<8x1xf32>
    %240 = vector.broadcast %239 : vector<8x1xf32> to vector<8x32xf32>
    %241 = arith.mulf %231, %240 : vector<8x32xf32>
    %242 = vector.broadcast %190 : vector<1x32xf32> to vector<8x32xf32>
    %243 = arith.mulf %241, %242 : vector<8x32xf32>
    %244 = vector.broadcast %192 : vector<1x32xf32> to vector<8x32xf32>
    %245 = arith.addf %243, %244 : vector<8x32xf32>
    %246 = arith.truncf %245 : vector<8x32xf32> to vector<8x32xbf16>
    %cst_133 = arith.constant 0.000000e+00 : f32
    %247 = vector.broadcast %cst_133 : f32 to vector<8x32xf32>
    %c1_134 = arith.constant 1 : index
    %c0_135 = arith.constant 0 : index
    %c0_136 = arith.constant 0 : index
    %248 = vector.load %arg14[%c1_134, %c0_135, %c0_136] : memref<2x32x2048xbf16, #tpu.memory_space<vmem>>, vector<1x32x512xbf16>
    %249 = vector.shape_cast %248 : vector<1x32x512xbf16> to vector<32x512xbf16>
    %cst_137 = arith.constant dense<0.000000e+00> : vector<8x512xf32>
    %250 = tpu.matmul %246, %249, %cst_137 {dimension_numbers = #tpu.dot_dimension_numbers<[1], [0], [0], [1], [0, 0, 1, 1], [], []>} : vector<8x32xbf16>, vector<32x512xbf16>, vector<8x512xf32> -> vector<8x512xf32>
    %c1_138 = arith.constant 1 : index
    %c0_139 = arith.constant 0 : index
    %c0_140 = arith.constant 0 : index
    %251 = vector.load %arg15[%c1_138, %c0_139, %c0_140] : memref<2x1x2048xf32, #tpu.memory_space<vmem>>, vector<1x1x512xf32>
    %252 = vector.shape_cast %251 : vector<1x1x512xf32> to vector<1x512xf32>
    %253 = vector.broadcast %252 : vector<1x512xf32> to vector<8x512xf32>
    %254 = arith.addf %250, %253 : vector<8x512xf32>
    %cst_141 = arith.constant 0.000000e+00 : f32
    %255 = vector.broadcast %cst_141 : f32 to vector<8x512xf32>
    %256 = arith.maximumf %254, %255 : vector<8x512xf32>
    %257 = arith.truncf %256 : vector<8x512xf32> to vector<8x512xbf16>
    %c1_142 = arith.constant 1 : index
    %c0_143 = arith.constant 0 : index
    %c0_144 = arith.constant 0 : index
    %258 = vector.load %arg16[%c1_142, %c0_143, %c0_144] : memref<2x2048x32xbf16, #tpu.memory_space<vmem>>, vector<1x512x32xbf16>
    %259 = vector.shape_cast %258 : vector<1x512x32xbf16> to vector<512x32xbf16>
    %cst_145 = arith.constant dense<0.000000e+00> : vector<8x32xf32>
    %260 = tpu.matmul %257, %259, %cst_145 {dimension_numbers = #tpu.dot_dimension_numbers<[1], [0], [0], [1], [0, 0, 1, 1], [], []>} : vector<8x512xbf16>, vector<512x32xbf16>, vector<8x32xf32> -> vector<8x32xf32>
    %261 = arith.addf %247, %260 : vector<8x32xf32>
    %c1_146 = arith.constant 1 : index
    %c0_147 = arith.constant 0 : index
    %c512_148 = arith.constant 512 : index
    %262 = vector.load %arg14[%c1_146, %c0_147, %c512_148] : memref<2x32x2048xbf16, #tpu.memory_space<vmem>>, vector<1x32x512xbf16>
    %263 = vector.shape_cast %262 : vector<1x32x512xbf16> to vector<32x512xbf16>
    %cst_149 = arith.constant dense<0.000000e+00> : vector<8x512xf32>
    %264 = tpu.matmul %246, %263, %cst_149 {dimension_numbers = #tpu.dot_dimension_numbers<[1], [0], [0], [1], [0, 0, 1, 1], [], []>} : vector<8x32xbf16>, vector<32x512xbf16>, vector<8x512xf32> -> vector<8x512xf32>
    %c1_150 = arith.constant 1 : index
    %c0_151 = arith.constant 0 : index
    %c512_152 = arith.constant 512 : index
    %265 = vector.load %arg15[%c1_150, %c0_151, %c512_152] : memref<2x1x2048xf32, #tpu.memory_space<vmem>>, vector<1x1x512xf32>
    %266 = vector.shape_cast %265 : vector<1x1x512xf32> to vector<1x512xf32>
    %267 = vector.broadcast %266 : vector<1x512xf32> to vector<8x512xf32>
    %268 = arith.addf %264, %267 : vector<8x512xf32>
    %cst_153 = arith.constant 0.000000e+00 : f32
    %269 = vector.broadcast %cst_153 : f32 to vector<8x512xf32>
    %270 = arith.maximumf %268, %269 : vector<8x512xf32>
    %271 = arith.truncf %270 : vector<8x512xf32> to vector<8x512xbf16>
    %c1_154 = arith.constant 1 : index
    %c512_155 = arith.constant 512 : index
    %c0_156 = arith.constant 0 : index
    %272 = vector.load %arg16[%c1_154, %c512_155, %c0_156] : memref<2x2048x32xbf16, #tpu.memory_space<vmem>>, vector<1x512x32xbf16>
    %273 = vector.shape_cast %272 : vector<1x512x32xbf16> to vector<512x32xbf16>
    %cst_157 = arith.constant dense<0.000000e+00> : vector<8x32xf32>
    %274 = tpu.matmul %271, %273, %cst_157 {dimension_numbers = #tpu.dot_dimension_numbers<[1], [0], [0], [1], [0, 0, 1, 1], [], []>} : vector<8x512xbf16>, vector<512x32xbf16>, vector<8x32xf32> -> vector<8x32xf32>
    %275 = arith.addf %261, %274 : vector<8x32xf32>
    %c1_158 = arith.constant 1 : index
    %c0_159 = arith.constant 0 : index
    %c1024_160 = arith.constant 1024 : index
    %276 = vector.load %arg14[%c1_158, %c0_159, %c1024_160] : memref<2x32x2048xbf16, #tpu.memory_space<vmem>>, vector<1x32x512xbf16>
    %277 = vector.shape_cast %276 : vector<1x32x512xbf16> to vector<32x512xbf16>
    %cst_161 = arith.constant dense<0.000000e+00> : vector<8x512xf32>
    %278 = tpu.matmul %246, %277, %cst_161 {dimension_numbers = #tpu.dot_dimension_numbers<[1], [0], [0], [1], [0, 0, 1, 1], [], []>} : vector<8x32xbf16>, vector<32x512xbf16>, vector<8x512xf32> -> vector<8x512xf32>
    %c1_162 = arith.constant 1 : index
    %c0_163 = arith.constant 0 : index
    %c1024_164 = arith.constant 1024 : index
    %279 = vector.load %arg15[%c1_162, %c0_163, %c1024_164] : memref<2x1x2048xf32, #tpu.memory_space<vmem>>, vector<1x1x512xf32>
    %280 = vector.shape_cast %279 : vector<1x1x512xf32> to vector<1x512xf32>
    %281 = vector.broadcast %280 : vector<1x512xf32> to vector<8x512xf32>
    %282 = arith.addf %278, %281 : vector<8x512xf32>
    %cst_165 = arith.constant 0.000000e+00 : f32
    %283 = vector.broadcast %cst_165 : f32 to vector<8x512xf32>
    %284 = arith.maximumf %282, %283 : vector<8x512xf32>
    %285 = arith.truncf %284 : vector<8x512xf32> to vector<8x512xbf16>
    %c1_166 = arith.constant 1 : index
    %c1024_167 = arith.constant 1024 : index
    %c0_168 = arith.constant 0 : index
    %286 = vector.load %arg16[%c1_166, %c1024_167, %c0_168] : memref<2x2048x32xbf16, #tpu.memory_space<vmem>>, vector<1x512x32xbf16>
    %287 = vector.shape_cast %286 : vector<1x512x32xbf16> to vector<512x32xbf16>
    %cst_169 = arith.constant dense<0.000000e+00> : vector<8x32xf32>
    %288 = tpu.matmul %285, %287, %cst_169 {dimension_numbers = #tpu.dot_dimension_numbers<[1], [0], [0], [1], [0, 0, 1, 1], [], []>} : vector<8x512xbf16>, vector<512x32xbf16>, vector<8x32xf32> -> vector<8x32xf32>
    %289 = arith.addf %275, %288 : vector<8x32xf32>
    %c1_170 = arith.constant 1 : index
    %c0_171 = arith.constant 0 : index
    %c1536_172 = arith.constant 1536 : index
    %290 = vector.load %arg14[%c1_170, %c0_171, %c1536_172] : memref<2x32x2048xbf16, #tpu.memory_space<vmem>>, vector<1x32x512xbf16>
    %291 = vector.shape_cast %290 : vector<1x32x512xbf16> to vector<32x512xbf16>
    %cst_173 = arith.constant dense<0.000000e+00> : vector<8x512xf32>
    %292 = tpu.matmul %246, %291, %cst_173 {dimension_numbers = #tpu.dot_dimension_numbers<[1], [0], [0], [1], [0, 0, 1, 1], [], []>} : vector<8x32xbf16>, vector<32x512xbf16>, vector<8x512xf32> -> vector<8x512xf32>
    %c1_174 = arith.constant 1 : index
    %c0_175 = arith.constant 0 : index
    %c1536_176 = arith.constant 1536 : index
    %293 = vector.load %arg15[%c1_174, %c0_175, %c1536_176] : memref<2x1x2048xf32, #tpu.memory_space<vmem>>, vector<1x1x512xf32>
    %294 = vector.shape_cast %293 : vector<1x1x512xf32> to vector<1x512xf32>
    %295 = vector.broadcast %294 : vector<1x512xf32> to vector<8x512xf32>
    %296 = arith.addf %292, %295 : vector<8x512xf32>
    %cst_177 = arith.constant 0.000000e+00 : f32
    %297 = vector.broadcast %cst_177 : f32 to vector<8x512xf32>
    %298 = arith.maximumf %296, %297 : vector<8x512xf32>
    %299 = arith.truncf %298 : vector<8x512xf32> to vector<8x512xbf16>
    %c1_178 = arith.constant 1 : index
    %c1536_179 = arith.constant 1536 : index
    %c0_180 = arith.constant 0 : index
    %300 = vector.load %arg16[%c1_178, %c1536_179, %c0_180] : memref<2x2048x32xbf16, #tpu.memory_space<vmem>>, vector<1x512x32xbf16>
    %301 = vector.shape_cast %300 : vector<1x512x32xbf16> to vector<512x32xbf16>
    %cst_181 = arith.constant dense<0.000000e+00> : vector<8x32xf32>
    %302 = tpu.matmul %299, %301, %cst_181 {dimension_numbers = #tpu.dot_dimension_numbers<[1], [0], [0], [1], [0, 0, 1, 1], [], []>} : vector<8x512xbf16>, vector<512x32xbf16>, vector<8x32xf32> -> vector<8x32xf32>
    %303 = arith.addf %289, %302 : vector<8x32xf32>
    %c1_182 = arith.constant 1 : index
    %c0_183 = arith.constant 0 : index
    %c0_184 = arith.constant 0 : index
    %304 = vector.load %arg17[%c1_182, %c0_183, %c0_184] : memref<2x1x32xf32, #tpu.memory_space<vmem>>, vector<1x1x32xf32>
    %305 = vector.shape_cast %304 : vector<1x1x32xf32> to vector<1x32xf32>
    %306 = vector.broadcast %305 : vector<1x32xf32> to vector<8x32xf32>
    %307 = arith.addf %303, %306 : vector<8x32xf32>
    %308 = arith.addf %245, %307 : vector<8x32xf32>
    %c1_185 = arith.constant 1 : index
    %c0_186 = arith.constant 0 : index
    %c0_187 = arith.constant 0 : index
    %309 = vector.load %arg18[%c1_185, %c0_186, %c0_187] : memref<2x1x32xf32, #tpu.memory_space<vmem>>, vector<1x1x32xf32>
    %310 = vector.shape_cast %309 : vector<1x1x32xf32> to vector<1x32xf32>
    %c1_188 = arith.constant 1 : index
    %c0_189 = arith.constant 0 : index
    %c0_190 = arith.constant 0 : index
    %311 = vector.load %arg19[%c1_188, %c0_189, %c0_190] : memref<2x1x32xf32, #tpu.memory_space<vmem>>, vector<1x1x32xf32>
    %312 = vector.shape_cast %311 : vector<1x1x32xf32> to vector<1x32xf32>
    %cst_191 = arith.constant dense<0.000000e+00> : vector<8xf32>
    %313 = vector.multi_reduction <add>, %308, %cst_191 [1] : vector<8x32xf32> to vector<8xf32>
    %314 = vector.shape_cast %313 : vector<8xf32> to vector<8x1xf32>
    %cst_192 = arith.constant 3.200000e+01 : f32
    %315 = vector.broadcast %cst_192 : f32 to vector<8x1xf32>
    %316 = arith.divf %314, %315 : vector<8x1xf32>
    %317 = vector.broadcast %316 : vector<8x1xf32> to vector<8x32xf32>
    %318 = arith.subf %308, %317 : vector<8x32xf32>
    %319 = arith.mulf %318, %318 : vector<8x32xf32>
    %cst_193 = arith.constant dense<0.000000e+00> : vector<8xf32>
    %320 = vector.multi_reduction <add>, %319, %cst_193 [1] : vector<8x32xf32> to vector<8xf32>
    %321 = vector.shape_cast %320 : vector<8xf32> to vector<8x1xf32>
    %cst_194 = arith.constant 3.200000e+01 : f32
    %322 = vector.broadcast %cst_194 : f32 to vector<8x1xf32>
    %323 = arith.divf %321, %322 : vector<8x1xf32>
    %cst_195 = arith.constant 9.99999974E-6 : f32
    %324 = vector.broadcast %cst_195 : f32 to vector<8x1xf32>
    %325 = arith.addf %323, %324 : vector<8x1xf32>
    %326 = math.rsqrt %325 : vector<8x1xf32>
    %327 = vector.broadcast %326 : vector<8x1xf32> to vector<8x32xf32>
    %328 = arith.mulf %318, %327 : vector<8x32xf32>
    %329 = vector.broadcast %310 : vector<1x32xf32> to vector<8x32xf32>
    %330 = arith.mulf %328, %329 : vector<8x32xf32>
    %331 = vector.broadcast %312 : vector<1x32xf32> to vector<8x32xf32>
    %332 = arith.addf %330, %331 : vector<8x32xf32>
    %c0_196 = arith.constant 0 : index
    %c0_197 = arith.constant 0 : index
    %333 = vector.load %arg20[%c0_196, %c0_197] : memref<1x32xf32, #tpu.memory_space<vmem>>, vector<1x32xf32>
    %c0_198 = arith.constant 0 : index
    %c0_199 = arith.constant 0 : index
    %334 = vector.load %arg21[%c0_198, %c0_199] : memref<1x32xf32, #tpu.memory_space<vmem>>, vector<1x32xf32>
    %cst_200 = arith.constant dense<0.000000e+00> : vector<8xf32>
    %335 = vector.multi_reduction <add>, %332, %cst_200 [1] : vector<8x32xf32> to vector<8xf32>
    %336 = vector.shape_cast %335 : vector<8xf32> to vector<8x1xf32>
    %cst_201 = arith.constant 3.200000e+01 : f32
    %337 = vector.broadcast %cst_201 : f32 to vector<8x1xf32>
    %338 = arith.divf %336, %337 : vector<8x1xf32>
    %339 = vector.broadcast %338 : vector<8x1xf32> to vector<8x32xf32>
    %340 = arith.subf %332, %339 : vector<8x32xf32>
    %341 = arith.mulf %340, %340 : vector<8x32xf32>
    %cst_202 = arith.constant dense<0.000000e+00> : vector<8xf32>
    %342 = vector.multi_reduction <add>, %341, %cst_202 [1] : vector<8x32xf32> to vector<8xf32>
    %343 = vector.shape_cast %342 : vector<8xf32> to vector<8x1xf32>
    %cst_203 = arith.constant 3.200000e+01 : f32
    %344 = vector.broadcast %cst_203 : f32 to vector<8x1xf32>
    %345 = arith.divf %343, %344 : vector<8x1xf32>
    %cst_204 = arith.constant 9.99999974E-6 : f32
    %346 = vector.broadcast %cst_204 : f32 to vector<8x1xf32>
    %347 = arith.addf %345, %346 : vector<8x1xf32>
    %348 = math.rsqrt %347 : vector<8x1xf32>
    %349 = vector.broadcast %348 : vector<8x1xf32> to vector<8x32xf32>
    %350 = arith.mulf %340, %349 : vector<8x32xf32>
    %351 = vector.broadcast %333 : vector<1x32xf32> to vector<8x32xf32>
    %352 = arith.mulf %350, %351 : vector<8x32xf32>
    %353 = vector.broadcast %334 : vector<1x32xf32> to vector<8x32xf32>
    %354 = arith.addf %352, %353 : vector<8x32xf32>
    %c0_205 = arith.constant 0 : index
    %c0_206 = arith.constant 0 : index
    %c0_207 = arith.constant 0 : index
    %355 = vector.load %arg2[%c0_205, %c0_206, %c0_207] : memref<1x6x32xbf16, #tpu.memory_space<vmem>>, vector<1x6x32xbf16>
    %356 = vector.shape_cast %355 : vector<1x6x32xbf16> to vector<6x32xbf16>
    %357 = arith.extf %356 : vector<6x32xbf16> to vector<6x32xf32>
    %358 = arith.truncf %357 : vector<6x32xf32> to vector<6x32xbf16>
    %c0_208 = arith.constant 0 : index
    %c0_209 = arith.constant 0 : index
    %c0_210 = arith.constant 0 : index
    %359 = vector.load %arg22[%c0_208, %c0_209, %c0_210] : memref<2x32x96xbf16, #tpu.memory_space<vmem>>, vector<1x32x96xbf16>
    %360 = vector.shape_cast %359 : vector<1x32x96xbf16> to vector<32x96xbf16>
    %cst_211 = arith.constant dense<0.000000e+00> : vector<6x96xf32>
    %361 = tpu.matmul %358, %360, %cst_211 {dimension_numbers = #tpu.dot_dimension_numbers<[1], [0], [0], [1], [0, 0, 1, 1], [], []>} : vector<6x32xbf16>, vector<32x96xbf16>, vector<6x96xf32> -> vector<6x96xf32>
    %c0_212 = arith.constant 0 : index
    %c0_213 = arith.constant 0 : index
    %c0_214 = arith.constant 0 : index
    %362 = vector.load %arg23[%c0_212, %c0_213, %c0_214] : memref<2x1x96xf32, #tpu.memory_space<vmem>>, vector<1x1x96xf32>
    %363 = vector.shape_cast %362 : vector<1x1x96xf32> to vector<1x96xf32>
    %364 = vector.broadcast %363 : vector<1x96xf32> to vector<6x96xf32>
    %365 = arith.addf %361, %364 : vector<6x96xf32>
    %366 = vector.extract_strided_slice %365 {offsets = [0, 0], sizes = [6, 32], strides = [1, 1]} : vector<6x96xf32> to vector<6x32xf32>
    %367 = vector.extract_strided_slice %365 {offsets = [0, 32], sizes = [6, 32], strides = [1, 1]} : vector<6x96xf32> to vector<6x32xf32>
    %368 = vector.extract_strided_slice %365 {offsets = [0, 64], sizes = [6, 32], strides = [1, 1]} : vector<6x96xf32> to vector<6x32xf32>
    %c0_215 = arith.constant 0 : index
    %c0_216 = arith.constant 0 : index
    %c0_217 = arith.constant 0 : index
    %369 = vector.load %arg24[%c0_215, %c0_216, %c0_217] : memref<2x32x32xbf16, #tpu.memory_space<vmem>>, vector<1x32x32xbf16>
    %370 = vector.shape_cast %369 : vector<1x32x32xbf16> to vector<32x32xbf16>
    %c0_218 = arith.constant 0 : index
    %c0_219 = arith.constant 0 : index
    %c0_220 = arith.constant 0 : index
    %371 = vector.load %arg25[%c0_218, %c0_219, %c0_220] : memref<2x1x32xf32, #tpu.memory_space<vmem>>, vector<1x1x32xf32>
    %372 = vector.shape_cast %371 : vector<1x1x32xf32> to vector<1x32xf32>
    %c0_221 = arith.constant 0 : index
    %c0_222 = arith.constant 0 : index
    %c0_223 = arith.constant 0 : index
    %373 = vector.load %arg26[%c0_221, %c0_222, %c0_223] : memref<2x1x32xf32, #tpu.memory_space<vmem>>, vector<1x1x32xf32>
    %374 = vector.shape_cast %373 : vector<1x1x32xf32> to vector<1x32xf32>
    %c0_224 = arith.constant 0 : index
    %c0_225 = arith.constant 0 : index
    %c0_226 = arith.constant 0 : index
    %375 = vector.load %arg27[%c0_224, %c0_225, %c0_226] : memref<2x1x32xf32, #tpu.memory_space<vmem>>, vector<1x1x32xf32>
    %376 = vector.shape_cast %375 : vector<1x1x32xf32> to vector<1x32xf32>
    %377 = vector.shape_cast %366 : vector<6x32xf32> to vector<6x4x8xf32>
    %378 = tpu.transpose %377, [1, 0, 2] : vector<6x4x8xf32> -> vector<4x6x8xf32>
    %379 = arith.truncf %378 : vector<4x6x8xf32> to vector<4x6x8xbf16>
    %380 = vector.shape_cast %367 : vector<6x32xf32> to vector<6x4x8xf32>
    %381 = tpu.transpose %380, [1, 0, 2] : vector<6x4x8xf32> -> vector<4x6x8xf32>
    %382 = arith.truncf %381 : vector<4x6x8xf32> to vector<4x6x8xbf16>
    %383 = vector.shape_cast %368 : vector<6x32xf32> to vector<6x4x8xf32>
    %384 = tpu.transpose %383, [1, 0, 2] : vector<6x4x8xf32> -> vector<4x6x8xf32>
    %385 = arith.truncf %384 : vector<4x6x8xf32> to vector<4x6x8xbf16>
    "tpu.trace_start"() <{level = 10 : i32, message = "hqd,hkd->hqk"}> : () -> ()
    %cst_227 = arith.constant dense<0.000000e+00> : vector<4x6x6xf32>
    %386 = tpu.matmul %379, %382, %cst_227 {dimension_numbers = #tpu.dot_dimension_numbers<[2], [2], [1], [1], [0, 0, 0, 1, 1, 1], [0], [0]>} : vector<4x6x8xbf16>, vector<4x6x8xbf16>, vector<4x6x6xf32> -> vector<4x6x6xf32>
    "tpu.trace_stop"() : () -> ()
    %cst_228 = arith.constant 0.353553385 : f32
    %387 = vector.broadcast %cst_228 : f32 to vector<4x6x6xf32>
    %388 = arith.mulf %386, %387 : vector<4x6x6xf32>
    %389 = vector.shape_cast %9 : vector<6x6xf32> to vector<1x6x6xf32>
    %390 = vector.broadcast %389 : vector<1x6x6xf32> to vector<4x6x6xf32>
    %391 = arith.addf %388, %390 : vector<4x6x6xf32>
    %cst_229 = arith.constant dense<0xFF800000> : vector<4x6xf32>
    %392 = vector.multi_reduction <maximumf>, %391, %cst_229 [2] : vector<4x6x6xf32> to vector<4x6xf32>
    %393 = vector.shape_cast %392 : vector<4x6xf32> to vector<4x6x1xf32>
    %394 = vector.broadcast %393 : vector<4x6x1xf32> to vector<4x6x6xf32>
    %395 = arith.subf %391, %394 : vector<4x6x6xf32>
    %396 = math.exp %395 : vector<4x6x6xf32>
    %cst_230 = arith.constant dense<0.000000e+00> : vector<4x6xf32>
    %397 = vector.multi_reduction <add>, %396, %cst_230 [2] : vector<4x6x6xf32> to vector<4x6xf32>
    %398 = vector.shape_cast %397 : vector<4x6xf32> to vector<4x6x1xf32>
    %399 = vector.broadcast %398 : vector<4x6x1xf32> to vector<4x6x6xf32>
    %400 = arith.divf %396, %399 : vector<4x6x6xf32>
    %401 = arith.truncf %400 : vector<4x6x6xf32> to vector<4x6x6xbf16>
    "tpu.trace_start"() <{level = 10 : i32, message = "hqk,hkd->hqd"}> : () -> ()
    %cst_231 = arith.constant dense<0.000000e+00> : vector<4x6x8xf32>
    %402 = tpu.matmul %401, %385, %cst_231 {dimension_numbers = #tpu.dot_dimension_numbers<[2], [1], [1], [2], [0, 0, 0, 1, 1, 2], [0], [0]>} : vector<4x6x6xbf16>, vector<4x6x8xbf16>, vector<4x6x8xf32> -> vector<4x6x8xf32>
    "tpu.trace_stop"() : () -> ()
    %403 = tpu.transpose %402, [1, 0, 2] : vector<4x6x8xf32> -> vector<6x4x8xf32>
    %404 = vector.shape_cast %403 : vector<6x4x8xf32> to vector<6x32xf32>
    %405 = arith.truncf %404 : vector<6x32xf32> to vector<6x32xbf16>
    %cst_232 = arith.constant dense<0.000000e+00> : vector<6x32xf32>
    %406 = tpu.matmul %405, %370, %cst_232 {dimension_numbers = #tpu.dot_dimension_numbers<[1], [0], [0], [1], [0, 0, 1, 1], [], []>} : vector<6x32xbf16>, vector<32x32xbf16>, vector<6x32xf32> -> vector<6x32xf32>
    %407 = vector.broadcast %372 : vector<1x32xf32> to vector<6x32xf32>
    %408 = arith.addf %406, %407 : vector<6x32xf32>
    %409 = arith.addf %357, %408 : vector<6x32xf32>
    %cst_233 = arith.constant dense<0.000000e+00> : vector<6xf32>
    %410 = vector.multi_reduction <add>, %409, %cst_233 [1] : vector<6x32xf32> to vector<6xf32>
    %411 = vector.shape_cast %410 : vector<6xf32> to vector<6x1xf32>
    %cst_234 = arith.constant 3.200000e+01 : f32
    %412 = vector.broadcast %cst_234 : f32 to vector<6x1xf32>
    %413 = arith.divf %411, %412 : vector<6x1xf32>
    %414 = vector.broadcast %413 : vector<6x1xf32> to vector<6x32xf32>
    %415 = arith.subf %409, %414 : vector<6x32xf32>
    %416 = arith.mulf %415, %415 : vector<6x32xf32>
    %cst_235 = arith.constant dense<0.000000e+00> : vector<6xf32>
    %417 = vector.multi_reduction <add>, %416, %cst_235 [1] : vector<6x32xf32> to vector<6xf32>
    %418 = vector.shape_cast %417 : vector<6xf32> to vector<6x1xf32>
    %cst_236 = arith.constant 3.200000e+01 : f32
    %419 = vector.broadcast %cst_236 : f32 to vector<6x1xf32>
    %420 = arith.divf %418, %419 : vector<6x1xf32>
    %cst_237 = arith.constant 9.99999974E-6 : f32
    %421 = vector.broadcast %cst_237 : f32 to vector<6x1xf32>
    %422 = arith.addf %420, %421 : vector<6x1xf32>
    %423 = math.rsqrt %422 : vector<6x1xf32>
    %424 = vector.broadcast %423 : vector<6x1xf32> to vector<6x32xf32>
    %425 = arith.mulf %415, %424 : vector<6x32xf32>
    %426 = vector.broadcast %374 : vector<1x32xf32> to vector<6x32xf32>
    %427 = arith.mulf %425, %426 : vector<6x32xf32>
    %428 = vector.broadcast %376 : vector<1x32xf32> to vector<6x32xf32>
    %429 = arith.addf %427, %428 : vector<6x32xf32>
    %430 = arith.truncf %429 : vector<6x32xf32> to vector<6x32xbf16>
    %c0_238 = arith.constant 0 : index
    %c0_239 = arith.constant 0 : index
    %c0_240 = arith.constant 0 : index
    %431 = vector.load %arg28[%c0_238, %c0_239, %c0_240] : memref<2x32x32xbf16, #tpu.memory_space<vmem>>, vector<1x32x32xbf16>
    %432 = vector.shape_cast %431 : vector<1x32x32xbf16> to vector<32x32xbf16>
    %cst_241 = arith.constant dense<0.000000e+00> : vector<6x32xf32>
    %433 = tpu.matmul %430, %432, %cst_241 {dimension_numbers = #tpu.dot_dimension_numbers<[1], [0], [0], [1], [0, 0, 1, 1], [], []>} : vector<6x32xbf16>, vector<32x32xbf16>, vector<6x32xf32> -> vector<6x32xf32>
    %c0_242 = arith.constant 0 : index
    %c0_243 = arith.constant 0 : index
    %c0_244 = arith.constant 0 : index
    %434 = vector.load %arg29[%c0_242, %c0_243, %c0_244] : memref<2x1x32xf32, #tpu.memory_space<vmem>>, vector<1x1x32xf32>
    %435 = vector.shape_cast %434 : vector<1x1x32xf32> to vector<1x32xf32>
    %436 = vector.broadcast %435 : vector<1x32xf32> to vector<6x32xf32>
    %437 = arith.addf %433, %436 : vector<6x32xf32>
    %438 = arith.truncf %354 : vector<8x32xf32> to vector<8x32xbf16>
    %c0_245 = arith.constant 0 : index
    %c0_246 = arith.constant 0 : index
    %c0_247 = arith.constant 0 : index
    %439 = vector.load %arg30[%c0_245, %c0_246, %c0_247] : memref<2x32x64xbf16, #tpu.memory_space<vmem>>, vector<1x32x64xbf16>
    %440 = vector.shape_cast %439 : vector<1x32x64xbf16> to vector<32x64xbf16>
    %cst_248 = arith.constant dense<0.000000e+00> : vector<8x64xf32>
    %441 = tpu.matmul %438, %440, %cst_248 {dimension_numbers = #tpu.dot_dimension_numbers<[1], [0], [0], [1], [0, 0, 1, 1], [], []>} : vector<8x32xbf16>, vector<32x64xbf16>, vector<8x64xf32> -> vector<8x64xf32>
    %c0_249 = arith.constant 0 : index
    %c0_250 = arith.constant 0 : index
    %c0_251 = arith.constant 0 : index
    %442 = vector.load %arg31[%c0_249, %c0_250, %c0_251] : memref<2x1x64xf32, #tpu.memory_space<vmem>>, vector<1x1x64xf32>
    %443 = vector.shape_cast %442 : vector<1x1x64xf32> to vector<1x64xf32>
    %444 = vector.broadcast %443 : vector<1x64xf32> to vector<8x64xf32>
    %445 = arith.addf %441, %444 : vector<8x64xf32>
    %446 = vector.extract_strided_slice %445 {offsets = [0, 0], sizes = [8, 32], strides = [1, 1]} : vector<8x64xf32> to vector<8x32xf32>
    %447 = vector.extract_strided_slice %445 {offsets = [0, 32], sizes = [8, 32], strides = [1, 1]} : vector<8x64xf32> to vector<8x32xf32>
    %c0_252 = arith.constant 0 : index
    %c0_253 = arith.constant 0 : index
    %c0_254 = arith.constant 0 : index
    %448 = vector.load %arg32[%c0_252, %c0_253, %c0_254] : memref<2x32x32xbf16, #tpu.memory_space<vmem>>, vector<1x32x32xbf16>
    %449 = vector.shape_cast %448 : vector<1x32x32xbf16> to vector<32x32xbf16>
    %c0_255 = arith.constant 0 : index
    %c0_256 = arith.constant 0 : index
    %c0_257 = arith.constant 0 : index
    %450 = vector.load %arg33[%c0_255, %c0_256, %c0_257] : memref<2x1x32xf32, #tpu.memory_space<vmem>>, vector<1x1x32xf32>
    %451 = vector.shape_cast %450 : vector<1x1x32xf32> to vector<1x32xf32>
    %c0_258 = arith.constant 0 : index
    %c0_259 = arith.constant 0 : index
    %c0_260 = arith.constant 0 : index
    %452 = vector.load %arg34[%c0_258, %c0_259, %c0_260] : memref<2x1x32xf32, #tpu.memory_space<vmem>>, vector<1x1x32xf32>
    %453 = vector.shape_cast %452 : vector<1x1x32xf32> to vector<1x32xf32>
    %c0_261 = arith.constant 0 : index
    %c0_262 = arith.constant 0 : index
    %c0_263 = arith.constant 0 : index
    %454 = vector.load %arg35[%c0_261, %c0_262, %c0_263] : memref<2x1x32xf32, #tpu.memory_space<vmem>>, vector<1x1x32xf32>
    %455 = vector.shape_cast %454 : vector<1x1x32xf32> to vector<1x32xf32>
    %456 = vector.shape_cast %437 : vector<6x32xf32> to vector<6x4x8xf32>
    %457 = tpu.transpose %456, [1, 0, 2] : vector<6x4x8xf32> -> vector<4x6x8xf32>
    %458 = arith.truncf %457 : vector<4x6x8xf32> to vector<4x6x8xbf16>
    %459 = vector.shape_cast %446 : vector<8x32xf32> to vector<8x4x8xf32>
    %460 = tpu.transpose %459, [1, 0, 2] : vector<8x4x8xf32> -> vector<4x8x8xf32>
    %461 = arith.truncf %460 : vector<4x8x8xf32> to vector<4x8x8xbf16>
    %462 = vector.shape_cast %447 : vector<8x32xf32> to vector<8x4x8xf32>
    %463 = tpu.transpose %462, [1, 0, 2] : vector<8x4x8xf32> -> vector<4x8x8xf32>
    %464 = arith.truncf %463 : vector<4x8x8xf32> to vector<4x8x8xbf16>
    "tpu.trace_start"() <{level = 10 : i32, message = "hqd,hkd->hqk"}> : () -> ()
    %cst_264 = arith.constant dense<0.000000e+00> : vector<4x6x8xf32>
    %465 = tpu.matmul %458, %461, %cst_264 {dimension_numbers = #tpu.dot_dimension_numbers<[2], [2], [1], [1], [0, 0, 0, 1, 1, 1], [0], [0]>} : vector<4x6x8xbf16>, vector<4x8x8xbf16>, vector<4x6x8xf32> -> vector<4x6x8xf32>
    "tpu.trace_stop"() : () -> ()
    %cst_265 = arith.constant 0.353553385 : f32
    %466 = vector.broadcast %cst_265 : f32 to vector<4x6x8xf32>
    %467 = arith.mulf %465, %466 : vector<4x6x8xf32>
    %468 = vector.shape_cast %11 : vector<1x8xf32> to vector<1x1x8xf32>
    %469 = vector.broadcast %468 : vector<1x1x8xf32> to vector<4x6x8xf32>
    %470 = arith.addf %467, %469 : vector<4x6x8xf32>
    %cst_266 = arith.constant dense<0xFF800000> : vector<4x6xf32>
    %471 = vector.multi_reduction <maximumf>, %470, %cst_266 [2] : vector<4x6x8xf32> to vector<4x6xf32>
    %472 = vector.shape_cast %471 : vector<4x6xf32> to vector<4x6x1xf32>
    %473 = vector.broadcast %472 : vector<4x6x1xf32> to vector<4x6x8xf32>
    %474 = arith.subf %470, %473 : vector<4x6x8xf32>
    %475 = math.exp %474 : vector<4x6x8xf32>
    %cst_267 = arith.constant dense<0.000000e+00> : vector<4x6xf32>
    %476 = vector.multi_reduction <add>, %475, %cst_267 [2] : vector<4x6x8xf32> to vector<4x6xf32>
    %477 = vector.shape_cast %476 : vector<4x6xf32> to vector<4x6x1xf32>
    %478 = vector.broadcast %477 : vector<4x6x1xf32> to vector<4x6x8xf32>
    %479 = arith.divf %475, %478 : vector<4x6x8xf32>
    %480 = arith.truncf %479 : vector<4x6x8xf32> to vector<4x6x8xbf16>
    "tpu.trace_start"() <{level = 10 : i32, message = "hqk,hkd->hqd"}> : () -> ()
    %cst_268 = arith.constant dense<0.000000e+00> : vector<4x6x8xf32>
    %481 = tpu.matmul %480, %464, %cst_268 {dimension_numbers = #tpu.dot_dimension_numbers<[2], [1], [1], [2], [0, 0, 0, 1, 1, 2], [0], [0]>} : vector<4x6x8xbf16>, vector<4x8x8xbf16>, vector<4x6x8xf32> -> vector<4x6x8xf32>
    "tpu.trace_stop"() : () -> ()
    %482 = tpu.transpose %481, [1, 0, 2] : vector<4x6x8xf32> -> vector<6x4x8xf32>
    %483 = vector.shape_cast %482 : vector<6x4x8xf32> to vector<6x32xf32>
    %484 = arith.truncf %483 : vector<6x32xf32> to vector<6x32xbf16>
    %cst_269 = arith.constant dense<0.000000e+00> : vector<6x32xf32>
    %485 = tpu.matmul %484, %449, %cst_269 {dimension_numbers = #tpu.dot_dimension_numbers<[1], [0], [0], [1], [0, 0, 1, 1], [], []>} : vector<6x32xbf16>, vector<32x32xbf16>, vector<6x32xf32> -> vector<6x32xf32>
    %486 = vector.broadcast %451 : vector<1x32xf32> to vector<6x32xf32>
    %487 = arith.addf %485, %486 : vector<6x32xf32>
    %488 = arith.addf %429, %487 : vector<6x32xf32>
    %cst_270 = arith.constant dense<0.000000e+00> : vector<6xf32>
    %489 = vector.multi_reduction <add>, %488, %cst_270 [1] : vector<6x32xf32> to vector<6xf32>
    %490 = vector.shape_cast %489 : vector<6xf32> to vector<6x1xf32>
    %cst_271 = arith.constant 3.200000e+01 : f32
    %491 = vector.broadcast %cst_271 : f32 to vector<6x1xf32>
    %492 = arith.divf %490, %491 : vector<6x1xf32>
    %493 = vector.broadcast %492 : vector<6x1xf32> to vector<6x32xf32>
    %494 = arith.subf %488, %493 : vector<6x32xf32>
    %495 = arith.mulf %494, %494 : vector<6x32xf32>
    %cst_272 = arith.constant dense<0.000000e+00> : vector<6xf32>
    %496 = vector.multi_reduction <add>, %495, %cst_272 [1] : vector<6x32xf32> to vector<6xf32>
    %497 = vector.shape_cast %496 : vector<6xf32> to vector<6x1xf32>
    %cst_273 = arith.constant 3.200000e+01 : f32
    %498 = vector.broadcast %cst_273 : f32 to vector<6x1xf32>
    %499 = arith.divf %497, %498 : vector<6x1xf32>
    %cst_274 = arith.constant 9.99999974E-6 : f32
    %500 = vector.broadcast %cst_274 : f32 to vector<6x1xf32>
    %501 = arith.addf %499, %500 : vector<6x1xf32>
    %502 = math.rsqrt %501 : vector<6x1xf32>
    %503 = vector.broadcast %502 : vector<6x1xf32> to vector<6x32xf32>
    %504 = arith.mulf %494, %503 : vector<6x32xf32>
    %505 = vector.broadcast %453 : vector<1x32xf32> to vector<6x32xf32>
    %506 = arith.mulf %504, %505 : vector<6x32xf32>
    %507 = vector.broadcast %455 : vector<1x32xf32> to vector<6x32xf32>
    %508 = arith.addf %506, %507 : vector<6x32xf32>
    %509 = arith.truncf %508 : vector<6x32xf32> to vector<6x32xbf16>
    %cst_275 = arith.constant 0.000000e+00 : f32
    %510 = vector.broadcast %cst_275 : f32 to vector<6x32xf32>
    %c0_276 = arith.constant 0 : index
    %c0_277 = arith.constant 0 : index
    %c0_278 = arith.constant 0 : index
    %511 = vector.load %arg36[%c0_276, %c0_277, %c0_278] : memref<2x32x2048xbf16, #tpu.memory_space<vmem>>, vector<1x32x512xbf16>
    %512 = vector.shape_cast %511 : vector<1x32x512xbf16> to vector<32x512xbf16>
    %cst_279 = arith.constant dense<0.000000e+00> : vector<6x512xf32>
    %513 = tpu.matmul %509, %512, %cst_279 {dimension_numbers = #tpu.dot_dimension_numbers<[1], [0], [0], [1], [0, 0, 1, 1], [], []>} : vector<6x32xbf16>, vector<32x512xbf16>, vector<6x512xf32> -> vector<6x512xf32>
    %c0_280 = arith.constant 0 : index
    %c0_281 = arith.constant 0 : index
    %c0_282 = arith.constant 0 : index
    %514 = vector.load %arg37[%c0_280, %c0_281, %c0_282] : memref<2x1x2048xf32, #tpu.memory_space<vmem>>, vector<1x1x512xf32>
    %515 = vector.shape_cast %514 : vector<1x1x512xf32> to vector<1x512xf32>
    %516 = vector.broadcast %515 : vector<1x512xf32> to vector<6x512xf32>
    %517 = arith.addf %513, %516 : vector<6x512xf32>
    %cst_283 = arith.constant 0.000000e+00 : f32
    %518 = vector.broadcast %cst_283 : f32 to vector<6x512xf32>
    %519 = arith.maximumf %517, %518 : vector<6x512xf32>
    %520 = arith.truncf %519 : vector<6x512xf32> to vector<6x512xbf16>
    %c0_284 = arith.constant 0 : index
    %c0_285 = arith.constant 0 : index
    %c0_286 = arith.constant 0 : index
    %521 = vector.load %arg38[%c0_284, %c0_285, %c0_286] : memref<2x2048x32xbf16, #tpu.memory_space<vmem>>, vector<1x512x32xbf16>
    %522 = vector.shape_cast %521 : vector<1x512x32xbf16> to vector<512x32xbf16>
    %cst_287 = arith.constant dense<0.000000e+00> : vector<6x32xf32>
    %523 = tpu.matmul %520, %522, %cst_287 {dimension_numbers = #tpu.dot_dimension_numbers<[1], [0], [0], [1], [0, 0, 1, 1], [], []>} : vector<6x512xbf16>, vector<512x32xbf16>, vector<6x32xf32> -> vector<6x32xf32>
    %524 = arith.addf %510, %523 : vector<6x32xf32>
    %c0_288 = arith.constant 0 : index
    %c0_289 = arith.constant 0 : index
    %c512_290 = arith.constant 512 : index
    %525 = vector.load %arg36[%c0_288, %c0_289, %c512_290] : memref<2x32x2048xbf16, #tpu.memory_space<vmem>>, vector<1x32x512xbf16>
    %526 = vector.shape_cast %525 : vector<1x32x512xbf16> to vector<32x512xbf16>
    %cst_291 = arith.constant dense<0.000000e+00> : vector<6x512xf32>
    %527 = tpu.matmul %509, %526, %cst_291 {dimension_numbers = #tpu.dot_dimension_numbers<[1], [0], [0], [1], [0, 0, 1, 1], [], []>} : vector<6x32xbf16>, vector<32x512xbf16>, vector<6x512xf32> -> vector<6x512xf32>
    %c0_292 = arith.constant 0 : index
    %c0_293 = arith.constant 0 : index
    %c512_294 = arith.constant 512 : index
    %528 = vector.load %arg37[%c0_292, %c0_293, %c512_294] : memref<2x1x2048xf32, #tpu.memory_space<vmem>>, vector<1x1x512xf32>
    %529 = vector.shape_cast %528 : vector<1x1x512xf32> to vector<1x512xf32>
    %530 = vector.broadcast %529 : vector<1x512xf32> to vector<6x512xf32>
    %531 = arith.addf %527, %530 : vector<6x512xf32>
    %cst_295 = arith.constant 0.000000e+00 : f32
    %532 = vector.broadcast %cst_295 : f32 to vector<6x512xf32>
    %533 = arith.maximumf %531, %532 : vector<6x512xf32>
    %534 = arith.truncf %533 : vector<6x512xf32> to vector<6x512xbf16>
    %c0_296 = arith.constant 0 : index
    %c512_297 = arith.constant 512 : index
    %c0_298 = arith.constant 0 : index
    %535 = vector.load %arg38[%c0_296, %c512_297, %c0_298] : memref<2x2048x32xbf16, #tpu.memory_space<vmem>>, vector<1x512x32xbf16>
    %536 = vector.shape_cast %535 : vector<1x512x32xbf16> to vector<512x32xbf16>
    %cst_299 = arith.constant dense<0.000000e+00> : vector<6x32xf32>
    %537 = tpu.matmul %534, %536, %cst_299 {dimension_numbers = #tpu.dot_dimension_numbers<[1], [0], [0], [1], [0, 0, 1, 1], [], []>} : vector<6x512xbf16>, vector<512x32xbf16>, vector<6x32xf32> -> vector<6x32xf32>
    %538 = arith.addf %524, %537 : vector<6x32xf32>
    %c0_300 = arith.constant 0 : index
    %c0_301 = arith.constant 0 : index
    %c1024_302 = arith.constant 1024 : index
    %539 = vector.load %arg36[%c0_300, %c0_301, %c1024_302] : memref<2x32x2048xbf16, #tpu.memory_space<vmem>>, vector<1x32x512xbf16>
    %540 = vector.shape_cast %539 : vector<1x32x512xbf16> to vector<32x512xbf16>
    %cst_303 = arith.constant dense<0.000000e+00> : vector<6x512xf32>
    %541 = tpu.matmul %509, %540, %cst_303 {dimension_numbers = #tpu.dot_dimension_numbers<[1], [0], [0], [1], [0, 0, 1, 1], [], []>} : vector<6x32xbf16>, vector<32x512xbf16>, vector<6x512xf32> -> vector<6x512xf32>
    %c0_304 = arith.constant 0 : index
    %c0_305 = arith.constant 0 : index
    %c1024_306 = arith.constant 1024 : index
    %542 = vector.load %arg37[%c0_304, %c0_305, %c1024_306] : memref<2x1x2048xf32, #tpu.memory_space<vmem>>, vector<1x1x512xf32>
    %543 = vector.shape_cast %542 : vector<1x1x512xf32> to vector<1x512xf32>
    %544 = vector.broadcast %543 : vector<1x512xf32> to vector<6x512xf32>
    %545 = arith.addf %541, %544 : vector<6x512xf32>
    %cst_307 = arith.constant 0.000000e+00 : f32
    %546 = vector.broadcast %cst_307 : f32 to vector<6x512xf32>
    %547 = arith.maximumf %545, %546 : vector<6x512xf32>
    %548 = arith.truncf %547 : vector<6x512xf32> to vector<6x512xbf16>
    %c0_308 = arith.constant 0 : index
    %c1024_309 = arith.constant 1024 : index
    %c0_310 = arith.constant 0 : index
    %549 = vector.load %arg38[%c0_308, %c1024_309, %c0_310] : memref<2x2048x32xbf16, #tpu.memory_space<vmem>>, vector<1x512x32xbf16>
    %550 = vector.shape_cast %549 : vector<1x512x32xbf16> to vector<512x32xbf16>
    %cst_311 = arith.constant dense<0.000000e+00> : vector<6x32xf32>
    %551 = tpu.matmul %548, %550, %cst_311 {dimension_numbers = #tpu.dot_dimension_numbers<[1], [0], [0], [1], [0, 0, 1, 1], [], []>} : vector<6x512xbf16>, vector<512x32xbf16>, vector<6x32xf32> -> vector<6x32xf32>
    %552 = arith.addf %538, %551 : vector<6x32xf32>
    %c0_312 = arith.constant 0 : index
    %c0_313 = arith.constant 0 : index
    %c1536_314 = arith.constant 1536 : index
    %553 = vector.load %arg36[%c0_312, %c0_313, %c1536_314] : memref<2x32x2048xbf16, #tpu.memory_space<vmem>>, vector<1x32x512xbf16>
    %554 = vector.shape_cast %553 : vector<1x32x512xbf16> to vector<32x512xbf16>
    %cst_315 = arith.constant dense<0.000000e+00> : vector<6x512xf32>
    %555 = tpu.matmul %509, %554, %cst_315 {dimension_numbers = #tpu.dot_dimension_numbers<[1], [0], [0], [1], [0, 0, 1, 1], [], []>} : vector<6x32xbf16>, vector<32x512xbf16>, vector<6x512xf32> -> vector<6x512xf32>
    %c0_316 = arith.constant 0 : index
    %c0_317 = arith.constant 0 : index
    %c1536_318 = arith.constant 1536 : index
    %556 = vector.load %arg37[%c0_316, %c0_317, %c1536_318] : memref<2x1x2048xf32, #tpu.memory_space<vmem>>, vector<1x1x512xf32>
    %557 = vector.shape_cast %556 : vector<1x1x512xf32> to vector<1x512xf32>
    %558 = vector.broadcast %557 : vector<1x512xf32> to vector<6x512xf32>
    %559 = arith.addf %555, %558 : vector<6x512xf32>
    %cst_319 = arith.constant 0.000000e+00 : f32
    %560 = vector.broadcast %cst_319 : f32 to vector<6x512xf32>
    %561 = arith.maximumf %559, %560 : vector<6x512xf32>
    %562 = arith.truncf %561 : vector<6x512xf32> to vector<6x512xbf16>
    %c0_320 = arith.constant 0 : index
    %c1536_321 = arith.constant 1536 : index
    %c0_322 = arith.constant 0 : index
    %563 = vector.load %arg38[%c0_320, %c1536_321, %c0_322] : memref<2x2048x32xbf16, #tpu.memory_space<vmem>>, vector<1x512x32xbf16>
    %564 = vector.shape_cast %563 : vector<1x512x32xbf16> to vector<512x32xbf16>
    %cst_323 = arith.constant dense<0.000000e+00> : vector<6x32xf32>
    %565 = tpu.matmul %562, %564, %cst_323 {dimension_numbers = #tpu.dot_dimension_numbers<[1], [0], [0], [1], [0, 0, 1, 1], [], []>} : vector<6x512xbf16>, vector<512x32xbf16>, vector<6x32xf32> -> vector<6x32xf32>
    %566 = arith.addf %552, %565 : vector<6x32xf32>
    %c0_324 = arith.constant 0 : index
    %c0_325 = arith.constant 0 : index
    %c0_326 = arith.constant 0 : index
    %567 = vector.load %arg39[%c0_324, %c0_325, %c0_326] : memref<2x1x32xf32, #tpu.memory_space<vmem>>, vector<1x1x32xf32>
    %568 = vector.shape_cast %567 : vector<1x1x32xf32> to vector<1x32xf32>
    %569 = vector.broadcast %568 : vector<1x32xf32> to vector<6x32xf32>
    %570 = arith.addf %566, %569 : vector<6x32xf32>
    %571 = arith.addf %508, %570 : vector<6x32xf32>
    %c0_327 = arith.constant 0 : index
    %c0_328 = arith.constant 0 : index
    %c0_329 = arith.constant 0 : index
    %572 = vector.load %arg40[%c0_327, %c0_328, %c0_329] : memref<2x1x32xf32, #tpu.memory_space<vmem>>, vector<1x1x32xf32>
    %573 = vector.shape_cast %572 : vector<1x1x32xf32> to vector<1x32xf32>
    %c0_330 = arith.constant 0 : index
    %c0_331 = arith.constant 0 : index
    %c0_332 = arith.constant 0 : index
    %574 = vector.load %arg41[%c0_330, %c0_331, %c0_332] : memref<2x1x32xf32, #tpu.memory_space<vmem>>, vector<1x1x32xf32>
    %575 = vector.shape_cast %574 : vector<1x1x32xf32> to vector<1x32xf32>
    %cst_333 = arith.constant dense<0.000000e+00> : vector<6xf32>
    %576 = vector.multi_reduction <add>, %571, %cst_333 [1] : vector<6x32xf32> to vector<6xf32>
    %577 = vector.shape_cast %576 : vector<6xf32> to vector<6x1xf32>
    %cst_334 = arith.constant 3.200000e+01 : f32
    %578 = vector.broadcast %cst_334 : f32 to vector<6x1xf32>
    %579 = arith.divf %577, %578 : vector<6x1xf32>
    %580 = vector.broadcast %579 : vector<6x1xf32> to vector<6x32xf32>
    %581 = arith.subf %571, %580 : vector<6x32xf32>
    %582 = arith.mulf %581, %581 : vector<6x32xf32>
    %cst_335 = arith.constant dense<0.000000e+00> : vector<6xf32>
    %583 = vector.multi_reduction <add>, %582, %cst_335 [1] : vector<6x32xf32> to vector<6xf32>
    %584 = vector.shape_cast %583 : vector<6xf32> to vector<6x1xf32>
    %cst_336 = arith.constant 3.200000e+01 : f32
    %585 = vector.broadcast %cst_336 : f32 to vector<6x1xf32>
    %586 = arith.divf %584, %585 : vector<6x1xf32>
    %cst_337 = arith.constant 9.99999974E-6 : f32
    %587 = vector.broadcast %cst_337 : f32 to vector<6x1xf32>
    %588 = arith.addf %586, %587 : vector<6x1xf32>
    %589 = math.rsqrt %588 : vector<6x1xf32>
    %590 = vector.broadcast %589 : vector<6x1xf32> to vector<6x32xf32>
    %591 = arith.mulf %581, %590 : vector<6x32xf32>
    %592 = vector.broadcast %573 : vector<1x32xf32> to vector<6x32xf32>
    %593 = arith.mulf %591, %592 : vector<6x32xf32>
    %594 = vector.broadcast %575 : vector<1x32xf32> to vector<6x32xf32>
    %595 = arith.addf %593, %594 : vector<6x32xf32>
    %596 = arith.truncf %595 : vector<6x32xf32> to vector<6x32xbf16>
    %c1_338 = arith.constant 1 : index
    %c0_339 = arith.constant 0 : index
    %c0_340 = arith.constant 0 : index
    %597 = vector.load %arg22[%c1_338, %c0_339, %c0_340] : memref<2x32x96xbf16, #tpu.memory_space<vmem>>, vector<1x32x96xbf16>
    %598 = vector.shape_cast %597 : vector<1x32x96xbf16> to vector<32x96xbf16>
    %cst_341 = arith.constant dense<0.000000e+00> : vector<6x96xf32>
    %599 = tpu.matmul %596, %598, %cst_341 {dimension_numbers = #tpu.dot_dimension_numbers<[1], [0], [0], [1], [0, 0, 1, 1], [], []>} : vector<6x32xbf16>, vector<32x96xbf16>, vector<6x96xf32> -> vector<6x96xf32>
    %c1_342 = arith.constant 1 : index
    %c0_343 = arith.constant 0 : index
    %c0_344 = arith.constant 0 : index
    %600 = vector.load %arg23[%c1_342, %c0_343, %c0_344] : memref<2x1x96xf32, #tpu.memory_space<vmem>>, vector<1x1x96xf32>
    %601 = vector.shape_cast %600 : vector<1x1x96xf32> to vector<1x96xf32>
    %602 = vector.broadcast %601 : vector<1x96xf32> to vector<6x96xf32>
    %603 = arith.addf %599, %602 : vector<6x96xf32>
    %604 = vector.extract_strided_slice %603 {offsets = [0, 0], sizes = [6, 32], strides = [1, 1]} : vector<6x96xf32> to vector<6x32xf32>
    %605 = vector.extract_strided_slice %603 {offsets = [0, 32], sizes = [6, 32], strides = [1, 1]} : vector<6x96xf32> to vector<6x32xf32>
    %606 = vector.extract_strided_slice %603 {offsets = [0, 64], sizes = [6, 32], strides = [1, 1]} : vector<6x96xf32> to vector<6x32xf32>
    %c1_345 = arith.constant 1 : index
    %c0_346 = arith.constant 0 : index
    %c0_347 = arith.constant 0 : index
    %607 = vector.load %arg24[%c1_345, %c0_346, %c0_347] : memref<2x32x32xbf16, #tpu.memory_space<vmem>>, vector<1x32x32xbf16>
    %608 = vector.shape_cast %607 : vector<1x32x32xbf16> to vector<32x32xbf16>
    %c1_348 = arith.constant 1 : index
    %c0_349 = arith.constant 0 : index
    %c0_350 = arith.constant 0 : index
    %609 = vector.load %arg25[%c1_348, %c0_349, %c0_350] : memref<2x1x32xf32, #tpu.memory_space<vmem>>, vector<1x1x32xf32>
    %610 = vector.shape_cast %609 : vector<1x1x32xf32> to vector<1x32xf32>
    %c1_351 = arith.constant 1 : index
    %c0_352 = arith.constant 0 : index
    %c0_353 = arith.constant 0 : index
    %611 = vector.load %arg26[%c1_351, %c0_352, %c0_353] : memref<2x1x32xf32, #tpu.memory_space<vmem>>, vector<1x1x32xf32>
    %612 = vector.shape_cast %611 : vector<1x1x32xf32> to vector<1x32xf32>
    %c1_354 = arith.constant 1 : index
    %c0_355 = arith.constant 0 : index
    %c0_356 = arith.constant 0 : index
    %613 = vector.load %arg27[%c1_354, %c0_355, %c0_356] : memref<2x1x32xf32, #tpu.memory_space<vmem>>, vector<1x1x32xf32>
    %614 = vector.shape_cast %613 : vector<1x1x32xf32> to vector<1x32xf32>
    %615 = vector.shape_cast %604 : vector<6x32xf32> to vector<6x4x8xf32>
    %616 = tpu.transpose %615, [1, 0, 2] : vector<6x4x8xf32> -> vector<4x6x8xf32>
    %617 = arith.truncf %616 : vector<4x6x8xf32> to vector<4x6x8xbf16>
    %618 = vector.shape_cast %605 : vector<6x32xf32> to vector<6x4x8xf32>
    %619 = tpu.transpose %618, [1, 0, 2] : vector<6x4x8xf32> -> vector<4x6x8xf32>
    %620 = arith.truncf %619 : vector<4x6x8xf32> to vector<4x6x8xbf16>
    %621 = vector.shape_cast %606 : vector<6x32xf32> to vector<6x4x8xf32>
    %622 = tpu.transpose %621, [1, 0, 2] : vector<6x4x8xf32> -> vector<4x6x8xf32>
    %623 = arith.truncf %622 : vector<4x6x8xf32> to vector<4x6x8xbf16>
    "tpu.trace_start"() <{level = 10 : i32, message = "hqd,hkd->hqk"}> : () -> ()
    %cst_357 = arith.constant dense<0.000000e+00> : vector<4x6x6xf32>
    %624 = tpu.matmul %617, %620, %cst_357 {dimension_numbers = #tpu.dot_dimension_numbers<[2], [2], [1], [1], [0, 0, 0, 1, 1, 1], [0], [0]>} : vector<4x6x8xbf16>, vector<4x6x8xbf16>, vector<4x6x6xf32> -> vector<4x6x6xf32>
    "tpu.trace_stop"() : () -> ()
    %cst_358 = arith.constant 0.353553385 : f32
    %625 = vector.broadcast %cst_358 : f32 to vector<4x6x6xf32>
    %626 = arith.mulf %624, %625 : vector<4x6x6xf32>
    %627 = vector.shape_cast %9 : vector<6x6xf32> to vector<1x6x6xf32>
    %628 = vector.broadcast %627 : vector<1x6x6xf32> to vector<4x6x6xf32>
    %629 = arith.addf %626, %628 : vector<4x6x6xf32>
    %cst_359 = arith.constant dense<0xFF800000> : vector<4x6xf32>
    %630 = vector.multi_reduction <maximumf>, %629, %cst_359 [2] : vector<4x6x6xf32> to vector<4x6xf32>
    %631 = vector.shape_cast %630 : vector<4x6xf32> to vector<4x6x1xf32>
    %632 = vector.broadcast %631 : vector<4x6x1xf32> to vector<4x6x6xf32>
    %633 = arith.subf %629, %632 : vector<4x6x6xf32>
    %634 = math.exp %633 : vector<4x6x6xf32>
    %cst_360 = arith.constant dense<0.000000e+00> : vector<4x6xf32>
    %635 = vector.multi_reduction <add>, %634, %cst_360 [2] : vector<4x6x6xf32> to vector<4x6xf32>
    %636 = vector.shape_cast %635 : vector<4x6xf32> to vector<4x6x1xf32>
    %637 = vector.broadcast %636 : vector<4x6x1xf32> to vector<4x6x6xf32>
    %638 = arith.divf %634, %637 : vector<4x6x6xf32>
    %639 = arith.truncf %638 : vector<4x6x6xf32> to vector<4x6x6xbf16>
    "tpu.trace_start"() <{level = 10 : i32, message = "hqk,hkd->hqd"}> : () -> ()
    %cst_361 = arith.constant dense<0.000000e+00> : vector<4x6x8xf32>
    %640 = tpu.matmul %639, %623, %cst_361 {dimension_numbers = #tpu.dot_dimension_numbers<[2], [1], [1], [2], [0, 0, 0, 1, 1, 2], [0], [0]>} : vector<4x6x6xbf16>, vector<4x6x8xbf16>, vector<4x6x8xf32> -> vector<4x6x8xf32>
    "tpu.trace_stop"() : () -> ()
    %641 = tpu.transpose %640, [1, 0, 2] : vector<4x6x8xf32> -> vector<6x4x8xf32>
    %642 = vector.shape_cast %641 : vector<6x4x8xf32> to vector<6x32xf32>
    %643 = arith.truncf %642 : vector<6x32xf32> to vector<6x32xbf16>
    %cst_362 = arith.constant dense<0.000000e+00> : vector<6x32xf32>
    %644 = tpu.matmul %643, %608, %cst_362 {dimension_numbers = #tpu.dot_dimension_numbers<[1], [0], [0], [1], [0, 0, 1, 1], [], []>} : vector<6x32xbf16>, vector<32x32xbf16>, vector<6x32xf32> -> vector<6x32xf32>
    %645 = vector.broadcast %610 : vector<1x32xf32> to vector<6x32xf32>
    %646 = arith.addf %644, %645 : vector<6x32xf32>
    %647 = arith.addf %595, %646 : vector<6x32xf32>
    %cst_363 = arith.constant dense<0.000000e+00> : vector<6xf32>
    %648 = vector.multi_reduction <add>, %647, %cst_363 [1] : vector<6x32xf32> to vector<6xf32>
    %649 = vector.shape_cast %648 : vector<6xf32> to vector<6x1xf32>
    %cst_364 = arith.constant 3.200000e+01 : f32
    %650 = vector.broadcast %cst_364 : f32 to vector<6x1xf32>
    %651 = arith.divf %649, %650 : vector<6x1xf32>
    %652 = vector.broadcast %651 : vector<6x1xf32> to vector<6x32xf32>
    %653 = arith.subf %647, %652 : vector<6x32xf32>
    %654 = arith.mulf %653, %653 : vector<6x32xf32>
    %cst_365 = arith.constant dense<0.000000e+00> : vector<6xf32>
    %655 = vector.multi_reduction <add>, %654, %cst_365 [1] : vector<6x32xf32> to vector<6xf32>
    %656 = vector.shape_cast %655 : vector<6xf32> to vector<6x1xf32>
    %cst_366 = arith.constant 3.200000e+01 : f32
    %657 = vector.broadcast %cst_366 : f32 to vector<6x1xf32>
    %658 = arith.divf %656, %657 : vector<6x1xf32>
    %cst_367 = arith.constant 9.99999974E-6 : f32
    %659 = vector.broadcast %cst_367 : f32 to vector<6x1xf32>
    %660 = arith.addf %658, %659 : vector<6x1xf32>
    %661 = math.rsqrt %660 : vector<6x1xf32>
    %662 = vector.broadcast %661 : vector<6x1xf32> to vector<6x32xf32>
    %663 = arith.mulf %653, %662 : vector<6x32xf32>
    %664 = vector.broadcast %612 : vector<1x32xf32> to vector<6x32xf32>
    %665 = arith.mulf %663, %664 : vector<6x32xf32>
    %666 = vector.broadcast %614 : vector<1x32xf32> to vector<6x32xf32>
    %667 = arith.addf %665, %666 : vector<6x32xf32>
    %668 = arith.truncf %667 : vector<6x32xf32> to vector<6x32xbf16>
    %c1_368 = arith.constant 1 : index
    %c0_369 = arith.constant 0 : index
    %c0_370 = arith.constant 0 : index
    %669 = vector.load %arg28[%c1_368, %c0_369, %c0_370] : memref<2x32x32xbf16, #tpu.memory_space<vmem>>, vector<1x32x32xbf16>
    %670 = vector.shape_cast %669 : vector<1x32x32xbf16> to vector<32x32xbf16>
    %cst_371 = arith.constant dense<0.000000e+00> : vector<6x32xf32>
    %671 = tpu.matmul %668, %670, %cst_371 {dimension_numbers = #tpu.dot_dimension_numbers<[1], [0], [0], [1], [0, 0, 1, 1], [], []>} : vector<6x32xbf16>, vector<32x32xbf16>, vector<6x32xf32> -> vector<6x32xf32>
    %c1_372 = arith.constant 1 : index
    %c0_373 = arith.constant 0 : index
    %c0_374 = arith.constant 0 : index
    %672 = vector.load %arg29[%c1_372, %c0_373, %c0_374] : memref<2x1x32xf32, #tpu.memory_space<vmem>>, vector<1x1x32xf32>
    %673 = vector.shape_cast %672 : vector<1x1x32xf32> to vector<1x32xf32>
    %674 = vector.broadcast %673 : vector<1x32xf32> to vector<6x32xf32>
    %675 = arith.addf %671, %674 : vector<6x32xf32>
    %676 = arith.truncf %354 : vector<8x32xf32> to vector<8x32xbf16>
    %c1_375 = arith.constant 1 : index
    %c0_376 = arith.constant 0 : index
    %c0_377 = arith.constant 0 : index
    %677 = vector.load %arg30[%c1_375, %c0_376, %c0_377] : memref<2x32x64xbf16, #tpu.memory_space<vmem>>, vector<1x32x64xbf16>
    %678 = vector.shape_cast %677 : vector<1x32x64xbf16> to vector<32x64xbf16>
    %cst_378 = arith.constant dense<0.000000e+00> : vector<8x64xf32>
    %679 = tpu.matmul %676, %678, %cst_378 {dimension_numbers = #tpu.dot_dimension_numbers<[1], [0], [0], [1], [0, 0, 1, 1], [], []>} : vector<8x32xbf16>, vector<32x64xbf16>, vector<8x64xf32> -> vector<8x64xf32>
    %c1_379 = arith.constant 1 : index
    %c0_380 = arith.constant 0 : index
    %c0_381 = arith.constant 0 : index
    %680 = vector.load %arg31[%c1_379, %c0_380, %c0_381] : memref<2x1x64xf32, #tpu.memory_space<vmem>>, vector<1x1x64xf32>
    %681 = vector.shape_cast %680 : vector<1x1x64xf32> to vector<1x64xf32>
    %682 = vector.broadcast %681 : vector<1x64xf32> to vector<8x64xf32>
    %683 = arith.addf %679, %682 : vector<8x64xf32>
    %684 = vector.extract_strided_slice %683 {offsets = [0, 0], sizes = [8, 32], strides = [1, 1]} : vector<8x64xf32> to vector<8x32xf32>
    %685 = vector.extract_strided_slice %683 {offsets = [0, 32], sizes = [8, 32], strides = [1, 1]} : vector<8x64xf32> to vector<8x32xf32>
    %c1_382 = arith.constant 1 : index
    %c0_383 = arith.constant 0 : index
    %c0_384 = arith.constant 0 : index
    %686 = vector.load %arg32[%c1_382, %c0_383, %c0_384] : memref<2x32x32xbf16, #tpu.memory_space<vmem>>, vector<1x32x32xbf16>
    %687 = vector.shape_cast %686 : vector<1x32x32xbf16> to vector<32x32xbf16>
    %c1_385 = arith.constant 1 : index
    %c0_386 = arith.constant 0 : index
    %c0_387 = arith.constant 0 : index
    %688 = vector.load %arg33[%c1_385, %c0_386, %c0_387] : memref<2x1x32xf32, #tpu.memory_space<vmem>>, vector<1x1x32xf32>
    %689 = vector.shape_cast %688 : vector<1x1x32xf32> to vector<1x32xf32>
    %c1_388 = arith.constant 1 : index
    %c0_389 = arith.constant 0 : index
    %c0_390 = arith.constant 0 : index
    %690 = vector.load %arg34[%c1_388, %c0_389, %c0_390] : memref<2x1x32xf32, #tpu.memory_space<vmem>>, vector<1x1x32xf32>
    %691 = vector.shape_cast %690 : vector<1x1x32xf32> to vector<1x32xf32>
    %c1_391 = arith.constant 1 : index
    %c0_392 = arith.constant 0 : index
    %c0_393 = arith.constant 0 : index
    %692 = vector.load %arg35[%c1_391, %c0_392, %c0_393] : memref<2x1x32xf32, #tpu.memory_space<vmem>>, vector<1x1x32xf32>
    %693 = vector.shape_cast %692 : vector<1x1x32xf32> to vector<1x32xf32>
    %694 = vector.shape_cast %675 : vector<6x32xf32> to vector<6x4x8xf32>
    %695 = tpu.transpose %694, [1, 0, 2] : vector<6x4x8xf32> -> vector<4x6x8xf32>
    %696 = arith.truncf %695 : vector<4x6x8xf32> to vector<4x6x8xbf16>
    %697 = vector.shape_cast %684 : vector<8x32xf32> to vector<8x4x8xf32>
    %698 = tpu.transpose %697, [1, 0, 2] : vector<8x4x8xf32> -> vector<4x8x8xf32>
    %699 = arith.truncf %698 : vector<4x8x8xf32> to vector<4x8x8xbf16>
    %700 = vector.shape_cast %685 : vector<8x32xf32> to vector<8x4x8xf32>
    %701 = tpu.transpose %700, [1, 0, 2] : vector<8x4x8xf32> -> vector<4x8x8xf32>
    %702 = arith.truncf %701 : vector<4x8x8xf32> to vector<4x8x8xbf16>
    "tpu.trace_start"() <{level = 10 : i32, message = "hqd,hkd->hqk"}> : () -> ()
    %cst_394 = arith.constant dense<0.000000e+00> : vector<4x6x8xf32>
    %703 = tpu.matmul %696, %699, %cst_394 {dimension_numbers = #tpu.dot_dimension_numbers<[2], [2], [1], [1], [0, 0, 0, 1, 1, 1], [0], [0]>} : vector<4x6x8xbf16>, vector<4x8x8xbf16>, vector<4x6x8xf32> -> vector<4x6x8xf32>
    "tpu.trace_stop"() : () -> ()
    %cst_395 = arith.constant 0.353553385 : f32
    %704 = vector.broadcast %cst_395 : f32 to vector<4x6x8xf32>
    %705 = arith.mulf %703, %704 : vector<4x6x8xf32>
    %706 = vector.shape_cast %11 : vector<1x8xf32> to vector<1x1x8xf32>
    %707 = vector.broadcast %706 : vector<1x1x8xf32> to vector<4x6x8xf32>
    %708 = arith.addf %705, %707 : vector<4x6x8xf32>
    %cst_396 = arith.constant dense<0xFF800000> : vector<4x6xf32>
    %709 = vector.multi_reduction <maximumf>, %708, %cst_396 [2] : vector<4x6x8xf32> to vector<4x6xf32>
    %710 = vector.shape_cast %709 : vector<4x6xf32> to vector<4x6x1xf32>
    %711 = vector.broadcast %710 : vector<4x6x1xf32> to vector<4x6x8xf32>
    %712 = arith.subf %708, %711 : vector<4x6x8xf32>
    %713 = math.exp %712 : vector<4x6x8xf32>
    %cst_397 = arith.constant dense<0.000000e+00> : vector<4x6xf32>
    %714 = vector.multi_reduction <add>, %713, %cst_397 [2] : vector<4x6x8xf32> to vector<4x6xf32>
    %715 = vector.shape_cast %714 : vector<4x6xf32> to vector<4x6x1xf32>
    %716 = vector.broadcast %715 : vector<4x6x1xf32> to vector<4x6x8xf32>
    %717 = arith.divf %713, %716 : vector<4x6x8xf32>
    %718 = arith.truncf %717 : vector<4x6x8xf32> to vector<4x6x8xbf16>
    "tpu.trace_start"() <{level = 10 : i32, message = "hqk,hkd->hqd"}> : () -> ()
    %cst_398 = arith.constant dense<0.000000e+00> : vector<4x6x8xf32>
    %719 = tpu.matmul %718, %702, %cst_398 {dimension_numbers = #tpu.dot_dimension_numbers<[2], [1], [1], [2], [0, 0, 0, 1, 1, 2], [0], [0]>} : vector<4x6x8xbf16>, vector<4x8x8xbf16>, vector<4x6x8xf32> -> vector<4x6x8xf32>
    "tpu.trace_stop"() : () -> ()
    %720 = tpu.transpose %719, [1, 0, 2] : vector<4x6x8xf32> -> vector<6x4x8xf32>
    %721 = vector.shape_cast %720 : vector<6x4x8xf32> to vector<6x32xf32>
    %722 = arith.truncf %721 : vector<6x32xf32> to vector<6x32xbf16>
    %cst_399 = arith.constant dense<0.000000e+00> : vector<6x32xf32>
    %723 = tpu.matmul %722, %687, %cst_399 {dimension_numbers = #tpu.dot_dimension_numbers<[1], [0], [0], [1], [0, 0, 1, 1], [], []>} : vector<6x32xbf16>, vector<32x32xbf16>, vector<6x32xf32> -> vector<6x32xf32>
    %724 = vector.broadcast %689 : vector<1x32xf32> to vector<6x32xf32>
    %725 = arith.addf %723, %724 : vector<6x32xf32>
    %726 = arith.addf %667, %725 : vector<6x32xf32>
    %cst_400 = arith.constant dense<0.000000e+00> : vector<6xf32>
    %727 = vector.multi_reduction <add>, %726, %cst_400 [1] : vector<6x32xf32> to vector<6xf32>
    %728 = vector.shape_cast %727 : vector<6xf32> to vector<6x1xf32>
    %cst_401 = arith.constant 3.200000e+01 : f32
    %729 = vector.broadcast %cst_401 : f32 to vector<6x1xf32>
    %730 = arith.divf %728, %729 : vector<6x1xf32>
    %731 = vector.broadcast %730 : vector<6x1xf32> to vector<6x32xf32>
    %732 = arith.subf %726, %731 : vector<6x32xf32>
    %733 = arith.mulf %732, %732 : vector<6x32xf32>
    %cst_402 = arith.constant dense<0.000000e+00> : vector<6xf32>
    %734 = vector.multi_reduction <add>, %733, %cst_402 [1] : vector<6x32xf32> to vector<6xf32>
    %735 = vector.shape_cast %734 : vector<6xf32> to vector<6x1xf32>
    %cst_403 = arith.constant 3.200000e+01 : f32
    %736 = vector.broadcast %cst_403 : f32 to vector<6x1xf32>
    %737 = arith.divf %735, %736 : vector<6x1xf32>
    %cst_404 = arith.constant 9.99999974E-6 : f32
    %738 = vector.broadcast %cst_404 : f32 to vector<6x1xf32>
    %739 = arith.addf %737, %738 : vector<6x1xf32>
    %740 = math.rsqrt %739 : vector<6x1xf32>
    %741 = vector.broadcast %740 : vector<6x1xf32> to vector<6x32xf32>
    %742 = arith.mulf %732, %741 : vector<6x32xf32>
    %743 = vector.broadcast %691 : vector<1x32xf32> to vector<6x32xf32>
    %744 = arith.mulf %742, %743 : vector<6x32xf32>
    %745 = vector.broadcast %693 : vector<1x32xf32> to vector<6x32xf32>
    %746 = arith.addf %744, %745 : vector<6x32xf32>
    %747 = arith.truncf %746 : vector<6x32xf32> to vector<6x32xbf16>
    %cst_405 = arith.constant 0.000000e+00 : f32
    %748 = vector.broadcast %cst_405 : f32 to vector<6x32xf32>
    %c1_406 = arith.constant 1 : index
    %c0_407 = arith.constant 0 : index
    %c0_408 = arith.constant 0 : index
    %749 = vector.load %arg36[%c1_406, %c0_407, %c0_408] : memref<2x32x2048xbf16, #tpu.memory_space<vmem>>, vector<1x32x512xbf16>
    %750 = vector.shape_cast %749 : vector<1x32x512xbf16> to vector<32x512xbf16>
    %cst_409 = arith.constant dense<0.000000e+00> : vector<6x512xf32>
    %751 = tpu.matmul %747, %750, %cst_409 {dimension_numbers = #tpu.dot_dimension_numbers<[1], [0], [0], [1], [0, 0, 1, 1], [], []>} : vector<6x32xbf16>, vector<32x512xbf16>, vector<6x512xf32> -> vector<6x512xf32>
    %c1_410 = arith.constant 1 : index
    %c0_411 = arith.constant 0 : index
    %c0_412 = arith.constant 0 : index
    %752 = vector.load %arg37[%c1_410, %c0_411, %c0_412] : memref<2x1x2048xf32, #tpu.memory_space<vmem>>, vector<1x1x512xf32>
    %753 = vector.shape_cast %752 : vector<1x1x512xf32> to vector<1x512xf32>
    %754 = vector.broadcast %753 : vector<1x512xf32> to vector<6x512xf32>
    %755 = arith.addf %751, %754 : vector<6x512xf32>
    %cst_413 = arith.constant 0.000000e+00 : f32
    %756 = vector.broadcast %cst_413 : f32 to vector<6x512xf32>
    %757 = arith.maximumf %755, %756 : vector<6x512xf32>
    %758 = arith.truncf %757 : vector<6x512xf32> to vector<6x512xbf16>
    %c1_414 = arith.constant 1 : index
    %c0_415 = arith.constant 0 : index
    %c0_416 = arith.constant 0 : index
    %759 = vector.load %arg38[%c1_414, %c0_415, %c0_416] : memref<2x2048x32xbf16, #tpu.memory_space<vmem>>, vector<1x512x32xbf16>
    %760 = vector.shape_cast %759 : vector<1x512x32xbf16> to vector<512x32xbf16>
    %cst_417 = arith.constant dense<0.000000e+00> : vector<6x32xf32>
    %761 = tpu.matmul %758, %760, %cst_417 {dimension_numbers = #tpu.dot_dimension_numbers<[1], [0], [0], [1], [0, 0, 1, 1], [], []>} : vector<6x512xbf16>, vector<512x32xbf16>, vector<6x32xf32> -> vector<6x32xf32>
    %762 = arith.addf %748, %761 : vector<6x32xf32>
    %c1_418 = arith.constant 1 : index
    %c0_419 = arith.constant 0 : index
    %c512_420 = arith.constant 512 : index
    %763 = vector.load %arg36[%c1_418, %c0_419, %c512_420] : memref<2x32x2048xbf16, #tpu.memory_space<vmem>>, vector<1x32x512xbf16>
    %764 = vector.shape_cast %763 : vector<1x32x512xbf16> to vector<32x512xbf16>
    %cst_421 = arith.constant dense<0.000000e+00> : vector<6x512xf32>
    %765 = tpu.matmul %747, %764, %cst_421 {dimension_numbers = #tpu.dot_dimension_numbers<[1], [0], [0], [1], [0, 0, 1, 1], [], []>} : vector<6x32xbf16>, vector<32x512xbf16>, vector<6x512xf32> -> vector<6x512xf32>
    %c1_422 = arith.constant 1 : index
    %c0_423 = arith.constant 0 : index
    %c512_424 = arith.constant 512 : index
    %766 = vector.load %arg37[%c1_422, %c0_423, %c512_424] : memref<2x1x2048xf32, #tpu.memory_space<vmem>>, vector<1x1x512xf32>
    %767 = vector.shape_cast %766 : vector<1x1x512xf32> to vector<1x512xf32>
    %768 = vector.broadcast %767 : vector<1x512xf32> to vector<6x512xf32>
    %769 = arith.addf %765, %768 : vector<6x512xf32>
    %cst_425 = arith.constant 0.000000e+00 : f32
    %770 = vector.broadcast %cst_425 : f32 to vector<6x512xf32>
    %771 = arith.maximumf %769, %770 : vector<6x512xf32>
    %772 = arith.truncf %771 : vector<6x512xf32> to vector<6x512xbf16>
    %c1_426 = arith.constant 1 : index
    %c512_427 = arith.constant 512 : index
    %c0_428 = arith.constant 0 : index
    %773 = vector.load %arg38[%c1_426, %c512_427, %c0_428] : memref<2x2048x32xbf16, #tpu.memory_space<vmem>>, vector<1x512x32xbf16>
    %774 = vector.shape_cast %773 : vector<1x512x32xbf16> to vector<512x32xbf16>
    %cst_429 = arith.constant dense<0.000000e+00> : vector<6x32xf32>
    %775 = tpu.matmul %772, %774, %cst_429 {dimension_numbers = #tpu.dot_dimension_numbers<[1], [0], [0], [1], [0, 0, 1, 1], [], []>} : vector<6x512xbf16>, vector<512x32xbf16>, vector<6x32xf32> -> vector<6x32xf32>
    %776 = arith.addf %762, %775 : vector<6x32xf32>
    %c1_430 = arith.constant 1 : index
    %c0_431 = arith.constant 0 : index
    %c1024_432 = arith.constant 1024 : index
    %777 = vector.load %arg36[%c1_430, %c0_431, %c1024_432] : memref<2x32x2048xbf16, #tpu.memory_space<vmem>>, vector<1x32x512xbf16>
    %778 = vector.shape_cast %777 : vector<1x32x512xbf16> to vector<32x512xbf16>
    %cst_433 = arith.constant dense<0.000000e+00> : vector<6x512xf32>
    %779 = tpu.matmul %747, %778, %cst_433 {dimension_numbers = #tpu.dot_dimension_numbers<[1], [0], [0], [1], [0, 0, 1, 1], [], []>} : vector<6x32xbf16>, vector<32x512xbf16>, vector<6x512xf32> -> vector<6x512xf32>
    %c1_434 = arith.constant 1 : index
    %c0_435 = arith.constant 0 : index
    %c1024_436 = arith.constant 1024 : index
    %780 = vector.load %arg37[%c1_434, %c0_435, %c1024_436] : memref<2x1x2048xf32, #tpu.memory_space<vmem>>, vector<1x1x512xf32>
    %781 = vector.shape_cast %780 : vector<1x1x512xf32> to vector<1x512xf32>
    %782 = vector.broadcast %781 : vector<1x512xf32> to vector<6x512xf32>
    %783 = arith.addf %779, %782 : vector<6x512xf32>
    %cst_437 = arith.constant 0.000000e+00 : f32
    %784 = vector.broadcast %cst_437 : f32 to vector<6x512xf32>
    %785 = arith.maximumf %783, %784 : vector<6x512xf32>
    %786 = arith.truncf %785 : vector<6x512xf32> to vector<6x512xbf16>
    %c1_438 = arith.constant 1 : index
    %c1024_439 = arith.constant 1024 : index
    %c0_440 = arith.constant 0 : index
    %787 = vector.load %arg38[%c1_438, %c1024_439, %c0_440] : memref<2x2048x32xbf16, #tpu.memory_space<vmem>>, vector<1x512x32xbf16>
    %788 = vector.shape_cast %787 : vector<1x512x32xbf16> to vector<512x32xbf16>
    %cst_441 = arith.constant dense<0.000000e+00> : vector<6x32xf32>
    %789 = tpu.matmul %786, %788, %cst_441 {dimension_numbers = #tpu.dot_dimension_numbers<[1], [0], [0], [1], [0, 0, 1, 1], [], []>} : vector<6x512xbf16>, vector<512x32xbf16>, vector<6x32xf32> -> vector<6x32xf32>
    %790 = arith.addf %776, %789 : vector<6x32xf32>
    %c1_442 = arith.constant 1 : index
    %c0_443 = arith.constant 0 : index
    %c1536_444 = arith.constant 1536 : index
    %791 = vector.load %arg36[%c1_442, %c0_443, %c1536_444] : memref<2x32x2048xbf16, #tpu.memory_space<vmem>>, vector<1x32x512xbf16>
    %792 = vector.shape_cast %791 : vector<1x32x512xbf16> to vector<32x512xbf16>
    %cst_445 = arith.constant dense<0.000000e+00> : vector<6x512xf32>
    %793 = tpu.matmul %747, %792, %cst_445 {dimension_numbers = #tpu.dot_dimension_numbers<[1], [0], [0], [1], [0, 0, 1, 1], [], []>} : vector<6x32xbf16>, vector<32x512xbf16>, vector<6x512xf32> -> vector<6x512xf32>
    %c1_446 = arith.constant 1 : index
    %c0_447 = arith.constant 0 : index
    %c1536_448 = arith.constant 1536 : index
    %794 = vector.load %arg37[%c1_446, %c0_447, %c1536_448] : memref<2x1x2048xf32, #tpu.memory_space<vmem>>, vector<1x1x512xf32>
    %795 = vector.shape_cast %794 : vector<1x1x512xf32> to vector<1x512xf32>
    %796 = vector.broadcast %795 : vector<1x512xf32> to vector<6x512xf32>
    %797 = arith.addf %793, %796 : vector<6x512xf32>
    %cst_449 = arith.constant 0.000000e+00 : f32
    %798 = vector.broadcast %cst_449 : f32 to vector<6x512xf32>
    %799 = arith.maximumf %797, %798 : vector<6x512xf32>
    %800 = arith.truncf %799 : vector<6x512xf32> to vector<6x512xbf16>
    %c1_450 = arith.constant 1 : index
    %c1536_451 = arith.constant 1536 : index
    %c0_452 = arith.constant 0 : index
    %801 = vector.load %arg38[%c1_450, %c1536_451, %c0_452] : memref<2x2048x32xbf16, #tpu.memory_space<vmem>>, vector<1x512x32xbf16>
    %802 = vector.shape_cast %801 : vector<1x512x32xbf16> to vector<512x32xbf16>
    %cst_453 = arith.constant dense<0.000000e+00> : vector<6x32xf32>
    %803 = tpu.matmul %800, %802, %cst_453 {dimension_numbers = #tpu.dot_dimension_numbers<[1], [0], [0], [1], [0, 0, 1, 1], [], []>} : vector<6x512xbf16>, vector<512x32xbf16>, vector<6x32xf32> -> vector<6x32xf32>
    %804 = arith.addf %790, %803 : vector<6x32xf32>
    %c1_454 = arith.constant 1 : index
    %c0_455 = arith.constant 0 : index
    %c0_456 = arith.constant 0 : index
    %805 = vector.load %arg39[%c1_454, %c0_455, %c0_456] : memref<2x1x32xf32, #tpu.memory_space<vmem>>, vector<1x1x32xf32>
    %806 = vector.shape_cast %805 : vector<1x1x32xf32> to vector<1x32xf32>
    %807 = vector.broadcast %806 : vector<1x32xf32> to vector<6x32xf32>
    %808 = arith.addf %804, %807 : vector<6x32xf32>
    %809 = arith.addf %746, %808 : vector<6x32xf32>
    %c1_457 = arith.constant 1 : index
    %c0_458 = arith.constant 0 : index
    %c0_459 = arith.constant 0 : index
    %810 = vector.load %arg40[%c1_457, %c0_458, %c0_459] : memref<2x1x32xf32, #tpu.memory_space<vmem>>, vector<1x1x32xf32>
    %811 = vector.shape_cast %810 : vector<1x1x32xf32> to vector<1x32xf32>
    %c1_460 = arith.constant 1 : index
    %c0_461 = arith.constant 0 : index
    %c0_462 = arith.constant 0 : index
    %812 = vector.load %arg41[%c1_460, %c0_461, %c0_462] : memref<2x1x32xf32, #tpu.memory_space<vmem>>, vector<1x1x32xf32>
    %813 = vector.shape_cast %812 : vector<1x1x32xf32> to vector<1x32xf32>
    %cst_463 = arith.constant dense<0.000000e+00> : vector<6xf32>
    %814 = vector.multi_reduction <add>, %809, %cst_463 [1] : vector<6x32xf32> to vector<6xf32>
    %815 = vector.shape_cast %814 : vector<6xf32> to vector<6x1xf32>
    %cst_464 = arith.constant 3.200000e+01 : f32
    %816 = vector.broadcast %cst_464 : f32 to vector<6x1xf32>
    %817 = arith.divf %815, %816 : vector<6x1xf32>
    %818 = vector.broadcast %817 : vector<6x1xf32> to vector<6x32xf32>
    %819 = arith.subf %809, %818 : vector<6x32xf32>
    %820 = arith.mulf %819, %819 : vector<6x32xf32>
    %cst_465 = arith.constant dense<0.000000e+00> : vector<6xf32>
    %821 = vector.multi_reduction <add>, %820, %cst_465 [1] : vector<6x32xf32> to vector<6xf32>
    %822 = vector.shape_cast %821 : vector<6xf32> to vector<6x1xf32>
    %cst_466 = arith.constant 3.200000e+01 : f32
    %823 = vector.broadcast %cst_466 : f32 to vector<6x1xf32>
    %824 = arith.divf %822, %823 : vector<6x1xf32>
    %cst_467 = arith.constant 9.99999974E-6 : f32
    %825 = vector.broadcast %cst_467 : f32 to vector<6x1xf32>
    %826 = arith.addf %824, %825 : vector<6x1xf32>
    %827 = math.rsqrt %826 : vector<6x1xf32>
    %828 = vector.broadcast %827 : vector<6x1xf32> to vector<6x32xf32>
    %829 = arith.mulf %819, %828 : vector<6x32xf32>
    %830 = vector.broadcast %811 : vector<1x32xf32> to vector<6x32xf32>
    %831 = arith.mulf %829, %830 : vector<6x32xf32>
    %832 = vector.broadcast %813 : vector<1x32xf32> to vector<6x32xf32>
    %833 = arith.addf %831, %832 : vector<6x32xf32>
    %c0_468 = arith.constant 0 : index
    %c0_469 = arith.constant 0 : index
    %834 = vector.load %arg42[%c0_468, %c0_469] : memref<1x32xf32, #tpu.memory_space<vmem>>, vector<1x32xf32>
    %c0_470 = arith.constant 0 : index
    %c0_471 = arith.constant 0 : index
    %835 = vector.load %arg43[%c0_470, %c0_471] : memref<1x32xf32, #tpu.memory_space<vmem>>, vector<1x32xf32>
    %cst_472 = arith.constant dense<0.000000e+00> : vector<6xf32>
    %836 = vector.multi_reduction <add>, %833, %cst_472 [1] : vector<6x32xf32> to vector<6xf32>
    %837 = vector.shape_cast %836 : vector<6xf32> to vector<6x1xf32>
    %cst_473 = arith.constant 3.200000e+01 : f32
    %838 = vector.broadcast %cst_473 : f32 to vector<6x1xf32>
    %839 = arith.divf %837, %838 : vector<6x1xf32>
    %840 = vector.broadcast %839 : vector<6x1xf32> to vector<6x32xf32>
    %841 = arith.subf %833, %840 : vector<6x32xf32>
    %842 = arith.mulf %841, %841 : vector<6x32xf32>
    %cst_474 = arith.constant dense<0.000000e+00> : vector<6xf32>
    %843 = vector.multi_reduction <add>, %842, %cst_474 [1] : vector<6x32xf32> to vector<6xf32>
    %844 = vector.shape_cast %843 : vector<6xf32> to vector<6x1xf32>
    %cst_475 = arith.constant 3.200000e+01 : f32
    %845 = vector.broadcast %cst_475 : f32 to vector<6x1xf32>
    %846 = arith.divf %844, %845 : vector<6x1xf32>
    %cst_476 = arith.constant 9.99999974E-6 : f32
    %847 = vector.broadcast %cst_476 : f32 to vector<6x1xf32>
    %848 = arith.addf %846, %847 : vector<6x1xf32>
    %849 = math.rsqrt %848 : vector<6x1xf32>
    %850 = vector.broadcast %849 : vector<6x1xf32> to vector<6x32xf32>
    %851 = arith.mulf %841, %850 : vector<6x32xf32>
    %852 = vector.broadcast %834 : vector<1x32xf32> to vector<6x32xf32>
    %853 = arith.mulf %851, %852 : vector<6x32xf32>
    %854 = vector.broadcast %835 : vector<1x32xf32> to vector<6x32xf32>
    %855 = arith.addf %853, %854 : vector<6x32xf32>
    %856 = arith.truncf %855 : vector<6x32xf32> to vector<6x32xbf16>
    %c0_477 = arith.constant 0 : index
    %c0_478 = arith.constant 0 : index
    %857 = vector.load %arg44[%c0_477, %c0_478] : memref<32x128xbf16, #tpu.memory_space<vmem>>, vector<32x128xbf16>
    %cst_479 = arith.constant dense<0.000000e+00> : vector<6x128xf32>
    %858 = tpu.matmul %856, %857, %cst_479 {dimension_numbers = #tpu.dot_dimension_numbers<[1], [0], [0], [1], [0, 0, 1, 1], [], []>} : vector<6x32xbf16>, vector<32x128xbf16>, vector<6x128xf32> -> vector<6x128xf32>
    %c0_480 = arith.constant 0 : index
    %c0_481 = arith.constant 0 : index
    %859 = vector.load %arg45[%c0_480, %c0_481] : memref<1x128xf32, #tpu.memory_space<vmem>>, vector<1x128xf32>
    %860 = vector.broadcast %859 : vector<1x128xf32> to vector<6x128xf32>
    %861 = arith.addf %858, %860 : vector<6x128xf32>
    %c0_482 = arith.constant 0 : index
    %c0_483 = arith.constant 0 : index
    %c0_484 = arith.constant 0 : index
    %862 = vector.load %arg46[%c0_482, %c0_483, %c0_484] : memref<1x6x128xf32, #tpu.memory_space<vmem>>, vector<1x6x128xf32>
    %863 = vector.shape_cast %862 : vector<1x6x128xf32> to vector<6x128xf32>
    %864 = vector.shape_cast %861 : vector<6x128xf32> to vector<1x6x128xf32>
    tpu.vector_store %arg46[%c0_482, %c0_483, %c0_484], %864 {strides = array<i32>} : memref<1x6x128xf32, #tpu.memory_space<vmem>>, vector<1x6x128xf32>,
    return
  }
  func.func @transform_0(%arg0: i32) -> (i32, i32, i32) {
    %c0_i32 = arith.constant 0 : i32
    %c0_i32_0 = arith.constant 0 : i32
    %c0_i32_1 = arith.constant 0 : i32
    return %arg0, %c0_i32, %c0_i32_0 : i32, i32, i32
  }
  func.func @transform_1(%arg0: i32) -> (i32, i32, i32) {
    %c0_i32 = arith.constant 0 : i32
    %c0_i32_0 = arith.constant 0 : i32
    %c0_i32_1 = arith.constant 0 : i32
    return %arg0, %c0_i32, %c0_i32_0 : i32, i32, i32
  }
  func.func @transform_2(%arg0: i32) -> (i32, i32) {
    %c0_i32 = arith.constant 0 : i32
    %c0_i32_0 = arith.constant 0 : i32
    %c0_i32_1 = arith.constant 0 : i32
    return %c0_i32, %c0_i32_0 : i32, i32
  }
  func.func @transform_3(%arg0: i32) -> (i32, i32) {
    %c0_i32 = arith.constant 0 : i32
    %c0_i32_0 = arith.constant 0 : i32
    %c0_i32_1 = arith.constant 0 : i32
    return %c0_i32, %c0_i32_0 : i32, i32
  }
  func.func @transform_4(%arg0: i32) -> (i32, i32, i32) {
    %c0_i32 = arith.constant 0 : i32
    %c0_i32_0 = arith.constant 0 : i32
    %c0_i32_1 = arith.constant 0 : i32
    return %arg0, %c0_i32, %c0_i32_0 : i32, i32, i32
  }
  func.func @transform_5(%arg0: i32) -> (i32, i32, i32) {
    %c0_i32 = arith.constant 0 : i32
    %c0_i32_0 = arith.constant 0 : i32
    %c0_i32_1 = arith.constant 0 : i32
    return %arg0, %c0_i32, %c0_i32_0 : i32, i32, i32
  }
  func.func @transform_6(%arg0: i32) -> (i32, i32, i32) {
    %c0_i32 = arith.constant 0 : i32
    %c0_i32_0 = arith.constant 0 : i32
    %c0_i32_1 = arith.constant 0 : i32
    return %arg0, %c0_i32, %c0_i32_0 : i32, i32, i32
  }
  func.func @transform_7(%arg0: i32) -> (i32, i32, i32) {
    %c0_i32 = arith.constant 0 : i32
    %c0_i32_0 = arith.constant 0 : i32
    %c0_i32_1 = arith.constant 0 : i32
    %c0_i32_2 = arith.constant 0 : i32
    return %c0_i32, %c0_i32_0, %c0_i32_1 : i32, i32, i32
  }
  func.func @transform_8(%arg0: i32) -> (i32, i32, i32) {
    %c0_i32 = arith.constant 0 : i32
    %c0_i32_0 = arith.constant 0 : i32
    %c0_i32_1 = arith.constant 0 : i32
    %c0_i32_2 = arith.constant 0 : i32
    return %c0_i32, %c0_i32_0, %c0_i32_1 : i32, i32, i32
  }
  func.func @transform_9(%arg0: i32) -> (i32, i32, i32) {
    %c0_i32 = arith.constant 0 : i32
    %c0_i32_0 = arith.constant 0 : i32
    %c0_i32_1 = arith.constant 0 : i32
    %c0_i32_2 = arith.constant 0 : i32
    return %c0_i32, %c0_i32_0, %c0_i32_1 : i32, i32, i32
  }
  func.func @transform_10(%arg0: i32) -> (i32, i32, i32) {
    %c0_i32 = arith.constant 0 : i32
    %c0_i32_0 = arith.constant 0 : i32
    %c0_i32_1 = arith.constant 0 : i32
    %c0_i32_2 = arith.constant 0 : i32
    return %c0_i32, %c0_i32_0, %c0_i32_1 : i32, i32, i32
  }
  func.func @transform_11(%arg0: i32) -> (i32, i32, i32) {
    %c0_i32 = arith.constant 0 : i32
    %c0_i32_0 = arith.constant 0 : i32
    %c0_i32_1 = arith.constant 0 : i32
    %c0_i32_2 = arith.constant 0 : i32
    return %c0_i32, %c0_i32_0, %c0_i32_1 : i32, i32, i32
  }
  func.func @transform_12(%arg0: i32) -> (i32, i32, i32) {
    %c0_i32 = arith.constant 0 : i32
    %c0_i32_0 = arith.constant 0 : i32
    %c0_i32_1 = arith.constant 0 : i32
    %c0_i32_2 = arith.constant 0 : i32
    return %c0_i32, %c0_i32_0, %c0_i32_1 : i32, i32, i32
  }
  func.func @transform_13(%arg0: i32) -> (i32, i32, i32) {
    %c0_i32 = arith.constant 0 : i32
    %c0_i32_0 = arith.constant 0 : i32
    %c0_i32_1 = arith.constant 0 : i32
    %c0_i32_2 = arith.constant 0 : i32
    return %c0_i32, %c0_i32_0, %c0_i32_1 : i32, i32, i32
  }
  func.func @transform_14(%arg0: i32) -> (i32, i32, i32) {
    %c0_i32 = arith.constant 0 : i32
    %c0_i32_0 = arith.constant 0 : i32
    %c0_i32_1 = arith.constant 0 : i32
    %c0_i32_2 = arith.constant 0 : i32
    return %c0_i32, %c0_i32_0, %c0_i32_1 : i32, i32, i32
  }
  func.func @transform_15(%arg0: i32) -> (i32, i32, i32) {
    %c0_i32 = arith.constant 0 : i32
    %c0_i32_0 = arith.constant 0 : i32
    %c0_i32_1 = arith.constant 0 : i32
    %c0_i32_2 = arith.constant 0 : i32
    return %c0_i32, %c0_i32_0, %c0_i32_1 : i32, i32, i32
  }
  func.func @transform_16(%arg0: i32) -> (i32, i32, i32) {
    %c0_i32 = arith.constant 0 : i32
    %c0_i32_0 = arith.constant 0 : i32
    %c0_i32_1 = arith.constant 0 : i32
    %c0_i32_2 = arith.constant 0 : i32
    return %c0_i32, %c0_i32_0, %c0_i32_1 : i32, i32, i32
  }
  func.func @transform_17(%arg0: i32) -> (i32, i32, i32) {
    %c0_i32 = arith.constant 0 : i32
    %c0_i32_0 = arith.constant 0 : i32
    %c0_i32_1 = arith.constant 0 : i32
    %c0_i32_2 = arith.constant 0 : i32
    return %c0_i32, %c0_i32_0, %c0_i32_1 : i32, i32, i32
  }
  func.func @transform_18(%arg0: i32) -> (i32, i32, i32) {
    %c0_i32 = arith.constant 0 : i32
    %c0_i32_0 = arith.constant 0 : i32
    %c0_i32_1 = arith.constant 0 : i32
    %c0_i32_2 = arith.constant 0 : i32
    return %c0_i32, %c0_i32_0, %c0_i32_1 : i32, i32, i32
  }
  func.func @transform_19(%arg0: i32) -> (i32, i32) {
    %c0_i32 = arith.constant 0 : i32
    %c0_i32_0 = arith.constant 0 : i32
    %c0_i32_1 = arith.constant 0 : i32
    return %c0_i32, %c0_i32_0 : i32, i32
  }
  func.func @transform_20(%arg0: i32) -> (i32, i32) {
    %c0_i32 = arith.constant 0 : i32
    %c0_i32_0 = arith.constant 0 : i32
    %c0_i32_1 = arith.constant 0 : i32
    return %c0_i32, %c0_i32_0 : i32, i32
  }
  func.func @transform_21(%arg0: i32) -> (i32, i32, i32) {
    %c0_i32 = arith.constant 0 : i32
    %c0_i32_0 = arith.constant 0 : i32
    %c0_i32_1 = arith.constant 0 : i32
    %c0_i32_2 = arith.constant 0 : i32
    return %c0_i32, %c0_i32_0, %c0_i32_1 : i32, i32, i32
  }
  func.func @transform_22(%arg0: i32) -> (i32, i32, i32) {
    %c0_i32 = arith.constant 0 : i32
    %c0_i32_0 = arith.constant 0 : i32
    %c0_i32_1 = arith.constant 0 : i32
    %c0_i32_2 = arith.constant 0 : i32
    return %c0_i32, %c0_i32_0, %c0_i32_1 : i32, i32, i32
  }
  func.func @transform_23(%arg0: i32) -> (i32, i32, i32) {
    %c0_i32 = arith.constant 0 : i32
    %c0_i32_0 = arith.constant 0 : i32
    %c0_i32_1 = arith.constant 0 : i32
    %c0_i32_2 = arith.constant 0 : i32
    return %c0_i32, %c0_i32_0, %c0_i32_1 : i32, i32, i32
  }
  func.func @transform_24(%arg0: i32) -> (i32, i32, i32) {
    %c0_i32 = arith.constant 0 : i32
    %c0_i32_0 = arith.constant 0 : i32
    %c0_i32_1 = arith.constant 0 : i32
    %c0_i32_2 = arith.constant 0 : i32
    return %c0_i32, %c0_i32_0, %c0_i32_1 : i32, i32, i32
  }
  func.func @transform_25(%arg0: i32) -> (i32, i32, i32) {
    %c0_i32 = arith.constant 0 : i32
    %c0_i32_0 = arith.constant 0 : i32
    %c0_i32_1 = arith.constant 0 : i32
    %c0_i32_2 = arith.constant 0 : i32
    return %c0_i32, %c0_i32_0, %c0_i32_1 : i32, i32, i32
  }
  func.func @transform_26(%arg0: i32) -> (i32, i32, i32) {
    %c0_i32 = arith.constant 0 : i32
    %c0_i32_0 = arith.constant 0 : i32
    %c0_i32_1 = arith.constant 0 : i32
    %c0_i32_2 = arith.constant 0 : i32
    return %c0_i32, %c0_i32_0, %c0_i32_1 : i32, i32, i32
  }
  func.func @transform_27(%arg0: i32) -> (i32, i32, i32) {
    %c0_i32 = arith.constant 0 : i32
    %c0_i32_0 = arith.constant 0 : i32
    %c0_i32_1 = arith.constant 0 : i32
    %c0_i32_2 = arith.constant 0 : i32
    return %c0_i32, %c0_i32_0, %c0_i32_1 : i32, i32, i32
  }
  func.func @transform_28(%arg0: i32) -> (i32, i32, i32) {
    %c0_i32 = arith.constant 0 : i32
    %c0_i32_0 = arith.constant 0 : i32
    %c0_i32_1 = arith.constant 0 : i32
    %c0_i32_2 = arith.constant 0 : i32
    return %c0_i32, %c0_i32_0, %c0_i32_1 : i32, i32, i32
  }
  func.func @transform_29(%arg0: i32) -> (i32, i32, i32) {
    %c0_i32 = arith.constant 0 : i32
    %c0_i32_0 = arith.constant 0 : i32
    %c0_i32_1 = arith.constant 0 : i32
    %c0_i32_2 = arith.constant 0 : i32
    return %c0_i32, %c0_i32_0, %c0_i32_1 : i32, i32, i32
  }
  func.func @transform_30(%arg0: i32) -> (i32, i32, i32) {
    %c0_i32 = arith.constant 0 : i32
    %c0_i32_0 = arith.constant 0 : i32
    %c0_i32_1 = arith.constant 0 : i32
    %c0_i32_2 = arith.constant 0 : i32
    return %c0_i32, %c0_i32_0, %c0_i32_1 : i32, i32, i32
  }
  func.func @transform_31(%arg0: i32) -> (i32, i32, i32) {
    %c0_i32 = arith.constant 0 : i32
    %c0_i32_0 = arith.constant 0 : i32
    %c0_i32_1 = arith.constant 0 : i32
    %c0_i32_2 = arith.constant 0 : i32
    return %c0_i32, %c0_i32_0, %c0_i32_1 : i32, i32, i32
  }
  func.func @transform_32(%arg0: i32) -> (i32, i32, i32) {
    %c0_i32 = arith.constant 0 : i32
    %c0_i32_0 = arith.constant 0 : i32
    %c0_i32_1 = arith.constant 0 : i32
    %c0_i32_2 = arith.constant 0 : i32
    return %c0_i32, %c0_i32_0, %c0_i32_1 : i32, i32, i32
  }
  func.func @transform_33(%arg0: i32) -> (i32, i32, i32) {
    %c0_i32 = arith.constant 0 : i32
    %c0_i32_0 = arith.constant 0 : i32
    %c0_i32_1 = arith.constant 0 : i32
    %c0_i32_2 = arith.constant 0 : i32
    return %c0_i32, %c0_i32_0, %c0_i32_1 : i32, i32, i32
  }
  func.func @transform_34(%arg0: i32) -> (i32, i32, i32) {
    %c0_i32 = arith.constant 0 : i32
    %c0_i32_0 = arith.constant 0 : i32
    %c0_i32_1 = arith.constant 0 : i32
    %c0_i32_2 = arith.constant 0 : i32
    return %c0_i32, %c0_i32_0, %c0_i32_1 : i32, i32, i32
  }
  func.func @transform_35(%arg0: i32) -> (i32, i32, i32) {
    %c0_i32 = arith.constant 0 : i32
    %c0_i32_0 = arith.constant 0 : i32
    %c0_i32_1 = arith.constant 0 : i32
    %c0_i32_2 = arith.constant 0 : i32
    return %c0_i32, %c0_i32_0, %c0_i32_1 : i32, i32, i32
  }
  func.func @transform_36(%arg0: i32) -> (i32, i32, i32) {
    %c0_i32 = arith.constant 0 : i32
    %c0_i32_0 = arith.constant 0 : i32
    %c0_i32_1 = arith.constant 0 : i32
    %c0_i32_2 = arith.constant 0 : i32
    return %c0_i32, %c0_i32_0, %c0_i32_1 : i32, i32, i32
  }
  func.func @transform_37(%arg0: i32) -> (i32, i32, i32) {
    %c0_i32 = arith.constant 0 : i32
    %c0_i32_0 = arith.constant 0 : i32
    %c0_i32_1 = arith.constant 0 : i32
    %c0_i32_2 = arith.constant 0 : i32
    return %c0_i32, %c0_i32_0, %c0_i32_1 : i32, i32, i32
  }
  func.func @transform_38(%arg0: i32) -> (i32, i32, i32) {
    %c0_i32 = arith.constant 0 : i32
    %c0_i32_0 = arith.constant 0 : i32
    %c0_i32_1 = arith.constant 0 : i32
    %c0_i32_2 = arith.constant 0 : i32
    return %c0_i32, %c0_i32_0, %c0_i32_1 : i32, i32, i32
  }
  func.func @transform_39(%arg0: i32) -> (i32, i32, i32) {
    %c0_i32 = arith.constant 0 : i32
    %c0_i32_0 = arith.constant 0 : i32
    %c0_i32_1 = arith.constant 0 : i32
    %c0_i32_2 = arith.constant 0 : i32
    return %c0_i32, %c0_i32_0, %c0_i32_1 : i32, i32, i32
  }
  func.func @transform_40(%arg0: i32) -> (i32, i32, i32) {
    %c0_i32 = arith.constant 0 : i32
    %c0_i32_0 = arith.constant 0 : i32
    %c0_i32_1 = arith.constant 0 : i32
    %c0_i32_2 = arith.constant 0 : i32
    return %c0_i32, %c0_i32_0, %c0_i32_1 : i32, i32, i32
  }
  func.func @transform_41(%arg0: i32) -> (i32, i32) {
    %c0_i32 = arith.constant 0 : i32
    %c0_i32_0 = arith.constant 0 : i32
    %c0_i32_1 = arith.constant 0 : i32
    return %c0_i32, %c0_i32_0 : i32, i32
  }
  func.func @transform_42(%arg0: i32) -> (i32, i32) {
    %c0_i32 = arith.constant 0 : i32
    %c0_i32_0 = arith.constant 0 : i32
    %c0_i32_1 = arith.constant 0 : i32
    return %c0_i32, %c0_i32_0 : i32, i32
  }
  func.func @transform_43(%arg0: i32) -> (i32, i32) {
    %c0_i32 = arith.constant 0 : i32
    %c0_i32_0 = arith.constant 0 : i32
    %c0_i32_1 = arith.constant 0 : i32
    return %c0_i32, %c0_i32_0 : i32, i32
  }
  func.func @transform_44(%arg0: i32) -> (i32, i32) {
    %c0_i32 = arith.constant 0 : i32
    %c0_i32_0 = arith.constant 0 : i32
    %c0_i32_1 = arith.constant 0 : i32
    return %c0_i32, %c0_i32_0 : i32, i32
  }
  func.func @transform_45(%arg0: i32) -> (i32, i32, i32) {
    %c0_i32 = arith.constant 0 : i32
    %c0_i32_0 = arith.constant 0 : i32
    %c0_i32_1 = arith.constant 0 : i32
    return %arg0, %c0_i32, %c0_i32_0 : i32, i32, i32
  }
}

</mosaic_0001>

<bundles_post_ra>
// kernel: py_transformer_forward.1
= control target key start
LH: loop header
LB: loop body
LE: loop exit
PB: predicated region body
PF: predicated region fallthrough
CT: control target
= control target key end

     0   :  { %s20482_s6 = smov 1   ;;  %s20483_s10 = smov 2   ;;  %s23054_s0 = inlined_call_operand.smem [shape: u32[46], index: -1, kind: input, shape index: {}] }
   0x1   :  { %s20548_s5 = sld [smem:[%s23054_s0]]   ;;  %s20484_s14 = smov 3  }
   0x2   :  { %s20553_s9 = sld [smem:[%s23054_s0 + %s20482_s6]]   ;;  %s20485_s18 = smov 4  }
   0x3   :  { %s20558_s13 = sld [smem:[%s23054_s0 + %s20483_s10]]   ;;  %s20486_s22 = smov 5  }
   0x4   :  { %s20563_s17 = sld [smem:[%s23054_s0 + %s20484_s14]]   ;;  %s20487_s26 = smov 6  }
   0x5   :  { %s20568_s21 = sld [smem:[%s23054_s0 + %s20485_s18]]   ;;  %s20488_s30 = smov 7  }
   0x6   :  { %s20573_s25 = sld [smem:[%s23054_s0 + %s20486_s22]]   ;;  %s20489_s4 = smov 8  }
   0x7   :  { %23106 = sst [smem:[#allocation2_spill]] %s20548_s5  ;;  %s20490_s10 = smov 9  }
   0x8   :  { %23107 = sst [smem:[#allocation3_spill]] %s20553_s9  ;;  %s20491_s15 = smov 10  }
   0x9   :  { %23108 = sst [smem:[#allocation4_spill]] %s20558_s13  ;;  %s20492_s20 = smov 11  }
   0xa   :  { %23109 = sst [smem:[#allocation5_spill]] %s20563_s17  ;;  %s20494_s1 = smov 13  }
   0xb   :  { %23110 = sst [smem:[#allocation6_spill]] %s20568_s21  ;;  %s20495_s7 = smov 14  }
   0xc   :  { %23111 = sst [smem:[#allocation7_spill]] %s20573_s25  ;;  %s20497_s22 = smov 16  }
   0xd   :  { %s20578_s29 = sld [smem:[%s23054_s0 + %s20487_s26]]   ;;  %s20493_s26 = smov 12  }
   0xe   :  { %s20583_s3 = sld [smem:[%s23054_s0 + %s20488_s30]]   ;;  %s20498_s28 = smov 17  }
   0xf   :  { %s20588_s8 = sld [smem:[%s23054_s0 + %s20489_s4]]  }
  0x10   :  { %s20593_s14 = sld [smem:[%s23054_s0 + %s20490_s10]]  }
  0x11   :  { %s20598_s19 = sld [smem:[%s23054_s0 + %s20491_s15]]   ;;  %s20496_s15 = smov 15  }
  0x12   :  { %s20603_s24 = sld [smem:[%s23054_s0 + %s20492_s20]]  }
  0x13   :  { %23112 = sst [smem:[#allocation8_spill]] %s20578_s29 }
  0x14   :  { %23113 = sst [smem:[#allocation9_spill]] %s20583_s3 }
  0x15   :  { %23114 = sst [smem:[#allocation10_spill]] %s20588_s8 }
  0x16   :  { %23115 = sst [smem:[#allocation11_spill]] %s20593_s14 }
  0x17   :  { %23116 = sst [smem:[#allocation12_spill]] %s20598_s19 }
  0x18   :  { %23117 = sst [smem:[#allocation13_spill]] %s20603_s24 }
  0x19   :  { %s20608_s30 = sld [smem:[%s23054_s0 + %s20493_s26]]  }
  0x1a   :  { %s20613_s6 = sld [smem:[%s23054_s0 + %s20494_s1]]  }
  0x1b   :  { %s20618_s12 = sld [smem:[%s23054_s0 + %s20495_s7]]   ;;  %s20499_s7 = smov 18  }
  0x1c   :  { %s20623_s20 = sld [smem:[%s23054_s0 + %s20496_s15]]   ;;  %s20500_s15 = smov 19  }
  0x1d   :  { %s20628_s27 = sld [smem:[%s23054_s0 + %s20497_s22]]   ;;  %s20501_s22 = smov 20  }
  0x1e   :  { %s20633_s4 = sld [smem:[%s23054_s0 + %s20498_s28]]   ;;  %s20502_s28 = smov 21  }
  0x1f   :  { %23118 = sst [smem:[#allocation14_spill]] %s20608_s30 }
  0x20   :  { %23119 = sst [smem:[#allocation15_spill]] %s20613_s6 }
  0x21   :  { %23120 = sst [smem:[#allocation16_spill]] %s20618_s12 }
  0x22   :  { %23121 = sst [smem:[#allocation17_spill]] %s20623_s20 }
  0x23   :  { %23122 = sst [smem:[#allocation18_spill]] %s20628_s27 }
  0x24   :  { %23123 = sst [smem:[#allocation19_spill]] %s20633_s4 }
  0x25   :  { %s20638_s29 = sld [smem:[%s23054_s0 + %s20499_s7]]   ;;  %s20503_s7 = smov 22  }
  0x26   :  { %s20643_s17 = sld [smem:[%s23054_s0 + %s20500_s15]]   ;;  %s20504_s15 = smov 23  }
  0x27   :  { %s20648_s25 = sld [smem:[%s23054_s0 + %s20501_s22]]   ;;  %s20505_s22 = smov 24  }
  0x28   :  { %s20653_s9 = sld [smem:[%s23054_s0 + %s20502_s28]]   ;;  %s20506_s28 = smov 25  }
  0x2b   :  { %23124 = sst [smem:[#allocation20_spill]] %s20638_s29 }
  0x2c   :  { %23125 = sst [smem:[#allocation21_spill]] %s20643_s17 }
  0x2d   :  { %23126 = sst [smem:[#allocation22_spill]] %s20648_s25 }
  0x2e   :  { %23127 = sst [smem:[#allocation23_spill]] %s20653_s9 }
  0x2f   :  { %s20658_s29 = sld [smem:[%s23054_s0 + %s20503_s7]]   ;;  %s20507_s7 = smov 26  }
  0x30   :  { %s20663_s17 = sld [smem:[%s23054_s0 + %s20504_s15]]   ;;  %s20508_s15 = smov 27  }
  0x31   :  { %s20668_s25 = sld [smem:[%s23054_s0 + %s20505_s22]]   ;;  %s20509_s22 = smov 28  }
  0x32   :  { %s20673_s9 = sld [smem:[%s23054_s0 + %s20506_s28]]   ;;  %s20510_s28 = smov 29  }
  0x35   :  { %23128 = sst [smem:[#allocation24_spill]] %s20658_s29 }
  0x36   :  { %23129 = sst [smem:[#allocation25_spill]] %s20663_s17 }
  0x37   :  { %23130 = sst [smem:[#allocation26_spill]] %s20668_s25 }
  0x38   :  { %23131 = sst [smem:[#allocation27_spill]] %s20673_s9 }
  0x39   :  { %s20678_s29 = sld [smem:[%s23054_s0 + %s20507_s7]]   ;;  %s20511_s7 = smov 30  }
  0x3a   :  { %s20683_s17 = sld [smem:[%s23054_s0 + %s20508_s15]]   ;;  %s20512_s15 = smov 31  }
  0x3b   :  { %s20688_s25 = sld [smem:[%s23054_s0 + %s20509_s22]]   ;;  %s20513_s22 = smov 32  }
  0x3c   :  { %s20693_s9 = sld [smem:[%s23054_s0 + %s20510_s28]]   ;;  %s20514_s28 = smov 33  }
  0x3f   :  { %23132 = sst [smem:[#allocation28_spill]] %s20678_s29 }
  0x40   :  { %23133 = sst [smem:[#allocation29_spill]] %s20683_s17 }
  0x41   :  { %23134 = sst [smem:[#allocation30_spill]] %s20688_s25 }
  0x42   :  { %23135 = sst [smem:[#allocation31_spill]] %s20693_s9 }
  0x43   :  { %s20698_s29 = sld [smem:[%s23054_s0 + %s20511_s7]]   ;;  %s20515_s7 = smov 34  }
  0x44   :  { %s20703_s17 = sld [smem:[%s23054_s0 + %s20512_s15]]   ;;  %s20516_s15 = smov 35  }
  0x45   :  { %s20708_s25 = sld [smem:[%s23054_s0 + %s20513_s22]]   ;;  %s20517_s22 = smov 36  }
  0x46   :  { %s20713_s9 = sld [smem:[%s23054_s0 + %s20514_s28]]   ;;  %s20518_s28 = smov 37  }
  0x49   :  { %23136 = sst [smem:[#allocation32_spill]] %s20698_s29 }
  0x4a   :  { %23137 = sst [smem:[#allocation33_spill]] %s20703_s17 }
  0x4b   :  { %23138 = sst [smem:[#allocation34_spill]] %s20708_s25 }
  0x4c   :  { %23139 = sst [smem:[#allocation35_spill]] %s20713_s9 }
  0x4d   :  { %s20718_s29 = sld [smem:[%s23054_s0 + %s20515_s7]]   ;;  %s20519_s7 = smov 38  }
  0x4e   :  { %s20723_s17 = sld [smem:[%s23054_s0 + %s20516_s15]]   ;;  %s20520_s15 = smov 39  }
  0x4f   :  { %s20728_s25 = sld [smem:[%s23054_s0 + %s20517_s22]]   ;;  %s20521_s22 = smov 40  }
  0x50   :  { %s20733_s9 = sld [smem:[%s23054_s0 + %s20518_s28]]   ;;  %s20522_s28 = smov 41  }
  0x53   :  { %23140 = sst [smem:[#allocation36_spill]] %s20718_s29 }
  0x54   :  { %23141 = sst [smem:[#allocation37_spill]] %s20723_s17 }
  0x55   :  { %23142 = sst [smem:[#allocation38_spill]] %s20728_s25 }
  0x56   :  { %23143 = sst [smem:[#allocation39_spill]] %s20733_s9 }
  0x57   :  { %s20738_s29 = sld [smem:[%s23054_s0 + %s20519_s7]]   ;;  %s20523_s7 = smov 42  }
  0x58   :  { %s20743_s17 = sld [smem:[%s23054_s0 + %s20520_s15]]   ;;  %s20524_s15 = smov 43  }
  0x59   :  { %s20748_s25 = sld [smem:[%s23054_s0 + %s20521_s22]]   ;;  %s20525_s22 = smov 44  }
  0x5a   :  { %s20753_s9 = sld [smem:[%s23054_s0 + %s20522_s28]]   ;;  %s20526_s28 = smov 45  }
  0x5d   :  { %23144 = sst [smem:[#allocation40_spill]] %s20738_s29 }
  0x5e   :  { %23145 = sst [smem:[#allocation41_spill]] %s20743_s17 }
  0x5f   :  { %23146 = sst [smem:[#allocation42_spill]] %s20748_s25 }
  0x60   :  { %23147 = sst [smem:[#allocation43_spill]] %s20753_s9 }
  0x61   :  { %s20758_s29 = sld [smem:[%s23054_s0 + %s20523_s7]]   ;;  %s20775_s7 = smov 0  }
  0x62   :  { %s20763_s17 = sld [smem:[%s23054_s0 + %s20524_s15]]  }
  0x63   :  { %s20768_s25 = sld [smem:[%s23054_s0 + %s20525_s22]]  }
  0x64   :  { %s20773_s9 = sld [smem:[%s23054_s0 + %s20526_s28]]  }
  0x69   :  { %23148 = sst [smem:[#allocation44_spill]] %s20768_s25 }
  0x6a   :  { %23149 = sst [smem:[#allocation45_spill]] %s20773_s9 }
  0x6b LB: > { %s23150_s30 = sld [smem:[#allocation14_spill]]  ;;  %s23151_s27 = sld [smem:[#allocation18_spill]]  ;;  %s20480_s7 = sphi %s20775_s7, %s101_s7  }
  0x6c   : > { %s23152_s24 = sld [smem:[#allocation13_spill]]  ;;  %s23153_s20 = sld [smem:[#allocation17_spill]] }
  0x6d   : > { %s23154_s19 = sld [smem:[#allocation12_spill]]  ;;  %s23155_s14 = sld [smem:[#allocation11_spill]] }
  0x6e   : > { %s23156_s12 = sld [smem:[#allocation16_spill]]  ;;  %s23157_s8 = sld [smem:[#allocation10_spill]] }
  0x6f   : > { %s23158_s6 = sld [smem:[#allocation15_spill]]  ;;  %s23159_s4 = sld [smem:[#allocation19_spill]] }
  0x70   : > { %s23160_s3 = sld [smem:[#allocation9_spill]]  ;;  %23161 = sst [smem:[#allocation46_spill]] %s20480_s7 }
  0x71   : > { %s17003_s10 = sadd.s32 4294967295, %s20480_s7   ;;  %p17007_p0 = scmp.ge.s32.totalorder %s20480_s7, 1 }
  0x72   : > { %p1265_p1 = scmp.lt.s32.totalorder %s20480_s7, 3 }
  0x74   : > { %p1266_p2 = pnand %p17007_p0, %p1265_p1 }
  0x76   : > { %1269 = sbr.rel (%p1266_p2) target bundleno = 16593 (0x40d1), region = 200 }
  0x7d   : > { %s23162_s5 = sld [smem:[#allocation2_spill]]  ;;  %v19810_v0 = vld [vmem:[%s23160_s3] sm:$0xff]   ;;  %v20527_v1 = vmov 0.0   ;;  %v19811_v2 = vld [vmem:[%s23160_s3 + $0x8] sm:$0xff]   ;;  %vm20528_vm0 = vmmov 0   ;;  %p1384_p3 = scmp.lt.s32.totalorder %s17003_s10, 1  ;;  %v1516_v15 = vlaneseq }
  0x7e   : > { %19336 = vmatprep.subr.bf16.mxu0 %v20527_v1  ;;  %19344 = vmatprep.subr.bf16.mxu1 %v20527_v1  ;;  %vm1450_vm1 = vcmask 261120   ;;  %v17013_v4 = vld [vmem:[%s23157_s8] ss:$0 sm:$0xff]  ;;  %s23086_s15 = smov 104   ;;  %s23090_s16 = smov 120   ;;  %vm1955_vm2 = vcmask 64512  }
  0x7f   : > { %19337 = vmatpush3.bf16.msra.mxu0 %v19810_v0  ;;  %19340 = vmatprep.mubr.msk.bf16.mxu0 %vm20528_vm0, %v20527_v1  ;;  %s23208_s10 = smov (!%p1384_p3, %s17003_s10), 1  ;;  %s23084_s18 = smov 96   ;;  %v20533_v13 = vmov 1983009808   ;;  %v20828_v17 = vshrl.u32 %v1516_v15, 7  ;;  %vm2199_vm3 = vcmask 1043456  }
  0x80   : > { %19338 = vmatprep.subr.bf16.mxu0 %v20527_v1  ;;  %19346 = vmatprep.mubr.msk.bf16.mxu1 %vm20528_vm0, %v20527_v1  ;;  %23163 = sst [smem:[#allocation47_spill]] %s23208_s10  ;;  %s17008_s0 = sshll.u32 %s23208_s10, 2  ;;  %v1514_v14 = vunpack.c.l.s4 %v20533_v13  ;;  %v20534_v18 = vmov 1934713408   ;;  %vm2530_vm4 = vcmask 130048   ;;  %vm2532_vm5 = vcmask 195584  }
  0x81   : > { %s23088_s22 = smov 112   ;;  %v1546_v19 = vunpack.c.l.s4 %v20534_v18  ;;  %s23164_s21 = sld [smem:[#allocation6_spill]]  ;;  %vm8603_vm6 = vcmask 46080   ;;  %vm8656_vm7 = vcmask 1042432   ;;  %vm8652_vm8 = vcmask 48128  }
  0x82   : > { %v1515_v16 = vunpack.c.0.s8 %v1514_v14  ;;  %s23165_s13 = sld [smem:[#allocation4_spill]]  ;;  %s23082_s26 = smov 64   ;;  %vm9041_vm9 = vcmask 259072   ;;  %vm9849_vm10 = vcmask 62464  }
  0x83   : > { %19339 = vmatpush3.bf16.msra.mxu0 %v19811_v2  ;;  %s20798_s11 = scalar_lea.vmem %s23162_s5, %s17008_s0  ;;  %v1547_v25 = vunpack.c.0.s8 %v1546_v19  ;;  %s23080_s28 = smov 16  }
  0x84   : > { %19350 = vmatprep.subr.bf16.mxu0 %v20527_v1  ;;  %v1425_v3 = vld [vmem:[%s20798_s11] sm:$0xf]  ;;  %v20835_v22 = vsub.s32 %v1515_v16, %v20828_v17  ;;  %s23078_s1 = smov 8   ;;  %s23076_s2 = smov 24  }
  0x85   : > { %v20846_v32 = vsub.s32 %v1547_v25, %v20828_v17  ;;  %s23182_s5 = sld [smem:[#allocation28_spill]]  ;;  %s23197_s7 = sld [smem:[#allocation40_spill]] }
  0x86   : > { %19341 = vmatmul.mubr.msk.bf16.vlgmr.msra.gmra.mrb[0].mxu0 %vm1450_vm1, %v1425_v3  ;;  %s23199_s25 = sld [smem:[#allocation41_spill]] }
  0x87   : > { %19352 = vmatprep.mubr.msk.bf16.mxu0 %vm20528_vm0, %v20527_v1  ;;  %s1394_s23 = scalar_lea.vmem %s23164_s21, %s23208_s10  ;;  %s23193_s21 = sld [smem:[#allocation35_spill]] }
  0x8b   : > { %s23198_s9 = smov %s23197_s7 }
 0x159   : > { %v1488_v5 = vpop.f32.mrb[0].mxu0 }
 0x15a   : > { %v20806_v6 = vadd.f32 %v17013_v4, %v1488_v5  ;;  %v19342_v7 = vpop.f32.mrb[1].mxu0 }
 0x15b   : > { %v1491_v8 = vpop.f32.mrb[2].mxu0 }
 0x15c   : > { %1508 = vrot.lane.b32.xlu1 %v20806_v6, %s23086_s15  ;;  %1502 = vrot.lane.b32.xlu0 %v20806_v6, %s23090_s16  ;;  %v19343_v9 = vpop.f32.mrb[3].mxu0 }
 0x160   : > { %1651 = vrot.lane.b32.xlu1 %v20806_v6, %s23084_s18  ;;  %1505 = vrot.lane.b32.xlu0 %v20806_v6, %s23088_s22 }
 0x1ce   : > { %v20816_v10 = vpop.permute.xlu0 %1502  ;;  %v20820_v11 = vpop.permute.xlu1 %1508 }
 0x1cf   : > { %1653 = vrot.lane.b32.xlu0 %v20816_v10, %s23084_s18  ;;  %v1527_v23 = vcombine.low %v20816_v10, %v20820_v11  ;;  %v1528_v24 = vcombine.high %v20816_v10, %v20820_v11 }
 0x1d1   : > { %v1535_v28 = vrot.slane %v1527_v23, %v20835_v22  ;;  %v1542_v29 = vrot.slane %v1528_v24, %v20835_v22 }
 0x1d2   : > { %v20822_v12 = vpop.permute.xlu0 %1505  ;;  %v1652_v30 = vpop.permute.xlu1 %1651 }
 0x1d3   : > { %1657 = vrot.lane.b32.xlu0 %v20820_v11, %s23084_s18  ;;  %1655 = vrot.lane.b32.xlu1 %v20822_v12, %s23084_s18  ;;  %v1511_v20 = vcombine.low %v20806_v6, %v20822_v12  ;;  %v1512_v21 = vcombine.high %v20806_v6, %v20822_v12 }
 0x1d5   : > { %v1519_v26 = vrot.slane %v1511_v20, %v20835_v22  ;;  %v1526_v27 = vrot.slane %v1512_v21, %v20835_v22 }
 0x1d7   : > { %v1543_v33 = vcombine.low %v1519_v26, %v1535_v28  ;;  %v1544_v34 = vcombine.high %v1519_v26, %v1535_v28  ;;  %v1559_v35 = vcombine.low %v1526_v27, %v1542_v29  ;;  %v1560_v36 = vcombine.high %v1526_v27, %v1542_v29 }
 0x1d9   : > { %v1551_v43 = vrot.slane %v1543_v33, %v20846_v32  ;;  %v1558_v44 = vrot.slane %v1544_v34, %v20846_v32  ;;  %v1567_v45 = vrot.slane %v1559_v35, %v20846_v32  ;;  %v1574_v46 = vrot.slane %v1560_v36, %v20846_v32 }
 0x1db   : > { %v1579_v55 = vcombine.low %v1551_v43, %v1558_v44  ;;  %v17017_v56 = vcombine.high %v1551_v43, %v1558_v44  ;;  %v1595_v57 = vcombine.low %v1567_v45, %v1574_v46  ;;  %v17018_v58 = vcombine.high %v1567_v45, %v1574_v46 }
 0x1dd   : > { %v1586_v4 = vrot.slane %v1579_v55, %v20835_v22  ;;  %v1594_v5 = vrot.slane %v17017_v56, %v20835_v22  ;;  %v1602_v7 = vrot.slane %v1595_v57, %v20835_v22  ;;  %v1610_v8 = vrot.slane %v17018_v58, %v20835_v22  ;;  %v1406_v55 = vld [vmem:[%s23165_s13] sm:$0xff] }
 0x1de   : > { %v17011_v56 = vld [vmem:[%s1394_s23] ss:$0 sm:$0xff]  ;;  %s23167_s23 = sld [smem:[#allocation23_spill]] }
 0x1df   : > { %v1611_v24 = vcombine.low %v1586_v4, %v1594_v5  ;;  %v1627_v25 = vcombine.low %v1602_v7, %v1610_v8  ;;  %v20899_v57 = vadd.f32 %v17011_v56, %v1406_v55 }
 0x1e1   : > { %v1619_v33 = vrot.slane %v1611_v24, %v20846_v32  ;;  %v1635_v34 = vrot.slane %v1627_v25, %v20846_v32 }
 0x241   : > { %v1654_v31 = vpop.permute.xlu0 %1653 }
 0x245   : > { %v1656_v37 = vpop.permute.xlu1 %1655  ;;  %v1658_v38 = vpop.permute.xlu0 %1657 }
 0x246   : > { %v1663_v39 = vcombine.low %v1652_v30, %v1656_v37  ;;  %v1664_v40 = vcombine.high %v1652_v30, %v1656_v37  ;;  %v1679_v41 = vcombine.low %v1654_v31, %v1658_v38  ;;  %v1680_v42 = vcombine.high %v1654_v31, %v1658_v38 }
 0x248   : > { %v1671_v47 = vrot.slane %v1663_v39, %v20835_v22  ;;  %v1678_v48 = vrot.slane %v1664_v40, %v20835_v22  ;;  %v1687_v49 = vrot.slane %v1679_v41, %v20835_v22  ;;  %v1694_v50 = vrot.slane %v1680_v42, %v20835_v22 }
 0x249   : > { %v1612_v39 = vcombine.high %v1586_v4, %v1594_v5  ;;  %v1628_v40 = vcombine.high %v1602_v7, %v1610_v8  ;;  %v1643_v41 = vcombine.low %v1619_v33, %v1635_v34  ;;  %v1644_v42 = vcombine.high %v1619_v33, %v1635_v34 }
 0x24a   : > { %v1695_v51 = vcombine.low %v1671_v47, %v1687_v49  ;;  %v1696_v52 = vcombine.high %v1671_v47, %v1687_v49  ;;  %v1711_v53 = vcombine.low %v1678_v48, %v1694_v50  ;;  %v1712_v54 = vcombine.high %v1678_v48, %v1694_v50 }
 0x24b   : > { %v1647_v45 = vpack.c.bf16 %v1643_v41, %v1643_v41  ;;  %v1648_v46 = vpack.c.bf16 %v1644_v42, %v1644_v42  ;;  %v1626_v47 = vrot.slane %v1612_v39, %v20846_v32  ;;  %v1642_v48 = vrot.slane %v1628_v40, %v20846_v32 }
 0x24c   : > { %v1703_v59 = vrot.slane %v1695_v51, %v20846_v32  ;;  %v1710_v60 = vrot.slane %v1696_v52, %v20846_v32  ;;  %v1719_v61 = vrot.slane %v1711_v53, %v20846_v32  ;;  %v1726_v62 = vrot.slane %v1712_v54, %v20846_v32 }
 0x24d   : > { %v1645_v51 = vcombine.low %v1626_v47, %v1642_v48  ;;  %v1646_v52 = vcombine.high %v1626_v47, %v1642_v48 }
 0x24e   : > { %v1731_v63 = vcombine.low %v1703_v59, %v1710_v60  ;;  %v17019_v0 = vcombine.high %v1703_v59, %v1710_v60  ;;  %v1747_v2 = vcombine.low %v1719_v61, %v1726_v62  ;;  %v17020_v3 = vcombine.high %v1719_v61, %v1726_v62 }
 0x24f   : > { %v1649_v53 = vpack.c.bf16 %v1645_v51, %v1645_v51  ;;  %v1650_v54 = vpack.c.bf16 %v1646_v52, %v1646_v52 }
 0x250   : > { %v1738_v9 = vrot.slane %v1731_v63, %v20835_v22  ;;  %v1746_v13 = vrot.slane %v17019_v0, %v20835_v22  ;;  %v1754_v14 = vrot.slane %v1747_v2, %v20835_v22  ;;  %v1762_v15 = vrot.slane %v17020_v3, %v20835_v22 }
 0x252   : > { %v1763_v16 = vcombine.low %v1738_v9, %v1746_v13  ;;  %v1779_v18 = vcombine.low %v1754_v14, %v1762_v15  ;;  %v1764_v19 = vcombine.high %v1738_v9, %v1746_v13  ;;  %v1780_v20 = vcombine.high %v1754_v14, %v1762_v15 }
 0x254   : > { %v1771_v21 = vrot.slane %v1763_v16, %v20846_v32  ;;  %v1787_v23 = vrot.slane %v1779_v18, %v20846_v32  ;;  %v1778_v28 = vrot.slane %v1764_v19, %v20846_v32  ;;  %v1794_v29 = vrot.slane %v1780_v20, %v20846_v32 }
 0x256   : > { %v1795_v26 = vcombine.low %v1771_v21, %v1787_v23  ;;  %v1796_v27 = vcombine.high %v1771_v21, %v1787_v23  ;;  %v1797_v37 = vcombine.low %v1778_v28, %v1794_v29  ;;  %v1798_v38 = vcombine.high %v1778_v28, %v1794_v29 }
 0x258   : > { %v1799_v30 = vpack.c.bf16 %v1795_v26, %v1795_v26  ;;  %v1800_v31 = vpack.c.bf16 %v1796_v27, %v1796_v27  ;;  %v1801_v43 = vpack.c.bf16 %v1797_v37, %v1797_v37  ;;  %v1802_v44 = vpack.c.bf16 %v1798_v38, %v1798_v38 }
 0x25a   : > { %v1960_v35 = vsel %vm1955_vm2, %v1799_v30, 0  ;;  %v2006_v36 = vsel %vm1955_vm2, %v1800_v31, 0  ;;  %v2052_v49 = vsel %vm1955_vm2, %v1801_v43, 0  ;;  %v2098_v50 = vsel %vm1955_vm2, %v1802_v44, 0 }
 0x25b   : > { %19345 = vmatpush3.bf16.xpose.msra.mxu1 %v1960_v35  ;;  %19351 = vmatpush3.bf16.xpose.msra.mxu0 %v2006_v36 }
 0x25c   : > { %19356 = vmatprep.subr.bf16.mxu1 %v20527_v1  ;;  %19362 = vmatprep.subr.bf16.mxu0 %v20527_v1 }
 0x262   : > { %19347 = vmatmul.mubr.msk.bf16.vlgmr.msra.gmra.mrb[0].mxu1 %vm1955_vm2, %v1647_v45  ;;  %19353 = vmatmul.mubr.msk.bf16.vlgmr.msra.gmra.mrb[4].mxu0 %vm1955_vm2, %v1648_v46 }
 0x263   : > { %19357 = vmatpush3.bf16.xpose.msra.mxu1 %v2052_v49  ;;  %19363 = vmatpush3.bf16.xpose.msra.mxu0 %v2098_v50 }
 0x264   : > { %19358 = vmatprep.mubr.msk.bf16.mxu1 %vm20528_vm0, %v20527_v1  ;;  %19364 = vmatprep.mubr.msk.bf16.mxu0 %vm20528_vm0, %v20527_v1 }
 0x265   : > { %19368 = vmatprep.subr.bf16.mxu1 %v20527_v1  ;;  %19374 = vmatprep.subr.bf16.mxu0 %v20527_v1 }
 0x26a   : > { %19359 = vmatmul.mubr.msk.bf16.vlgmr.msra.gmra.mrb[4].mxu1 %vm1955_vm2, %v1649_v53  ;;  %19365 = vmatmul.mubr.msk.bf16.vlgmr.msra.gmra.mrb[8].mxu0 %vm1955_vm2, %v1650_v54 }
 0x26b   : > { %19370 = vmatprep.mubr.msk.bf16.mxu1 %vm20528_vm0, %v20527_v1  ;;  %19376 = vmatprep.mubr.msk.bf16.mxu0 %vm20528_vm0, %v20527_v1 }
 0x335   : > { %v1996_v58 = vpop.f32.mrb[0].mxu1  ;;  %v2042_v59 = vpop.f32.mrb[4].mxu0 }
 0x336   : > { %v2140_v60 = vmul.f32 0.35355338, %v1996_v58  ;;  %v2141_v61 = vmul.f32 0.35355338, %v2042_v59  ;;  %v19348_v62 = vpop.f32.mrb[1].mxu1  ;;  %v19354_v63 = vpop.f32.mrb[5].mxu0 }
 0x337   : > { %v1999_v0 = vpop.f32.mrb[2].mxu1  ;;  %v2045_v2 = vpop.f32.mrb[6].mxu0 }
 0x338   : > { %v19349_v3 = vpop.f32.mrb[3].mxu1  ;;  %v19355_v4 = vpop.f32.mrb[7].mxu0  ;;  %v2144_v5 = vadd.f32 %v2140_v60, %v20899_v57  ;;  %v2145_v7 = vadd.f32 %v2141_v61, %v20899_v57 }
 0x33a   : > { %v2148_v8 = vsel %vm1955_vm2, %v2144_v5, -inf  ;;  %v2151_v9 = vsel %vm1955_vm2, %v2145_v7, -inf }
 0x33b   : > { %2149 = vmax.xlane.f32.xlu1 %v2148_v8  ;;  %2152 = vmax.xlane.f32.xlu0 %v2151_v9 }
 0x33d   : > { %v2088_v13 = vpop.f32.mrb[4].mxu1  ;;  %v2134_v14 = vpop.f32.mrb[8].mxu0 }
 0x33e   : > { %v2142_v15 = vmul.f32 0.35355338, %v2088_v13  ;;  %v2143_v16 = vmul.f32 0.35355338, %v2134_v14  ;;  %v19360_v18 = vpop.f32.mrb[5].mxu1  ;;  %v19366_v19 = vpop.f32.mrb[9].mxu0 }
 0x33f   : > { %v2091_v20 = vpop.f32.mrb[6].mxu1  ;;  %v2137_v21 = vpop.f32.mrb[10].mxu0 }
 0x340   : > { %v19361_v23 = vpop.f32.mrb[7].mxu1  ;;  %v19367_v24 = vpop.f32.mrb[11].mxu0  ;;  %v2146_v25 = vadd.f32 %v2142_v15, %v20899_v57  ;;  %v2147_v26 = vadd.f32 %v2143_v16, %v20899_v57 }
 0x342   : > { %v2154_v27 = vsel %vm1955_vm2, %v2146_v25, -inf  ;;  %v2157_v28 = vsel %vm1955_vm2, %v2147_v26, -inf }
 0x343   : > { %2155 = vmax.xlane.f32.xlu0 %v2154_v27  ;;  %2158 = vmax.xlane.f32.xlu1 %v2157_v28 }
 0x354   : > { %1805 = vrot.lane.b32.xlu1 %v20816_v10, %s23082_s26 }
 0x359   : > { %1803 = vrot.lane.b32.xlu0 %v20806_v6, %s23082_s26 }
 0x3c8   : > { %v2150_v29 = vpop.xlane.xlu1 %2149  ;;  %v2153_v30 = vpop.xlane.xlu0 %2152 }
 0x3c9   : > { %v2160_v31 = vsub.f32 %v2144_v5, %v2150_v29  ;;  %v2161_v33 = vsub.f32 %v2145_v7, %v2153_v30 }
 0x3cb   : > { %v2164_v34 = vmul.f32 1.442695, %v2160_v31  ;;  %v2166_v35 = vmul.f32 1.442695, %v2161_v33 }
 0x3cd   : > { %20352 = vpow2.f32 %v2164_v34 }
 0x3ce   : > { %20354 = vpow2.f32 %v2166_v35 }
 0x3d0   : > { %v2159_v6 = vpop.xlane.xlu1 %2158  ;;  %v2156_v39 = vpop.xlane.xlu0 %2155 }
 0x3d1   : > { %v2163_v40 = vsub.f32 %v2147_v26, %v2159_v6  ;;  %v2162_v41 = vsub.f32 %v2146_v25, %v2156_v39 }
 0x3d3   : > { %v2170_v42 = vmul.f32 1.442695, %v2163_v40  ;;  %v2168_v43 = vmul.f32 1.442695, %v2162_v41 }
 0x3d4   : > { %v1806_v47 = vpop.permute.xlu1 %1805 }
 0x3d5   : > { %20356 = vpow2.f32 %v2170_v42 }
 0x3d6   : > { %20358 = vpow2.f32 %v2168_v43 }
 0x3d7   : > { %v20913_v36 = vpop.eup %20352 }
 0x3d8   : > { %v20915_v37 = vpop.eup %20354  ;;  %v2172_v38 = vsel %vm1955_vm2, %v20913_v36, 0.0 }
 0x3d9   : > { %2173 = vadd.xlane.f32.xlu0 %v2172_v38  ;;  %v2175_v10 = vsel %vm1955_vm2, %v20915_v37, 0.0 }
 0x3da   : > { %2176 = vadd.xlane.f32.xlu1 %v2175_v10 }
 0x3df   : > { %v20925_v44 = vpop.eup %20356 }
 0x3e0   : > { %v20927_v45 = vpop.eup %20358  ;;  %v2181_v46 = vsel %vm1955_vm2, %v20925_v44, 0.0 }
 0x3eb   : > { %1807 = vrot.lane.b32.xlu1 %v20822_v12, %s23082_s26  ;;  %v2178_v12 = vsel %vm1955_vm2, %v20927_v45, 0.0 }
 0x3ef   : > { %1809 = vrot.lane.b32.xlu0 %v20820_v11, %s23082_s26  ;;  %v1804_v11 = vpop.permute.xlu0 %1803 }
 0x40e   : > { %2182 = vadd.xlane.f32.xlu0 %v2181_v46 }
 0x40f   : > { %2179 = vadd.xlane.f32.xlu1 %v2178_v12 }
 0x466   : > { %v2174_v48 = vpop.xlane.xlu0 %2173 }
 0x467   : > { %v2177_v49 = vpop.xlane.xlu1 %2176  ;;  %20360 = vrcp.f32 %v2174_v48 }
 0x468   : > { %20362 = vrcp.f32 %v2177_v49 }
 0x46a   : > { %v1810_v50 = vpop.permute.xlu0 %1809 }
 0x46b   : > { %v1831_v51 = vcombine.low %v1806_v47, %v1810_v50  ;;  %v1832_v52 = vcombine.high %v1806_v47, %v1810_v50  ;;  %v1808_v53 = vpop.permute.xlu1 %1807 }
 0x46c   : > { %v1815_v54 = vcombine.low %v1804_v11, %v1808_v53  ;;  %v1816_v55 = vcombine.high %v1804_v11, %v1808_v53 }
 0x46d   : > { %v1839_v56 = vrot.slane %v1831_v51, %v20835_v22  ;;  %v1846_v58 = vrot.slane %v1832_v52, %v20835_v22 }
 0x46e   : > { %v1823_v59 = vrot.slane %v1815_v54, %v20835_v22  ;;  %v1830_v60 = vrot.slane %v1816_v55, %v20835_v22 }
 0x470   : > { %v1847_v61 = vcombine.low %v1823_v59, %v1839_v56  ;;  %v1848_v62 = vcombine.high %v1823_v59, %v1839_v56  ;;  %v1863_v63 = vcombine.low %v1830_v60, %v1846_v58  ;;  %v1864_v0 = vcombine.high %v1830_v60, %v1846_v58 }
 0x471   : > { %v20361_v24 = vpop.eup %20360 }
 0x472   : > { %v1855_v2 = vrot.slane %v1847_v61, %v20846_v32  ;;  %v1862_v3 = vrot.slane %v1848_v62, %v20846_v32  ;;  %v1871_v4 = vrot.slane %v1863_v63, %v20846_v32  ;;  %v1878_v5 = vrot.slane %v1864_v0, %v20846_v32  ;;  %v20363_v29 = vpop.eup %20362 }
 0x473   : > { %v2185_v10 = vmul.f32 %v20361_v24, %v20913_v36  ;;  %v2187_v6 = vmul.f32 %v20363_v29, %v20915_v37 }
 0x474   : > { %v1883_v7 = vcombine.low %v1855_v2, %v1862_v3  ;;  %v17021_v8 = vcombine.high %v1855_v2, %v1862_v3  ;;  %v1899_v9 = vcombine.low %v1871_v4, %v1878_v5  ;;  %v17022_v13 = vcombine.high %v1871_v4, %v1878_v5 }
 0x475   : > { %v2192_v43 = vpack.c.bf16 %v2185_v10, %v2185_v10  ;;  %v2193_v46 = vpack.c.bf16 %v2187_v6, %v2187_v6 }
 0x476   : > { %v1890_v14 = vrot.slane %v1883_v7, %v20835_v22  ;;  %v1898_v15 = vrot.slane %v17021_v8, %v20835_v22  ;;  %v1906_v16 = vrot.slane %v1899_v9, %v20835_v22  ;;  %v1914_v18 = vrot.slane %v17022_v13, %v20835_v22 }
 0x478   : > { %v1915_v19 = vcombine.low %v1890_v14, %v1898_v15  ;;  %v1931_v20 = vcombine.low %v1906_v16, %v1914_v18  ;;  %v1916_v21 = vcombine.high %v1890_v14, %v1898_v15  ;;  %v1932_v23 = vcombine.high %v1906_v16, %v1914_v18  ;;  %v19812_v18 = vld [vmem:[%s23155_s14] sm:$0xff]  }
 0x47a   : > { %v1923_v25 = vrot.slane %v1915_v19, %v20846_v32  ;;  %v1939_v26 = vrot.slane %v1931_v20, %v20846_v32  ;;  %v1930_v27 = vrot.slane %v1916_v21, %v20846_v32  ;;  %v1946_v28 = vrot.slane %v1932_v23, %v20846_v32 }
 0x47c   : > { %v1947_v30 = vcombine.low %v1923_v25, %v1939_v26  ;;  %v1948_v31 = vcombine.high %v1923_v25, %v1939_v26  ;;  %v1949_v33 = vcombine.low %v1930_v27, %v1946_v28  ;;  %v1950_v34 = vcombine.high %v1930_v27, %v1946_v28  ;;  %v19813_v28 = vld [vmem:[%s23155_s14 + $0x8] sm:$0xff]  }
 0x47e   : > { %v1951_v35 = vpack.c.bf16 %v1947_v30, %v1947_v30  ;;  %v1952_v38 = vpack.c.bf16 %v1948_v31, %v1948_v31  ;;  %v1953_v41 = vpack.c.bf16 %v1949_v33, %v1949_v33  ;;  %v1954_v42 = vpack.c.bf16 %v1950_v34, %v1950_v34 }
 0x480   : > { %v2201_v39 = vsel %vm2199_vm3, %v1951_v35, 0  ;;  %v2247_v40 = vsel %vm2199_vm3, %v1952_v38, 0  ;;  %v2293_v36 = vsel %vm2199_vm3, %v1953_v41, 0  ;;  %v2339_v37 = vsel %vm2199_vm3, %v1954_v42, 0 }
 0x481   : > { %19369 = vmatpush3.bf16.msra.mxu1 %v2201_v39  ;;  %19375 = vmatpush3.bf16.msra.mxu0 %v2247_v40 }
 0x482   : > { %19380 = vmatprep.subr.bf16.mxu1 %v20527_v1  ;;  %19386 = vmatprep.subr.bf16.mxu0 %v20527_v1 }
 0x484   : > { %19371 = vmatmul.mubr.msk.bf16.vlgmr.msra.gmra.mrb[8].mxu1 %vm1955_vm2, %v2192_v43  ;;  %19377 = vmatmul.mubr.msk.bf16.vlgmr.msra.gmra.mrb[12].mxu0 %vm1955_vm2, %v2193_v46 }
 0x485   : > { %19381 = vmatpush3.bf16.msra.mxu1 %v2293_v36  ;;  %19387 = vmatpush3.bf16.msra.mxu0 %v2339_v37 }
 0x486   : > { %19382 = vmatprep.mubr.msk.bf16.mxu1 %vm20528_vm0, %v20527_v1  ;;  %19388 = vmatprep.mubr.msk.bf16.mxu0 %vm20528_vm0, %v20527_v1 }
 0x487   : > { %19392 = vmatprep.subr.bf16.mxu1 %v20527_v1 }
 0x49b   : > { %v2183_v12 = vpop.xlane.xlu0 %2182 }
 0x49c   : > { %20364 = vrcp.f32 %v2183_v12  ;;  %v2180_v11 = vpop.xlane.xlu1 %2179 }
 0x49d   : > { %20366 = vrcp.f32 %v2180_v11 }
 0x4a6   : > { %v20365_v47 = vpop.eup %20364 }
 0x4a7   : > { %v20367_v48 = vpop.eup %20366  ;;  %v2191_v49 = vmul.f32 %v20365_v47, %v20925_v44 }
 0x4a8   : > { %v2189_v50 = vmul.f32 %v20367_v48, %v20927_v45 }
 0x4a9   : > { %v2195_v51 = vpack.c.bf16 %v2191_v49, %v2191_v49 }
 0x4aa   : > { %v2194_v52 = vpack.c.bf16 %v2189_v50, %v2189_v50 }
 0x4ab   : > { %19389 = vmatmul.mubr.msk.bf16.vlgmr.msra.gmra.mrb[16].mxu0 %vm1955_vm2, %v2195_v51 }
 0x4ac   : > { %19383 = vmatmul.mubr.msk.bf16.vlgmr.msra.gmra.mrb[12].mxu1 %vm1955_vm2, %v2194_v52 }
 0x4ad   : > { %19396 = vmatprep.mubr.msk.bf16.mxu1 %vm20528_vm0, %v20527_v1  ;;  %19393 = vmatpush3.bf16.msra.mxu1 %v19812_v18 }
 0x4ae   : > { %19394 = vmatprep.subr.bf16.mxu1 %v20527_v1 }
 0x4b1   : > { %19395 = vmatpush3.bf16.msra.mxu1 %v19813_v28  ;;  %v2853_v28 = vld [vmem:[%s23158_s6 + $0x10] sm:$0xff] }
 0x557   : > { %v2237_v53 = vpop.f32.mrb[8].mxu1  ;;  %v2283_v54 = vpop.f32.mrb[12].mxu0 }
 0x558   : > { %v19372_v55 = vpop.f32.mrb[9].mxu1  ;;  %v19378_v56 = vpop.f32.mrb[13].mxu0 }
 0x559   : > { %v2240_v58 = vpop.f32.mrb[10].mxu1  ;;  %v2286_v59 = vpop.f32.mrb[14].mxu0  ;;  %v17033_v55 = vld [vmem:[%s23154_s19] ss:$0 sm:$0xff] }
 0x55a   : > { %v19373_v60 = vpop.f32.mrb[11].mxu1  ;;  %v19379_v61 = vpop.f32.mrb[15].mxu0  ;;  %v20472_v56 = vld [vmem:[%s20798_s11] sm:$0xf]  ;;  %s23166_s11 = sld [smem:[#allocation20_spill]] }
 0x55b   : > { %v1426_v58 = vunpack.c.l.bf16 %v20472_v56  ;;  %v19816_v56 = vld [vmem:[%s23153_s20 + $0x100] sm:$0xff]  }
 0x57e   : > { %v2375_v44 = vpop.f32.mrb[16].mxu0 }
 0x57f   : > { %v2329_v45 = vpop.f32.mrb[12].mxu1  ;;  %v2397_v62 = vcombine.low %v2283_v54, %v2375_v44  ;;  %v2398_v63 = vcombine.high %v2283_v54, %v2375_v44  ;;  %v19390_v0 = vpop.f32.mrb[17].mxu0 }
 0x580   : > { %v2381_v2 = vcombine.low %v2237_v53, %v2329_v45  ;;  %v2382_v3 = vcombine.high %v2237_v53, %v2329_v45  ;;  %v19384_v4 = vpop.f32.mrb[13].mxu1  ;;  %v2378_v5 = vpop.f32.mrb[18].mxu0 }
 0x581   : > { %v2405_v7 = vrot.slane %v2397_v62, %v20835_v22  ;;  %v2412_v8 = vrot.slane %v2398_v63, %v20835_v22  ;;  %v2332_v9 = vpop.f32.mrb[14].mxu1  ;;  %v19391_v13 = vpop.f32.mrb[19].mxu0 }
 0x582   : > { %v2389_v14 = vrot.slane %v2381_v2, %v20835_v22  ;;  %v2396_v15 = vrot.slane %v2382_v3, %v20835_v22  ;;  %v19385_v16 = vpop.f32.mrb[15].mxu1  ;;  %v2627_v9 = vld [vmem:[%s23158_s6 + $0x8] sm:$0xff] }
 0x584   : > { %v2413_v19 = vcombine.low %v2389_v14, %v2405_v7  ;;  %v2414_v20 = vcombine.high %v2389_v14, %v2405_v7  ;;  %v2429_v21 = vcombine.low %v2396_v15, %v2412_v8  ;;  %v2430_v23 = vcombine.high %v2396_v15, %v2412_v8  ;;  %v2626_v7 = vld [vmem:[%s23158_s6] sm:$0xff]  ;;  %v2629_v14 = vld [vmem:[%s23158_s6 + $0x48] sm:$0xff] }
 0x585   : > { %v2628_v8 = vld [vmem:[%s23158_s6 + $0x40] sm:$0xff]  ;;  %v17041_v16 = vcombine.low %v2627_v9, %v2629_v14  ;;  %v17042_v18 = vcombine.high %v2627_v9, %v2629_v14  ;;  %v19834_v14 = vld [vmem:[%s23153_s20 + $0x168] sm:$0xff]  }
 0x586   : > { %v2421_v24 = vrot.slane %v2413_v19, %v20846_v32  ;;  %v2428_v25 = vrot.slane %v2414_v20, %v20846_v32  ;;  %v2437_v26 = vrot.slane %v2429_v21, %v20846_v32  ;;  %v2444_v27 = vrot.slane %v2430_v23, %v20846_v32  ;;  %v2630_v19 = vld [vmem:[%s23158_s6 + $0x80] sm:$0xff]  ;;  %v2631_v21 = vld [vmem:[%s23158_s6 + $0x88] sm:$0xff] }
 0x587   : > { %v17040_v13 = vcombine.high %v2626_v7, %v2628_v8  ;;  %v17039_v15 = vcombine.low %v2626_v7, %v2628_v8  ;;  %2740 = vmatprep.subr.bf16.mxu1 %v17042_v18  ;;  %v2632_v20 = vld [vmem:[%s23158_s6 + $0xc0] sm:$0xff]  ;;  %v19837_v18 = vld [vmem:[%s23153_s20 + $0x1a8] sm:$0xff]  }
 0x588   : > { %v2449_v29 = vcombine.low %v2421_v24, %v2428_v25  ;;  %v17031_v30 = vcombine.high %v2421_v24, %v2428_v25  ;;  %v2465_v31 = vcombine.low %v2437_v26, %v2444_v27  ;;  %v17032_v33 = vcombine.high %v2437_v26, %v2444_v27  ;;  %v2633_v24 = vld [vmem:[%s23158_s6 + $0xc8] sm:$0xff]  ;;  %v19830_v7 = vld [vmem:[%s23153_s20 + $0x160] sm:$0xff]  }
 0x589   : > { %2699 = vmatprep.subr.bf16.mxu0 %v17040_v13  ;;  %v17044_v23 = vcombine.high %v2630_v19, %v2632_v20  ;;  %v17043_v25 = vcombine.low %v2630_v19, %v2632_v20  ;;  %v17045_v26 = vcombine.low %v2631_v21, %v2633_v24  ;;  %v17046_v27 = vcombine.high %v2631_v21, %v2633_v24  ;;  %v19831_v8 = vld [vmem:[%s23153_s20 + $0x1e0] sm:$0xff]   ;;  %v19838_v19 = vld [vmem:[%s23153_s20 + $0x170] sm:$0xff]   ;;  %v19842_v24 = vld [vmem:[%s23153_s20 + $0x178] sm:$0xff]  }
 0x58a   : > { %v2456_v34 = vrot.slane %v2449_v29, %v20835_v22  ;;  %v2464_v35 = vrot.slane %v17031_v30, %v20835_v22  ;;  %v2472_v38 = vrot.slane %v2465_v31, %v20835_v22  ;;  %v2480_v10 = vrot.slane %v17032_v33, %v20835_v22  ;;  %2700 = vmatpush1.bf16.msra.mxu0 %v17039_v15  ;;  %v2855_v29 = vld [vmem:[%s23158_s6 + $0x50] sm:$0xff]  ;;  %v2854_v30 = vld [vmem:[%s23158_s6 + $0x18] sm:$0xff]  ;;  %v19832_v9 = vld [vmem:[%s23153_s20 + $0x120] sm:$0xff]  }
 0x58b   : > { %2701 = vmatprep.subr.bf16.mxu0 %v17044_v23  ;;  %v17050_v31 = vcombine.high %v2853_v28, %v2855_v29  ;;  %v2856_v33 = vld [vmem:[%s23158_s6 + $0x58] sm:$0xff]  ;;  %v19833_v13 = vld [vmem:[%s23153_s20 + $0x1a0] sm:$0xff]   ;;  %v19835_v15 = vld [vmem:[%s23153_s20 + $0x1e8] sm:$0xff]  }
 0x58c   : > { %v2482_v6 = vcombine.high %v2456_v34, %v2464_v35  ;;  %v2498_v39 = vcombine.high %v2472_v38, %v2480_v10  ;;  %v2481_v40 = vcombine.low %v2456_v34, %v2464_v35  ;;  %v2497_v41 = vcombine.low %v2472_v38, %v2480_v10  ;;  %v19839_v20 = vld [vmem:[%s23153_s20 + $0x1f0] sm:$0xff]  }
 0x58d   : > { %v20539_v34 = vmov 0   ;;  %v17049_v35 = vcombine.low %v2853_v28, %v2855_v29  ;;  %v17051_v38 = vcombine.low %v2854_v30, %v2856_v33  ;;  %v17052_v10 = vcombine.high %v2854_v30, %v2856_v33  ;;  %v19840_v21 = vld [vmem:[%s23153_s20 + $0x130] sm:$0xff]   ;;  %v19846_v28 = vld [vmem:[%s23153_s20 + $0x40] sm:$0xff]  }
 0x58e   : > { %v2496_v42 = vrot.slane %v2482_v6, %v20846_v32  ;;  %v2512_v43 = vrot.slane %v2498_v39, %v20846_v32  ;;  %v2489_v46 = vrot.slane %v2481_v40, %v20846_v32  ;;  %v2505_v36 = vrot.slane %v2497_v41, %v20846_v32  ;;  %2702 = vmatpush1.bf16.msra.mxu0 %v17043_v25  ;;  %v19841_v23 = vld [vmem:[%s23153_s20 + $0x1b0] sm:$0xff]   ;;  %v19843_v25 = vld [vmem:[%s23153_s20 + $0x1f8] sm:$0xff]   ;;  %v19847_v29 = vld [vmem:[%s23153_s20 + $0xc0] sm:$0xff]  }
 0x58f   : > { %2731 = vmatprep.mubr.bf16.mxu0 %v20539_v34  ;;  %2923 = vmatprep.subr.bf16.mxu0 %v17050_v31  ;;  %v21075_v33 = vsub.s32 1, %v20828_v17 }
 0x590   : > { %v2515_v37 = vcombine.low %v2496_v42, %v2512_v43  ;;  %v2514_v12 = vcombine.high %v2489_v46, %v2505_v36  ;;  %v2516_v11 = vcombine.high %v2496_v42, %v2512_v43  ;;  %v2513_v47 = vcombine.low %v2489_v46, %v2505_v36  ;;  %v17037_v42 = vld [vmem:[%s23152_s24] ss:$0 sm:$0xff] }
 0x591   : > { %v17038_v46 = vld [vmem:[%s23150_s30] ss:$0 sm:$0xff] }
 0x592   : > { %2522 = vrot.lane.b32.xlu1 %v2515_v37, %s23080_s28  ;;  %2518 = vrot.lane.b32.xlu0 %v2514_v12, %s23078_s1  ;;  %v2857_v37 = vld [vmem:[%s23158_s6 + $0x90] sm:$0xff] }
 0x593   : > { %v2859_v12 = vld [vmem:[%s23158_s6 + $0xd0] sm:$0xff] }
 0x596   : > { %2526 = vrot.lane.b32.xlu1 %v2516_v11, %s23076_s2  ;;  %v2858_v11 = vld [vmem:[%s23158_s6 + $0x98] sm:$0xff] }
 0x604   : > { %v2523_v48 = vpop.permute.xlu1 %2522  ;;  %v2519_v49 = vpop.permute.xlu0 %2518 }
 0x605   : > { %v2529_v50 = vsel %vm1955_vm2, %v2513_v47, %v2519_v49  ;;  %v2860_v47 = vld [vmem:[%s23158_s6 + $0xd8] sm:$0xff] }
 0x606   : > { %v2531_v52 = vsel %vm2530_vm4, %v2529_v50, %v2523_v48  ;;  %v17054_v50 = vcombine.high %v2857_v37, %v2859_v12 }
 0x608   : > { %v2527_v51 = vpop.permute.xlu1 %2526 }
 0x609   : > { %v2533_v53 = vsel %vm2532_vm5, %v2531_v52, %v2527_v51  ;;  %v17056_v51 = vcombine.high %v2858_v11, %v2860_v47  ;;  %v17053_v52 = vcombine.low %v2857_v37, %v2859_v12 }
 0x60a   : > { %v2534_v54 = vpack.c.bf16 %v2533_v53, %v2533_v53  ;;  %v17055_v53 = vcombine.low %v2858_v11, %v2860_v47 }
 0x60c   : > { %19397 = vmatmul.mubr.msk.bf16.vlgmr.msra.gmra.mrb[16].mxu1 %vm1450_vm1, %v2534_v54  ;;  %v19814_v54 = vld [vmem:[%s23153_s20 + $0x140] sm:$0xff]  }
 0x60d   : > { %2741 = vmatpush1.bf16.msra.mxu1 %v17041_v16  ;;  %2772 = vmatprep.mubr.bf16.mxu1 %v20539_v34  ;;  %v19836_v16 = vld [vmem:[%s23153_s20 + $0x128] sm:$0xff]  }
 0x60e   : > { %2742 = vmatprep.subr.bf16.mxu1 %v17046_v27  ;;  %v19845_v27 = vld [vmem:[%s23153_s20 + $0x1b8] sm:$0xff]  }
 0x611   : > { %2743 = vmatpush1.bf16.msra.mxu1 %v17045_v26  ;;  %v19844_v26 = vld [vmem:[%s23153_s20 + $0x138] sm:$0xff]  }
 0x612   : > { %2964 = vmatprep.subr.bf16.mxu1 %v17052_v10 }
 0x6df   : > { %v2590_v59 = vpop.f32.mrb[16].mxu1 }
 0x6e0   : > { %v2591_v60 = vadd.f32 %v17033_v55, %v2590_v59  ;;  %v19398_v61 = vpop.f32.mrb[17].mxu1  ;;  %v19815_v55 = vld [vmem:[%s23153_s20 + $0x1c0] sm:$0xff]   ;;  %v19818_v59 = vld [vmem:[%s23153_s20 + $0x148] sm:$0xff]  }
 0x6e1   : > { %v2593_v44 = vpop.f32.mrb[18].mxu1  ;;  %v19820_v61 = vld [vmem:[%s23153_s20 + $0x108] sm:$0xff]  }
 0x6e2   : > { %v19399_v45 = vpop.f32.mrb[19].mxu1  ;;  %v2596_v62 = vadd.f32 %v2591_v60, %v1426_v58  ;;  %v19817_v58 = vld [vmem:[%s23153_s20 + $0x180] sm:$0xff]   ;;  %v19819_v60 = vld [vmem:[%s23153_s20 + $0x1c8] sm:$0xff]  }
 0x6e3   : > { %v19821_v44 = vld [vmem:[%s23153_s20 + $0x188] sm:$0xff]   ;;  %v19822_v45 = vld [vmem:[%s23153_s20 + $0x150] sm:$0xff]  }
 0x6e4   : > { %v2597_v63 = vsel %vm1450_vm1, %v2596_v62, 0.0 }
 0x6e5   : > { %2598 = vadd.xlane.f32.xlu0 %v2597_v63  ;;  %v19824_v63 = vld [vmem:[%s23153_s20 + $0x110] sm:$0xff]  }
 0x772   : > { %v2599_v0 = vpop.xlane.xlu0 %2598 }
 0x773   : > { %v2601_v2 = vmul.f32 0.03125, %v2599_v0  ;;  %v19825_v0 = vld [vmem:[%s23153_s20 + $0x190] sm:$0xff]  }
 0x775   : > { %v2602_v3 = vsub.f32 %v2596_v62, %v2601_v2  ;;  %v19823_v62 = vld [vmem:[%s23153_s20 + $0x1d0] sm:$0xff]   ;;  %v19826_v2 = vld [vmem:[%s23153_s20 + $0x158] sm:$0xff]  }
 0x777   : > { %v2603_v4 = vmul.f32 %v2602_v3, %v2602_v3 }
 0x779   : > { %v2604_v5 = vsel %vm1450_vm1, %v2603_v4, 0.0  ;;  %v19828_v4 = vld [vmem:[%s23153_s20 + $0x118] sm:$0xff]  }
 0x77a   : > { %2605 = vadd.xlane.f32.xlu1 %v2604_v5  ;;  %v19829_v5 = vld [vmem:[%s23153_s20 + $0x198] sm:$0xff]  }
 0x807   : > { %v2606_v6 = vpop.xlane.xlu1 %2605 }
 0x808   : > { %v2607_v39 = vmul.f32 0.03125, %v2606_v6  ;;  %v21081_v6 = vld [vmem:[%s23156_s12] sm:$0xf] }
 0x809   : > { %v2643_v37 = vrot.slane %v21081_v6, %v21075_v33 }
 0x80a   : > { %v2608_v40 = vadd.f32 1e-05, %v2607_v39 }
 0x80c   : > { %20368 = vrsqrt.f32 %v2608_v40 }
 0x816   : > { %v20369_v41 = vpop.eup %20368 }
 0x817   : > { %v2610_v43 = vmul.f32 %v20369_v41, %v2602_v3  ;;  %v19827_v3 = vld [vmem:[%s23153_s20 + $0x1d8] sm:$0xff]   ;;  %v2861_v41 = vld [vmem:[%s23156_s12 + $0x4] sm:$0xf] }
 0x819   : > { %v2617_v36 = vmul.f32 %v17037_v42, %v2610_v43  ;;  %v21085_v42 = vsub.s32 0, %v20828_v17  ;;  %v21088_v43 = vsub.s32 2, %v20828_v17 }
 0x81b   : > { %v21020_v48 = vadd.f32 %v17038_v46, %v2617_v36  ;;  %v2866_v11 = vrot.slane %v2861_v41, %v21085_v42  ;;  %v2874_v47 = vrot.slane %v2861_v41, %v21088_v43 }
 0x81d   : > { %v21024_v49 = vpack.c.bf16 %v21020_v48, %v21020_v48 }
 0x81f   : > { %17047 = vmatmul.mubr.msk.bf16.vlgmr.msra.gmra.mrb[20].mxu0 %vm1450_vm1, %v21024_v49  ;;  %17048 = vmatmul.mubr.msk.bf16.vlgmr.msra.gmra.mrb[20].mxu1 %vm1450_vm1, %v21024_v49 }
 0x820   : > { %2924 = vmatpush1.bf16.msra.mxu0 %v17049_v35  ;;  %2965 = vmatpush1.bf16.msra.mxu1 %v17051_v38  ;;  %v21078_v38 = vsub.s32 3, %v20828_v17 }
 0x821   : > { %2925 = vmatprep.subr.bf16.mxu0 %v17054_v50  ;;  %2966 = vmatprep.subr.bf16.mxu1 %v17056_v51  ;;  %v2870_v50 = vrot.slane %v2861_v41, %v21075_v33 }
 0x822   : > { %2955 = vmatprep.mubr.bf16.mxu0 %v20539_v34  ;;  %2996 = vmatprep.mubr.bf16.mxu1 %v20539_v34  ;;  %v2651_v12 = vrot.slane %v21081_v6, %v21078_v38  ;;  %v2878_v51 = vrot.slane %v2861_v41, %v21078_v38  ;;  %v19863_v41 = vld [vmem:[%s23153_s20 + $0xe0] sm:$0xff]  }
 0x824   : > { %2926 = vmatpush1.bf16.msra.mxu0 %v17053_v52  ;;  %2967 = vmatpush1.bf16.msra.mxu1 %v17055_v53 }
 0x825   : > { %18513 = vmatprep.subr.bf16.mxu0 %v19814_v54  ;;  %18535 = vmatprep.subr.bf16.mxu1 %v19815_v55 }
 0x827   : > { %17057 = vmatmul.mubr.msk.bf16.vlgmr.msra.gmra.mrb[24].mxu0 %vm1450_vm1, %v21024_v49  ;;  %17058 = vmatmul.mubr.msk.bf16.vlgmr.msra.gmra.mrb[24].mxu1 %vm1450_vm1, %v21024_v49 }
 0x828   : > { %18514 = vmatpush3.bf16.msra.mxu0 %v19816_v56  ;;  %18536 = vmatpush3.bf16.msra.mxu1 %v19817_v58 }
 0x829   : > { %18515 = vmatprep.subr.bf16.mxu0 %v19818_v59  ;;  %18537 = vmatprep.subr.bf16.mxu1 %v19819_v60 }
 0x82c   : > { %18516 = vmatpush3.bf16.msra.mxu0 %v19820_v61  ;;  %18538 = vmatpush3.bf16.msra.mxu1 %v19821_v44 }
 0x82d   : > { %18517 = vmatprep.subr.bf16.mxu0 %v19822_v45  ;;  %18539 = vmatprep.subr.bf16.mxu1 %v19823_v62 }
 0x830   : > { %18518 = vmatpush3.bf16.msra.mxu0 %v19824_v63  ;;  %18540 = vmatpush3.bf16.msra.mxu1 %v19825_v0 }
 0x831   : > { %18519 = vmatprep.subr.bf16.mxu0 %v19826_v2  ;;  %18541 = vmatprep.subr.bf16.mxu1 %v19827_v3 }
 0x834   : > { %18520 = vmatpush3.bf16.msra.mxu0 %v19828_v4  ;;  %18542 = vmatpush3.bf16.msra.mxu1 %v19829_v5 }
 0x835   : > { %18521 = vmatprep.subr.bf16.mxu0 %v19830_v7  ;;  %18543 = vmatprep.subr.bf16.mxu1 %v19831_v8 }
 0x838   : > { %18522 = vmatpush3.bf16.msra.mxu0 %v19832_v9  ;;  %18544 = vmatpush3.bf16.msra.mxu1 %v19833_v13  ;;  %v19848_v13 = vld [vmem:[%s23153_s20] sm:$0xff]  }
 0x839   : > { %18523 = vmatprep.subr.bf16.mxu0 %v19834_v14  ;;  %18545 = vmatprep.subr.bf16.mxu1 %v19835_v15  ;;  %v19849_v14 = vld [vmem:[%s23153_s20 + $0x80] sm:$0xff]  }
 0x83c   : > { %18524 = vmatpush3.bf16.msra.mxu0 %v19836_v16  ;;  %18546 = vmatpush3.bf16.msra.mxu1 %v19837_v18  ;;  %v19850_v18 = vld [vmem:[%s23153_s20 + $0x48] sm:$0xff]  }
 0x83d   : > { %18525 = vmatprep.subr.bf16.mxu0 %v19838_v19  ;;  %18547 = vmatprep.subr.bf16.mxu1 %v19839_v20  ;;  %v19851_v19 = vld [vmem:[%s23153_s20 + $0xc8] sm:$0xff]  }
 0x840   : > { %18526 = vmatpush3.bf16.msra.mxu0 %v19840_v21  ;;  %18548 = vmatpush3.bf16.msra.mxu1 %v19841_v23  ;;  %v19852_v23 = vld [vmem:[%s23153_s20 + $0x8] sm:$0xff]  }
 0x841   : > { %18527 = vmatprep.subr.bf16.mxu0 %v19842_v24  ;;  %18549 = vmatprep.subr.bf16.mxu1 %v19843_v25  ;;  %v19853_v24 = vld [vmem:[%s23153_s20 + $0x88] sm:$0xff]   ;;  %v19854_v25 = vld [vmem:[%s23153_s20 + $0x50] sm:$0xff]  }
 0x844   : > { %18528 = vmatpush3.bf16.msra.mxu0 %v19844_v26  ;;  %18550 = vmatpush3.bf16.msra.mxu1 %v19845_v27  ;;  %v19855_v26 = vld [vmem:[%s23153_s20 + $0xd0] sm:$0xff]  }
 0x845   : > { %18557 = vmatprep.subr.bf16.mxu0 %v19846_v28  ;;  %18579 = vmatprep.subr.bf16.mxu1 %v19847_v29  ;;  %v19856_v27 = vld [vmem:[%s23153_s20 + $0x10] sm:$0xff]   ;;  %v19858_v29 = vld [vmem:[%s23153_s20 + $0x58] sm:$0xff]  }
 0x846   : > { %v19857_v28 = vld [vmem:[%s23153_s20 + $0x90] sm:$0xff]  }
 0x8f2   : > { %v21070_v30 = vpop.f32.mrb[20].mxu0  ;;  %v21072_v31 = vpop.f32.mrb[20].mxu1 }
 0x8f3   : > { %v2735_v35 = vpop.f32.mrb[21].mxu0  ;;  %v2776_v10 = vpop.f32.mrb[21].mxu1 }
 0x8f4   : > { %v2737_v39 = vpop.f32.mrb[22].mxu0  ;;  %v2778_v40 = vpop.f32.mrb[22].mxu1  ;;  %v2736_v17 = vadd.f32 %v2735_v35, %v2643_v37  ;;  %v2777_v54 = vadd.f32 %v2776_v10, %v2651_v12  ;;  %v19859_v35 = vld [vmem:[%s23153_s20 + $0xd8] sm:$0xff]   ;;  %v19866_v37 = vld [vmem:[%s23153_s20 + $0x68] sm:$0xff]  }
 0x8f5   : > { %v2738_v46 = vpop.f32.mrb[23].mxu0  ;;  %v2779_v36 = vpop.f32.mrb[23].mxu1  ;;  %v19860_v10 = vld [vmem:[%s23153_s20 + $0x18] sm:$0xff]   ;;  %v19862_v40 = vld [vmem:[%s23153_s20 + $0x60] sm:$0xff]   ;;  %v19867_v12 = vld [vmem:[%s23153_s20 + $0xe8] sm:$0xff]  }
 0x8f6   : > { %v2782_v5 = vmax.f32 %v2736_v17, 0.0  ;;  %v2784_v7 = vmax.f32 %v2777_v54, 0.0  ;;  %v19861_v39 = vld [vmem:[%s23153_s20 + $0x98] sm:$0xff]   ;;  %v19864_v46 = vld [vmem:[%s23153_s20 + $0x20] sm:$0xff]   ;;  %v19872_v17 = vld [vmem:[%s23153_s20 + $0x30] sm:$0xff]  }
 0x8f7   : > { %v19865_v36 = vld [vmem:[%s23153_s20 + $0xa0] sm:$0xff]   ;;  %v19873_v54 = vld [vmem:[%s23153_s20 + $0xb0] sm:$0xff]  }
 0x8f8   : > { %v2786_v20 = vpack.c.bf16 %v2782_v5, %v2782_v5  ;;  %v2788_v21 = vpack.c.bf16 %v2784_v7, %v2784_v7  ;;  %v3628_v5 = vld [vmem:[%s23158_s6 + $0xe8] sm:$0xff] }
 0x8fa   : > { %v2957_v52 = vpop.f32.mrb[24].mxu0  ;;  %v2998_v53 = vpop.f32.mrb[24].mxu1 }
 0x8fb   : > { %v2958_v55 = vadd.f32 %v2957_v52, %v2866_v11  ;;  %v2999_v56 = vadd.f32 %v2998_v53, %v2874_v47  ;;  %v2959_v58 = vpop.f32.mrb[25].mxu0  ;;  %v3000_v59 = vpop.f32.mrb[25].mxu1  ;;  %v19868_v11 = vld [vmem:[%s23153_s20 + $0x28] sm:$0xff]   ;;  %v19870_v52 = vld [vmem:[%s23153_s20 + $0x70] sm:$0xff]  }
 0x8fc   : > { %v2960_v60 = vadd.f32 %v2959_v58, %v2870_v50  ;;  %v3001_v61 = vadd.f32 %v3000_v59, %v2878_v51  ;;  %v2961_v44 = vpop.f32.mrb[26].mxu0  ;;  %v3002_v45 = vpop.f32.mrb[26].mxu1  ;;  %v19869_v47 = vld [vmem:[%s23153_s20 + $0xa8] sm:$0xff]   ;;  %v2639_v50 = vrot.slane %v21081_v6, %v21085_v42  ;;  %v2647_v51 = vrot.slane %v21081_v6, %v21088_v43  ;;  %v19871_v53 = vld [vmem:[%s23153_s20 + $0xf0] sm:$0xff]   ;;  %v19874_v6 = vld [vmem:[%s23153_s20 + $0x78] sm:$0xff]  }
 0x8fd   : > { %v3005_v62 = vmax.f32 %v2958_v55, 0.0  ;;  %v3007_v63 = vmax.f32 %v2999_v56, 0.0  ;;  %v2962_v0 = vpop.f32.mrb[27].mxu0  ;;  %v3003_v2 = vpop.f32.mrb[27].mxu1  ;;  %v19875_v58 = vld [vmem:[%s23153_s20 + $0xf8] sm:$0xff]   ;;  %v3621_v59 = vld [vmem:[%s23158_s6 + $0x20] sm:$0xff] }
 0x8fe   : > { %v3006_v3 = vmax.f32 %v2960_v60, 0.0  ;;  %v3008_v4 = vmax.f32 %v3001_v61, 0.0  ;;  %v2734_v55 = vadd.f32 %v21070_v30, %v2639_v50  ;;  %v2775_v56 = vadd.f32 %v21072_v31, %v2647_v51  ;;  %v3623_v60 = vld [vmem:[%s23158_s6 + $0x60] sm:$0xff]  ;;  %v3622_v61 = vld [vmem:[%s23158_s6 + $0x28] sm:$0xff]  ;;  %v19876_v45 = vld [vmem:[%s23153_s20 + $0x38] sm:$0xff]  }
 0x8ff   : > { %v3009_v15 = vpack.c.bf16 %v3005_v62, %v3005_v62  ;;  %v3011_v16 = vpack.c.bf16 %v3007_v63, %v3007_v63  ;;  %v3624_v44 = vld [vmem:[%s23158_s6 + $0x68] sm:$0xff]  ;;  %v19877_v62 = vld [vmem:[%s23153_s20 + $0xb8] sm:$0xff]   ;;  %v17124_v31 = vcombine.high %v3621_v59, %v3623_v60  ;;  %v3625_v2 = vld [vmem:[%s23158_s6 + $0xa0] sm:$0xff]  ;;  %v17123_v7 = vcombine.low %v3621_v59, %v3623_v60 }
 0x900   : > { %v3010_v8 = vpack.c.bf16 %v3006_v3, %v3006_v3  ;;  %v3012_v9 = vpack.c.bf16 %v3008_v4, %v3008_v4  ;;  %v2781_v63 = vmax.f32 %v2734_v55, 0.0  ;;  %v2783_v30 = vmax.f32 %v2775_v56, 0.0  ;;  %v3627_v3 = vld [vmem:[%s23158_s6 + $0xe0] sm:$0xff]  ;;  %v3626_v4 = vld [vmem:[%s23158_s6 + $0xa8] sm:$0xff]  ;;  %v19905_v55 = vld [vmem:[%s23153_s20 + $0x2b0] sm:$0xff]  }
 0x901   : > { %v17126_v0 = vcombine.high %v3622_v61, %v3624_v44  ;;  %v19899_v50 = vld [vmem:[%s23153_s20 + $0x2e8] sm:$0xff]   ;;  %v19906_v56 = vld [vmem:[%s23153_s20 + $0x278] sm:$0xff]   ;;  %v21181_v60 = vld [vmem:[%s23158_s6 + $0x30] sm:$0xff] }
 0x902   : > { %3301 = vmatprep.mubr.bf16.mxu0 %v3010_v8  ;;  %3341 = vmatprep.mubr.bf16.mxu1 %v3012_v9  ;;  %v17125_v8 = vcombine.low %v3622_v61, %v3624_v44  ;;  %v17128_v9 = vcombine.high %v3625_v2, %v3627_v3  ;;  %v19900_v51 = vld [vmem:[%s23153_s20 + $0x228] sm:$0xff]   ;;  %v19909_v59 = vld [vmem:[%s23153_s20 + $0x2b8] sm:$0xff]   ;;  %v21184_v61 = vld [vmem:[%s23158_s6 + $0x70] sm:$0xff] }
 0x903   : > { %3302 = vmatmul.mubr.bf16.vlgmr.msra.gmra.mrb[28].mxu0 %v3009_v15  ;;  %3342 = vmatmul.mubr.bf16.vlgmr.msra.gmra.mrb[28].mxu1 %v3011_v16  ;;  %v17130_v15 = vcombine.high %v3626_v4, %v3628_v5  ;;  %v17127_v16 = vcombine.low %v3625_v2, %v3627_v3  ;;  %v21187_v44 = vld [vmem:[%s23158_s6 + $0x38] sm:$0xff] }
 0x904   : > { %18558 = vmatpush3.bf16.msra.mxu0 %v19848_v13  ;;  %18580 = vmatpush3.bf16.msra.mxu1 %v19849_v14  ;;  %v2785_v13 = vpack.c.bf16 %v2781_v63, %v2781_v63  ;;  %v2787_v14 = vpack.c.bf16 %v2783_v30, %v2783_v30  ;;  %v17165_v63 = vcombine.low %v21181_v60, %v21184_v61 }
 0x905   : > { %3573 = vmatprep.mubr.bf16.mxu0 %v2786_v20  ;;  %3613 = vmatprep.mubr.bf16.mxu1 %v2788_v21  ;;  %v19879_v20 = vld [vmem:[%s23153_s20 + $0x2c0] sm:$0xff]  }
 0x906   : > { %18559 = vmatprep.subr.bf16.mxu0 %v19850_v18  ;;  %18581 = vmatprep.subr.bf16.mxu1 %v19851_v19  ;;  %v17129_v18 = vcombine.low %v3626_v4, %v3628_v5  ;;  %v19878_v19 = vld [vmem:[%s23153_s20 + $0x240] sm:$0xff]  }
 0x907   : > { %v19880_v21 = vld [vmem:[%s23153_s20 + $0x200] sm:$0xff]  }
 0x908   : > { %18560 = vmatpush3.bf16.msra.mxu0 %v19852_v23  ;;  %18582 = vmatpush3.bf16.msra.mxu1 %v19853_v24  ;;  %v19881_v23 = vld [vmem:[%s23153_s20 + $0x280] sm:$0xff]   ;;  %v19882_v24 = vld [vmem:[%s23153_s20 + $0x248] sm:$0xff]  }
 0x909   : > { %18561 = vmatprep.subr.bf16.mxu0 %v19854_v25  ;;  %18583 = vmatprep.subr.bf16.mxu1 %v19855_v26  ;;  %v19883_v25 = vld [vmem:[%s23153_s20 + $0x2c8] sm:$0xff]  }
 0x90a   : > { %v19884_v26 = vld [vmem:[%s23153_s20 + $0x208] sm:$0xff]  }
 0x90c   : > { %18562 = vmatpush3.bf16.msra.mxu0 %v19856_v27  ;;  %18584 = vmatpush3.bf16.msra.mxu1 %v19857_v28  ;;  %v19885_v27 = vld [vmem:[%s23153_s20 + $0x288] sm:$0xff]   ;;  %v19886_v28 = vld [vmem:[%s23153_s20 + $0x250] sm:$0xff]  }
 0x90d   : > { %18563 = vmatprep.subr.bf16.mxu0 %v19858_v29  ;;  %18585 = vmatprep.subr.bf16.mxu1 %v19859_v35  ;;  %v19887_v29 = vld [vmem:[%s23153_s20 + $0x2d0] sm:$0xff]  }
 0x90e   : > { %v19888_v35 = vld [vmem:[%s23153_s20 + $0x210] sm:$0xff]  }
 0x910   : > { %18564 = vmatpush3.bf16.msra.mxu0 %v19860_v10  ;;  %18586 = vmatpush3.bf16.msra.mxu1 %v19861_v39  ;;  %v19889_v10 = vld [vmem:[%s23153_s20 + $0x290] sm:$0xff]   ;;  %v19890_v39 = vld [vmem:[%s23153_s20 + $0x258] sm:$0xff]  }
 0x911   : > { %18565 = vmatprep.subr.bf16.mxu0 %v19862_v40  ;;  %18587 = vmatprep.subr.bf16.mxu1 %v19863_v41  ;;  %v19891_v40 = vld [vmem:[%s23153_s20 + $0x2d8] sm:$0xff]  }
 0x912   : > { %v19892_v41 = vld [vmem:[%s23153_s20 + $0x218] sm:$0xff]  }
 0x914   : > { %18566 = vmatpush3.bf16.msra.mxu0 %v19864_v46  ;;  %18588 = vmatpush3.bf16.msra.mxu1 %v19865_v36  ;;  %v19893_v46 = vld [vmem:[%s23153_s20 + $0x298] sm:$0xff]   ;;  %v19894_v36 = vld [vmem:[%s23153_s20 + $0x260] sm:$0xff]  }
 0x915   : > { %18567 = vmatprep.subr.bf16.mxu0 %v19866_v37  ;;  %18589 = vmatprep.subr.bf16.mxu1 %v19867_v12  ;;  %v19895_v37 = vld [vmem:[%s23153_s20 + $0x2e0] sm:$0xff]  }
 0x916   : > { %v19896_v12 = vld [vmem:[%s23153_s20 + $0x220] sm:$0xff]  }
 0x918   : > { %18568 = vmatpush3.bf16.msra.mxu0 %v19868_v11  ;;  %18590 = vmatpush3.bf16.msra.mxu1 %v19869_v47  ;;  %v19897_v11 = vld [vmem:[%s23153_s20 + $0x2a0] sm:$0xff]   ;;  %v19898_v47 = vld [vmem:[%s23153_s20 + $0x268] sm:$0xff]  }
 0x919   : > { %18569 = vmatprep.subr.bf16.mxu0 %v19870_v52  ;;  %18591 = vmatprep.subr.bf16.mxu1 %v19871_v53  ;;  %v19901_v52 = vld [vmem:[%s23153_s20 + $0x2a8] sm:$0xff]   ;;  %v19902_v53 = vld [vmem:[%s23153_s20 + $0x270] sm:$0xff]  }
 0x91c   : > { %18570 = vmatpush3.bf16.msra.mxu0 %v19872_v17  ;;  %18592 = vmatpush3.bf16.msra.mxu1 %v19873_v54  ;;  %v19903_v17 = vld [vmem:[%s23153_s20 + $0x2f0] sm:$0xff]  }
 0x91d   : > { %18571 = vmatprep.subr.bf16.mxu0 %v19874_v6  ;;  %18593 = vmatprep.subr.bf16.mxu1 %v19875_v58  ;;  %v19904_v54 = vld [vmem:[%s23153_s20 + $0x230] sm:$0xff]   ;;  %v19907_v6 = vld [vmem:[%s23153_s20 + $0x2f8] sm:$0xff]  }
 0x91e   : > { %v19908_v58 = vld [vmem:[%s23153_s20 + $0x238] sm:$0xff]  }
 0x920   : > { %18572 = vmatpush3.bf16.msra.mxu0 %v19876_v45  ;;  %18594 = vmatpush3.bf16.msra.mxu1 %v19877_v62  ;;  %v17166_v45 = vcombine.high %v21181_v60, %v21184_v61  ;;  %v21192_v62 = vld [vmem:[%s23158_s6 + $0x78] sm:$0xff]  ;;  %v4124_v60 = vld [vmem:[%s23158_s6 + $0xf0] sm:$0xff] }
 0x921   : > { %3691 = vmatprep.subr.bf16.mxu0 %v17124_v31  ;;  %3732 = vmatprep.subr.bf16.mxu1 %v17126_v0  ;;  %v17167_v30 = vcombine.low %v21187_v44, %v21192_v62  ;;  %v17168_v31 = vcombine.high %v21187_v44, %v21192_v62  ;;  %v4123_v61 = vld [vmem:[%s23158_s6 + $0xb8] sm:$0xff] }
 0x922   : > { %v4125_v44 = vld [vmem:[%s23158_s6 + $0xf8] sm:$0xff] }
 0x923   : > { %3574 = vmatmul.mubr.bf16.vlgmr.msra.gmra.mrb[32].mxu0 %v2785_v13  ;;  %3614 = vmatmul.mubr.bf16.vlgmr.msra.gmra.mrb[32].mxu1 %v2787_v14 }
 0x924   : > { %3692 = vmatpush1.bf16.msra.mxu0 %v17123_v7  ;;  %3733 = vmatpush1.bf16.msra.mxu1 %v17125_v8 }
 0x925   : > { %3693 = vmatprep.subr.bf16.mxu0 %v17128_v9  ;;  %3734 = vmatprep.subr.bf16.mxu1 %v17130_v15 }
 0x926   : > { %3723 = vmatprep.mubr.bf16.mxu0 %v20539_v34  ;;  %3764 = vmatprep.mubr.bf16.mxu1 %v20539_v34 }
 0x928   : > { %3694 = vmatpush1.bf16.msra.mxu0 %v17127_v16  ;;  %3735 = vmatpush1.bf16.msra.mxu1 %v17129_v18 }
 0x929   : > { %18601 = vmatprep.subr.bf16.mxu0 %v19878_v19  ;;  %18623 = vmatprep.subr.bf16.mxu1 %v19879_v20 }
 0x92b   : > { %17131 = vmatmul.mubr.msk.bf16.vlgmr.msra.gmra.mrb[36].mxu0 %vm1450_vm1, %v21024_v49  ;;  %17132 = vmatmul.mubr.msk.bf16.vlgmr.msra.gmra.mrb[36].mxu1 %vm1450_vm1, %v21024_v49 }
 0x92c   : > { %18602 = vmatpush3.bf16.msra.mxu0 %v19880_v21  ;;  %18624 = vmatpush3.bf16.msra.mxu1 %v19881_v23 }
 0x92d   : > { %18603 = vmatprep.subr.bf16.mxu0 %v19882_v24  ;;  %18625 = vmatprep.subr.bf16.mxu1 %v19883_v25 }
 0x930   : > { %18604 = vmatpush3.bf16.msra.mxu0 %v19884_v26  ;;  %18626 = vmatpush3.bf16.msra.mxu1 %v19885_v27  ;;  %v3629_v26 = vld [vmem:[%s23156_s12 + $0x8] sm:$0xf] }
 0x931   : > { %18605 = vmatprep.subr.bf16.mxu0 %v19886_v28  ;;  %18627 = vmatprep.subr.bf16.mxu1 %v19887_v29 }
 0x934   : > { %18606 = vmatpush3.bf16.msra.mxu0 %v19888_v35  ;;  %18628 = vmatpush3.bf16.msra.mxu1 %v19889_v10  ;;  %v3634_v35 = vrot.slane %v3629_v26, %v21085_v42  ;;  %v3642_v10 = vrot.slane %v3629_v26, %v21088_v43 }
 0x935   : > { %18607 = vmatprep.subr.bf16.mxu0 %v19890_v39  ;;  %18629 = vmatprep.subr.bf16.mxu1 %v19891_v40  ;;  %v3638_v40 = vrot.slane %v3629_v26, %v21075_v33 }
 0x938   : > { %18608 = vmatpush3.bf16.msra.mxu0 %v19892_v41  ;;  %18630 = vmatpush3.bf16.msra.mxu1 %v19893_v46  ;;  %v3646_v41 = vrot.slane %v3629_v26, %v21078_v38  ;;  %v19927_v26 = vld [vmem:[%s23153_s20 + $0x3e0] sm:$0xff]  }
 0x939   : > { %18609 = vmatprep.subr.bf16.mxu0 %v19894_v36  ;;  %18631 = vmatprep.subr.bf16.mxu1 %v19895_v37 }
 0x93c   : > { %18610 = vmatpush3.bf16.msra.mxu0 %v19896_v12  ;;  %18632 = vmatpush3.bf16.msra.mxu1 %v19897_v11 }
 0x93d   : > { %18611 = vmatprep.subr.bf16.mxu0 %v19898_v47  ;;  %18633 = vmatprep.subr.bf16.mxu1 %v19899_v50 }
 0x940   : > { %18612 = vmatpush3.bf16.msra.mxu0 %v19900_v51  ;;  %18634 = vmatpush3.bf16.msra.mxu1 %v19901_v52 }
 0x941   : > { %18613 = vmatprep.subr.bf16.mxu0 %v19902_v53  ;;  %18635 = vmatprep.subr.bf16.mxu1 %v19903_v17 }
 0x944   : > { %18614 = vmatpush3.bf16.msra.mxu0 %v19904_v54  ;;  %18636 = vmatpush3.bf16.msra.mxu1 %v19905_v55 }
 0x945   : > { %18615 = vmatprep.subr.bf16.mxu0 %v19906_v56  ;;  %18637 = vmatprep.subr.bf16.mxu1 %v19907_v6  ;;  %v4122_v6 = vld [vmem:[%s23158_s6 + $0xb0] sm:$0xff] }
 0x948   : > { %18616 = vmatpush3.bf16.msra.mxu0 %v19908_v58  ;;  %18638 = vmatpush3.bf16.msra.mxu1 %v19909_v59 }
 0x949   : > { %4188 = vmatprep.subr.bf16.mxu0 %v17166_v45  ;;  %4229 = vmatprep.subr.bf16.mxu1 %v17168_v31 }
 0x9d6   : > { %v18529_v0 = vpop.f32.mrb[28].mxu0  ;;  %v18551_v2 = vpop.f32.mrb[28].mxu1 }
 0x9d7   : > { %v18530_v3 = vpop.f32.mrb[29].mxu0  ;;  %v18552_v4 = vpop.f32.mrb[29].mxu1 }
 0x9d8   : > { %v18531_v5 = vadd.f32 %v18530_v3, %v18529_v0  ;;  %v18553_v7 = vadd.f32 %v18552_v4, %v18551_v2  ;;  %v18532_v8 = vpop.f32.mrb[30].mxu0  ;;  %v18554_v9 = vpop.f32.mrb[30].mxu1  ;;  %v17170_v2 = vcombine.high %v4122_v6, %v4124_v60  ;;  %v17172_v3 = vcombine.high %v4123_v61, %v4125_v44 }
 0x9d9   : > { %v18533_v13 = vpop.f32.mrb[31].mxu0  ;;  %v18555_v14 = vpop.f32.mrb[31].mxu1  ;;  %v17169_v4 = vcombine.low %v4122_v6, %v4124_v60  ;;  %v19911_v8 = vld [vmem:[%s23153_s20 + $0x3c0] sm:$0xff]  }
 0x9da   : > { %v3344_v15 = vadd.f32 %v18553_v7, %v18531_v5  ;;  %v17171_v5 = vcombine.low %v4123_v61, %v4125_v44  ;;  %v19910_v7 = vld [vmem:[%s23153_s20 + $0x340] sm:$0xff]   ;;  %v19915_v13 = vld [vmem:[%s23153_s20 + $0x3c8] sm:$0xff]  }
 0x9db   : > { %v19913_v9 = vld [vmem:[%s23153_s20 + $0x380] sm:$0xff]   ;;  %v19916_v14 = vld [vmem:[%s23153_s20 + $0x308] sm:$0xff]  }
 0x9f6   : > { %v18573_v16 = vpop.f32.mrb[32].mxu0  ;;  %v18595_v18 = vpop.f32.mrb[32].mxu1 }
 0x9f7   : > { %v18574_v19 = vpop.f32.mrb[33].mxu0  ;;  %v18596_v20 = vpop.f32.mrb[33].mxu1 }
 0x9f8   : > { %v18575_v21 = vadd.f32 %v18574_v19, %v18573_v16  ;;  %v18597_v23 = vadd.f32 %v18596_v20, %v18595_v18  ;;  %v18576_v24 = vpop.f32.mrb[34].mxu0  ;;  %v18598_v25 = vpop.f32.mrb[34].mxu1  ;;  %v19918_v16 = vld [vmem:[%s23153_s20 + $0x350] sm:$0xff]  }
 0x9f9   : > { %v18577_v27 = vpop.f32.mrb[35].mxu0  ;;  %v18599_v28 = vpop.f32.mrb[35].mxu1  ;;  %v19919_v18 = vld [vmem:[%s23153_s20 + $0x3d0] sm:$0xff]   ;;  %v19925_v24 = vld [vmem:[%s23153_s20 + $0x398] sm:$0xff]   ;;  %v19926_v25 = vld [vmem:[%s23153_s20 + $0x360] sm:$0xff]  }
 0x9fa   : > { %v3576_v29 = vadd.f32 %v18575_v21, %v3344_v15  ;;  %v19917_v15 = vld [vmem:[%s23153_s20 + $0x388] sm:$0xff]   ;;  %v19920_v19 = vld [vmem:[%s23153_s20 + $0x310] sm:$0xff]   ;;  %v19923_v21 = vld [vmem:[%s23153_s20 + $0x3d8] sm:$0xff]  }
 0x9fb   : > { %v19921_v20 = vld [vmem:[%s23153_s20 + $0x390] sm:$0xff]   ;;  %v19928_v27 = vld [vmem:[%s23153_s20 + $0x320] sm:$0xff]  }
 0x9fc   : > { %v21203_v39 = vadd.f32 %v18597_v23, %v3576_v29  ;;  %v19924_v23 = vld [vmem:[%s23153_s20 + $0x318] sm:$0xff]   ;;  %v19929_v28 = vld [vmem:[%s23153_s20 + $0x3a0] sm:$0xff]   ;;  %v19930_v29 = vld [vmem:[%s23153_s20 + $0x368] sm:$0xff]  }
 0x9fe   : > { %v3725_v46 = vpop.f32.mrb[36].mxu0  ;;  %v3766_v36 = vpop.f32.mrb[36].mxu1 }
 0x9ff   : > { %v3726_v37 = vadd.f32 %v3725_v46, %v3634_v35  ;;  %v3767_v12 = vadd.f32 %v3766_v36, %v3642_v10  ;;  %v3727_v11 = vpop.f32.mrb[37].mxu0  ;;  %v3768_v47 = vpop.f32.mrb[37].mxu1  ;;  %v19931_v35 = vld [vmem:[%s23153_s20 + $0x3e8] sm:$0xff]   ;;  %v19935_v46 = vld [vmem:[%s23153_s20 + $0x3f0] sm:$0xff]  }
 0xa00   : > { %v3728_v50 = vadd.f32 %v3727_v11, %v3638_v40  ;;  %v3769_v51 = vadd.f32 %v3768_v47, %v3646_v41  ;;  %v3729_v52 = vpop.f32.mrb[38].mxu0  ;;  %v3770_v53 = vpop.f32.mrb[38].mxu1  ;;  %v19932_v10 = vld [vmem:[%s23153_s20 + $0x328] sm:$0xff]   ;;  %v19934_v41 = vld [vmem:[%s23153_s20 + $0x370] sm:$0xff]   ;;  %v19939_v11 = vld [vmem:[%s23153_s20 + $0x3f8] sm:$0xff]  }
 0xa01   : > { %v3773_v17 = vmax.f32 %v3726_v37, 0.0  ;;  %v3775_v54 = vmax.f32 %v3767_v12, 0.0  ;;  %v3730_v55 = vpop.f32.mrb[39].mxu0  ;;  %v3771_v56 = vpop.f32.mrb[39].mxu1  ;;  %v19933_v40 = vld [vmem:[%s23153_s20 + $0x3a8] sm:$0xff]   ;;  %v19936_v36 = vld [vmem:[%s23153_s20 + $0x330] sm:$0xff]  }
 0xa02   : > { %v3774_v58 = vmax.f32 %v3728_v50, 0.0  ;;  %v3776_v59 = vmax.f32 %v3769_v51, 0.0  ;;  %v19937_v37 = vld [vmem:[%s23153_s20 + $0x3b0] sm:$0xff]   ;;  %v19938_v12 = vld [vmem:[%s23153_s20 + $0x378] sm:$0xff]  }
 0xa03   : > { %v3777_v31 = vpack.c.bf16 %v3773_v17, %v3773_v17  ;;  %v3779_v0 = vpack.c.bf16 %v3775_v54, %v3775_v54  ;;  %v19940_v47 = vld [vmem:[%s23153_s20 + $0x338] sm:$0xff]  }
 0xa04   : > { %v3778_v45 = vpack.c.bf16 %v3774_v58, %v3774_v58  ;;  %v3780_v62 = vpack.c.bf16 %v3776_v59, %v3776_v59  ;;  %v19941_v50 = vld [vmem:[%s23153_s20 + $0x3b8] sm:$0xff]   ;;  %v4126_v58 = vld [vmem:[%s23156_s12 + $0xc] sm:$0xf] }
 0xa05   : > { %v4131_v44 = vrot.slane %v4126_v58, %v21085_v42 }
 0xa06   : > { %4069 = vmatprep.mubr.bf16.mxu0 %v3778_v45  ;;  %4109 = vmatprep.mubr.bf16.mxu1 %v3780_v62  ;;  %v4139_v45 = vrot.slane %v4126_v58, %v21088_v43 }
 0xa07   : > { %4070 = vmatmul.mubr.bf16.vlgmr.msra.gmra.mrb[40].mxu0 %v3777_v31  ;;  %4110 = vmatmul.mubr.bf16.vlgmr.msra.gmra.mrb[40].mxu1 %v3779_v0  ;;  %v4135_v31 = vrot.slane %v4126_v58, %v21075_v33  ;;  %v4143_v0 = vrot.slane %v4126_v58, %v21078_v38 }
 0xa08   : > { %4189 = vmatpush1.bf16.msra.mxu0 %v17165_v63  ;;  %4230 = vmatpush1.bf16.msra.mxu1 %v17167_v30  ;;  %v19912_v63 = vld [vmem:[%s23153_s20 + $0x300] sm:$0xff]   ;;  %v19914_v30 = vld [vmem:[%s23153_s20 + $0x348] sm:$0xff]  }
 0xa09   : > { %4190 = vmatprep.subr.bf16.mxu0 %v17170_v2  ;;  %4231 = vmatprep.subr.bf16.mxu1 %v17172_v3 }
 0xa0a   : > { %4220 = vmatprep.mubr.bf16.mxu0 %v20539_v34  ;;  %4261 = vmatprep.mubr.bf16.mxu1 %v20539_v34 }
 0xa0c   : > { %4191 = vmatpush1.bf16.msra.mxu0 %v17169_v4  ;;  %4232 = vmatpush1.bf16.msra.mxu1 %v17171_v5 }
 0xa0d   : > { %18645 = vmatprep.subr.bf16.mxu0 %v19910_v7  ;;  %18667 = vmatprep.subr.bf16.mxu1 %v19911_v8 }
 0xa0f   : > { %17173 = vmatmul.mubr.msk.bf16.vlgmr.msra.gmra.mrb[44].mxu0 %vm1450_vm1, %v21024_v49  ;;  %17174 = vmatmul.mubr.msk.bf16.vlgmr.msra.gmra.mrb[44].mxu1 %vm1450_vm1, %v21024_v49  ;;  %v19922_v49 = vld [vmem:[%s23153_s20 + $0x358] sm:$0xff]  }
 0xa10   : > { %18646 = vmatpush3.bf16.msra.mxu0 %v19912_v63  ;;  %18668 = vmatpush3.bf16.msra.mxu1 %v19913_v9 }
 0xa11   : > { %18647 = vmatprep.subr.bf16.mxu0 %v19914_v30  ;;  %18669 = vmatprep.subr.bf16.mxu1 %v19915_v13 }
 0xa14   : > { %18648 = vmatpush3.bf16.msra.mxu0 %v19916_v14  ;;  %18670 = vmatpush3.bf16.msra.mxu1 %v19917_v15 }
 0xa15   : > { %18649 = vmatprep.subr.bf16.mxu0 %v19918_v16  ;;  %18671 = vmatprep.subr.bf16.mxu1 %v19919_v18 }
 0xa18   : > { %18650 = vmatpush3.bf16.msra.mxu0 %v19920_v19  ;;  %18672 = vmatpush3.bf16.msra.mxu1 %v19921_v20 }
 0xa19   : > { %18651 = vmatprep.subr.bf16.mxu0 %v19922_v49  ;;  %18673 = vmatprep.subr.bf16.mxu1 %v19923_v21 }
 0xa1c   : > { %18652 = vmatpush3.bf16.msra.mxu0 %v19924_v23  ;;  %18674 = vmatpush3.bf16.msra.mxu1 %v19925_v24 }
 0xa1d   : > { %18653 = vmatprep.subr.bf16.mxu0 %v19926_v25  ;;  %18675 = vmatprep.subr.bf16.mxu1 %v19927_v26 }
 0xa20   : > { %18654 = vmatpush3.bf16.msra.mxu0 %v19928_v27  ;;  %18676 = vmatpush3.bf16.msra.mxu1 %v19929_v28 }
 0xa21   : > { %18655 = vmatprep.subr.bf16.mxu0 %v19930_v29  ;;  %18677 = vmatprep.subr.bf16.mxu1 %v19931_v35 }
 0xa24   : > { %18656 = vmatpush3.bf16.msra.mxu0 %v19932_v10  ;;  %18678 = vmatpush3.bf16.msra.mxu1 %v19933_v40 }
 0xa25   : > { %18657 = vmatprep.subr.bf16.mxu0 %v19934_v41  ;;  %18679 = vmatprep.subr.bf16.mxu1 %v19935_v46 }
 0xa28   : > { %18658 = vmatpush3.bf16.msra.mxu0 %v19936_v36  ;;  %18680 = vmatpush3.bf16.msra.mxu1 %v19937_v37  ;;  %v17207_v36 = vld [vmem:[%s23151_s27] ss:$0 sm:$0xff] }
 0xa29   : > { %18659 = vmatprep.subr.bf16.mxu0 %v19938_v12  ;;  %18681 = vmatprep.subr.bf16.mxu1 %v19939_v11 }
 0xa2c   : > { %18660 = vmatpush3.bf16.msra.mxu0 %v19940_v47  ;;  %18682 = vmatpush3.bf16.msra.mxu1 %v19941_v50 }
 0xa2d   : > { %19400 = vmatprep.subr.bf16.mxu0 %v20527_v1  ;;  %19408 = vmatprep.subr.bf16.mxu1 %v20527_v1 }
 0xada   : > { %v18617_v51 = vpop.f32.mrb[40].mxu0  ;;  %v18639_v52 = vpop.f32.mrb[40].mxu1 }
 0xadb   : > { %v18618_v53 = vpop.f32.mrb[41].mxu0  ;;  %v18640_v17 = vpop.f32.mrb[41].mxu1 }
 0xadc   : > { %v18619_v54 = vadd.f32 %v18618_v53, %v18617_v51  ;;  %v18641_v55 = vadd.f32 %v18640_v17, %v18639_v52  ;;  %v18620_v56 = vpop.f32.mrb[42].mxu0  ;;  %v18642_v6 = vpop.f32.mrb[42].mxu1 }
 0xadd   : > { %v18621_v59 = vpop.f32.mrb[43].mxu0  ;;  %v18643_v60 = vpop.f32.mrb[43].mxu1 }
 0xade   : > { %v4112_v61 = vadd.f32 %v18641_v55, %v18619_v54  ;;  %v19942_v54 = vld [vmem:[%s23160_s3 + $0x10] sm:$0xff]   ;;  %v19943_v55 = vld [vmem:[%s23160_s3 + $0x18] sm:$0xff]   ;;  %v17208_v59 = vld [vmem:[%s23159_s4] ss:$0 sm:$0xff]  ;;  %s23180_s3 = sld [smem:[#allocation22_spill]] }
 0xae0   : > { %v4117_v62 = vadd.f32 %v4112_v61, %v21203_v39  ;;  %v17209_v61 = vld [vmem:[%s23166_s11] ss:$0 sm:$0xff] }
 0xae2   : > { %v4222_v2 = vpop.f32.mrb[44].mxu0  ;;  %v4263_v3 = vpop.f32.mrb[44].mxu1 }
 0xae3   : > { %v4223_v4 = vadd.f32 %v4222_v2, %v4131_v44  ;;  %v4264_v5 = vadd.f32 %v4263_v3, %v4139_v45  ;;  %v4224_v7 = vpop.f32.mrb[45].mxu0  ;;  %v4265_v8 = vpop.f32.mrb[45].mxu1 }
 0xae4   : > { %v4225_v63 = vadd.f32 %v4224_v7, %v4135_v31  ;;  %v4266_v9 = vadd.f32 %v4265_v8, %v4143_v0  ;;  %v4226_v30 = vpop.f32.mrb[46].mxu0  ;;  %v4267_v13 = vpop.f32.mrb[46].mxu1  ;;  %v17215_v31 = vld [vmem:[%s23157_s8 + $0x1] ss:$0 sm:$0xff]  ;;  %s23184_s8 = sld [smem:[#allocation30_spill]] }
 0xae5   : > { %v4270_v14 = vmax.f32 %v4223_v4, 0.0  ;;  %v4272_v15 = vmax.f32 %v4264_v5, 0.0  ;;  %v4227_v16 = vpop.f32.mrb[47].mxu0  ;;  %v4268_v18 = vpop.f32.mrb[47].mxu1 }
 0xae6   : > { %v4271_v19 = vmax.f32 %v4225_v63, 0.0  ;;  %v4273_v39 = vmax.f32 %v4266_v9, 0.0 }
 0xae7   : > { %v4274_v21 = vpack.c.bf16 %v4270_v14, %v4270_v14  ;;  %v4276_v23 = vpack.c.bf16 %v4272_v15, %v4272_v15 }
 0xae8   : > { %v4275_v20 = vpack.c.bf16 %v4271_v19, %v4271_v19  ;;  %v4277_v49 = vpack.c.bf16 %v4273_v39, %v4273_v39 }
 0xaea   : > { %4566 = vmatprep.mubr.bf16.mxu0 %v4275_v20  ;;  %4606 = vmatprep.mubr.bf16.mxu1 %v4277_v49 }
 0xaeb   : > { %4567 = vmatmul.mubr.bf16.vlgmr.msra.gmra.mrb[48].mxu0 %v4274_v21  ;;  %4607 = vmatmul.mubr.bf16.vlgmr.msra.gmra.mrb[48].mxu1 %v4276_v23 }
 0xaec   : > { %19404 = vmatprep.mubr.msk.bf16.mxu0 %vm20528_vm0, %v20527_v1  ;;  %19410 = vmatprep.mubr.msk.bf16.mxu1 %vm20528_vm0, %v20527_v1 }
 0xaed   : > { %19401 = vmatpush3.bf16.msra.mxu0 %v19942_v54 }
 0xaee   : > { %19402 = vmatprep.subr.bf16.mxu0 %v20527_v1 }
 0xaf1   : > { %19403 = vmatpush3.bf16.msra.mxu0 %v19943_v55 }
 0xaf2   : > { %19414 = vmatprep.subr.bf16.mxu0 %v20527_v1 }
 0xbbe   : > { %v18661_v24 = vpop.f32.mrb[48].mxu0  ;;  %v18683_v25 = vpop.f32.mrb[48].mxu1 }
 0xbbf   : > { %v18662_v26 = vpop.f32.mrb[49].mxu0  ;;  %v18684_v27 = vpop.f32.mrb[49].mxu1 }
 0xbc0   : > { %v18663_v28 = vadd.f32 %v18662_v26, %v18661_v24  ;;  %v18685_v29 = vadd.f32 %v18684_v27, %v18683_v25  ;;  %v18664_v35 = vpop.f32.mrb[50].mxu0  ;;  %v18686_v10 = vpop.f32.mrb[50].mxu1 }
 0xbc1   : > { %v18665_v40 = vpop.f32.mrb[51].mxu0  ;;  %v18687_v41 = vpop.f32.mrb[51].mxu1 }
 0xbc2   : > { %v4609_v46 = vadd.f32 %v18685_v29, %v18663_v28 }
 0xbc4   : > { %v4614_v37 = vadd.f32 %v4609_v46, %v4117_v62 }
 0xbc6   : > { %v4622_v12 = vadd.f32 %v17207_v36, %v4614_v37 }
 0xbc8   : > { %v4623_v11 = vadd.f32 %v4622_v12, %v21020_v48 }
 0xbca   : > { %v4626_v47 = vsel %vm1450_vm1, %v4623_v11, 0.0 }
 0xbcb   : > { %4627 = vadd.xlane.f32.xlu0 %v4626_v47 }
 0xc58   : > { %v4628_v50 = vpop.xlane.xlu0 %4627 }
 0xc59   : > { %v4629_v51 = vmul.f32 0.03125, %v4628_v50 }
 0xc5b   : > { %v4630_v52 = vsub.f32 %v4623_v11, %v4629_v51 }
 0xc5d   : > { %v4631_v53 = vmul.f32 %v4630_v52, %v4630_v52 }
 0xc5f   : > { %v4632_v17 = vsel %vm1450_vm1, %v4631_v53, 0.0 }
 0xc60   : > { %4633 = vadd.xlane.f32.xlu0 %v4632_v17 }
 0xced   : > { %v4634_v48 = vpop.xlane.xlu0 %4633 }
 0xcee   : > { %v4635_v56 = vmul.f32 0.03125, %v4634_v48 }
 0xcf0   : > { %v4636_v6 = vadd.f32 1e-05, %v4635_v56 }
 0xcf2   : > { %20370 = vrsqrt.f32 %v4636_v6 }
 0xcfc   : > { %v20371_v58 = vpop.eup %20370 }
 0xcfd   : > { %v4638_v60 = vmul.f32 %v20371_v58, %v4630_v52 }
 0xcff   : > { %v4645_v44 = vmul.f32 %v17208_v59, %v4638_v60 }
 0xd01   : > { %v21271_v45 = vadd.f32 %v17209_v61, %v4645_v44 }
 0xd03   : > { %v4653_v62 = vpack.c.bf16 %v21271_v45, %v21271_v45 }
 0xd05   : > { %19405 = vmatmul.mubr.msk.bf16.vlgmr.msra.gmra.mrb[52].mxu0 %vm1450_vm1, %v4653_v62 }
 0xd06   : > { %19416 = vmatprep.mubr.msk.bf16.mxu0 %vm20528_vm0, %v20527_v1 }
 0xdd8   : > { %v4716_v0 = vpop.f32.mrb[52].mxu0 }
 0xdd9   : > { %v21279_v2 = vadd.f32 %v17215_v31, %v4716_v0  ;;  %v19406_v3 = vpop.f32.mrb[53].mxu0 }
 0xdda   : > { %v4719_v4 = vpop.f32.mrb[54].mxu0 }
 0xddb   : > { %4737 = vrot.lane.b32.xlu0 %v21279_v2, %s23088_s22  ;;  %4734 = vrot.lane.b32.xlu1 %v21279_v2, %s23090_s16  ;;  %v19407_v5 = vpop.f32.mrb[55].mxu0 }
 0xddf   : > { %4740 = vrot.lane.b32.xlu1 %v21279_v2, %s23086_s15 }
 0xde3   : > { %4883 = vrot.lane.b32.xlu1 %v21279_v2, %s23084_s18 }
 0xe4d   : > { %v21289_v7 = vpop.permute.xlu0 %4737  ;;  %v21291_v8 = vpop.permute.xlu1 %4734 }
 0xe4e   : > { %4887 = vrot.lane.b32.xlu1 %v21289_v7, %s23084_s18  ;;  %4885 = vrot.lane.b32.xlu0 %v21291_v8, %s23084_s18  ;;  %v4743_v13 = vcombine.low %v21279_v2, %v21289_v7  ;;  %v4744_v14 = vcombine.high %v21279_v2, %v21289_v7 }
 0xe50   : > { %v4751_v19 = vrot.slane %v4743_v13, %v20835_v22  ;;  %v4758_v39 = vrot.slane %v4744_v14, %v20835_v22 }
 0xe51   : > { %v21297_v63 = vpop.permute.xlu1 %4740 }
 0xe52   : > { %4889 = vrot.lane.b32.xlu0 %v21297_v63, %s23084_s18  ;;  %v4759_v9 = vcombine.low %v21291_v8, %v21297_v63  ;;  %v4760_v30 = vcombine.high %v21291_v8, %v21297_v63 }
 0xe54   : > { %v4767_v16 = vrot.slane %v4759_v9, %v20835_v22  ;;  %v4774_v18 = vrot.slane %v4760_v30, %v20835_v22 }
 0xe55   : > { %v4884_v15 = vpop.permute.xlu1 %4883 }
 0xe56   : > { %v4775_v21 = vcombine.low %v4751_v19, %v4767_v16  ;;  %v4776_v23 = vcombine.high %v4751_v19, %v4767_v16  ;;  %v4791_v24 = vcombine.low %v4758_v39, %v4774_v18  ;;  %v4792_v25 = vcombine.high %v4758_v39, %v4774_v18 }
 0xe58   : > { %v4783_v10 = vrot.slane %v4775_v21, %v20846_v32  ;;  %v4790_v40 = vrot.slane %v4776_v23, %v20846_v32  ;;  %v4799_v41 = vrot.slane %v4791_v24, %v20846_v32  ;;  %v4806_v46 = vrot.slane %v4792_v25, %v20846_v32 }
 0xe5a   : > { %v4811_v53 = vcombine.low %v4783_v10, %v4790_v40  ;;  %v17226_v17 = vcombine.high %v4783_v10, %v4790_v40  ;;  %v4827_v54 = vcombine.low %v4799_v41, %v4806_v46  ;;  %v17227_v55 = vcombine.high %v4799_v41, %v4806_v46 }
 0xe5c   : > { %v4818_v62 = vrot.slane %v4811_v53, %v20835_v22  ;;  %v4826_v31 = vrot.slane %v17226_v17, %v20835_v22  ;;  %v4834_v0 = vrot.slane %v4827_v54, %v20835_v22  ;;  %v4842_v3 = vrot.slane %v17227_v55, %v20835_v22 }
 0xe5e   : > { %v4843_v39 = vcombine.low %v4818_v62, %v4826_v31  ;;  %v4844_v41 = vcombine.high %v4818_v62, %v4826_v31 }
 0xec0   : > { %v4886_v20 = vpop.permute.xlu0 %4885  ;;  %v4888_v49 = vpop.permute.xlu1 %4887 }
 0xec1   : > { %v4895_v26 = vcombine.low %v4884_v15, %v4888_v49  ;;  %v4896_v27 = vcombine.high %v4884_v15, %v4888_v49 }
 0xec3   : > { %v4903_v36 = vrot.slane %v4895_v26, %v20835_v22  ;;  %v4910_v37 = vrot.slane %v4896_v27, %v20835_v22  ;;  %v4851_v27 = vrot.slane %v4843_v39, %v20846_v32 }
 0xec4   : > { %v4890_v28 = vpop.permute.xlu0 %4889 }
 0xec5   : > { %v4911_v29 = vcombine.low %v4886_v20, %v4890_v28  ;;  %v4912_v35 = vcombine.high %v4886_v20, %v4890_v28  ;;  %v4859_v20 = vcombine.low %v4834_v0, %v4842_v3 }
 0xec7   : > { %v4919_v12 = vrot.slane %v4911_v29, %v20835_v22  ;;  %v4926_v11 = vrot.slane %v4912_v35, %v20835_v22  ;;  %v4867_v28 = vrot.slane %v4859_v20, %v20846_v32 }
 0xec9   : > { %v4927_v47 = vcombine.low %v4903_v36, %v4919_v12  ;;  %v4928_v50 = vcombine.high %v4903_v36, %v4919_v12  ;;  %v4943_v51 = vcombine.low %v4910_v37, %v4926_v11  ;;  %v4944_v52 = vcombine.high %v4910_v37, %v4926_v11 }
 0xeca   : > { %v4875_v46 = vcombine.low %v4851_v27, %v4867_v28  ;;  %v4876_v36 = vcombine.high %v4851_v27, %v4867_v28  ;;  %v4860_v37 = vcombine.high %v4834_v0, %v4842_v3 }
 0xecb   : > { %v4935_v48 = vrot.slane %v4927_v47, %v20846_v32  ;;  %v4942_v56 = vrot.slane %v4928_v50, %v20846_v32  ;;  %v4951_v6 = vrot.slane %v4943_v51, %v20846_v32  ;;  %v4958_v58 = vrot.slane %v4944_v52, %v20846_v32 }
 0xecc   : > { %v4879_v47 = vpack.c.bf16 %v4875_v46, %v4875_v46  ;;  %v4880_v50 = vpack.c.bf16 %v4876_v36, %v4876_v36  ;;  %v4858_v51 = vrot.slane %v4844_v41, %v20846_v32  ;;  %v4874_v52 = vrot.slane %v4860_v37, %v20846_v32 }
 0xecd   : > { %v4963_v59 = vcombine.low %v4935_v48, %v4942_v56  ;;  %v17228_v60 = vcombine.high %v4935_v48, %v4942_v56  ;;  %v4979_v61 = vcombine.low %v4951_v6, %v4958_v58  ;;  %v17229_v44 = vcombine.high %v4951_v6, %v4958_v58 }
 0xece   : > { %v4877_v54 = vcombine.low %v4858_v51, %v4874_v52  ;;  %v4878_v55 = vcombine.high %v4858_v51, %v4874_v52 }
 0xecf   : > { %v4970_v4 = vrot.slane %v4963_v59, %v20835_v22  ;;  %v4978_v5 = vrot.slane %v17228_v60, %v20835_v22  ;;  %v4986_v9 = vrot.slane %v4979_v61, %v20835_v22  ;;  %v4994_v30 = vrot.slane %v17229_v44, %v20835_v22 }
 0xed0   : > { %v4881_v48 = vpack.c.bf16 %v4877_v54, %v4877_v54  ;;  %v4882_v56 = vpack.c.bf16 %v4878_v55, %v4878_v55 }
 0xed1   : > { %v4995_v13 = vcombine.low %v4970_v4, %v4978_v5  ;;  %v5011_v14 = vcombine.low %v4986_v9, %v4994_v30  ;;  %v4996_v15 = vcombine.high %v4970_v4, %v4978_v5  ;;  %v5012_v16 = vcombine.high %v4986_v9, %v4994_v30 }
 0xed3   : > { %v5003_v18 = vrot.slane %v4995_v13, %v20846_v32  ;;  %v5019_v19 = vrot.slane %v5011_v14, %v20846_v32  ;;  %v5010_v23 = vrot.slane %v4996_v15, %v20846_v32  ;;  %v5026_v24 = vrot.slane %v5012_v16, %v20846_v32 }
 0xed5   : > { %v5027_v49 = vcombine.low %v5003_v18, %v5019_v19  ;;  %v5028_v21 = vcombine.high %v5003_v18, %v5019_v19  ;;  %v5029_v10 = vcombine.low %v5010_v23, %v5026_v24  ;;  %v5030_v40 = vcombine.high %v5010_v23, %v5026_v24 }
 0xed7   : > { %v5031_v25 = vpack.c.bf16 %v5027_v49, %v5027_v49  ;;  %v5032_v26 = vpack.c.bf16 %v5028_v21, %v5028_v21  ;;  %v5033_v12 = vpack.c.bf16 %v5029_v10, %v5029_v10  ;;  %v5034_v11 = vpack.c.bf16 %v5030_v40, %v5030_v40 }
 0xed9   : > { %v5191_v29 = vsel %vm1955_vm2, %v5031_v25, 0  ;;  %v5237_v35 = vsel %vm1955_vm2, %v5032_v26, 0  ;;  %v5283_v53 = vsel %vm1955_vm2, %v5033_v12, 0  ;;  %v5329_v17 = vsel %vm1955_vm2, %v5034_v11, 0 }
 0xeda   : > { %19409 = vmatpush3.bf16.xpose.msra.mxu1 %v5191_v29  ;;  %19415 = vmatpush3.bf16.xpose.msra.mxu0 %v5237_v35 }
 0xedb   : > { %19420 = vmatprep.subr.bf16.mxu1 %v20527_v1  ;;  %19426 = vmatprep.subr.bf16.mxu0 %v20527_v1 }
 0xee1   : > { %19411 = vmatmul.mubr.msk.bf16.vlgmr.msra.gmra.mrb[52].mxu1 %vm1955_vm2, %v4879_v47  ;;  %19417 = vmatmul.mubr.msk.bf16.vlgmr.msra.gmra.mrb[56].mxu0 %vm1955_vm2, %v4880_v50 }
 0xee2   : > { %19421 = vmatpush3.bf16.xpose.msra.mxu1 %v5283_v53  ;;  %19427 = vmatpush3.bf16.xpose.msra.mxu0 %v5329_v17 }
 0xee3   : > { %19422 = vmatprep.mubr.msk.bf16.mxu1 %vm20528_vm0, %v20527_v1  ;;  %19428 = vmatprep.mubr.msk.bf16.mxu0 %vm20528_vm0, %v20527_v1 }
 0xee4   : > { %19432 = vmatprep.subr.bf16.mxu1 %v20527_v1  ;;  %19438 = vmatprep.subr.bf16.mxu0 %v20527_v1 }
 0xee9   : > { %19423 = vmatmul.mubr.msk.bf16.vlgmr.msra.gmra.mrb[56].mxu1 %vm1955_vm2, %v4881_v48  ;;  %19429 = vmatmul.mubr.msk.bf16.vlgmr.msra.gmra.mrb[60].mxu0 %vm1955_vm2, %v4882_v56 }
 0xeea   : > { %19434 = vmatprep.mubr.msk.bf16.mxu1 %vm20528_vm0, %v20527_v1  ;;  %19440 = vmatprep.mubr.msk.bf16.mxu0 %vm20528_vm0, %v20527_v1 }
 0xfb4   : > { %v5227_v6 = vpop.f32.mrb[52].mxu1  ;;  %v5273_v58 = vpop.f32.mrb[56].mxu0 }
 0xfb5   : > { %v5371_v59 = vmul.f32 0.35355338, %v5227_v6  ;;  %v5372_v60 = vmul.f32 0.35355338, %v5273_v58  ;;  %v19412_v61 = vpop.f32.mrb[53].mxu1  ;;  %v19418_v44 = vpop.f32.mrb[57].mxu0 }
 0xfb6   : > { %v5230_v62 = vpop.f32.mrb[54].mxu1  ;;  %v5276_v31 = vpop.f32.mrb[58].mxu0 }
 0xfb7   : > { %v19413_v0 = vpop.f32.mrb[55].mxu1  ;;  %v19419_v3 = vpop.f32.mrb[59].mxu0  ;;  %v5375_v4 = vadd.f32 %v5371_v59, %v20899_v57  ;;  %v5376_v5 = vadd.f32 %v5372_v60, %v20899_v57 }
 0xfb9   : > { %v5379_v9 = vsel %vm1955_vm2, %v5375_v4, -inf  ;;  %v5382_v30 = vsel %vm1955_vm2, %v5376_v5, -inf }
 0xfba   : > { %5380 = vmax.xlane.f32.xlu1 %v5379_v9  ;;  %5383 = vmax.xlane.f32.xlu0 %v5382_v30 }
 0xfbc   : > { %v5319_v13 = vpop.f32.mrb[56].mxu1  ;;  %v5365_v14 = vpop.f32.mrb[60].mxu0 }
 0xfbd   : > { %v5373_v15 = vmul.f32 0.35355338, %v5319_v13  ;;  %v5374_v16 = vmul.f32 0.35355338, %v5365_v14  ;;  %v19424_v18 = vpop.f32.mrb[57].mxu1  ;;  %v19430_v19 = vpop.f32.mrb[61].mxu0 }
 0xfbe   : > { %v5322_v39 = vpop.f32.mrb[58].mxu1  ;;  %v5368_v20 = vpop.f32.mrb[62].mxu0 }
 0xfbf   : > { %v19425_v49 = vpop.f32.mrb[59].mxu1  ;;  %v19431_v21 = vpop.f32.mrb[63].mxu0  ;;  %v5377_v23 = vadd.f32 %v5373_v15, %v20899_v57  ;;  %v5378_v24 = vadd.f32 %v5374_v16, %v20899_v57 }
 0xfc1   : > { %v5385_v25 = vsel %vm1955_vm2, %v5377_v23, -inf  ;;  %v5388_v26 = vsel %vm1955_vm2, %v5378_v24, -inf }
 0xfc2   : > { %5386 = vmax.xlane.f32.xlu0 %v5385_v25  ;;  %5389 = vmax.xlane.f32.xlu1 %v5388_v26 }
 0xfd3   : > { %5037 = vrot.lane.b32.xlu1 %v21291_v8, %s23082_s26 }
 0xfd8   : > { %5035 = vrot.lane.b32.xlu0 %v21279_v2, %s23082_s26 }
0x1047   : > { %v5381_v27 = vpop.xlane.xlu1 %5380  ;;  %v5384_v28 = vpop.xlane.xlu0 %5383 }
0x1048   : > { %v5391_v29 = vsub.f32 %v5375_v4, %v5381_v27  ;;  %v5392_v35 = vsub.f32 %v5376_v5, %v5384_v28 }
0x104a   : > { %v5395_v10 = vmul.f32 1.442695, %v5391_v29  ;;  %v5397_v40 = vmul.f32 1.442695, %v5392_v35 }
0x104c   : > { %20372 = vpow2.f32 %v5395_v10 }
0x104d   : > { %20374 = vpow2.f32 %v5397_v40 }
0x104f   : > { %v5390_v2 = vpop.xlane.xlu1 %5389  ;;  %v5387_v36 = vpop.xlane.xlu0 %5386 }
0x1050   : > { %v5394_v37 = vsub.f32 %v5378_v24, %v5390_v2  ;;  %v5393_v12 = vsub.f32 %v5377_v23, %v5387_v36 }
0x1052   : > { %v5401_v11 = vmul.f32 1.442695, %v5394_v37  ;;  %v5399_v47 = vmul.f32 1.442695, %v5393_v12 }
0x1053   : > { %v5038_v53 = vpop.permute.xlu1 %5037 }
0x1054   : > { %20376 = vpow2.f32 %v5401_v11 }
0x1055   : > { %20378 = vpow2.f32 %v5399_v47 }
0x1056   : > { %v21373_v57 = vpop.eup %20372 }
0x1057   : > { %v21375_v41 = vpop.eup %20374  ;;  %v5403_v46 = vsel %vm1955_vm2, %v21373_v57, 0.0 }
0x1058   : > { %5404 = vadd.xlane.f32.xlu0 %v5403_v46  ;;  %v5406_v8 = vsel %vm1955_vm2, %v21375_v41, 0.0 }
0x1059   : > { %5407 = vadd.xlane.f32.xlu1 %v5406_v8 }
0x105e   : > { %v21385_v50 = vpop.eup %20376 }
0x105f   : > { %v21387_v51 = vpop.eup %20378  ;;  %v5412_v52 = vsel %vm1955_vm2, %v21385_v50, 0.0 }
0x106a   : > { %5039 = vrot.lane.b32.xlu1 %v21289_v7, %s23082_s26  ;;  %v5409_v7 = vsel %vm1955_vm2, %v21387_v51, 0.0 }
0x106e   : > { %5041 = vrot.lane.b32.xlu0 %v21297_v63, %s23082_s26  ;;  %v5036_v63 = vpop.permute.xlu0 %5035 }
0x108d   : > { %5413 = vadd.xlane.f32.xlu0 %v5412_v52 }
0x108e   : > { %5410 = vadd.xlane.f32.xlu1 %v5409_v7 }
0x10e5   : > { %v5405_v17 = vpop.xlane.xlu0 %5404 }
0x10e6   : > { %v5408_v54 = vpop.xlane.xlu1 %5407  ;;  %20380 = vrcp.f32 %v5405_v17 }
0x10e7   : > { %20382 = vrcp.f32 %v5408_v54 }
0x10e9   : > { %v5042_v55 = vpop.permute.xlu0 %5041 }
0x10ea   : > { %v5063_v48 = vcombine.low %v5038_v53, %v5042_v55  ;;  %v5064_v56 = vcombine.high %v5038_v53, %v5042_v55  ;;  %v5040_v6 = vpop.permute.xlu1 %5039 }
0x10eb   : > { %v5047_v58 = vcombine.low %v5036_v63, %v5040_v6  ;;  %v5048_v59 = vcombine.high %v5036_v63, %v5040_v6 }
0x10ec   : > { %v5071_v60 = vrot.slane %v5063_v48, %v20835_v22  ;;  %v5078_v61 = vrot.slane %v5064_v56, %v20835_v22 }
0x10ed   : > { %v5055_v44 = vrot.slane %v5047_v58, %v20835_v22  ;;  %v5062_v62 = vrot.slane %v5048_v59, %v20835_v22 }
0x10ef   : > { %v5079_v31 = vcombine.low %v5055_v44, %v5071_v60  ;;  %v5080_v0 = vcombine.high %v5055_v44, %v5071_v60  ;;  %v5095_v3 = vcombine.low %v5062_v62, %v5078_v61  ;;  %v5096_v4 = vcombine.high %v5062_v62, %v5078_v61 }
0x10f0   : > { %v20381_v26 = vpop.eup %20380 }
0x10f1   : > { %v5087_v5 = vrot.slane %v5079_v31, %v20846_v32  ;;  %v5094_v9 = vrot.slane %v5080_v0, %v20846_v32  ;;  %v5103_v30 = vrot.slane %v5095_v3, %v20846_v32  ;;  %v5110_v13 = vrot.slane %v5096_v4, %v20846_v32  ;;  %v20383_v10 = vpop.eup %20382 }
0x10f2   : > { %v5416_v12 = vmul.f32 %v20381_v26, %v21373_v57  ;;  %v5418_v11 = vmul.f32 %v20383_v10, %v21375_v41 }
0x10f3   : > { %v5115_v14 = vcombine.low %v5087_v5, %v5094_v9  ;;  %v17230_v15 = vcombine.high %v5087_v5, %v5094_v9  ;;  %v5131_v16 = vcombine.low %v5103_v30, %v5110_v13  ;;  %v17231_v18 = vcombine.high %v5103_v30, %v5110_v13 }
0x10f4   : > { %v5423_v53 = vpack.c.bf16 %v5416_v12, %v5416_v12  ;;  %v5424_v17 = vpack.c.bf16 %v5418_v11, %v5418_v11 }
0x10f5   : > { %v5122_v19 = vrot.slane %v5115_v14, %v20835_v22  ;;  %v5130_v39 = vrot.slane %v17230_v15, %v20835_v22  ;;  %v5138_v20 = vrot.slane %v5131_v16, %v20835_v22  ;;  %v5146_v49 = vrot.slane %v17231_v18, %v20835_v22 }
0x10f7   : > { %v5147_v21 = vcombine.low %v5122_v19, %v5130_v39  ;;  %v5163_v23 = vcombine.low %v5138_v20, %v5146_v49  ;;  %v5148_v24 = vcombine.high %v5122_v19, %v5130_v39  ;;  %v5164_v25 = vcombine.high %v5138_v20, %v5146_v49 }
0x10f9   : > { %v5155_v27 = vrot.slane %v5147_v21, %v20846_v32  ;;  %v5171_v28 = vrot.slane %v5163_v23, %v20846_v32  ;;  %v5162_v29 = vrot.slane %v5148_v24, %v20846_v32  ;;  %v5178_v35 = vrot.slane %v5164_v25, %v20846_v32  ;;  %v19944_v25 = vld [vmem:[%s23155_s14 + $0x10] sm:$0xff]  }
0x10fb   : > { %v5179_v40 = vcombine.low %v5155_v27, %v5171_v28  ;;  %v5180_v46 = vcombine.high %v5155_v27, %v5171_v28  ;;  %v5181_v8 = vcombine.low %v5162_v29, %v5178_v35  ;;  %v5182_v2 = vcombine.high %v5162_v29, %v5178_v35 }
0x10fd   : > { %v5183_v36 = vpack.c.bf16 %v5179_v40, %v5179_v40  ;;  %v5184_v37 = vpack.c.bf16 %v5180_v46, %v5180_v46  ;;  %v5185_v7 = vpack.c.bf16 %v5181_v8, %v5181_v8  ;;  %v5186_v63 = vpack.c.bf16 %v5182_v2, %v5182_v2  ;;  %v19945_v8 = vld [vmem:[%s23155_s14 + $0x18] sm:$0xff]   ;;  %s23190_s14 = sld [smem:[#allocation33_spill]] }
0x10ff   : > { %v5431_v47 = vsel %vm2199_vm3, %v5183_v36, 0  ;;  %v5477_v52 = vsel %vm2199_vm3, %v5184_v37, 0  ;;  %v5523_v57 = vsel %vm2199_vm3, %v5185_v7, 0  ;;  %v5569_v41 = vsel %vm2199_vm3, %v5186_v63, 0 }
0x1100   : > { %19433 = vmatpush3.bf16.msra.mxu1 %v5431_v47  ;;  %19439 = vmatpush3.bf16.msra.mxu0 %v5477_v52 }
0x1101   : > { %19444 = vmatprep.subr.bf16.mxu1 %v20527_v1  ;;  %19450 = vmatprep.subr.bf16.mxu0 %v20527_v1 }
0x1103   : > { %19435 = vmatmul.mubr.msk.bf16.vlgmr.msra.gmra.mrb[60].mxu1 %vm1955_vm2, %v5423_v53  ;;  %19441 = vmatmul.mubr.msk.bf16.vlgmr.msra.gmra.mrb[64].mxu0 %vm1955_vm2, %v5424_v17 }
0x1104   : > { %19445 = vmatpush3.bf16.msra.mxu1 %v5523_v57  ;;  %19451 = vmatpush3.bf16.msra.mxu0 %v5569_v41 }
0x1105   : > { %19446 = vmatprep.mubr.msk.bf16.mxu1 %vm20528_vm0, %v20527_v1  ;;  %19452 = vmatprep.mubr.msk.bf16.mxu0 %vm20528_vm0, %v20527_v1 }
0x1106   : > { %19456 = vmatprep.subr.bf16.mxu1 %v20527_v1 }
0x111a   : > { %v5414_v54 = vpop.xlane.xlu0 %5413 }
0x111b   : > { %20384 = vrcp.f32 %v5414_v54  ;;  %v5411_v55 = vpop.xlane.xlu1 %5410 }
0x111c   : > { %20386 = vrcp.f32 %v5411_v55 }
0x1125   : > { %v20385_v48 = vpop.eup %20384 }
0x1126   : > { %v20387_v56 = vpop.eup %20386  ;;  %v5422_v6 = vmul.f32 %v20385_v48, %v21385_v50 }
0x1127   : > { %v5420_v58 = vmul.f32 %v20387_v56, %v21387_v51 }
0x1128   : > { %v5426_v59 = vpack.c.bf16 %v5422_v6, %v5422_v6 }
0x1129   : > { %v5425_v60 = vpack.c.bf16 %v5420_v58, %v5420_v58 }
0x112a   : > { %19453 = vmatmul.mubr.msk.bf16.vlgmr.msra.gmra.mrb[68].mxu0 %vm1955_vm2, %v5426_v59 }
0x112b   : > { %19447 = vmatmul.mubr.msk.bf16.vlgmr.msra.gmra.mrb[64].mxu1 %vm1955_vm2, %v5425_v60  ;;  %5960 = vmatprep.mubr.bf16.mxu0 %v20539_v34 }
0x112c   : > { %19460 = vmatprep.mubr.msk.bf16.mxu1 %vm20528_vm0, %v20527_v1  ;;  %19457 = vmatpush3.bf16.msra.mxu1 %v19944_v25 }
0x112d   : > { %19458 = vmatprep.subr.bf16.mxu1 %v20527_v1 }
0x1130   : > { %19459 = vmatpush3.bf16.msra.mxu1 %v19945_v8 }
0x11d6   : > { %v5467_v61 = vpop.f32.mrb[60].mxu1  ;;  %v5513_v44 = vpop.f32.mrb[64].mxu0 }
0x11d7   : > { %v19436_v62 = vpop.f32.mrb[61].mxu1  ;;  %v19442_v31 = vpop.f32.mrb[65].mxu0 }
0x11d8   : > { %v5470_v0 = vpop.f32.mrb[62].mxu1  ;;  %v5516_v3 = vpop.f32.mrb[66].mxu0 }
0x11d9   : > { %v19437_v50 = vpop.f32.mrb[63].mxu1  ;;  %v19443_v4 = vpop.f32.mrb[67].mxu0 }
0x11da   : > { %v17242_v50 = vld [vmem:[%s23154_s19 + $0x1] ss:$0 sm:$0xff]  ;;  %s23191_s19 = sld [smem:[#allocation34_spill]] }
0x11fd   : > { %v5605_v51 = vpop.f32.mrb[68].mxu0 }
0x11fe   : > { %v5559_v5 = vpop.f32.mrb[64].mxu1  ;;  %v5627_v9 = vcombine.low %v5513_v44, %v5605_v51  ;;  %v5628_v30 = vcombine.high %v5513_v44, %v5605_v51  ;;  %v19454_v13 = vpop.f32.mrb[69].mxu0 }
0x11ff   : > { %v5611_v14 = vcombine.low %v5467_v61, %v5559_v5  ;;  %v5612_v15 = vcombine.high %v5467_v61, %v5559_v5  ;;  %v19448_v16 = vpop.f32.mrb[65].mxu1  ;;  %v5608_v18 = vpop.f32.mrb[70].mxu0 }
0x1200   : > { %v5635_v19 = vrot.slane %v5627_v9, %v20835_v22  ;;  %v5642_v39 = vrot.slane %v5628_v30, %v20835_v22  ;;  %v5562_v20 = vpop.f32.mrb[66].mxu1  ;;  %v19455_v49 = vpop.f32.mrb[71].mxu0 }
0x1201   : > { %v5619_v21 = vrot.slane %v5611_v14, %v20835_v22  ;;  %v5626_v23 = vrot.slane %v5612_v15, %v20835_v22  ;;  %v19449_v24 = vpop.f32.mrb[67].mxu1  ;;  %v17248_v20 = vld [vmem:[%s23158_s6 + $0x100] sm:$0xff] }
0x1202   : > { %v17250_v49 = vld [vmem:[%s23158_s6 + $0x140] sm:$0xff]  ;;  %v17251_v24 = vld [vmem:[%s23158_s6 + $0x148] sm:$0xff] }
0x1203   : > { %v5643_v26 = vcombine.low %v5619_v21, %v5635_v19  ;;  %v5644_v27 = vcombine.high %v5619_v21, %v5635_v19  ;;  %v5659_v28 = vcombine.low %v5626_v23, %v5642_v39  ;;  %v5660_v29 = vcombine.high %v5626_v23, %v5642_v39  ;;  %v17249_v21 = vld [vmem:[%s23158_s6 + $0x108] sm:$0xff] }
0x1204   : > { %v17258_v23 = vcombine.high %v17248_v20, %v17250_v49  ;;  %v17259_v25 = vcombine.low %v17249_v21, %v17251_v24 }
0x1205   : > { %v5651_v35 = vrot.slane %v5643_v26, %v20846_v32  ;;  %v5658_v10 = vrot.slane %v5644_v27, %v20846_v32  ;;  %v5667_v40 = vrot.slane %v5659_v28, %v20846_v32  ;;  %v5674_v46 = vrot.slane %v5660_v29, %v20846_v32  ;;  %v17252_v27 = vld [vmem:[%s23158_s6 + $0x180] sm:$0xff]  ;;  %v17253_v29 = vld [vmem:[%s23158_s6 + $0x188] sm:$0xff] }
0x1206   : > { %v17260_v26 = vcombine.high %v17249_v21, %v17251_v24  ;;  %5928 = vmatprep.subr.bf16.mxu0 %v17258_v23  ;;  %v17254_v28 = vld [vmem:[%s23158_s6 + $0x1c0] sm:$0xff] }
0x1207   : > { %v5679_v2 = vcombine.low %v5651_v35, %v5658_v10  ;;  %v17240_v36 = vcombine.high %v5651_v35, %v5658_v10  ;;  %v5695_v37 = vcombine.low %v5667_v40, %v5674_v46  ;;  %v17241_v12 = vcombine.high %v5667_v40, %v5674_v46  ;;  %v17255_v10 = vld [vmem:[%s23158_s6 + $0x1c8] sm:$0xff]  ;;  %v19962_v21 = vld [vmem:[%s23153_s20 + $0x560] sm:$0xff]  }
0x1208   : > { %5969 = vmatprep.subr.bf16.mxu1 %v17260_v26  ;;  %v17262_v35 = vcombine.high %v17252_v27, %v17254_v28  ;;  %v17261_v40 = vcombine.low %v17252_v27, %v17254_v28  ;;  %v17263_v46 = vcombine.low %v17253_v29, %v17255_v10  ;;  %v17264_v8 = vcombine.high %v17253_v29, %v17255_v10  ;;  %v19963_v23 = vld [vmem:[%s23153_s20 + $0x5e0] sm:$0xff]   ;;  %v19967_v26 = vld [vmem:[%s23153_s20 + $0x5e8] sm:$0xff]   ;;  %v19970_v29 = vld [vmem:[%s23153_s20 + $0x570] sm:$0xff]  }
0x1209   : > { %v5686_v11 = vrot.slane %v5679_v2, %v20835_v22  ;;  %v5694_v47 = vrot.slane %v17240_v36, %v20835_v22  ;;  %v5702_v52 = vrot.slane %v5695_v37, %v20835_v22  ;;  %v5710_v7 = vrot.slane %v17241_v12, %v20835_v22  ;;  %v17331_v2 = vld [vmem:[%s23158_s6 + $0x110] sm:$0xff]  ;;  %v17332_v37 = vld [vmem:[%s23158_s6 + $0x118] sm:$0xff]  ;;  %v19964_v24 = vld [vmem:[%s23153_s20 + $0x520] sm:$0xff]  }
0x120a   : > { %v17333_v36 = vld [vmem:[%s23158_s6 + $0x150] sm:$0xff]  ;;  %v19968_v27 = vld [vmem:[%s23153_s20 + $0x528] sm:$0xff]  }
0x120b   : > { %v5712_v63 = vcombine.high %v5686_v11, %v5694_v47  ;;  %v5728_v53 = vcombine.high %v5702_v52, %v5710_v7  ;;  %v5711_v17 = vcombine.low %v5686_v11, %v5694_v47  ;;  %v5727_v57 = vcombine.low %v5702_v52, %v5710_v7  ;;  %v17334_v11 = vld [vmem:[%s23158_s6 + $0x158] sm:$0xff]  ;;  %v19969_v28 = vld [vmem:[%s23153_s20 + $0x5a8] sm:$0xff]   ;;  %v19972_v10 = vld [vmem:[%s23153_s20 + $0x530] sm:$0xff]  }
0x120c   : > { %v17341_v12 = vcombine.high %v17331_v2, %v17333_v36  ;;  %v17340_v47 = vcombine.low %v17331_v2, %v17333_v36  ;;  %v17342_v52 = vcombine.low %v17332_v37, %v17334_v11  ;;  %v17343_v7 = vcombine.high %v17332_v37, %v17334_v11  ;;  %v19976_v2 = vld [vmem:[%s23153_s20 + $0x538] sm:$0xff]   ;;  %v19978_v37 = vld [vmem:[%s23153_s20 + $0x440] sm:$0xff]  }
0x120d   : > { %v5726_v41 = vrot.slane %v5712_v63, %v20846_v32  ;;  %v5742_v54 = vrot.slane %v5728_v53, %v20846_v32  ;;  %v5719_v55 = vrot.slane %v5711_v17, %v20846_v32  ;;  %v5735_v48 = vrot.slane %v5727_v57, %v20846_v32  ;;  %v19977_v36 = vld [vmem:[%s23153_s20 + $0x5b8] sm:$0xff]  }
0x120f   : > { %v5745_v56 = vcombine.low %v5726_v41, %v5742_v54  ;;  %v5744_v6 = vcombine.high %v5719_v55, %v5735_v48  ;;  %v5746_v58 = vcombine.high %v5726_v41, %v5742_v54  ;;  %v5743_v59 = vcombine.low %v5719_v55, %v5735_v48  ;;  %v17246_v41 = vld [vmem:[%s23152_s24 + $0x1] ss:$0 sm:$0xff]  ;;  %s23194_s24 = sld [smem:[#allocation36_spill]] }
0x1210   : > { %v17247_v55 = vld [vmem:[%s23150_s30 + $0x1] ss:$0 sm:$0xff]  ;;  %s23196_s30 = sld [smem:[#allocation38_spill]] }
0x1211   : > { %5752 = vrot.lane.b32.xlu1 %v5745_v56, %s23080_s28  ;;  %5748 = vrot.lane.b32.xlu0 %v5744_v6, %s23078_s1  ;;  %v17335_v56 = vld [vmem:[%s23158_s6 + $0x190] sm:$0xff]  ;;  %s23169_s28 = sld [smem:[#allocation24_spill]] }
0x1212   : > { %v17337_v6 = vld [vmem:[%s23158_s6 + $0x1d0] sm:$0xff] }
0x1215   : > { %5756 = vrot.lane.b32.xlu1 %v5746_v58, %s23076_s2  ;;  %v17336_v58 = vld [vmem:[%s23158_s6 + $0x198] sm:$0xff]  ;;  %s23168_s2 = sld [smem:[#allocation3_spill]] }
0x121b   : > { %s1391_s1 = scalar_lea.vmem %s23168_s2, %s17008_s0  ;;  %s23170_s0 = sld [smem:[#allocation7_spill]] }
0x1221   : > { %s1397_s2 = scalar_lea.vmem %s23170_s0, %s23208_s10  ;;  %s23172_s0 = sld [smem:[#allocation25_spill]] }
0x1283   : > { %v5753_v60 = vpop.permute.xlu1 %5752  ;;  %v5749_v61 = vpop.permute.xlu0 %5748 }
0x1284   : > { %v5759_v44 = vsel %vm1955_vm2, %v5743_v59, %v5749_v61  ;;  %v17338_v59 = vld [vmem:[%s23158_s6 + $0x1d8] sm:$0xff] }
0x1285   : > { %v5760_v31 = vsel %vm2530_vm4, %v5759_v44, %v5753_v60  ;;  %v17345_v44 = vcombine.high %v17335_v56, %v17337_v6 }
0x1287   : > { %v5757_v62 = vpop.permute.xlu1 %5756 }
0x1288   : > { %v5761_v0 = vsel %vm2532_vm5, %v5760_v31, %v5757_v62  ;;  %v17347_v62 = vcombine.high %v17336_v58, %v17338_v59  ;;  %v17344_v31 = vcombine.low %v17335_v56, %v17337_v6 }
0x1289   : > { %v5762_v3 = vpack.c.bf16 %v5761_v0, %v5761_v0  ;;  %v17346_v0 = vcombine.low %v17336_v58, %v17338_v59 }
0x128b   : > { %19461 = vmatmul.mubr.msk.bf16.vlgmr.msra.gmra.mrb[68].mxu1 %vm1450_vm1, %v5762_v3  ;;  %v19946_v3 = vld [vmem:[%s23153_s20 + $0x540] sm:$0xff]  }
0x128c   : > { %6001 = vmatprep.mubr.bf16.mxu1 %v20539_v34  ;;  %5970 = vmatpush1.bf16.msra.mxu1 %v17259_v25  ;;  %v19966_v25 = vld [vmem:[%s23153_s20 + $0x568] sm:$0xff]  }
0x128d   : > { %5971 = vmatprep.subr.bf16.mxu1 %v17264_v8  ;;  %v19975_v8 = vld [vmem:[%s23153_s20 + $0x5f8] sm:$0xff]  }
0x1290   : > { %5972 = vmatpush1.bf16.msra.mxu1 %v17263_v46  ;;  %v19974_v46 = vld [vmem:[%s23153_s20 + $0x578] sm:$0xff]  }
0x1291   : > { %6194 = vmatprep.subr.bf16.mxu1 %v17343_v7 }
0x135e   : > { %v5818_v4 = vpop.f32.mrb[68].mxu1 }
0x135f   : > { %v5819_v51 = vadd.f32 %v17242_v50, %v5818_v4  ;;  %v19462_v5 = vpop.f32.mrb[69].mxu1  ;;  %v19947_v50 = vld [vmem:[%s23153_s20 + $0x5c0] sm:$0xff]  }
0x1360   : > { %v5821_v9 = vpop.f32.mrb[70].mxu1  ;;  %v19948_v4 = vld [vmem:[%s23153_s20 + $0x500] sm:$0xff]   ;;  %v19950_v5 = vld [vmem:[%s23153_s20 + $0x548] sm:$0xff]  }
0x1361   : > { %v19463_v30 = vpop.f32.mrb[71].mxu1  ;;  %v5824_v13 = vadd.f32 %v5819_v51, %v21271_v45  ;;  %v17257_v45 = vcombine.low %v17248_v20, %v17250_v49  ;;  %v19949_v51 = vld [vmem:[%s23153_s20 + $0x580] sm:$0xff]   ;;  %v19951_v9 = vld [vmem:[%s23153_s20 + $0x5c8] sm:$0xff]   ;;  %v19960_v20 = vld [vmem:[%s23153_s20 + $0x518] sm:$0xff]  }
0x1362   : > { %v19952_v30 = vld [vmem:[%s23153_s20 + $0x508] sm:$0xff]   ;;  %v19961_v49 = vld [vmem:[%s23153_s20 + $0x598] sm:$0xff]  }
0x1363   : > { %v5825_v14 = vsel %vm1450_vm1, %v5824_v13, 0.0  ;;  %5929 = vmatpush1.bf16.msra.mxu0 %v17257_v45  ;;  %v19965_v45 = vld [vmem:[%s23153_s20 + $0x5a0] sm:$0xff]  }
0x1364   : > { %5826 = vadd.xlane.f32.xlu0 %v5825_v14  ;;  %5930 = vmatprep.subr.bf16.mxu0 %v17262_v35  ;;  %v19954_v14 = vld [vmem:[%s23153_s20 + $0x550] sm:$0xff]  }
0x1365   : > { %v19971_v35 = vld [vmem:[%s23153_s20 + $0x5f0] sm:$0xff]  }
0x1367   : > { %5931 = vmatpush1.bf16.msra.mxu0 %v17261_v40  ;;  %v19973_v40 = vld [vmem:[%s23153_s20 + $0x5b0] sm:$0xff]  }
0x1368   : > { %6153 = vmatprep.subr.bf16.mxu0 %v17341_v12  ;;  %v19979_v12 = vld [vmem:[%s23153_s20 + $0x4c0] sm:$0xff]  }
0x13f1   : > { %v5827_v15 = vpop.xlane.xlu0 %5826 }
0x13f2   : > { %v5828_v16 = vmul.f32 0.03125, %v5827_v15  ;;  %v19955_v15 = vld [vmem:[%s23153_s20 + $0x5d0] sm:$0xff]  }
0x13f4   : > { %v5829_v18 = vsub.f32 %v5824_v13, %v5828_v16  ;;  %v19953_v13 = vld [vmem:[%s23153_s20 + $0x588] sm:$0xff]   ;;  %v19956_v16 = vld [vmem:[%s23153_s20 + $0x510] sm:$0xff]  }
0x13f6   : > { %v5830_v19 = vmul.f32 %v5829_v18, %v5829_v18 }
0x13f8   : > { %v5831_v39 = vsel %vm1450_vm1, %v5830_v19, 0.0  ;;  %v19958_v19 = vld [vmem:[%s23153_s20 + $0x558] sm:$0xff]  }
0x13f9   : > { %5832 = vadd.xlane.f32.xlu1 %v5831_v39  ;;  %v19959_v39 = vld [vmem:[%s23153_s20 + $0x5d8] sm:$0xff]  }
0x1486   : > { %v5833_v63 = vpop.xlane.xlu1 %5832 }
0x1487   : > { %v5834_v53 = vmul.f32 0.03125, %v5833_v63  ;;  %v21535_v63 = vld [vmem:[%s23156_s12 + $0x10] sm:$0xf] }
0x1489   : > { %v5835_v17 = vadd.f32 1e-05, %v5834_v53 }
0x148b   : > { %20388 = vrsqrt.f32 %v5835_v17 }
0x1495   : > { %v20389_v57 = vpop.eup %20388 }
0x1496   : > { %v5837_v54 = vmul.f32 %v20389_v57, %v5829_v18  ;;  %v19957_v18 = vld [vmem:[%s23153_s20 + $0x590] sm:$0xff]  }
0x1497   : > { %v17339_v57 = vld [vmem:[%s23156_s12 + $0x14] sm:$0xf] }
0x1498   : > { %v5844_v48 = vmul.f32 %v17246_v41, %v5837_v54  ;;  %v6096_v56 = vrot.slane %v17339_v57, %v21085_v42  ;;  %v6104_v6 = vrot.slane %v17339_v57, %v21088_v43  ;;  %v6100_v58 = vrot.slane %v17339_v57, %v21075_v33 }
0x1499   : > { %v6108_v59 = vrot.slane %v17339_v57, %v21078_v38  ;;  %v19996_v57 = vld [vmem:[%s23153_s20 + $0x420] sm:$0xff]  }
0x149a   : > { %v21480_v60 = vadd.f32 %v17247_v55, %v5844_v48  ;;  %v5872_v55 = vrot.slane %v21535_v63, %v21075_v33  ;;  %v5880_v48 = vrot.slane %v21535_v63, %v21078_v38 }
0x149c   : > { %v21484_v61 = vpack.c.bf16 %v21480_v60, %v21480_v60 }
0x149e   : > { %17265 = vmatmul.mubr.msk.bf16.vlgmr.msra.gmra.mrb[72].mxu0 %vm1450_vm1, %v21484_v61  ;;  %17266 = vmatmul.mubr.msk.bf16.vlgmr.msra.gmra.mrb[72].mxu1 %vm1450_vm1, %v21484_v61 }
0x149f   : > { %6154 = vmatpush1.bf16.msra.mxu0 %v17340_v47  ;;  %6195 = vmatpush1.bf16.msra.mxu1 %v17342_v52 }
0x14a0   : > { %6155 = vmatprep.subr.bf16.mxu0 %v17345_v44  ;;  %6196 = vmatprep.subr.bf16.mxu1 %v17347_v62 }
0x14a1   : > { %6185 = vmatprep.mubr.bf16.mxu0 %v20539_v34  ;;  %6226 = vmatprep.mubr.bf16.mxu1 %v20539_v34 }
0x14a3   : > { %6156 = vmatpush1.bf16.msra.mxu0 %v17344_v31  ;;  %6197 = vmatpush1.bf16.msra.mxu1 %v17346_v0 }
0x14a4   : > { %18711 = vmatprep.subr.bf16.mxu0 %v19946_v3  ;;  %18733 = vmatprep.subr.bf16.mxu1 %v19947_v50 }
0x14a6   : > { %17348 = vmatmul.mubr.msk.bf16.vlgmr.msra.gmra.mrb[76].mxu0 %vm1450_vm1, %v21484_v61  ;;  %17349 = vmatmul.mubr.msk.bf16.vlgmr.msra.gmra.mrb[76].mxu1 %vm1450_vm1, %v21484_v61 }
0x14a7   : > { %18712 = vmatpush3.bf16.msra.mxu0 %v19948_v4  ;;  %18734 = vmatpush3.bf16.msra.mxu1 %v19949_v51 }
0x14a8   : > { %18713 = vmatprep.subr.bf16.mxu0 %v19950_v5  ;;  %18735 = vmatprep.subr.bf16.mxu1 %v19951_v9 }
0x14ab   : > { %18714 = vmatpush3.bf16.msra.mxu0 %v19952_v30  ;;  %18736 = vmatpush3.bf16.msra.mxu1 %v19953_v13 }
0x14ac   : > { %18715 = vmatprep.subr.bf16.mxu0 %v19954_v14  ;;  %18737 = vmatprep.subr.bf16.mxu1 %v19955_v15 }
0x14af   : > { %18716 = vmatpush3.bf16.msra.mxu0 %v19956_v16  ;;  %18738 = vmatpush3.bf16.msra.mxu1 %v19957_v18 }
0x14b0   : > { %18717 = vmatprep.subr.bf16.mxu0 %v19958_v19  ;;  %18739 = vmatprep.subr.bf16.mxu1 %v19959_v39 }
0x14b3   : > { %18718 = vmatpush3.bf16.msra.mxu0 %v19960_v20  ;;  %18740 = vmatpush3.bf16.msra.mxu1 %v19961_v49 }
0x14b4   : > { %18719 = vmatprep.subr.bf16.mxu0 %v19962_v21  ;;  %18741 = vmatprep.subr.bf16.mxu1 %v19963_v23 }
0x14b7   : > { %18720 = vmatpush3.bf16.msra.mxu0 %v19964_v24  ;;  %18742 = vmatpush3.bf16.msra.mxu1 %v19965_v45  ;;  %v19980_v24 = vld [vmem:[%s23153_s20 + $0x400] sm:$0xff]  }
0x14b8   : > { %18721 = vmatprep.subr.bf16.mxu0 %v19966_v25  ;;  %18743 = vmatprep.subr.bf16.mxu1 %v19967_v26  ;;  %v19981_v45 = vld [vmem:[%s23153_s20 + $0x480] sm:$0xff]  }
0x14bb   : > { %18722 = vmatpush3.bf16.msra.mxu0 %v19968_v27  ;;  %18744 = vmatpush3.bf16.msra.mxu1 %v19969_v28  ;;  %v19982_v27 = vld [vmem:[%s23153_s20 + $0x448] sm:$0xff]  }
0x14bc   : > { %18723 = vmatprep.subr.bf16.mxu0 %v19970_v29  ;;  %18745 = vmatprep.subr.bf16.mxu1 %v19971_v35  ;;  %v19983_v28 = vld [vmem:[%s23153_s20 + $0x4c8] sm:$0xff]  }
0x14bf   : > { %18724 = vmatpush3.bf16.msra.mxu0 %v19972_v10  ;;  %18746 = vmatpush3.bf16.msra.mxu1 %v19973_v40  ;;  %v19984_v10 = vld [vmem:[%s23153_s20 + $0x408] sm:$0xff]  }
0x14c0   : > { %18725 = vmatprep.subr.bf16.mxu0 %v19974_v46  ;;  %18747 = vmatprep.subr.bf16.mxu1 %v19975_v8  ;;  %v19985_v40 = vld [vmem:[%s23153_s20 + $0x488] sm:$0xff]   ;;  %v19986_v46 = vld [vmem:[%s23153_s20 + $0x450] sm:$0xff]  }
0x14c1   : > { %v19987_v8 = vld [vmem:[%s23153_s20 + $0x4d0] sm:$0xff]  }
0x14c3   : > { %18726 = vmatpush3.bf16.msra.mxu0 %v19976_v2  ;;  %18748 = vmatpush3.bf16.msra.mxu1 %v19977_v36  ;;  %v19988_v2 = vld [vmem:[%s23153_s20 + $0x410] sm:$0xff]  }
0x14c4   : > { %18755 = vmatprep.subr.bf16.mxu0 %v19978_v37  ;;  %18777 = vmatprep.subr.bf16.mxu1 %v19979_v12  ;;  %v19989_v36 = vld [vmem:[%s23153_s20 + $0x490] sm:$0xff]   ;;  %v19990_v37 = vld [vmem:[%s23153_s20 + $0x458] sm:$0xff]  }
0x14c5   : > { %v19991_v12 = vld [vmem:[%s23153_s20 + $0x4d8] sm:$0xff]  }
0x1571   : > { %v21530_v11 = vpop.f32.mrb[72].mxu0  ;;  %v21532_v47 = vpop.f32.mrb[72].mxu1 }
0x1572   : > { %v5964_v52 = vpop.f32.mrb[73].mxu0  ;;  %v6005_v7 = vpop.f32.mrb[73].mxu1 }
0x1573   : > { %v5966_v53 = vpop.f32.mrb[74].mxu0  ;;  %v6007_v17 = vpop.f32.mrb[74].mxu1  ;;  %v5965_v31 = vadd.f32 %v5964_v52, %v5872_v55  ;;  %v6006_v0 = vadd.f32 %v6005_v7, %v5880_v48  ;;  %v19992_v52 = vld [vmem:[%s23153_s20 + $0x418] sm:$0xff]   ;;  %v19999_v55 = vld [vmem:[%s23153_s20 + $0x4e8] sm:$0xff]  }
0x1574   : > { %v5967_v41 = vpop.f32.mrb[75].mxu0  ;;  %v6008_v54 = vpop.f32.mrb[75].mxu1  ;;  %v19993_v7 = vld [vmem:[%s23153_s20 + $0x498] sm:$0xff]   ;;  %v19994_v53 = vld [vmem:[%s23153_s20 + $0x460] sm:$0xff]   ;;  %v20000_v48 = vld [vmem:[%s23153_s20 + $0x428] sm:$0xff]  }
0x1575   : > { %v6011_v20 = vmax.f32 %v5965_v31, 0.0  ;;  %v6013_v49 = vmax.f32 %v6006_v0, 0.0  ;;  %v19995_v17 = vld [vmem:[%s23153_s20 + $0x4e0] sm:$0xff]   ;;  %v19998_v54 = vld [vmem:[%s23153_s20 + $0x468] sm:$0xff]   ;;  %v20005_v31 = vld [vmem:[%s23153_s20 + $0x4b0] sm:$0xff]  }
0x1576   : > { %v19997_v41 = vld [vmem:[%s23153_s20 + $0x4a0] sm:$0xff]  }
0x1577   : > { %v6015_v29 = vpack.c.bf16 %v6011_v20, %v6011_v20  ;;  %v6017_v35 = vpack.c.bf16 %v6013_v49, %v6013_v49 }
0x1579   : > { %v6187_v44 = vpop.f32.mrb[76].mxu0  ;;  %v6228_v62 = vpop.f32.mrb[76].mxu1 }
0x157a   : > { %v6188_v3 = vadd.f32 %v6187_v44, %v6096_v56  ;;  %v6229_v50 = vadd.f32 %v6228_v62, %v6104_v6  ;;  %v6189_v4 = vpop.f32.mrb[77].mxu0  ;;  %v6230_v51 = vpop.f32.mrb[77].mxu1  ;;  %v20001_v56 = vld [vmem:[%s23153_s20 + $0x4a8] sm:$0xff]   ;;  %v5868_v6 = vrot.slane %v21535_v63, %v21085_v42  ;;  %v20003_v44 = vld [vmem:[%s23153_s20 + $0x4f0] sm:$0xff]  }
0x157b   : > { %v6190_v5 = vadd.f32 %v6189_v4, %v6100_v58  ;;  %v6231_v9 = vadd.f32 %v6230_v51, %v6108_v59  ;;  %v6191_v30 = vpop.f32.mrb[78].mxu0  ;;  %v6232_v13 = vpop.f32.mrb[78].mxu1  ;;  %v5876_v58 = vrot.slane %v21535_v63, %v21088_v43  ;;  %v20002_v59 = vld [vmem:[%s23153_s20 + $0x470] sm:$0xff]   ;;  %v20006_v63 = vld [vmem:[%s23153_s20 + $0x478] sm:$0xff]   ;;  %v17478_v4 = vld [vmem:[%s23158_s6 + $0x120] sm:$0xff] }
0x157c   : > { %v6235_v14 = vmax.f32 %v6188_v3, 0.0  ;;  %v6237_v15 = vmax.f32 %v6229_v50, 0.0  ;;  %v6192_v16 = vpop.f32.mrb[79].mxu0  ;;  %v6233_v18 = vpop.f32.mrb[79].mxu1  ;;  %v20004_v62 = vld [vmem:[%s23153_s20 + $0x430] sm:$0xff]   ;;  %v5963_v0 = vadd.f32 %v21530_v11, %v5868_v6  ;;  %v20007_v50 = vld [vmem:[%s23153_s20 + $0x4f8] sm:$0xff]  }
0x157d   : > { %v6236_v19 = vmax.f32 %v6190_v5, 0.0  ;;  %v6238_v39 = vmax.f32 %v6231_v9, 0.0  ;;  %v6004_v3 = vadd.f32 %v21532_v47, %v5876_v58  ;;  %v17480_v51 = vld [vmem:[%s23158_s6 + $0x160] sm:$0xff]  ;;  %v17479_v5 = vld [vmem:[%s23158_s6 + $0x128] sm:$0xff]  ;;  %v20008_v30 = vld [vmem:[%s23153_s20 + $0x438] sm:$0xff]  }
0x157e   : > { %v6239_v25 = vpack.c.bf16 %v6235_v14, %v6235_v14  ;;  %v6241_v26 = vpack.c.bf16 %v6237_v15, %v6237_v15  ;;  %v17481_v9 = vld [vmem:[%s23158_s6 + $0x168] sm:$0xff]  ;;  %v20009_v13 = vld [vmem:[%s23153_s20 + $0x4b8] sm:$0xff]   ;;  %v6010_v14 = vmax.f32 %v5963_v0, 0.0  ;;  %v17488_v47 = vcombine.high %v17478_v4, %v17480_v51  ;;  %v17482_v16 = vld [vmem:[%s23158_s6 + $0x1a0] sm:$0xff] }
0x157f   : > { %v6240_v21 = vpack.c.bf16 %v6236_v19, %v6236_v19  ;;  %v6242_v23 = vpack.c.bf16 %v6238_v39, %v6238_v39  ;;  %v6012_v11 = vmax.f32 %v6004_v3, 0.0  ;;  %v17490_v15 = vcombine.high %v17479_v5, %v17481_v9  ;;  %v17484_v18 = vld [vmem:[%s23158_s6 + $0x1e0] sm:$0xff]  ;;  %v17483_v19 = vld [vmem:[%s23158_s6 + $0x1a8] sm:$0xff]  ;;  %v20038_v0 = vld [vmem:[%s23153_s20 + $0x678] sm:$0xff]  }
0x1580   : > { %v17485_v39 = vld [vmem:[%s23158_s6 + $0x1e8] sm:$0xff]  ;;  %v17487_v20 = vcombine.low %v17478_v4, %v17480_v51  ;;  %v17489_v49 = vcombine.low %v17479_v5, %v17481_v9  ;;  %v20039_v3 = vld [vmem:[%s23153_s20 + $0x6f8] sm:$0xff]   ;;  %v21629_v4 = vld [vmem:[%s23158_s6 + $0x130] sm:$0xff] }
0x1581   : > { %6531 = vmatprep.mubr.bf16.mxu0 %v6240_v21  ;;  %6571 = vmatprep.mubr.bf16.mxu1 %v6242_v23  ;;  %v17492_v21 = vcombine.high %v17482_v16, %v17484_v18  ;;  %v6014_v23 = vpack.c.bf16 %v6010_v14, %v6010_v14  ;;  %v20032_v6 = vld [vmem:[%s23153_s20 + $0x628] sm:$0xff]   ;;  %v21632_v51 = vld [vmem:[%s23158_s6 + $0x170] sm:$0xff]  ;;  %v21635_v5 = vld [vmem:[%s23158_s6 + $0x138] sm:$0xff] }
0x1582   : > { %6532 = vmatmul.mubr.bf16.vlgmr.msra.gmra.mrb[80].mxu0 %v6239_v25  ;;  %6572 = vmatmul.mubr.bf16.vlgmr.msra.gmra.mrb[80].mxu1 %v6241_v26  ;;  %v17491_v25 = vcombine.low %v17482_v16, %v17484_v18  ;;  %v17493_v26 = vcombine.low %v17483_v19, %v17485_v39  ;;  %v20033_v58 = vld [vmem:[%s23153_s20 + $0x6a8] sm:$0xff]   ;;  %v17603_v9 = vcombine.high %v21629_v4, %v21632_v51 }
0x1583   : > { %18756 = vmatpush3.bf16.msra.mxu0 %v19980_v24  ;;  %18778 = vmatpush3.bf16.msra.mxu1 %v19981_v45  ;;  %v6016_v24 = vpack.c.bf16 %v6012_v11, %v6012_v11  ;;  %v17494_v45 = vcombine.high %v17483_v19, %v17485_v39 }
0x1584   : > { %6803 = vmatprep.mubr.bf16.mxu0 %v6015_v29  ;;  %6843 = vmatprep.mubr.bf16.mxu1 %v6017_v35  ;;  %v20012_v29 = vld [vmem:[%s23153_s20 + $0x600] sm:$0xff]  }
0x1585   : > { %18757 = vmatprep.subr.bf16.mxu0 %v19982_v27  ;;  %18779 = vmatprep.subr.bf16.mxu1 %v19983_v28  ;;  %v20010_v27 = vld [vmem:[%s23153_s20 + $0x640] sm:$0xff]  }
0x1586   : > { %v20011_v28 = vld [vmem:[%s23153_s20 + $0x6c0] sm:$0xff]  }
0x1587   : > { %18758 = vmatpush3.bf16.msra.mxu0 %v19984_v10  ;;  %18780 = vmatpush3.bf16.msra.mxu1 %v19985_v40  ;;  %v20013_v35 = vld [vmem:[%s23153_s20 + $0x680] sm:$0xff]   ;;  %v20014_v10 = vld [vmem:[%s23153_s20 + $0x648] sm:$0xff]  }
0x1588   : > { %18759 = vmatprep.subr.bf16.mxu0 %v19986_v46  ;;  %18781 = vmatprep.subr.bf16.mxu1 %v19987_v8  ;;  %v20015_v40 = vld [vmem:[%s23153_s20 + $0x6c8] sm:$0xff]  }
0x1589   : > { %v20016_v46 = vld [vmem:[%s23153_s20 + $0x608] sm:$0xff]  }
0x158a   : > { %v20017_v8 = vld [vmem:[%s23153_s20 + $0x688] sm:$0xff]  }
0x158b   : > { %18760 = vmatpush3.bf16.msra.mxu0 %v19988_v2  ;;  %18782 = vmatpush3.bf16.msra.mxu1 %v19989_v36  ;;  %v20018_v2 = vld [vmem:[%s23153_s20 + $0x650] sm:$0xff]  }
0x158c   : > { %18761 = vmatprep.subr.bf16.mxu0 %v19990_v37  ;;  %18783 = vmatprep.subr.bf16.mxu1 %v19991_v12  ;;  %v20019_v36 = vld [vmem:[%s23153_s20 + $0x6d0] sm:$0xff]  }
0x158d   : > { %v20020_v37 = vld [vmem:[%s23153_s20 + $0x610] sm:$0xff]  }
0x158e   : > { %v20021_v12 = vld [vmem:[%s23153_s20 + $0x690] sm:$0xff]  }
0x158f   : > { %18762 = vmatpush3.bf16.msra.mxu0 %v19992_v52  ;;  %18784 = vmatpush3.bf16.msra.mxu1 %v19993_v7  ;;  %v20022_v52 = vld [vmem:[%s23153_s20 + $0x658] sm:$0xff]  }
0x1590   : > { %18763 = vmatprep.subr.bf16.mxu0 %v19994_v53  ;;  %18785 = vmatprep.subr.bf16.mxu1 %v19995_v17  ;;  %v20023_v7 = vld [vmem:[%s23153_s20 + $0x6d8] sm:$0xff]  }
0x1591   : > { %v20024_v53 = vld [vmem:[%s23153_s20 + $0x618] sm:$0xff]  }
0x1592   : > { %v20025_v17 = vld [vmem:[%s23153_s20 + $0x698] sm:$0xff]  }
0x1593   : > { %18764 = vmatpush3.bf16.msra.mxu0 %v19996_v57  ;;  %18786 = vmatpush3.bf16.msra.mxu1 %v19997_v41  ;;  %v20026_v57 = vld [vmem:[%s23153_s20 + $0x660] sm:$0xff]  }
0x1594   : > { %18765 = vmatprep.subr.bf16.mxu0 %v19998_v54  ;;  %18787 = vmatprep.subr.bf16.mxu1 %v19999_v55  ;;  %v20027_v41 = vld [vmem:[%s23153_s20 + $0x6e0] sm:$0xff]  }
0x1595   : > { %v20028_v54 = vld [vmem:[%s23153_s20 + $0x620] sm:$0xff]  }
0x1596   : > { %v20029_v55 = vld [vmem:[%s23153_s20 + $0x6a0] sm:$0xff]  }
0x1597   : > { %18766 = vmatpush3.bf16.msra.mxu0 %v20000_v48  ;;  %18788 = vmatpush3.bf16.msra.mxu1 %v20001_v56  ;;  %v20030_v48 = vld [vmem:[%s23153_s20 + $0x668] sm:$0xff]  }
0x1598   : > { %18767 = vmatprep.subr.bf16.mxu0 %v20002_v59  ;;  %18789 = vmatprep.subr.bf16.mxu1 %v20003_v44  ;;  %v20031_v56 = vld [vmem:[%s23153_s20 + $0x6e8] sm:$0xff]   ;;  %v20034_v59 = vld [vmem:[%s23153_s20 + $0x670] sm:$0xff]  }
0x1599   : > { %v20035_v44 = vld [vmem:[%s23153_s20 + $0x6f0] sm:$0xff]  }
0x159b   : > { %18768 = vmatpush3.bf16.msra.mxu0 %v20004_v62  ;;  %18790 = vmatpush3.bf16.msra.mxu1 %v20005_v31  ;;  %v20036_v62 = vld [vmem:[%s23153_s20 + $0x630] sm:$0xff]  }
0x159c   : > { %18769 = vmatprep.subr.bf16.mxu0 %v20006_v63  ;;  %18791 = vmatprep.subr.bf16.mxu1 %v20007_v50  ;;  %v20037_v31 = vld [vmem:[%s23153_s20 + $0x6b0] sm:$0xff]   ;;  %v20040_v63 = vld [vmem:[%s23153_s20 + $0x638] sm:$0xff]  }
0x159d   : > { %v20041_v50 = vld [vmem:[%s23153_s20 + $0x6b8] sm:$0xff]  }
0x159f   : > { %18770 = vmatpush3.bf16.msra.mxu0 %v20008_v30  ;;  %18792 = vmatpush3.bf16.msra.mxu1 %v20009_v13  ;;  %v21640_v30 = vld [vmem:[%s23158_s6 + $0x178] sm:$0xff]  ;;  %v17602_v13 = vcombine.low %v21629_v4, %v21632_v51 }
0x15a0   : > { %6921 = vmatprep.subr.bf16.mxu0 %v17488_v47  ;;  %6962 = vmatprep.subr.bf16.mxu1 %v17490_v15  ;;  %v17604_v14 = vcombine.low %v21635_v5, %v21640_v30  ;;  %v17605_v11 = vcombine.high %v21635_v5, %v21640_v30  ;;  %v17598_v4 = vld [vmem:[%s23158_s6 + $0x1b8] sm:$0xff] }
0x15a1   : > { %v17600_v51 = vld [vmem:[%s23158_s6 + $0x1f8] sm:$0xff] }
0x15a2   : > { %6804 = vmatmul.mubr.bf16.vlgmr.msra.gmra.mrb[84].mxu0 %v6014_v23  ;;  %6844 = vmatmul.mubr.bf16.vlgmr.msra.gmra.mrb[84].mxu1 %v6016_v24 }
0x15a3   : > { %6922 = vmatpush1.bf16.msra.mxu0 %v17487_v20  ;;  %6963 = vmatpush1.bf16.msra.mxu1 %v17489_v49 }
0x15a4   : > { %6923 = vmatprep.subr.bf16.mxu0 %v17492_v21  ;;  %6964 = vmatprep.subr.bf16.mxu1 %v17494_v45 }
0x15a5   : > { %6953 = vmatprep.mubr.bf16.mxu0 %v20539_v34  ;;  %6994 = vmatprep.mubr.bf16.mxu1 %v20539_v34 }
0x15a7   : > { %6924 = vmatpush1.bf16.msra.mxu0 %v17491_v25  ;;  %6965 = vmatpush1.bf16.msra.mxu1 %v17493_v26 }
0x15a8   : > { %18799 = vmatprep.subr.bf16.mxu0 %v20010_v27  ;;  %18821 = vmatprep.subr.bf16.mxu1 %v20011_v28 }
0x15aa   : > { %17495 = vmatmul.mubr.msk.bf16.vlgmr.msra.gmra.mrb[88].mxu0 %vm1450_vm1, %v21484_v61  ;;  %17496 = vmatmul.mubr.msk.bf16.vlgmr.msra.gmra.mrb[88].mxu1 %vm1450_vm1, %v21484_v61 }
0x15ab   : > { %18800 = vmatpush3.bf16.msra.mxu0 %v20012_v29  ;;  %18822 = vmatpush3.bf16.msra.mxu1 %v20013_v35 }
0x15ac   : > { %18801 = vmatprep.subr.bf16.mxu0 %v20014_v10  ;;  %18823 = vmatprep.subr.bf16.mxu1 %v20015_v40  ;;  %v17486_v40 = vld [vmem:[%s23156_s12 + $0x18] sm:$0xf] }
0x15af   : > { %18802 = vmatpush3.bf16.msra.mxu0 %v20016_v46  ;;  %18824 = vmatpush3.bf16.msra.mxu1 %v20017_v8 }
0x15b0   : > { %18803 = vmatprep.subr.bf16.mxu0 %v20018_v2  ;;  %18825 = vmatprep.subr.bf16.mxu1 %v20019_v36  ;;  %v6864_v36 = vrot.slane %v17486_v40, %v21085_v42 }
0x15b3   : > { %18804 = vmatpush3.bf16.msra.mxu0 %v20020_v37  ;;  %18826 = vmatpush3.bf16.msra.mxu1 %v20021_v12  ;;  %v6872_v37 = vrot.slane %v17486_v40, %v21088_v43 }
0x15b4   : > { %18805 = vmatprep.subr.bf16.mxu0 %v20022_v52  ;;  %18827 = vmatprep.subr.bf16.mxu1 %v20023_v7  ;;  %v6868_v52 = vrot.slane %v17486_v40, %v21075_v33  ;;  %v6876_v7 = vrot.slane %v17486_v40, %v21078_v38  ;;  %v20060_v40 = vld [vmem:[%s23153_s20 + $0x720] sm:$0xff]  }
0x15b7   : > { %18806 = vmatpush3.bf16.msra.mxu0 %v20024_v53  ;;  %18828 = vmatpush3.bf16.msra.mxu1 %v20025_v17 }
0x15b8   : > { %18807 = vmatprep.subr.bf16.mxu0 %v20026_v57  ;;  %18829 = vmatprep.subr.bf16.mxu1 %v20027_v41 }
0x15bb   : > { %18808 = vmatpush3.bf16.msra.mxu0 %v20028_v54  ;;  %18830 = vmatpush3.bf16.msra.mxu1 %v20029_v55 }
0x15bc   : > { %18809 = vmatprep.subr.bf16.mxu0 %v20030_v48  ;;  %18831 = vmatprep.subr.bf16.mxu1 %v20031_v56 }
0x15bf   : > { %18810 = vmatpush3.bf16.msra.mxu0 %v20032_v6  ;;  %18832 = vmatpush3.bf16.msra.mxu1 %v20033_v58 }
0x15c0   : > { %18811 = vmatprep.subr.bf16.mxu0 %v20034_v59  ;;  %18833 = vmatprep.subr.bf16.mxu1 %v20035_v44 }
0x15c3   : > { %18812 = vmatpush3.bf16.msra.mxu0 %v20036_v62  ;;  %18834 = vmatpush3.bf16.msra.mxu1 %v20037_v31 }
0x15c4   : > { %18813 = vmatprep.subr.bf16.mxu0 %v20038_v0  ;;  %18835 = vmatprep.subr.bf16.mxu1 %v20039_v3  ;;  %v17597_v0 = vld [vmem:[%s23158_s6 + $0x1b0] sm:$0xff] }
0x15c7   : > { %18814 = vmatpush3.bf16.msra.mxu0 %v20040_v63  ;;  %18836 = vmatpush3.bf16.msra.mxu1 %v20041_v50  ;;  %v17599_v50 = vld [vmem:[%s23158_s6 + $0x1f0] sm:$0xff]  ;;  %s23183_s6 = sld [smem:[#allocation32_spill]] }
0x15c8   : > { %7418 = vmatprep.subr.bf16.mxu0 %v17603_v9  ;;  %7459 = vmatprep.subr.bf16.mxu1 %v17605_v11 }
0x1655   : > { %v18727_v47 = vpop.f32.mrb[80].mxu0  ;;  %v18749_v15 = vpop.f32.mrb[80].mxu1 }
0x1656   : > { %v18728_v16 = vpop.f32.mrb[81].mxu0  ;;  %v18750_v18 = vpop.f32.mrb[81].mxu1 }
0x1657   : > { %v18729_v19 = vadd.f32 %v18728_v16, %v18727_v47  ;;  %v18751_v39 = vadd.f32 %v18750_v18, %v18749_v15  ;;  %v18730_v20 = vpop.f32.mrb[82].mxu0  ;;  %v18752_v49 = vpop.f32.mrb[82].mxu1  ;;  %v17607_v47 = vcombine.high %v17597_v0, %v17599_v50  ;;  %v17609_v15 = vcombine.high %v17598_v4, %v17600_v51 }
0x1658   : > { %v18731_v21 = vpop.f32.mrb[83].mxu0  ;;  %v18753_v23 = vpop.f32.mrb[83].mxu1  ;;  %v17606_v16 = vcombine.low %v17597_v0, %v17599_v50  ;;  %v17608_v18 = vcombine.low %v17598_v4, %v17600_v51  ;;  %v20045_v20 = vld [vmem:[%s23153_s20 + $0x780] sm:$0xff]   ;;  %v20047_v49 = vld [vmem:[%s23153_s20 + $0x7c8] sm:$0xff]   ;;  %v17601_v0 = vld [vmem:[%s23156_s12 + $0x1c] sm:$0xf] }
0x1659   : > { %v6574_v24 = vadd.f32 %v18751_v39, %v18729_v19  ;;  %v20042_v19 = vld [vmem:[%s23153_s20 + $0x740] sm:$0xff]   ;;  %v20048_v21 = vld [vmem:[%s23153_s20 + $0x708] sm:$0xff]   ;;  %v7361_v4 = vrot.slane %v17601_v0, %v21085_v42  ;;  %v7369_v51 = vrot.slane %v17601_v0, %v21088_v43  ;;  %s23188_s12 = sld [smem:[#allocation8_spill]] }
0x165a   : > { %v20043_v39 = vld [vmem:[%s23153_s20 + $0x7c0] sm:$0xff]   ;;  %v20049_v23 = vld [vmem:[%s23153_s20 + $0x788] sm:$0xff]  }
0x165f   : > { %s22032_s13 = scalar_lea.vmem %s23188_s12, %s23208_s10  ;;  %s23189_s12 = smov 96  }
0x1660   : > { %s23200_s10 = sld [smem:[#allocation42_spill]] }
0x1675   : > { %v18771_v45 = vpop.f32.mrb[84].mxu0  ;;  %v18793_v25 = vpop.f32.mrb[84].mxu1 }
0x1676   : > { %v18772_v26 = vpop.f32.mrb[85].mxu0  ;;  %v18794_v27 = vpop.f32.mrb[85].mxu1 }
0x1677   : > { %v18773_v28 = vadd.f32 %v18772_v26, %v18771_v45  ;;  %v18795_v29 = vadd.f32 %v18794_v27, %v18793_v25  ;;  %v18774_v35 = vpop.f32.mrb[86].mxu0  ;;  %v18796_v10 = vpop.f32.mrb[86].mxu1  ;;  %v20051_v45 = vld [vmem:[%s23153_s20 + $0x7d0] sm:$0xff]   ;;  %v20055_v27 = vld [vmem:[%s23153_s20 + $0x7d8] sm:$0xff]  }
0x1678   : > { %v18775_v46 = vpop.f32.mrb[87].mxu0  ;;  %v18797_v8 = vpop.f32.mrb[87].mxu1  ;;  %v20052_v25 = vld [vmem:[%s23153_s20 + $0x710] sm:$0xff]   ;;  %v20058_v35 = vld [vmem:[%s23153_s20 + $0x760] sm:$0xff]  }
0x1679   : > { %v6806_v2 = vadd.f32 %v18773_v28, %v6574_v24  ;;  %v20050_v24 = vld [vmem:[%s23153_s20 + $0x750] sm:$0xff]   ;;  %v20056_v28 = vld [vmem:[%s23153_s20 + $0x718] sm:$0xff]   ;;  %v20059_v10 = vld [vmem:[%s23153_s20 + $0x7e0] sm:$0xff]  }
0x167a   : > { %v20053_v26 = vld [vmem:[%s23153_s20 + $0x790] sm:$0xff]   ;;  %v20061_v46 = vld [vmem:[%s23153_s20 + $0x7a0] sm:$0xff]   ;;  %v20062_v8 = vld [vmem:[%s23153_s20 + $0x768] sm:$0xff]  }
0x167b   : > { %v21651_v12 = vadd.f32 %v18795_v29, %v6806_v2  ;;  %v20057_v29 = vld [vmem:[%s23153_s20 + $0x798] sm:$0xff]   ;;  %v20063_v2 = vld [vmem:[%s23153_s20 + $0x7e8] sm:$0xff]  }
0x167d   : > { %v6955_v53 = vpop.f32.mrb[88].mxu0  ;;  %v6996_v17 = vpop.f32.mrb[88].mxu1 }
0x167e   : > { %v6956_v57 = vadd.f32 %v6955_v53, %v6864_v36  ;;  %v6997_v41 = vadd.f32 %v6996_v17, %v6872_v37  ;;  %v6957_v54 = vpop.f32.mrb[89].mxu0  ;;  %v6998_v55 = vpop.f32.mrb[89].mxu1  ;;  %v20064_v36 = vld [vmem:[%s23153_s20 + $0x728] sm:$0xff]   ;;  %v20068_v53 = vld [vmem:[%s23153_s20 + $0x730] sm:$0xff]  }
0x167f   : > { %v6958_v48 = vadd.f32 %v6957_v54, %v6868_v52  ;;  %v6999_v56 = vadd.f32 %v6998_v55, %v6876_v7  ;;  %v6959_v6 = vpop.f32.mrb[90].mxu0  ;;  %v7000_v58 = vpop.f32.mrb[90].mxu1  ;;  %v20065_v37 = vld [vmem:[%s23153_s20 + $0x7a8] sm:$0xff]   ;;  %v20066_v52 = vld [vmem:[%s23153_s20 + $0x770] sm:$0xff]   ;;  %v20072_v54 = vld [vmem:[%s23153_s20 + $0x738] sm:$0xff]  }
0x1680   : > { %v7003_v59 = vmax.f32 %v6956_v57, 0.0  ;;  %v7005_v44 = vmax.f32 %v6997_v41, 0.0  ;;  %v6960_v62 = vpop.f32.mrb[91].mxu0  ;;  %v7001_v31 = vpop.f32.mrb[91].mxu1  ;;  %v20067_v7 = vld [vmem:[%s23153_s20 + $0x7f0] sm:$0xff]   ;;  %v20070_v57 = vld [vmem:[%s23153_s20 + $0x778] sm:$0xff]  }
0x1681   : > { %v7004_v3 = vmax.f32 %v6958_v48, 0.0  ;;  %v7006_v63 = vmax.f32 %v6999_v56, 0.0  ;;  %v20069_v17 = vld [vmem:[%s23153_s20 + $0x7b0] sm:$0xff]   ;;  %v20071_v41 = vld [vmem:[%s23153_s20 + $0x7f8] sm:$0xff]  }
0x1682   : > { %v7007_v30 = vpack.c.bf16 %v7003_v59, %v7003_v59  ;;  %v7009_v11 = vpack.c.bf16 %v7005_v44, %v7005_v44  ;;  %v20073_v55 = vld [vmem:[%s23153_s20 + $0x7b8] sm:$0xff]  }
0x1683   : > { %v7008_v5 = vpack.c.bf16 %v7004_v3, %v7004_v3  ;;  %v7010_v9 = vpack.c.bf16 %v7006_v63, %v7006_v63 }
0x1685   : > { %7299 = vmatprep.mubr.bf16.mxu0 %v7008_v5  ;;  %7339 = vmatprep.mubr.bf16.mxu1 %v7010_v9  ;;  %v7365_v9 = vrot.slane %v17601_v0, %v21075_v33 }
0x1686   : > { %7300 = vmatmul.mubr.bf16.vlgmr.msra.gmra.mrb[92].mxu0 %v7007_v30  ;;  %7340 = vmatmul.mubr.bf16.vlgmr.msra.gmra.mrb[92].mxu1 %v7009_v11  ;;  %v7373_v30 = vrot.slane %v17601_v0, %v21078_v38 }
0x1687   : > { %7419 = vmatpush1.bf16.msra.mxu0 %v17602_v13  ;;  %7460 = vmatpush1.bf16.msra.mxu1 %v17604_v14  ;;  %v20044_v13 = vld [vmem:[%s23153_s20 + $0x700] sm:$0xff]   ;;  %v20046_v14 = vld [vmem:[%s23153_s20 + $0x748] sm:$0xff]  }
0x1688   : > { %7420 = vmatprep.subr.bf16.mxu0 %v17607_v47  ;;  %7461 = vmatprep.subr.bf16.mxu1 %v17609_v15 }
0x1689   : > { %7450 = vmatprep.mubr.bf16.mxu0 %v20539_v34  ;;  %7491 = vmatprep.mubr.bf16.mxu1 %v20539_v34 }
0x168b   : > { %7421 = vmatpush1.bf16.msra.mxu0 %v17606_v16  ;;  %7462 = vmatpush1.bf16.msra.mxu1 %v17608_v18 }
0x168c   : > { %18843 = vmatprep.subr.bf16.mxu0 %v20042_v19  ;;  %18865 = vmatprep.subr.bf16.mxu1 %v20043_v39 }
0x168e   : > { %17610 = vmatmul.mubr.msk.bf16.vlgmr.msra.gmra.mrb[96].mxu0 %vm1450_vm1, %v21484_v61  ;;  %17611 = vmatmul.mubr.msk.bf16.vlgmr.msra.gmra.mrb[96].mxu1 %vm1450_vm1, %v21484_v61  ;;  %v20054_v61 = vld [vmem:[%s23153_s20 + $0x758] sm:$0xff]   ;;  %s23192_s20 = sld [smem:[#allocation37_spill]] }
0x168f   : > { %18844 = vmatpush3.bf16.msra.mxu0 %v20044_v13  ;;  %18866 = vmatpush3.bf16.msra.mxu1 %v20045_v20 }
0x1690   : > { %18845 = vmatprep.subr.bf16.mxu0 %v20046_v14  ;;  %18867 = vmatprep.subr.bf16.mxu1 %v20047_v49 }
0x1693   : > { %18846 = vmatpush3.bf16.msra.mxu0 %v20048_v21  ;;  %18868 = vmatpush3.bf16.msra.mxu1 %v20049_v23 }
0x1694   : > { %18847 = vmatprep.subr.bf16.mxu0 %v20050_v24  ;;  %18869 = vmatprep.subr.bf16.mxu1 %v20051_v45 }
0x1697   : > { %18848 = vmatpush3.bf16.msra.mxu0 %v20052_v25  ;;  %18870 = vmatpush3.bf16.msra.mxu1 %v20053_v26 }
0x1698   : > { %18849 = vmatprep.subr.bf16.mxu0 %v20054_v61  ;;  %18871 = vmatprep.subr.bf16.mxu1 %v20055_v27  ;;  %v20074_v61 = vld [vmem:[%s23167_s23] sm:$0xff]  }
0x169b   : > { %18850 = vmatpush3.bf16.msra.mxu0 %v20056_v28  ;;  %18872 = vmatpush3.bf16.msra.mxu1 %v20057_v29  ;;  %v20075_v29 = vld [vmem:[%s23167_s23 + $0x8] sm:$0xff]  }
0x169c   : > { %18851 = vmatprep.subr.bf16.mxu0 %v20058_v35  ;;  %18873 = vmatprep.subr.bf16.mxu1 %v20059_v10  ;;  %v21715_v35 = vld [vmem:[%s1391_s1] sm:$0x7]  ;;  %s23171_s1 = sld [smem:[#allocation5_spill]] }
0x169f   : > { %18852 = vmatpush3.bf16.msra.mxu0 %v20060_v40  ;;  %18874 = vmatpush3.bf16.msra.mxu1 %v20061_v46 }
0x16a0   : > { %18853 = vmatprep.subr.bf16.mxu0 %v20062_v8  ;;  %18875 = vmatprep.subr.bf16.mxu1 %v20063_v2 }
0x16a3   : > { %18854 = vmatpush3.bf16.msra.mxu0 %v20064_v36  ;;  %18876 = vmatpush3.bf16.msra.mxu1 %v20065_v37 }
0x16a4   : > { %18855 = vmatprep.subr.bf16.mxu0 %v20066_v52  ;;  %18877 = vmatprep.subr.bf16.mxu1 %v20067_v7 }
0x16a7   : > { %18856 = vmatpush3.bf16.msra.mxu0 %v20068_v53  ;;  %18878 = vmatpush3.bf16.msra.mxu1 %v20069_v17 }
0x16a8   : > { %18857 = vmatprep.subr.bf16.mxu0 %v20070_v57  ;;  %18879 = vmatprep.subr.bf16.mxu1 %v20071_v41  ;;  %v17716_v41 = vld [vmem:[%s23169_s28] ss:$0 sm:$0xff] }
0x16ab   : > { %18858 = vmatpush3.bf16.msra.mxu0 %v20072_v54  ;;  %18880 = vmatpush3.bf16.msra.mxu1 %v20073_v55 }
0x16ac   : > { %19464 = vmatprep.subr.bf16.mxu0 %v20527_v1  ;;  %19472 = vmatprep.subr.bf16.mxu1 %v20527_v1 }
0x1759   : > { %v18815_v48 = vpop.f32.mrb[92].mxu0  ;;  %v18837_v56 = vpop.f32.mrb[92].mxu1 }
0x175a   : > { %v18816_v6 = vpop.f32.mrb[93].mxu0  ;;  %v18838_v58 = vpop.f32.mrb[93].mxu1 }
0x175b   : > { %v18817_v59 = vadd.f32 %v18816_v6, %v18815_v48  ;;  %v18839_v44 = vadd.f32 %v18838_v58, %v18837_v56  ;;  %v18818_v62 = vpop.f32.mrb[94].mxu0  ;;  %v18840_v31 = vpop.f32.mrb[94].mxu1 }
0x175c   : > { %v18819_v3 = vpop.f32.mrb[95].mxu0  ;;  %v18841_v63 = vpop.f32.mrb[95].mxu1 }
0x175d   : > { %v7342_v50 = vadd.f32 %v18839_v44, %v18817_v59 }
0x175f   : > { %v7347_v5 = vadd.f32 %v7342_v50, %v21651_v12 }
0x1761   : > { %v7452_v11 = vpop.f32.mrb[96].mxu0  ;;  %v7493_v47 = vpop.f32.mrb[96].mxu1 }
0x1762   : > { %v7453_v15 = vadd.f32 %v7452_v11, %v7361_v4  ;;  %v7494_v16 = vadd.f32 %v7493_v47, %v7369_v51  ;;  %v7454_v18 = vpop.f32.mrb[97].mxu0  ;;  %v7495_v19 = vpop.f32.mrb[97].mxu1 }
0x1763   : > { %v7455_v39 = vadd.f32 %v7454_v18, %v7365_v9  ;;  %v7496_v13 = vadd.f32 %v7495_v19, %v7373_v30  ;;  %v7456_v20 = vpop.f32.mrb[98].mxu0  ;;  %v7497_v14 = vpop.f32.mrb[98].mxu1 }
0x1764   : > { %v7500_v49 = vmax.f32 %v7453_v15, 0.0  ;;  %v7502_v21 = vmax.f32 %v7494_v16, 0.0  ;;  %v7457_v23 = vpop.f32.mrb[99].mxu0  ;;  %v7498_v12 = vpop.f32.mrb[99].mxu1 }
0x1765   : > { %v7501_v24 = vmax.f32 %v7455_v39, 0.0  ;;  %v7503_v45 = vmax.f32 %v7496_v13, 0.0 }
0x1766   : > { %v7504_v27 = vpack.c.bf16 %v7500_v49, %v7500_v49  ;;  %v7506_v28 = vpack.c.bf16 %v7502_v21, %v7502_v21 }
0x1767   : > { %v7505_v25 = vpack.c.bf16 %v7501_v24, %v7501_v24  ;;  %v7507_v26 = vpack.c.bf16 %v7503_v45, %v7503_v45 }
0x1769   : > { %7796 = vmatprep.mubr.bf16.mxu0 %v7505_v25  ;;  %7836 = vmatprep.mubr.bf16.mxu1 %v7507_v26 }
0x176a   : > { %7797 = vmatmul.mubr.bf16.vlgmr.msra.gmra.mrb[100].mxu0 %v7504_v27  ;;  %7837 = vmatmul.mubr.bf16.vlgmr.msra.gmra.mrb[100].mxu1 %v7506_v28 }
0x176b   : > { %19465 = vmatpush3.bf16.msra.mxu0 %v20074_v61  ;;  %19468 = vmatprep.mubr.msk.bf16.mxu0 %vm20528_vm0, %v20527_v1 }
0x176c   : > { %19466 = vmatprep.subr.bf16.mxu0 %v20527_v1  ;;  %19474 = vmatprep.mubr.msk.bf16.mxu1 %vm20528_vm0, %v20527_v1 }
0x176f   : > { %19467 = vmatpush3.bf16.msra.mxu0 %v20075_v29 }
0x1770   : > { %19478 = vmatprep.subr.bf16.mxu0 %v20527_v1 }
0x1772   : > { %19469 = vmatmul.mubr.msk.bf16.vlgmr.msra.gmra.mrb[104].mxu0 %vm1450_vm1, %v21715_v35 }
0x1773   : > { %19480 = vmatprep.mubr.msk.bf16.mxu0 %vm20528_vm0, %v20527_v1 }
0x183d   : > { %v18859_v10 = vpop.f32.mrb[100].mxu0  ;;  %v18881_v40 = vpop.f32.mrb[100].mxu1 }
0x183e   : > { %v18860_v46 = vpop.f32.mrb[101].mxu0  ;;  %v18882_v8 = vpop.f32.mrb[101].mxu1 }
0x183f   : > { %v18861_v2 = vadd.f32 %v18860_v46, %v18859_v10  ;;  %v18883_v36 = vadd.f32 %v18882_v8, %v18881_v40  ;;  %v18862_v37 = vpop.f32.mrb[102].mxu0  ;;  %v18884_v52 = vpop.f32.mrb[102].mxu1 }
0x1840   : > { %v18863_v7 = vpop.f32.mrb[103].mxu0  ;;  %v18885_v53 = vpop.f32.mrb[103].mxu1 }
0x1841   : > { %v7839_v17 = vadd.f32 %v18883_v36, %v18861_v2 }
0x1843   : > { %v21722_v57 = vadd.f32 %v7839_v17, %v7347_v5 }
0x1845   : > { %v7977_v54 = vpop.f32.mrb[104].mxu0 }
0x1846   : > { %v21725_v55 = vadd.f32 %v17716_v41, %v7977_v54  ;;  %v19470_v48 = vpop.f32.mrb[105].mxu0 }
0x1847   : > { %v7980_v56 = vpop.f32.mrb[106].mxu0 }
0x1848   : > { %7994 = vrot.lane.b32.xlu1 %v21725_v55, %s23088_s22  ;;  %7991 = vrot.lane.b32.xlu0 %v21725_v55, %s23090_s16  ;;  %v19471_v6 = vpop.f32.mrb[107].mxu0  ;;  %s23178_s22 = sld [smem:[#allocation29_spill]] }
0x1849   : > { %s23179_s16 = sld [smem:[#allocation21_spill]] }
0x184c   : > { %8129 = vrot.lane.b32.xlu1 %v21725_v55, %s23084_s18  ;;  %7997 = vrot.lane.b32.xlu0 %v21725_v55, %s23086_s15  ;;  %s23177_s15 = sld [smem:[#allocation31_spill]] }
0x18ba   : > { %v21735_v58 = vpop.permute.xlu1 %7994  ;;  %v21737_v59 = vpop.permute.xlu0 %7991 }
0x18bb   : > { %8133 = vrot.lane.b32.xlu1 %v21735_v58, %s23084_s18  ;;  %8131 = vrot.lane.b32.xlu0 %v21737_v59, %s23084_s18  ;;  %v8000_v0 = vcombine.low %v21725_v55, %v21735_v58  ;;  %v8001_v3 = vcombine.high %v21725_v55, %v21735_v58 }
0x18bd   : > { %v8008_v51 = vrot.slane %v8000_v0, %v20835_v22  ;;  %v8015_v5 = vrot.slane %v8001_v3, %v20835_v22 }
0x18be   : > { %v21743_v44 = vpop.permute.xlu0 %7997  ;;  %v8130_v63 = vpop.permute.xlu1 %8129 }
0x18bf   : > { %8135 = vrot.lane.b32.xlu0 %v21743_v44, %s23084_s18  ;;  %v8016_v62 = vcombine.low %v21737_v59, %v21743_v44  ;;  %v8017_v31 = vcombine.high %v21737_v59, %v21743_v44  ;;  %s23176_s18 = sld [smem:[#allocation26_spill]] }
0x18c1   : > { %v8024_v50 = vrot.slane %v8016_v62, %v20835_v22  ;;  %v8031_v4 = vrot.slane %v8017_v31, %v20835_v22 }
0x18c3   : > { %v8032_v11 = vcombine.low %v8008_v51, %v8024_v50  ;;  %v8033_v47 = vcombine.high %v8008_v51, %v8024_v50  ;;  %v8048_v15 = vcombine.low %v8015_v5, %v8031_v4 }
0x18c5   : > { %v8040_v20 = vrot.slane %v8032_v11, %v20846_v32  ;;  %v8047_v14 = vrot.slane %v8033_v47, %v20846_v32  ;;  %v8055_v49 = vrot.slane %v8048_v15, %v20846_v32 }
0x18c7   : > { %v8058_v61 = vcombine.low %v8040_v20, %v8047_v14  ;;  %v17720_v27 = vcombine.high %v8040_v20, %v8047_v14  ;;  %v8081_v28 = vcombine.high %v8055_v49, %v20527_v1  ;;  %v8080_v54 = vrot.slane %v8055_v49, %v20835_v22 }
0x18c9   : > { %v8065_v36 = vrot.slane %v8058_v61, %v20835_v22  ;;  %v8073_v37 = vrot.slane %v17720_v27, %v20835_v22  ;;  %v8088_v52 = vrot.slane %v8081_v28, %v20835_v22 }
0x18cb   : > { %v8089_v3 = vcombine.low %v8065_v36, %v8073_v37  ;;  %v8106_v14 = vcombine.high %v8080_v54, %v8088_v52 }
0x18cd   : > { %v8097_v11 = vrot.slane %v8089_v3, %v20846_v32 }
0x192d   : > { %v8134_v9 = vpop.permute.xlu1 %8133  ;;  %v8132_v30 = vpop.permute.xlu0 %8131 }
0x192e   : > { %v8141_v16 = vcombine.low %v8130_v63, %v8134_v9  ;;  %v8142_v18 = vcombine.high %v8130_v63, %v8134_v9  ;;  %v8105_v63 = vcombine.low %v8080_v54, %v8088_v52 }
0x1930   : > { %v8149_v21 = vrot.slane %v8141_v16, %v20835_v22  ;;  %v8156_v23 = vrot.slane %v8142_v18, %v20835_v22  ;;  %v8113_v47 = vrot.slane %v8105_v63, %v20846_v32 }
0x1931   : > { %v8136_v19 = vpop.permute.xlu0 %8135 }
0x1932   : > { %v8157_v39 = vcombine.low %v8132_v30, %v8136_v19  ;;  %v8158_v13 = vcombine.high %v8132_v30, %v8136_v19  ;;  %v8122_v20 = vcombine.high %v8097_v11, %v8113_v47 }
0x1934   : > { %v8165_v12 = vrot.slane %v8157_v39, %v20835_v22  ;;  %v8172_v24 = vrot.slane %v8158_v13, %v20835_v22  ;;  %v8090_v39 = vcombine.high %v8065_v36, %v8073_v37  ;;  %v8121_v13 = vcombine.low %v8097_v11, %v8113_v47 }
0x1936   : > { %v8173_v45 = vcombine.low %v8149_v21, %v8165_v12  ;;  %v8174_v25 = vcombine.high %v8149_v21, %v8165_v12  ;;  %v8189_v26 = vcombine.low %v8156_v23, %v8172_v24  ;;  %v8125_v23 = vpack.c.bf16 %v8121_v13, %v8121_v13 }
0x1937   : > { %v8126_v12 = vpack.c.bf16 %v8122_v20, %v8122_v20  ;;  %v8104_v24 = vrot.slane %v8090_v39, %v20846_v32 }
0x1938   : > { %v8181_v29 = vrot.slane %v8173_v45, %v20846_v32  ;;  %v8188_v10 = vrot.slane %v8174_v25, %v20846_v32  ;;  %v8196_v40 = vrot.slane %v8189_v26, %v20846_v32  ;;  %v8120_v45 = vrot.slane %v8106_v14, %v20846_v32 }
0x193a   : > { %v8199_v46 = vcombine.low %v8181_v29, %v8188_v10  ;;  %v17721_v8 = vcombine.high %v8181_v29, %v8188_v10  ;;  %v8222_v2 = vcombine.high %v8196_v40, %v20527_v1  ;;  %v8221_v7 = vrot.slane %v8196_v40, %v20835_v22  ;;  %v1415_v10 = vld [vmem:[%s23171_s1] sm:$0x3f]  ;;  %s23173_s1 = smov 16  }
0x193b   : > { %v8123_v61 = vcombine.low %v8104_v24, %v8120_v45  ;;  %v8124_v27 = vcombine.high %v8104_v24, %v8120_v45  ;;  %v17012_v40 = vld [vmem:[%s1397_s2] ss:$0 sm:$0xff]  ;;  %s23174_s2 = smov 8  }
0x193c   : > { %v8206_v53 = vrot.slane %v8199_v46, %v20835_v22  ;;  %v8214_v17 = vrot.slane %v17721_v8, %v20835_v22  ;;  %v8229_v41 = vrot.slane %v8222_v2, %v20835_v22  ;;  %v21810_v46 = vadd.f32 %v17012_v40, %v1415_v10 }
0x193d   : > { %v8127_v28 = vpack.c.bf16 %v8123_v61, %v8123_v61  ;;  %v8128_v29 = vpack.c.bf16 %v8124_v27, %v8124_v27 }
0x193e   : > { %v8230_v48 = vcombine.low %v8206_v53, %v8214_v17  ;;  %v8246_v56 = vcombine.low %v8221_v7, %v8229_v41  ;;  %v8231_v6 = vcombine.high %v8206_v53, %v8214_v17  ;;  %v8247_v62 = vcombine.high %v8221_v7, %v8229_v41 }
0x1940   : > { %v8238_v31 = vrot.slane %v8230_v48, %v20846_v32  ;;  %v8254_v0 = vrot.slane %v8246_v56, %v20846_v32  ;;  %v8245_v51 = vrot.slane %v8231_v6, %v20846_v32  ;;  %v8261_v5 = vrot.slane %v8247_v62, %v20846_v32 }
0x1942   : > { %v8262_v50 = vcombine.low %v8238_v31, %v8254_v0  ;;  %v8263_v4 = vcombine.high %v8238_v31, %v8254_v0  ;;  %v8264_v18 = vcombine.low %v8245_v51, %v8261_v5  ;;  %v8265_v19 = vcombine.high %v8245_v51, %v8261_v5 }
0x1944   : > { %v8266_v9 = vpack.c.bf16 %v8262_v50, %v8262_v50  ;;  %v8267_v30 = vpack.c.bf16 %v8263_v4, %v8263_v4  ;;  %v8268_v49 = vpack.c.bf16 %v8264_v18, %v8264_v18  ;;  %v8269_v21 = vpack.c.bf16 %v8265_v19, %v8265_v19 }
0x1946   : > { %v8415_v15 = vsel %vm1955_vm2, %v8266_v9, 0  ;;  %v8461_v16 = vsel %vm1955_vm2, %v8267_v30, 0  ;;  %v8507_v25 = vsel %vm1955_vm2, %v8268_v49, 0  ;;  %v8553_v26 = vsel %vm1955_vm2, %v8269_v21, 0 }
0x1947   : > { %19473 = vmatpush3.bf16.xpose.msra.mxu1 %v8415_v15  ;;  %19479 = vmatpush3.bf16.xpose.msra.mxu0 %v8461_v16 }
0x1948   : > { %19484 = vmatprep.subr.bf16.mxu1 %v20527_v1  ;;  %19490 = vmatprep.subr.bf16.mxu0 %v20527_v1 }
0x194e   : > { %19475 = vmatmul.mubr.msk.bf16.vlgmr.msra.gmra.mrb[104].mxu1 %vm1955_vm2, %v8125_v23  ;;  %19481 = vmatmul.mubr.msk.bf16.vlgmr.msra.gmra.mrb[108].mxu0 %vm1955_vm2, %v8126_v12 }
0x194f   : > { %19485 = vmatpush3.bf16.xpose.msra.mxu1 %v8507_v25  ;;  %19491 = vmatpush3.bf16.xpose.msra.mxu0 %v8553_v26 }
0x1950   : > { %19486 = vmatprep.mubr.msk.bf16.mxu1 %vm20528_vm0, %v20527_v1  ;;  %19492 = vmatprep.mubr.msk.bf16.mxu0 %vm20528_vm0, %v20527_v1 }
0x1951   : > { %19496 = vmatprep.subr.bf16.mxu1 %v20527_v1  ;;  %19502 = vmatprep.subr.bf16.mxu0 %v20527_v1 }
0x1956   : > { %19487 = vmatmul.mubr.msk.bf16.vlgmr.msra.gmra.mrb[108].mxu1 %vm1955_vm2, %v8127_v28  ;;  %19493 = vmatmul.mubr.msk.bf16.vlgmr.msra.gmra.mrb[112].mxu0 %vm1955_vm2, %v8128_v29 }
0x1957   : > { %19498 = vmatprep.mubr.msk.bf16.mxu1 %vm20528_vm0, %v20527_v1  ;;  %19504 = vmatprep.mubr.msk.bf16.mxu0 %vm20528_vm0, %v20527_v1 }
0x1a21   : > { %v8451_v8 = vpop.f32.mrb[104].mxu1  ;;  %v8497_v2 = vpop.f32.mrb[108].mxu0 }
0x1a22   : > { %v8595_v36 = vmul.f32 0.35355338, %v8451_v8  ;;  %v8596_v37 = vmul.f32 0.35355338, %v8497_v2  ;;  %v19476_v52 = vpop.f32.mrb[105].mxu1  ;;  %v19482_v7 = vpop.f32.mrb[109].mxu0 }
0x1a23   : > { %v8454_v53 = vpop.f32.mrb[106].mxu1  ;;  %v8500_v17 = vpop.f32.mrb[110].mxu0 }
0x1a24   : > { %v19477_v41 = vpop.f32.mrb[107].mxu1  ;;  %v19483_v54 = vpop.f32.mrb[111].mxu0  ;;  %v8599_v48 = vadd.f32 %v8595_v36, %v21810_v46  ;;  %v8600_v56 = vadd.f32 %v8596_v37, %v21810_v46 }
0x1a26   : > { %v8604_v6 = vsel %vm8603_vm6, %v8599_v48, -inf  ;;  %v8607_v62 = vsel %vm8603_vm6, %v8600_v56, -inf }
0x1a27   : > { %8605 = vmax.xlane.f32.xlu1 %v8604_v6  ;;  %8608 = vmax.xlane.f32.xlu0 %v8607_v62 }
0x1a29   : > { %v8543_v31 = vpop.f32.mrb[108].mxu1  ;;  %v8589_v0 = vpop.f32.mrb[112].mxu0 }
0x1a2a   : > { %v8597_v3 = vmul.f32 0.35355338, %v8543_v31  ;;  %v8598_v63 = vmul.f32 0.35355338, %v8589_v0  ;;  %v19488_v50 = vpop.f32.mrb[109].mxu1  ;;  %v19494_v4 = vpop.f32.mrb[113].mxu0 }
0x1a2b   : > { %v8546_v51 = vpop.f32.mrb[110].mxu1  ;;  %v8592_v5 = vpop.f32.mrb[114].mxu0 }
0x1a2c   : > { %v19489_v9 = vpop.f32.mrb[111].mxu1  ;;  %v19495_v30 = vpop.f32.mrb[115].mxu0  ;;  %v8601_v11 = vadd.f32 %v8597_v3, %v21810_v46  ;;  %v8602_v47 = vadd.f32 %v8598_v63, %v21810_v46 }
0x1a2e   : > { %v8610_v15 = vsel %vm8603_vm6, %v8601_v11, -inf  ;;  %v8613_v16 = vsel %vm8603_vm6, %v8602_v47, -inf }
0x1a2f   : > { %8611 = vmax.xlane.f32.xlu0 %v8610_v15  ;;  %8614 = vmax.xlane.f32.xlu1 %v8613_v16 }
0x1a40   : > { %8272 = vrot.lane.b32.xlu1 %v21737_v59, %s23082_s26 }
0x1a45   : > { %8270 = vrot.lane.b32.xlu0 %v21725_v55, %s23082_s26 }
0x1ab4   : > { %v8606_v18 = vpop.xlane.xlu1 %8605  ;;  %v8609_v19 = vpop.xlane.xlu0 %8608 }
0x1ab5   : > { %v8616_v39 = vsub.f32 %v8599_v48, %v8606_v18  ;;  %v8617_v13 = vsub.f32 %v8600_v56, %v8609_v19 }
0x1ab7   : > { %v8620_v20 = vmul.f32 1.442695, %v8616_v39  ;;  %v8622_v14 = vmul.f32 1.442695, %v8617_v13 }
0x1ab9   : > { %20390 = vpow2.f32 %v8620_v20 }
0x1aba   : > { %20392 = vpow2.f32 %v8622_v14 }
0x1abc   : > { %v8615_v55 = vpop.xlane.xlu1 %8614  ;;  %v8612_v12 = vpop.xlane.xlu0 %8611 }
0x1abd   : > { %v8619_v24 = vsub.f32 %v8602_v47, %v8615_v55  ;;  %v8618_v45 = vsub.f32 %v8601_v11, %v8612_v12 }
0x1abf   : > { %v8626_v25 = vmul.f32 1.442695, %v8619_v24  ;;  %v8624_v26 = vmul.f32 1.442695, %v8618_v45 }
0x1ac0   : > { %v8273_v29 = vpop.permute.xlu1 %8272 }
0x1ac1   : > { %20394 = vpow2.f32 %v8626_v25 }
0x1ac2   : > { %20396 = vpow2.f32 %v8624_v26 }
0x1ac3   : > { %v21824_v49 = vpop.eup %20390 }
0x1ac4   : > { %v21826_v21 = vpop.eup %20392  ;;  %v8628_v23 = vsel %vm8603_vm6, %v21824_v49, 0.0 }
0x1ac5   : > { %8629 = vadd.xlane.f32.xlu0 %v8628_v23  ;;  %v8631_v59 = vsel %vm8603_vm6, %v21826_v21, 0.0 }
0x1ac6   : > { %8632 = vadd.xlane.f32.xlu1 %v8631_v59 }
0x1acb   : > { %v21836_v61 = vpop.eup %20394 }
0x1acc   : > { %v21838_v27 = vpop.eup %20396  ;;  %v8637_v28 = vsel %vm8603_vm6, %v21836_v61, 0.0 }
0x1ad7   : > { %8274 = vrot.lane.b32.xlu1 %v21735_v58, %s23082_s26  ;;  %v8634_v58 = vsel %vm8603_vm6, %v21838_v27, 0.0 }
0x1adb   : > { %8276 = vrot.lane.b32.xlu0 %v21743_v44, %s23082_s26  ;;  %v8271_v44 = vpop.permute.xlu0 %8270  ;;  %s23175_s26 = smov 24  }
0x1afa   : > { %8638 = vadd.xlane.f32.xlu0 %v8637_v28 }
0x1afb   : > { %8635 = vadd.xlane.f32.xlu1 %v8634_v58 }
0x1b52   : > { %v8630_v10 = vpop.xlane.xlu0 %8629 }
0x1b53   : > { %v8633_v40 = vpop.xlane.xlu1 %8632  ;;  %20398 = vrcp.f32 %v8630_v10 }
0x1b54   : > { %20400 = vrcp.f32 %v8633_v40 }
0x1b56   : > { %v8277_v8 = vpop.permute.xlu0 %8276 }
0x1b57   : > { %v8298_v2 = vcombine.low %v8273_v29, %v8277_v8  ;;  %v8299_v36 = vcombine.high %v8273_v29, %v8277_v8  ;;  %v8275_v37 = vpop.permute.xlu1 %8274 }
0x1b58   : > { %v8282_v52 = vcombine.low %v8271_v44, %v8275_v37  ;;  %v8283_v7 = vcombine.high %v8271_v44, %v8275_v37 }
0x1b59   : > { %v8306_v53 = vrot.slane %v8298_v2, %v20835_v22  ;;  %v8313_v17 = vrot.slane %v8299_v36, %v20835_v22 }
0x1b5a   : > { %v8290_v41 = vrot.slane %v8282_v52, %v20835_v22  ;;  %v8297_v54 = vrot.slane %v8283_v7, %v20835_v22 }
0x1b5c   : > { %v8314_v48 = vcombine.low %v8290_v41, %v8306_v53  ;;  %v8315_v56 = vcombine.high %v8290_v41, %v8306_v53  ;;  %v8330_v6 = vcombine.low %v8297_v54, %v8313_v17 }
0x1b5d   : > { %v20399_v16 = vpop.eup %20398 }
0x1b5e   : > { %v8322_v62 = vrot.slane %v8314_v48, %v20846_v32  ;;  %v8329_v31 = vrot.slane %v8315_v56, %v20846_v32  ;;  %v8337_v0 = vrot.slane %v8330_v6, %v20846_v32  ;;  %v20401_v20 = vpop.eup %20400  ;;  %v8641_v12 = vmul.f32 %v20399_v16, %v21824_v49 }
0x1b5f   : > { %v8643_v24 = vmul.f32 %v20401_v20, %v21826_v21 }
0x1b60   : > { %v8340_v3 = vcombine.low %v8322_v62, %v8329_v31  ;;  %v17722_v63 = vcombine.high %v8322_v62, %v8329_v31  ;;  %v8363_v50 = vcombine.high %v8337_v0, %v20527_v1  ;;  %v8362_v5 = vrot.slane %v8337_v0, %v20835_v22 }
0x1b61   : > { %v8648_v29 = vpack.c.bf16 %v8641_v12, %v8641_v12  ;;  %v8649_v10 = vpack.c.bf16 %v8643_v24, %v8643_v24 }
0x1b62   : > { %v8347_v4 = vrot.slane %v8340_v3, %v20835_v22  ;;  %v8355_v51 = vrot.slane %v17722_v63, %v20835_v22  ;;  %v8370_v9 = vrot.slane %v8363_v50, %v20835_v22 }
0x1b64   : > { %v8371_v30 = vcombine.low %v8347_v4, %v8355_v51  ;;  %v8387_v11 = vcombine.low %v8362_v5, %v8370_v9  ;;  %v8372_v47 = vcombine.high %v8347_v4, %v8355_v51  ;;  %v8388_v15 = vcombine.high %v8362_v5, %v8370_v9 }
0x1b66   : > { %v8379_v18 = vrot.slane %v8371_v30, %v20846_v32  ;;  %v8395_v19 = vrot.slane %v8387_v11, %v20846_v32  ;;  %v8386_v39 = vrot.slane %v8372_v47, %v20846_v32  ;;  %v8402_v13 = vrot.slane %v8388_v15, %v20846_v32 }
0x1b68   : > { %v8403_v14 = vcombine.low %v8379_v18, %v8395_v19  ;;  %v8404_v23 = vcombine.high %v8379_v18, %v8395_v19  ;;  %v8405_v59 = vcombine.low %v8386_v39, %v8402_v13  ;;  %v8406_v55 = vcombine.high %v8386_v39, %v8402_v13  ;;  %v20076_v19 = vld [vmem:[%s23172_s0] sm:$0xff]  }
0x1b6a   : > { %v8407_v45 = vpack.c.bf16 %v8403_v14, %v8403_v14  ;;  %v8408_v25 = vpack.c.bf16 %v8404_v23, %v8404_v23  ;;  %v8409_v58 = vpack.c.bf16 %v8405_v59, %v8405_v59  ;;  %v8410_v44 = vpack.c.bf16 %v8406_v55, %v8406_v55  ;;  %v20077_v55 = vld [vmem:[%s23172_s0 + $0x8] sm:$0xff]  }
0x1b6c   : > { %v8658_v26 = vsel %vm8656_vm7, %v8407_v45, 0  ;;  %v8704_v28 = vsel %vm8656_vm7, %v8408_v25, 0  ;;  %v8750_v49 = vsel %vm8656_vm7, %v8409_v58, 0  ;;  %v8796_v21 = vsel %vm8656_vm7, %v8410_v44, 0 }
0x1b6d   : > { %19497 = vmatpush3.bf16.msra.mxu1 %v8658_v26  ;;  %19503 = vmatpush3.bf16.msra.mxu0 %v8704_v28 }
0x1b6e   : > { %19508 = vmatprep.subr.bf16.mxu1 %v20527_v1  ;;  %19514 = vmatprep.subr.bf16.mxu0 %v20527_v1 }
0x1b70   : > { %19499 = vmatmul.mubr.msk.bf16.vlgmr.msra.gmra.mrb[112].mxu1 %vm8652_vm8, %v8648_v29  ;;  %19505 = vmatmul.mubr.msk.bf16.vlgmr.msra.gmra.mrb[116].mxu0 %vm8652_vm8, %v8649_v10 }
0x1b71   : > { %19509 = vmatpush3.bf16.msra.mxu1 %v8750_v49  ;;  %19515 = vmatpush3.bf16.msra.mxu0 %v8796_v21 }
0x1b72   : > { %19510 = vmatprep.mubr.msk.bf16.mxu1 %vm20528_vm0, %v20527_v1  ;;  %19516 = vmatprep.mubr.msk.bf16.mxu0 %vm20528_vm0, %v20527_v1 }
0x1b73   : > { %19520 = vmatprep.subr.bf16.mxu1 %v20527_v1  ;;  %19528 = vmatprep.subr.bf16.mxu0 %v20527_v1 }
0x1b87   : > { %v8639_v40 = vpop.xlane.xlu0 %8638 }
0x1b88   : > { %20402 = vrcp.f32 %v8639_v40  ;;  %v8636_v8 = vpop.xlane.xlu1 %8635 }
0x1b89   : > { %20404 = vrcp.f32 %v8636_v8 }
0x1b92   : > { %v20403_v2 = vpop.eup %20402 }
0x1b93   : > { %v20405_v36 = vpop.eup %20404  ;;  %v8647_v37 = vmul.f32 %v20403_v2, %v21836_v61 }
0x1b94   : > { %v8645_v52 = vmul.f32 %v20405_v36, %v21838_v27 }
0x1b95   : > { %v8651_v7 = vpack.c.bf16 %v8647_v37, %v8647_v37 }
0x1b96   : > { %v8650_v53 = vpack.c.bf16 %v8645_v52, %v8645_v52 }
0x1b97   : > { %19517 = vmatmul.mubr.msk.bf16.vlgmr.msra.gmra.mrb[120].mxu0 %vm8652_vm8, %v8651_v7 }
0x1b98   : > { %19511 = vmatmul.mubr.msk.bf16.vlgmr.msra.gmra.mrb[116].mxu1 %vm8652_vm8, %v8650_v53  ;;  %19532 = vmatprep.mubr.msk.bf16.mxu0 %vm20528_vm0, %v20527_v1  ;;  %v17709_v53 = vld [vmem:[%s23151_s27 + $0x1] ss:$0 sm:$0xff]  ;;  %s23195_s27 = sld [smem:[#allocation39_spill]] }
0x1b99   : > { %19524 = vmatprep.mubr.msk.bf16.mxu1 %vm20528_vm0, %v20527_v1  ;;  %19521 = vmatpush3.bf16.msra.mxu1 %v20076_v19  ;;  %v17713_v19 = vld [vmem:[%s23166_s11 + $0x1] ss:$0 sm:$0xff]  ;;  %s23187_s11 = smov 104  }
0x1b9a   : > { %19522 = vmatprep.subr.bf16.mxu1 %v20527_v1 }
0x1b9d   : > { %19523 = vmatpush3.bf16.msra.mxu1 %v20077_v55 }
0x1b9e   : > { %19536 = vmatprep.subr.bf16.mxu1 %v20527_v1 }
0x1c43   : > { %v8694_v17 = vpop.f32.mrb[112].mxu1  ;;  %v8740_v41 = vpop.f32.mrb[116].mxu0 }
0x1c44   : > { %v19500_v54 = vpop.f32.mrb[113].mxu1  ;;  %v19506_v48 = vpop.f32.mrb[117].mxu0 }
0x1c45   : > { %v8697_v56 = vpop.f32.mrb[114].mxu1  ;;  %v8743_v61 = vpop.f32.mrb[118].mxu0 }
0x1c46   : > { %v19501_v6 = vpop.f32.mrb[115].mxu1  ;;  %v19507_v27 = vpop.f32.mrb[119].mxu0 }
0x1c6a   : > { %v8832_v62 = vpop.f32.mrb[120].mxu0 }
0x1c6b   : > { %v8786_v31 = vpop.f32.mrb[116].mxu1  ;;  %v8854_v0 = vcombine.low %v8740_v41, %v8832_v62  ;;  %v8855_v3 = vcombine.high %v8740_v41, %v8832_v62  ;;  %v19518_v63 = vpop.f32.mrb[121].mxu0 }
0x1c6c   : > { %v8838_v50 = vcombine.low %v8694_v17, %v8786_v31  ;;  %v8839_v4 = vcombine.high %v8694_v17, %v8786_v31  ;;  %v19512_v51 = vpop.f32.mrb[117].mxu1  ;;  %v8835_v5 = vpop.f32.mrb[122].mxu0  ;;  %v7853_v17 = vadd.f32 %v17709_v53, %v21722_v57 }
0x1c6d   : > { %v8862_v9 = vrot.slane %v8854_v0, %v20835_v22  ;;  %v8869_v30 = vrot.slane %v8855_v3, %v20835_v22  ;;  %v8789_v11 = vpop.f32.mrb[118].mxu1  ;;  %v19519_v47 = vpop.f32.mrb[123].mxu0 }
0x1c6e   : > { %v8846_v15 = vrot.slane %v8838_v50, %v20835_v22  ;;  %v8853_v16 = vrot.slane %v8839_v4, %v20835_v22  ;;  %v19513_v18 = vpop.f32.mrb[119].mxu1  ;;  %v7854_v41 = vadd.f32 %v7853_v17, %v21480_v60  ;;  %v17732_v47 = vld [vmem:[%s23176_s18] ss:$0 sm:$0xff] }
0x1c6f   : > { %v17714_v17 = vld [vmem:[%s23179_s16] ss:$0 sm:$0xff]  ;;  %s23186_s16 = smov 112  }
0x1c70   : > { %v8870_v39 = vcombine.low %v8846_v15, %v8862_v9  ;;  %v8871_v13 = vcombine.high %v8846_v15, %v8862_v9  ;;  %v8886_v20 = vcombine.low %v8853_v16, %v8869_v30  ;;  %v7859_v54 = vsel %vm1450_vm1, %v7854_v41, 0.0  ;;  %v17712_v16 = vld [vmem:[%s23159_s4 + $0x1] ss:$0 sm:$0xff]  ;;  %s23181_s4 = sld [smem:[#allocation27_spill]] }
0x1c72   : > { %v8878_v14 = vrot.slane %v8870_v39, %v20846_v32  ;;  %v8885_v23 = vrot.slane %v8871_v13, %v20846_v32  ;;  %v8893_v59 = vrot.slane %v8886_v20, %v20846_v32  ;;  %v7916_v20 = vunpack.c.l.bf16 %v21715_v35 }
0x1c74   : > { %v8896_v12 = vcombine.low %v8878_v14, %v8885_v23  ;;  %v17731_v24 = vcombine.high %v8878_v14, %v8885_v23  ;;  %v8919_v45 = vcombine.high %v8893_v59, %v20527_v1  ;;  %v8918_v25 = vrot.slane %v8893_v59, %v20835_v22 }
0x1c76   : > { %v8903_v26 = vrot.slane %v8896_v12, %v20835_v22  ;;  %v8911_v28 = vrot.slane %v17731_v24, %v20835_v22  ;;  %v8926_v58 = vrot.slane %v8919_v45, %v20835_v22 }
0x1c78   : > { %v8928_v44 = vcombine.high %v8903_v26, %v8911_v28  ;;  %v8944_v29 = vcombine.high %v8918_v25, %v8926_v58  ;;  %v8927_v10 = vcombine.low %v8903_v26, %v8911_v28  ;;  %v8943_v49 = vcombine.low %v8918_v25, %v8926_v58 }
0x1c7a   : > { %v8942_v21 = vrot.slane %v8928_v44, %v20846_v32  ;;  %v8958_v40 = vrot.slane %v8944_v29, %v20846_v32  ;;  %v8935_v8 = vrot.slane %v8927_v10, %v20846_v32  ;;  %v8951_v2 = vrot.slane %v8943_v49, %v20846_v32  ;;  %v20078_v10 = vld [vmem:[%s23177_s15] sm:$0xff]  }
0x1c7b   : > { %v20079_v49 = vld [vmem:[%s23178_s22] sm:$0xff]  }
0x1c7c   : > { %v8961_v36 = vcombine.low %v8942_v21, %v8958_v40  ;;  %v8960_v37 = vcombine.high %v8935_v8, %v8951_v2  ;;  %v8962_v52 = vcombine.high %v8942_v21, %v8958_v40  ;;  %v8959_v7 = vcombine.low %v8935_v8, %v8951_v2  ;;  %v20080_v21 = vld [vmem:[%s23177_s15 + $0x8] sm:$0xff]   ;;  %19529 = vmatpush3.bf16.msra.mxu0 %v20079_v49 }
0x1c7d   : > { %19530 = vmatprep.subr.bf16.mxu0 %v20527_v1  ;;  %v20081_v40 = vld [vmem:[%s23178_s22 + $0x8] sm:$0xff]  }
0x1c7e   : > { %8968 = vrot.lane.b32.xlu1 %v8961_v36, %s23173_s1  ;;  %8964 = vrot.lane.b32.xlu0 %v8960_v37, %s23174_s2 }
0x1c80   : > { %19531 = vmatpush3.bf16.msra.mxu0 %v20081_v40 }
0x1c81   : > { %19544 = vmatprep.subr.bf16.mxu0 %v20527_v1 }
0x1c82   : > { %8972 = vrot.lane.b32.xlu1 %v8962_v52, %s23175_s26 }
0x1c9d   : > { %7860 = vadd.xlane.f32.xlu0 %v7859_v54  ;;  %v17715_v54 = vld [vmem:[%s23180_s3] ss:$0 sm:$0xff]  ;;  %s23185_s3 = smov 120  }
0x1cf0   : > { %v8969_v48 = vpop.permute.xlu1 %8968  ;;  %v8965_v56 = vpop.permute.xlu0 %8964 }
0x1cf1   : > { %v8975_v61 = vsel %vm1955_vm2, %v8959_v7, %v8965_v56 }
0x1cf2   : > { %v8976_v27 = vsel %vm2530_vm4, %v8975_v61, %v8969_v48  ;;  %v17736_v61 = vld [vmem:[%s23181_s4] ss:$0 sm:$0xff] }
0x1cf4   : > { %v8973_v6 = vpop.permute.xlu1 %8972 }
0x1cf5   : > { %v8977_v62 = vsel %vm2532_vm5, %v8976_v27, %v8973_v6 }
0x1cf6   : > { %v8978_v31 = vpack.c.bf16 %v8977_v62, %v8977_v62  ;;  %v17737_v62 = vld [vmem:[%s23182_s5] ss:$0 sm:$0xff] }
0x1cf8   : > { %19525 = vmatmul.mubr.msk.bf16.vlgmr.msra.gmra.mrb[120].mxu1 %vm1450_vm1, %v8978_v31 }
0x1cf9   : > { %19540 = vmatprep.mubr.msk.bf16.mxu1 %vm20528_vm0, %v20527_v1  ;;  %19537 = vmatpush3.bf16.msra.mxu1 %v20078_v10 }
0x1cfa   : > { %19538 = vmatprep.subr.bf16.mxu1 %v20527_v1 }
0x1cfd   : > { %19539 = vmatpush3.bf16.msra.mxu1 %v20080_v21 }
0x1cfe   : > { %19550 = vmatprep.subr.bf16.mxu1 %v20527_v1 }
0x1d2a   : > { %v7861_v60 = vpop.xlane.xlu0 %7860 }
0x1d2b   : > { %v7862_v57 = vmul.f32 0.03125, %v7861_v60 }
0x1d2d   : > { %v7863_v0 = vsub.f32 %v7854_v41, %v7862_v57 }
0x1d2f   : > { %v7864_v3 = vmul.f32 %v7863_v0, %v7863_v0 }
0x1d31   : > { %v7865_v63 = vsel %vm1450_vm1, %v7864_v3, 0.0  ;;  %v17742_v3 = vld [vmem:[%s23183_s6] ss:$0 sm:$0xff] }
0x1d32   : > { %7866 = vadd.xlane.f32.xlu1 %v7865_v63 }
0x1dbf   : > { %v7867_v50 = vpop.xlane.xlu1 %7866 }
0x1dc0   : > { %v7868_v4 = vmul.f32 0.03125, %v7867_v50 }
0x1dc2   : > { %v7869_v51 = vadd.f32 1e-05, %v7868_v4 }
0x1dc4   : > { %20406 = vrsqrt.f32 %v7869_v51 }
0x1dcb   : > { %v9034_v5 = vpop.f32.mrb[120].mxu1 }
0x1dcc   : > { %v19526_v9 = vpop.f32.mrb[121].mxu1  ;;  %v9035_v39 = vadd.f32 %v17732_v47, %v9034_v5  ;;  %v17738_v5 = vld [vmem:[%s23184_s8] ss:$0 sm:$0xff] }
0x1dcd   : > { %v9037_v30 = vpop.f32.mrb[122].mxu1 }
0x1dce   : > { %v20407_v11 = vpop.eup %20406  ;;  %v19527_v15 = vpop.f32.mrb[123].mxu1  ;;  %v9040_v59 = vadd.f32 %v9035_v39, %v7916_v20 }
0x1dcf   : > { %v7871_v18 = vmul.f32 %v20407_v11, %v7863_v0 }
0x1dd0   : > { %v9042_v55 = vsel %vm9041_vm9, %v9040_v59, 0.0 }
0x1dd1   : > { %v7878_v13 = vmul.f32 %v17712_v16, %v7871_v18 }
0x1dd3   : > { %v7885_v14 = vadd.f32 %v17713_v19, %v7878_v13 }
0x1dd5   : > { %v7888_v23 = vsel %vm1450_vm1, %v7885_v14, 0.0 }
0x1dd6   : > { %7889 = vadd.xlane.f32.xlu0 %v7888_v23 }
0x1dda   : > { %9043 = vadd.xlane.f32.xlu0 %v9042_v55 }
0x1e63   : > { %v7890_v12 = vpop.xlane.xlu0 %7889 }
0x1e64   : > { %v7891_v24 = vmul.f32 0.03125, %v7890_v12 }
0x1e66   : > { %v7892_v45 = vsub.f32 %v7885_v14, %v7891_v24 }
0x1e67   : > { %v9044_v25 = vpop.xlane.xlu0 %9043 }
0x1e68   : > { %v9045_v26 = vmul.f32 0.03125, %v9044_v25  ;;  %v7893_v28 = vmul.f32 %v7892_v45, %v7892_v45 }
0x1e6a   : > { %v9046_v35 = vsub.f32 %v9040_v59, %v9045_v26  ;;  %v7894_v58 = vsel %vm1450_vm1, %v7893_v28, 0.0 }
0x1e6b   : > { %7895 = vadd.xlane.f32.xlu1 %v7894_v58 }
0x1e6c   : > { %v9047_v44 = vmul.f32 %v9046_v35, %v9046_v35 }
0x1e6e   : > { %v9048_v29 = vsel %vm9041_vm9, %v9047_v44, 0.0 }
0x1e6f   : > { %9049 = vadd.xlane.f32.xlu0 %v9048_v29 }
0x1ef8   : > { %v7896_v8 = vpop.xlane.xlu1 %7895 }
0x1ef9   : > { %v7897_v2 = vmul.f32 0.03125, %v7896_v8 }
0x1efb   : > { %v7898_v36 = vadd.f32 1e-05, %v7897_v2 }
0x1efc   : > { %v9050_v37 = vpop.xlane.xlu0 %9049 }
0x1efd   : > { %20408 = vrsqrt.f32 %v7898_v36  ;;  %v9051_v52 = vmul.f32 0.03125, %v9050_v37 }
0x1eff   : > { %v9052_v7 = vadd.f32 1e-05, %v9051_v52 }
0x1f01   : > { %20410 = vrsqrt.f32 %v9052_v7 }
0x1f07   : > { %v20409_v53 = vpop.eup %20408 }
0x1f08   : > { %v7900_v41 = vmul.f32 %v20409_v53, %v7892_v45 }
0x1f0a   : > { %v7907_v48 = vmul.f32 %v17714_v17, %v7900_v41 }
0x1f0b   : > { %v20411_v56 = vpop.eup %20410 }
0x1f0c   : > { %v9054_v6 = vmul.f32 %v20411_v56, %v9046_v35  ;;  %v7914_v27 = vadd.f32 %v17715_v54, %v7907_v48 }
0x1f0e   : > { %v9061_v31 = vmul.f32 %v17736_v61, %v9054_v6  ;;  %v21938_v60 = vpack.c.bf16 %v7914_v27, %v7914_v27 }
0x1f10   : > { %19541 = vmatmul.mubr.msk.bf16.vlgmr.msra.gmra.mrb[124].mxu1 %vm1450_vm1, %v21938_v60  ;;  %v21942_v57 = vadd.f32 %v17737_v62, %v9061_v31 }
0x1f11   : > { %19552 = vmatprep.mubr.msk.bf16.mxu1 %vm20528_vm0, %v20527_v1 }
0x1f12   : > { %v9069_v0 = vpack.c.bf16 %v21942_v57, %v21942_v57 }
0x1f14   : > { %19533 = vmatmul.mubr.msk.bf16.vlgmr.msra.gmra.mrb[124].mxu0 %vm1450_vm1, %v9069_v0 }
0x1f15   : > { %19546 = vmatprep.mubr.msk.bf16.mxu0 %vm20528_vm0, %v20527_v1 }
0x1fe3   : > { %v9197_v63 = vpop.f32.mrb[124].mxu1 }
0x1fe4   : > { %v21952_v50 = vadd.f32 %v17742_v3, %v9197_v63  ;;  %v19542_v4 = vpop.f32.mrb[125].mxu1 }
0x1fe5   : > { %v9200_v51 = vpop.f32.mrb[126].mxu1 }
0x1fe6   : > { %9350 = vrot.lane.b32.xlu1 %v21952_v50, %s23185_s3  ;;  %v19543_v9 = vpop.f32.mrb[127].mxu1  ;;  %9353 = vrot.lane.b32.xlu0 %v21952_v50, %s23186_s16 }
0x1fe7   : > { %v9130_v30 = vpop.f32.mrb[124].mxu0 }
0x1fe8   : > { %v9131_v11 = vadd.f32 %v17738_v5, %v9130_v30  ;;  %v19534_v47 = vpop.f32.mrb[125].mxu0 }
0x1fe9   : > { %v9133_v15 = vpop.f32.mrb[126].mxu0 }
0x1fea   : > { %9356 = vrot.lane.b32.xlu1 %v21952_v50, %s23187_s11  ;;  %9214 = vrot.lane.b32.xlu0 %v9131_v11, %s23186_s16  ;;  %v19535_v16 = vpop.f32.mrb[127].mxu0 }
0x1fee   : > { %9211 = vrot.lane.b32.xlu1 %v9131_v11, %s23185_s3 }
0x1ff2   : > { %9217 = vrot.lane.b32.xlu1 %v9131_v11, %s23187_s11 }
0x2058   : > { %v21964_v18 = vpop.permute.xlu1 %9350  ;;  %v21966_v19 = vpop.permute.xlu0 %9353 }
0x2059   : > { %v9359_v39 = vcombine.low %v21952_v50, %v21966_v19  ;;  %v9360_v13 = vcombine.high %v21952_v50, %v21966_v19 }
0x205b   : > { %v9367_v59 = vrot.slane %v9359_v39, %v20835_v22  ;;  %v9374_v55 = vrot.slane %v9360_v13, %v20835_v22 }
0x205c   : > { %v21972_v20 = vpop.permute.xlu1 %9356  ;;  %v9215_v58 = vpop.permute.xlu0 %9214 }
0x205d   : > { %v9375_v14 = vcombine.low %v21964_v18, %v21972_v20  ;;  %v9376_v23 = vcombine.high %v21964_v18, %v21972_v20  ;;  %v9220_v21 = vcombine.low %v9131_v11, %v9215_v58  ;;  %v9221_v40 = vcombine.high %v9131_v11, %v9215_v58 }
0x205f   : > { %v9383_v12 = vrot.slane %v9375_v14, %v20835_v22  ;;  %v9390_v24 = vrot.slane %v9376_v23, %v20835_v22  ;;  %v9228_v56 = vrot.slane %v9220_v21, %v20835_v22  ;;  %v9235_v61 = vrot.slane %v9221_v40, %v20835_v22 }
0x2060   : > { %v9212_v45 = vpop.permute.xlu1 %9211 }
0x2061   : > { %v9391_v25 = vcombine.low %v9367_v59, %v9383_v12  ;;  %v9392_v26 = vcombine.high %v9367_v59, %v9383_v12  ;;  %v9407_v28 = vcombine.low %v9374_v55, %v9390_v24  ;;  %v9408_v35 = vcombine.high %v9374_v55, %v9390_v24 }
0x2063   : > { %v9399_v44 = vrot.slane %v9391_v25, %v20846_v32  ;;  %v9406_v29 = vrot.slane %v9392_v26, %v20846_v32  ;;  %v9415_v10 = vrot.slane %v9407_v28, %v20846_v32  ;;  %v9422_v49 = vrot.slane %v9408_v35, %v20846_v32 }
0x2064   : > { %v9218_v8 = vpop.permute.xlu1 %9217 }
0x2065   : > { %v9427_v2 = vcombine.low %v9399_v44, %v9406_v29  ;;  %v17747_v36 = vcombine.high %v9399_v44, %v9406_v29  ;;  %v9443_v37 = vcombine.low %v9415_v10, %v9422_v49  ;;  %v17748_v52 = vcombine.high %v9415_v10, %v9422_v49 }
0x2066   : > { %v9236_v7 = vcombine.low %v9212_v45, %v9218_v8  ;;  %v9237_v53 = vcombine.high %v9212_v45, %v9218_v8 }
0x2067   : > { %v9434_v17 = vrot.slane %v9427_v2, %v20835_v22  ;;  %v9442_v41 = vrot.slane %v17747_v36, %v20835_v22  ;;  %v9450_v54 = vrot.slane %v9443_v37, %v20835_v22  ;;  %v9458_v48 = vrot.slane %v17748_v52, %v20835_v22 }
0x2068   : > { %v9244_v6 = vrot.slane %v9236_v7, %v20835_v22  ;;  %v9251_v27 = vrot.slane %v9237_v53, %v20835_v22 }
0x2069   : > { %v9459_v62 = vcombine.low %v9434_v17, %v9442_v41  ;;  %v9475_v31 = vcombine.low %v9450_v54, %v9458_v48  ;;  %v9460_v0 = vcombine.high %v9434_v17, %v9442_v41  ;;  %v9476_v51 = vcombine.high %v9450_v54, %v9458_v48 }
0x206a   : > { %v9252_v3 = vcombine.low %v9228_v56, %v9244_v6  ;;  %v9253_v63 = vcombine.high %v9228_v56, %v9244_v6  ;;  %v9268_v4 = vcombine.low %v9235_v61, %v9251_v27 }
0x206b   : > { %v9467_v5 = vrot.slane %v9459_v62, %v20846_v32  ;;  %v9483_v9 = vrot.slane %v9475_v31, %v20846_v32  ;;  %v9474_v39 = vrot.slane %v9460_v0, %v20846_v32  ;;  %v9490_v59 = vrot.slane %v9476_v51, %v20846_v32  ;;  %v17755_v0 = vld [vmem:[%s22032_s13] ss:$0 sm:$0xff] }
0x206c   : > { %v9260_v30 = vrot.slane %v9252_v3, %v20846_v32  ;;  %v9267_v11 = vrot.slane %v9253_v63, %v20846_v32  ;;  %v9275_v47 = vrot.slane %v9268_v4, %v20846_v32 }
0x206d   : > { %v9491_v15 = vcombine.low %v9467_v5, %v9483_v9  ;;  %v9492_v16 = vcombine.high %v9467_v5, %v9483_v9  ;;  %v9493_v29 = vcombine.low %v9474_v39, %v9490_v59  ;;  %v9494_v10 = vcombine.high %v9474_v39, %v9490_v59 }
0x206e   : > { %v9278_v13 = vcombine.low %v9260_v30, %v9267_v11  ;;  %v17746_v14 = vcombine.high %v9260_v30, %v9267_v11  ;;  %v9301_v23 = vcombine.high %v9275_v47, %v20527_v1  ;;  %v9300_v25 = vrot.slane %v9275_v47, %v20835_v22 }
0x206f   : > { %v9495_v55 = vpack.c.bf16 %v9491_v15, %v9491_v15  ;;  %v9496_v12 = vpack.c.bf16 %v9492_v16, %v9492_v16  ;;  %v9497_v37 = vpack.c.bf16 %v9493_v29, %v9493_v29  ;;  %v9498_v52 = vpack.c.bf16 %v9494_v10, %v9494_v10 }
0x2070   : > { %v9285_v24 = vrot.slane %v9278_v13, %v20835_v22  ;;  %v9293_v45 = vrot.slane %v17746_v14, %v20835_v22  ;;  %v9308_v26 = vrot.slane %v9301_v23, %v20835_v22 }
0x2071   : > { %v9655_v28 = vsel %vm1955_vm2, %v9495_v55, 0  ;;  %v9701_v35 = vsel %vm1955_vm2, %v9496_v12, 0  ;;  %v9747_v54 = vsel %vm1955_vm2, %v9497_v37, 0  ;;  %v9793_v48 = vsel %vm1955_vm2, %v9498_v52, 0 }
0x2072   : > { %v9309_v58 = vcombine.low %v9285_v24, %v9293_v45  ;;  %v9325_v44 = vcombine.low %v9300_v25, %v9308_v26  ;;  %19545 = vmatpush3.bf16.xpose.msra.mxu0 %v9655_v28  ;;  %19551 = vmatpush3.bf16.xpose.msra.mxu1 %v9701_v35  ;;  %v9310_v49 = vcombine.high %v9285_v24, %v9293_v45 }
0x2073   : > { %19556 = vmatprep.subr.bf16.mxu0 %v20527_v1  ;;  %v9326_v21 = vcombine.high %v9300_v25, %v9308_v26  ;;  %19562 = vmatprep.subr.bf16.mxu1 %v20527_v1 }
0x2074   : > { %v9333_v40 = vrot.slane %v9325_v44, %v20846_v32  ;;  %v9317_v8 = vrot.slane %v9309_v58, %v20846_v32  ;;  %v9324_v41 = vrot.slane %v9310_v49, %v20846_v32 }
0x2075   : > { %v9340_v7 = vrot.slane %v9326_v21, %v20846_v32 }
0x2076   : > { %v9341_v2 = vcombine.low %v9317_v8, %v9333_v40  ;;  %v9342_v36 = vcombine.high %v9317_v8, %v9333_v40 }
0x2077   : > { %v9343_v56 = vcombine.low %v9324_v41, %v9340_v7  ;;  %v9344_v61 = vcombine.high %v9324_v41, %v9340_v7 }
0x2078   : > { %v9345_v53 = vpack.c.bf16 %v9341_v2, %v9341_v2  ;;  %v9346_v17 = vpack.c.bf16 %v9342_v36, %v9342_v36 }
0x2079   : > { %v9347_v6 = vpack.c.bf16 %v9343_v56, %v9343_v56  ;;  %v9348_v27 = vpack.c.bf16 %v9344_v61, %v9344_v61 }
0x207a   : > { %19547 = vmatmul.mubr.msk.bf16.vlgmr.msra.gmra.mrb[128].mxu0 %vm1955_vm2, %v9345_v53  ;;  %19553 = vmatmul.mubr.msk.bf16.vlgmr.msra.gmra.mrb[128].mxu1 %vm1955_vm2, %v9346_v17 }
0x207b   : > { %19557 = vmatpush3.bf16.xpose.msra.mxu0 %v9747_v54  ;;  %19563 = vmatpush3.bf16.xpose.msra.mxu1 %v9793_v48 }
0x207c   : > { %19558 = vmatprep.mubr.msk.bf16.mxu0 %vm20528_vm0, %v20527_v1  ;;  %19564 = vmatprep.mubr.msk.bf16.mxu1 %vm20528_vm0, %v20527_v1 }
0x207d   : > { %19568 = vmatprep.subr.bf16.mxu0 %v20527_v1  ;;  %19574 = vmatprep.subr.bf16.mxu1 %v20527_v1 }
0x2082   : > { %19559 = vmatmul.mubr.msk.bf16.vlgmr.msra.gmra.mrb[132].mxu0 %vm1955_vm2, %v9347_v6  ;;  %19565 = vmatmul.mubr.msk.bf16.vlgmr.msra.gmra.mrb[132].mxu1 %vm1955_vm2, %v9348_v27 }
0x2083   : > { %19570 = vmatprep.mubr.msk.bf16.mxu0 %vm20528_vm0, %v20527_v1  ;;  %19576 = vmatprep.mubr.msk.bf16.mxu1 %vm20528_vm0, %v20527_v1 }
0x214d   : > { %v9691_v62 = vpop.f32.mrb[128].mxu0  ;;  %v9737_v31 = vpop.f32.mrb[128].mxu1 }
0x214e   : > { %v9835_v3 = vmul.f32 0.35355338, %v9691_v62  ;;  %v9836_v63 = vmul.f32 0.35355338, %v9737_v31  ;;  %v19548_v4 = vpop.f32.mrb[129].mxu0  ;;  %v19554_v51 = vpop.f32.mrb[129].mxu1 }
0x214f   : > { %v9694_v5 = vpop.f32.mrb[130].mxu0  ;;  %v9740_v9 = vpop.f32.mrb[130].mxu1 }
0x2150   : > { %v19549_v30 = vpop.f32.mrb[131].mxu0  ;;  %v19555_v11 = vpop.f32.mrb[131].mxu1  ;;  %v9846_v47 = vadd.f32 %v17755_v0, %v9836_v63  ;;  %v9845_v15 = vadd.f32 %v17755_v0, %v9835_v3 }
0x2152   : > { %v9853_v16 = vsel %vm9849_vm10, %v9846_v47, -inf  ;;  %v9850_v39 = vsel %vm9849_vm10, %v9845_v15, -inf }
0x2153   : > { %9854 = vmax.xlane.f32.xlu1 %v9853_v16  ;;  %9851 = vmax.xlane.f32.xlu0 %v9850_v39 }
0x2155   : > { %v9783_v13 = vpop.f32.mrb[132].mxu0  ;;  %v9829_v14 = vpop.f32.mrb[132].mxu1 }
0x2156   : > { %v9837_v23 = vmul.f32 0.35355338, %v9783_v13  ;;  %v9838_v59 = vmul.f32 0.35355338, %v9829_v14  ;;  %v19560_v55 = vpop.f32.mrb[133].mxu0  ;;  %v19566_v12 = vpop.f32.mrb[133].mxu1 }
0x2157   : > { %v9786_v24 = vpop.f32.mrb[134].mxu0  ;;  %v9832_v45 = vpop.f32.mrb[134].mxu1 }
0x2158   : > { %v19561_v25 = vpop.f32.mrb[135].mxu0  ;;  %v19567_v26 = vpop.f32.mrb[135].mxu1  ;;  %v9847_v28 = vadd.f32 %v17755_v0, %v9837_v23  ;;  %v9848_v58 = vadd.f32 %v17755_v0, %v9838_v59 }
0x215a   : > { %v9856_v35 = vsel %vm9849_vm10, %v9847_v28, -inf  ;;  %v9859_v44 = vsel %vm9849_vm10, %v9848_v58, -inf }
0x215b   : > { %9857 = vmax.xlane.f32.xlu0 %v9856_v35 }
0x215f   : > { %9860 = vmax.xlane.f32.xlu0 %v9859_v44 }
0x2164   : > { %9499 = vrot.lane.b32.xlu1 %v21952_v50, %s23189_s12 }
0x21e0   : > { %v9855_v29 = vpop.xlane.xlu1 %9854  ;;  %v9852_v10 = vpop.xlane.xlu0 %9851 }
0x21e1   : > { %v9863_v49 = vsub.f32 %v9846_v47, %v9855_v29  ;;  %v9862_v21 = vsub.f32 %v9845_v15, %v9852_v10 }
0x21e3   : > { %v9868_v40 = vmul.f32 1.442695, %v9863_v49  ;;  %v9866_v8 = vmul.f32 1.442695, %v9862_v21 }
0x21e5   : > { %20412 = vpow2.f32 %v9868_v40 }
0x21e6   : > { %20414 = vpow2.f32 %v9866_v8 }
0x21e8   : > { %v9858_v50 = vpop.xlane.xlu0 %9857 }
0x21e9   : > { %v9864_v7 = vsub.f32 %v9847_v28, %v9858_v50 }
0x21eb   : > { %v9870_v17 = vmul.f32 1.442695, %v9864_v7 }
0x21ec   : > { %v9861_v53 = vpop.xlane.xlu0 %9860 }
0x21ed   : > { %v9865_v41 = vsub.f32 %v9848_v58, %v9861_v53  ;;  %20416 = vpow2.f32 %v9870_v17 }
0x21ef   : > { %v22041_v2 = vpop.eup %20412  ;;  %v9872_v54 = vmul.f32 1.442695, %v9865_v41 }
0x21f0   : > { %v22043_v36 = vpop.eup %20414  ;;  %v9877_v37 = vsel %vm9849_vm10, %v22041_v2, 0.0 }
0x21f1   : > { %v9874_v52 = vsel %vm9849_vm10, %v22043_v36, 0.0  ;;  %9878 = vadd.xlane.f32.xlu0 %v9877_v37  ;;  %20418 = vpow2.f32 %v9872_v54 }
0x21f2   : > { %9875 = vadd.xlane.f32.xlu1 %v9874_v52 }
0x21f7   : > { %v22055_v48 = vpop.eup %20416 }
0x21f8   : > { %v9880_v56 = vsel %vm9849_vm10, %v22055_v48, 0.0 }
0x2203   : > { %9503 = vrot.lane.b32.xlu1 %v21966_v19, %s23189_s12  ;;  %v22059_v19 = vpop.eup %20418 }
0x2207   : > { %9505 = vrot.lane.b32.xlu1 %v21972_v20, %s23189_s12  ;;  %9501 = vrot.lane.b32.xlu0 %v21964_v18, %s23189_s12  ;;  %v9883_v20 = vsel %vm9849_vm10, %v22059_v19, 0.0  ;;  %v9500_v18 = vpop.permute.xlu1 %9499 }
0x2226   : > { %9881 = vadd.xlane.f32.xlu0 %v9880_v56 }
0x222b   : > { %9884 = vadd.xlane.f32.xlu1 %v9883_v20 }
0x227e   : > { %v9879_v6 = vpop.xlane.xlu0 %9878 }
0x227f   : > { %v9876_v61 = vpop.xlane.xlu1 %9875  ;;  %20420 = vrcp.f32 %v9879_v6 }
0x2280   : > { %20422 = vrcp.f32 %v9876_v61 }
0x2282   : > { %v9502_v0 = vpop.permute.xlu0 %9501 }
0x2283   : > { %v9504_v27 = vpop.permute.xlu1 %9503 }
0x2284   : > { %v9511_v62 = vcombine.low %v9500_v18, %v9504_v27  ;;  %v9512_v31 = vcombine.high %v9500_v18, %v9504_v27 }
0x2286   : > { %v9519_v51 = vrot.slane %v9511_v62, %v20835_v22  ;;  %v9526_v5 = vrot.slane %v9512_v31, %v20835_v22 }
0x2287   : > { %v9506_v3 = vpop.permute.xlu1 %9505 }
0x2288   : > { %v9527_v63 = vcombine.low %v9502_v0, %v9506_v3  ;;  %v9528_v4 = vcombine.high %v9502_v0, %v9506_v3 }
0x2289   : > { %v20421_v10 = vpop.eup %20420 }
0x228a   : > { %v9535_v9 = vrot.slane %v9527_v63, %v20835_v22  ;;  %v9542_v30 = vrot.slane %v9528_v4, %v20835_v22  ;;  %v20423_v37 = vpop.eup %20422  ;;  %v9889_v41 = vmul.f32 %v20421_v10, %v22041_v2 }
0x228b   : > { %v9887_v17 = vmul.f32 %v20423_v37, %v22043_v36 }
0x228c   : > { %v9543_v11 = vcombine.low %v9519_v51, %v9535_v9  ;;  %v9544_v47 = vcombine.high %v9519_v51, %v9535_v9  ;;  %v9559_v15 = vcombine.low %v9526_v5, %v9542_v30  ;;  %v9560_v16 = vcombine.high %v9526_v5, %v9542_v30 }
0x228d   : > { %v9894_v27 = vpack.c.bf16 %v9887_v17, %v9887_v17  ;;  %v9895_v62 = vpack.c.bf16 %v9889_v41, %v9889_v41 }
0x228e   : > { %v9551_v39 = vrot.slane %v9543_v11, %v20846_v32  ;;  %v9558_v13 = vrot.slane %v9544_v47, %v20846_v32  ;;  %v9567_v14 = vrot.slane %v9559_v15, %v20846_v32  ;;  %v9574_v23 = vrot.slane %v9560_v16, %v20846_v32 }
0x2290   : > { %v9579_v59 = vcombine.low %v9551_v39, %v9558_v13  ;;  %v17749_v55 = vcombine.high %v9551_v39, %v9558_v13  ;;  %v9595_v12 = vcombine.low %v9567_v14, %v9574_v23  ;;  %v17750_v24 = vcombine.high %v9567_v14, %v9574_v23 }
0x2292   : > { %v9586_v45 = vrot.slane %v9579_v59, %v20835_v22  ;;  %v9594_v25 = vrot.slane %v17749_v55, %v20835_v22  ;;  %v9602_v26 = vrot.slane %v9595_v12, %v20835_v22  ;;  %v9610_v28 = vrot.slane %v17750_v24, %v20835_v22 }
0x2294   : > { %v9611_v35 = vcombine.low %v9586_v45, %v9594_v25  ;;  %v9627_v58 = vcombine.low %v9602_v26, %v9610_v28  ;;  %v9612_v44 = vcombine.high %v9586_v45, %v9594_v25  ;;  %v9628_v29 = vcombine.high %v9602_v26, %v9610_v28 }
0x2296   : > { %v9619_v49 = vrot.slane %v9611_v35, %v20846_v32  ;;  %v9635_v21 = vrot.slane %v9627_v58, %v20846_v32  ;;  %v9626_v40 = vrot.slane %v9612_v44, %v20846_v32  ;;  %v9642_v8 = vrot.slane %v9628_v29, %v20846_v32 }
0x2298   : > { %v9643_v52 = vcombine.low %v9619_v49, %v9635_v21  ;;  %v9644_v50 = vcombine.high %v9619_v49, %v9635_v21  ;;  %v9645_v7 = vcombine.low %v9626_v40, %v9642_v8  ;;  %v9646_v53 = vcombine.high %v9626_v40, %v9642_v8  ;;  %v20082_v49 = vld [vmem:[%s23190_s14] sm:$0xff]  }
0x229a   : > { %v9647_v54 = vpack.c.bf16 %v9643_v52, %v9643_v52  ;;  %v9648_v56 = vpack.c.bf16 %v9644_v50, %v9644_v50  ;;  %v9649_v61 = vpack.c.bf16 %v9645_v7, %v9645_v7  ;;  %v9650_v6 = vpack.c.bf16 %v9646_v53, %v9646_v53  ;;  %v20083_v7 = vld [vmem:[%s23190_s14 + $0x8] sm:$0xff]  }
0x229c   : > { %v9902_v20 = vsel %vm2199_vm3, %v9647_v54, 0  ;;  %v9948_v18 = vsel %vm2199_vm3, %v9648_v56, 0  ;;  %v9994_v2 = vsel %vm2199_vm3, %v9649_v61, 0  ;;  %v10040_v36 = vsel %vm2199_vm3, %v9650_v6, 0 }
0x229d   : > { %19569 = vmatpush3.bf16.msra.mxu0 %v9902_v20  ;;  %19575 = vmatpush3.bf16.msra.mxu1 %v9948_v18 }
0x229e   : > { %19580 = vmatprep.subr.bf16.mxu0 %v20527_v1  ;;  %19586 = vmatprep.subr.bf16.mxu1 %v20527_v1 }
0x22a0   : > { %19571 = vmatmul.mubr.msk.bf16.vlgmr.msra.gmra.mrb[136].mxu0 %vm1955_vm2, %v9894_v27  ;;  %19577 = vmatmul.mubr.msk.bf16.vlgmr.msra.gmra.mrb[136].mxu1 %vm1955_vm2, %v9895_v62 }
0x22a1   : > { %19581 = vmatpush3.bf16.msra.mxu0 %v9994_v2  ;;  %19587 = vmatpush3.bf16.msra.mxu1 %v10040_v36 }
0x22a2   : > { %19582 = vmatprep.mubr.msk.bf16.mxu0 %vm20528_vm0, %v20527_v1  ;;  %19588 = vmatprep.mubr.msk.bf16.mxu1 %vm20528_vm0, %v20527_v1 }
0x22a3   : > { %19592 = vmatprep.subr.bf16.mxu0 %v20527_v1 }
0x22b3   : > { %v9882_v31 = vpop.xlane.xlu0 %9881 }
0x22b4   : > { %20424 = vrcp.f32 %v9882_v31 }
0x22b8   : > { %v9885_v0 = vpop.xlane.xlu1 %9884 }
0x22b9   : > { %20426 = vrcp.f32 %v9885_v0 }
0x22be   : > { %v20425_v3 = vpop.eup %20424 }
0x22bf   : > { %v9891_v63 = vmul.f32 %v20425_v3, %v22055_v48 }
0x22c1   : > { %v9896_v4 = vpack.c.bf16 %v9891_v63, %v9891_v63 }
0x22c3   : > { %v20427_v51 = vpop.eup %20426  ;;  %19583 = vmatmul.mubr.msk.bf16.vlgmr.msra.gmra.mrb[140].mxu0 %vm1955_vm2, %v9896_v4 }
0x22c4   : > { %v9893_v5 = vmul.f32 %v20427_v51, %v22059_v19  ;;  %19596 = vmatprep.mubr.msk.bf16.mxu0 %vm20528_vm0, %v20527_v1  ;;  %19593 = vmatpush3.bf16.msra.mxu0 %v20082_v49 }
0x22c5   : > { %19594 = vmatprep.subr.bf16.mxu0 %v20527_v1 }
0x22c6   : > { %v9897_v9 = vpack.c.bf16 %v9893_v5, %v9893_v5 }
0x22c8   : > { %19589 = vmatmul.mubr.msk.bf16.vlgmr.msra.gmra.mrb[140].mxu1 %vm1955_vm2, %v9897_v9  ;;  %19595 = vmatpush3.bf16.msra.mxu0 %v20083_v7 }
0x22c9   : > { %10418 = vmatprep.mubr.bf16.mxu1 %v20539_v34 }
0x2373   : > { %v9938_v30 = vpop.f32.mrb[136].mxu0  ;;  %v9984_v11 = vpop.f32.mrb[136].mxu1 }
0x2374   : > { %v19572_v47 = vpop.f32.mrb[137].mxu0  ;;  %v19578_v15 = vpop.f32.mrb[137].mxu1 }
0x2375   : > { %v9941_v16 = vpop.f32.mrb[138].mxu0  ;;  %v9987_v48 = vpop.f32.mrb[138].mxu1 }
0x2376   : > { %v19573_v39 = vpop.f32.mrb[139].mxu0  ;;  %v19579_v13 = vpop.f32.mrb[139].mxu1  ;;  %v17761_v48 = vld [vmem:[%s23191_s19] ss:$0 sm:$0xff] }
0x2396   : > { %v10030_v14 = vpop.f32.mrb[140].mxu0 }
0x2397   : > { %v10082_v23 = vcombine.low %v9938_v30, %v10030_v14  ;;  %v10083_v19 = vcombine.high %v9938_v30, %v10030_v14  ;;  %v19584_v59 = vpop.f32.mrb[141].mxu0 }
0x2398   : > { %v10033_v55 = vpop.f32.mrb[142].mxu0 }
0x2399   : > { %v19585_v12 = vpop.f32.mrb[143].mxu0  ;;  %v10090_v35 = vrot.slane %v10082_v23, %v20835_v22  ;;  %v10097_v58 = vrot.slane %v10083_v19, %v20835_v22 }
0x239b   : > { %v10076_v24 = vpop.f32.mrb[140].mxu1 }
0x239c   : > { %v10098_v45 = vcombine.low %v9984_v11, %v10076_v24  ;;  %v10099_v25 = vcombine.high %v9984_v11, %v10076_v24  ;;  %v19590_v26 = vpop.f32.mrb[141].mxu1 }
0x239d   : > { %v10079_v28 = vpop.f32.mrb[142].mxu1 }
0x239e   : > { %v10106_v44 = vrot.slane %v10098_v45, %v20835_v22  ;;  %v10113_v29 = vrot.slane %v10099_v25, %v20835_v22  ;;  %v19591_v10 = vpop.f32.mrb[143].mxu1  ;;  %v10313_v28 = vld [vmem:[%s23192_s20] sm:$0xff] }
0x23a0   : > { %v10114_v21 = vcombine.low %v10090_v35, %v10106_v44  ;;  %v10115_v40 = vcombine.high %v10090_v35, %v10106_v44  ;;  %v10130_v8 = vcombine.low %v10097_v58, %v10113_v29  ;;  %v10315_v35 = vld [vmem:[%s23192_s20 + $0x40] sm:$0xff]  ;;  %v10314_v58 = vld [vmem:[%s23192_s20 + $0x8] sm:$0xff] }
0x23a1   : > { %v17768_v44 = vcombine.high %v10313_v28, %v10315_v35  ;;  %v17767_v29 = vcombine.low %v10313_v28, %v10315_v35  ;;  %v20096_v28 = vld [vmem:[%s23195_s27 + $0x158] sm:$0xff]  }
0x23a2   : > { %v10122_v37 = vrot.slane %v10114_v21, %v20846_v32  ;;  %v10129_v52 = vrot.slane %v10115_v40, %v20846_v32  ;;  %v10137_v50 = vrot.slane %v10130_v8, %v20846_v32  ;;  %v10317_v21 = vld [vmem:[%s23192_s20 + $0x80] sm:$0xff]  ;;  %v10318_v8 = vld [vmem:[%s23192_s20 + $0x88] sm:$0xff]  ;;  %v20097_v35 = vld [vmem:[%s23195_s27 + $0x1d8] sm:$0xff]  }
0x23a3   : > { %10386 = vmatprep.subr.bf16.mxu1 %v17768_v44  ;;  %v10319_v40 = vld [vmem:[%s23192_s20 + $0xc0] sm:$0xff]  ;;  %v20099_v44 = vld [vmem:[%s23195_s27 + $0x198] sm:$0xff]  }
0x23a4   : > { %v10140_v53 = vcombine.low %v10122_v37, %v10129_v52  ;;  %v17760_v17 = vcombine.high %v10122_v37, %v10129_v52  ;;  %v10163_v41 = vcombine.high %v10137_v50, %v20527_v1  ;;  %v10162_v54 = vrot.slane %v10137_v50, %v20835_v22  ;;  %10387 = vmatpush1.bf16.msra.mxu1 %v17767_v29  ;;  %v10320_v52 = vld [vmem:[%s23192_s20 + $0xc8] sm:$0xff]  ;;  %v20101_v29 = vld [vmem:[%s23195_s27 + $0x1e0] sm:$0xff]  }
0x23a5   : > { %v17772_v37 = vcombine.high %v10317_v21, %v10319_v40  ;;  %v17771_v50 = vcombine.low %v10317_v21, %v10319_v40  ;;  %v17773_v7 = vcombine.low %v10318_v8, %v10320_v52  ;;  %v20104_v21 = vld [vmem:[%s23195_s27 + $0x168] sm:$0xff]  }
0x23a6   : > { %v10147_v56 = vrot.slane %v10140_v53, %v20835_v22  ;;  %v10155_v20 = vrot.slane %v17760_v17, %v20835_v22  ;;  %v10170_v18 = vrot.slane %v10163_v41, %v20835_v22  ;;  %v17774_v53 = vcombine.high %v10318_v8, %v10320_v52  ;;  %v10540_v17 = vld [vmem:[%s23192_s20 + $0x10] sm:$0xff]  ;;  %v20105_v40 = vld [vmem:[%s23195_s27 + $0x1e8] sm:$0xff]  }
0x23a7   : > { %10388 = vmatprep.subr.bf16.mxu1 %v17772_v37  ;;  %v10542_v41 = vld [vmem:[%s23192_s20 + $0x50] sm:$0xff]  ;;  %v20106_v8 = vld [vmem:[%s23195_s27 + $0x128] sm:$0xff]  }
0x23a8   : > { %v10172_v61 = vcombine.high %v10147_v56, %v10155_v20  ;;  %v10188_v6 = vcombine.high %v10162_v54, %v10170_v18  ;;  %v10171_v27 = vcombine.low %v10147_v56, %v10155_v20  ;;  %v10187_v62 = vcombine.low %v10162_v54, %v10170_v18  ;;  %10389 = vmatpush1.bf16.msra.mxu1 %v17771_v50  ;;  %v10541_v54 = vld [vmem:[%s23192_s20 + $0x18] sm:$0xff]  ;;  %v20107_v37 = vld [vmem:[%s23195_s27 + $0x1a8] sm:$0xff]   ;;  %v20108_v52 = vld [vmem:[%s23195_s27 + $0x170] sm:$0xff]  }
0x23a9   : > { %v17778_v56 = vcombine.high %v10540_v17, %v10542_v41  ;;  %v10543_v20 = vld [vmem:[%s23192_s20 + $0x58] sm:$0xff]  ;;  %v17777_v18 = vcombine.low %v10540_v17, %v10542_v41  ;;  %v20109_v50 = vld [vmem:[%s23195_s27 + $0x1f0] sm:$0xff]  }
0x23aa   : > { %v10186_v2 = vrot.slane %v10172_v61, %v20846_v32  ;;  %v10202_v36 = vrot.slane %v10188_v6, %v20846_v32  ;;  %v10179_v31 = vrot.slane %v10171_v27, %v20846_v32  ;;  %v10195_v0 = vrot.slane %v10187_v62, %v20846_v32  ;;  %v20112_v17 = vld [vmem:[%s23195_s27 + $0x178] sm:$0xff]  }
0x23ab   : > { %v17779_v61 = vcombine.low %v10541_v54, %v10543_v20  ;;  %v17780_v6 = vcombine.high %v10541_v54, %v10543_v20  ;;  %10610 = vmatprep.subr.bf16.mxu1 %v17778_v56  ;;  %v20113_v41 = vld [vmem:[%s23195_s27 + $0x1f8] sm:$0xff]   ;;  %v20116_v20 = vld [vmem:[%s23195_s27 + $0x40] sm:$0xff]  }
0x23ac   : > { %v10205_v3 = vcombine.low %v10186_v2, %v10202_v36  ;;  %v10204_v63 = vcombine.high %v10179_v31, %v10195_v0  ;;  %v10206_v4 = vcombine.high %v10186_v2, %v10202_v36  ;;  %v10203_v51 = vcombine.low %v10179_v31, %v10195_v0  ;;  %v17765_v31 = vld [vmem:[%s23193_s21] ss:$0 sm:$0xff]  ;;  %v20114_v54 = vld [vmem:[%s23195_s27 + $0x138] sm:$0xff]  }
0x23ad   : > { %v20115_v56 = vld [vmem:[%s23195_s27 + $0x1b8] sm:$0xff]  }
0x23ae   : > { %10212 = vrot.lane.b32.xlu1 %v10205_v3, %s23173_s1  ;;  %10208 = vrot.lane.b32.xlu0 %v10204_v63, %s23174_s2  ;;  %v17766_v3 = vld [vmem:[%s23194_s24] ss:$0 sm:$0xff] }
0x23b2   : > { %10216 = vrot.lane.b32.xlu0 %v10206_v4, %s23175_s26  ;;  %v10544_v4 = vld [vmem:[%s23192_s20 + $0x90] sm:$0xff] }
0x2420   : > { %v10209_v5 = vpop.permute.xlu0 %10208  ;;  %v10213_v9 = vpop.permute.xlu1 %10212 }
0x2421   : > { %v10219_v30 = vsel %vm1955_vm2, %v10203_v51, %v10209_v5  ;;  %v10546_v51 = vld [vmem:[%s23192_s20 + $0xd0] sm:$0xff]  ;;  %v10545_v5 = vld [vmem:[%s23192_s20 + $0x98] sm:$0xff] }
0x2422   : > { %v10220_v47 = vsel %vm2530_vm4, %v10219_v30, %v10213_v9  ;;  %v10547_v9 = vld [vmem:[%s23192_s20 + $0xd8] sm:$0xff] }
0x2424   : > { %v10217_v11 = vpop.permute.xlu0 %10216 }
0x2425   : > { %v10221_v15 = vsel %vm2532_vm5, %v10220_v47, %v10217_v11  ;;  %v17782_v47 = vcombine.high %v10544_v4, %v10546_v51 }
0x2426   : > { %v10222_v16 = vpack.c.bf16 %v10221_v15, %v10221_v15  ;;  %v17784_v15 = vcombine.high %v10545_v5, %v10547_v9 }
0x2428   : > { %19597 = vmatmul.mubr.msk.bf16.vlgmr.msra.gmra.mrb[144].mxu0 %vm1450_vm1, %v10222_v16  ;;  %v17781_v16 = vcombine.low %v10544_v4, %v10546_v51 }
0x2429   : > { %10459 = vmatprep.mubr.bf16.mxu0 %v20539_v34 }
0x24fb   : > { %v10278_v39 = vpop.f32.mrb[144].mxu0 }
0x24fc   : > { %v10279_v13 = vadd.f32 %v17761_v48, %v10278_v39  ;;  %v19598_v14 = vpop.f32.mrb[145].mxu0  ;;  %v17783_v48 = vcombine.low %v10545_v5, %v10547_v9  ;;  %v20084_v39 = vld [vmem:[%s23195_s27 + $0x140] sm:$0xff]  }
0x24fd   : > { %v10281_v23 = vpop.f32.mrb[146].mxu0  ;;  %v20086_v14 = vld [vmem:[%s23195_s27 + $0x100] sm:$0xff]  }
0x24fe   : > { %v10284_v19 = vadd.f32 %v10279_v13, %v21942_v57  ;;  %v19599_v59 = vpop.f32.mrb[147].mxu0  ;;  %v10316_v57 = vld [vmem:[%s23192_s20 + $0x48] sm:$0xff]  ;;  %v20085_v13 = vld [vmem:[%s23195_s27 + $0x1c0] sm:$0xff]  }
0x24ff   : > { %v17769_v10 = vcombine.low %v10314_v58, %v10316_v57  ;;  %v17770_v49 = vcombine.high %v10314_v58, %v10316_v57  ;;  %v20087_v23 = vld [vmem:[%s23195_s27 + $0x180] sm:$0xff]   ;;  %v20089_v59 = vld [vmem:[%s23195_s27 + $0x1c8] sm:$0xff]   ;;  %v20098_v58 = vld [vmem:[%s23195_s27 + $0x118] sm:$0xff]  }
0x2500   : > { %v10285_v55 = vsel %vm9041_vm9, %v10284_v19, 0.0  ;;  %v20100_v57 = vld [vmem:[%s23195_s27 + $0x160] sm:$0xff]  }
0x2501   : > { %10286 = vadd.xlane.f32.xlu1 %v10285_v55  ;;  %10427 = vmatprep.subr.bf16.mxu0 %v17770_v49  ;;  %v20090_v55 = vld [vmem:[%s23195_s27 + $0x108] sm:$0xff]   ;;  %v20103_v49 = vld [vmem:[%s23195_s27 + $0x1a0] sm:$0xff]  }
0x2502   : > { %10428 = vmatpush1.bf16.msra.mxu0 %v17769_v10  ;;  %v20102_v10 = vld [vmem:[%s23195_s27 + $0x120] sm:$0xff]  }
0x2503   : > { %10429 = vmatprep.subr.bf16.mxu0 %v17774_v53  ;;  %v20111_v53 = vld [vmem:[%s23195_s27 + $0x1b0] sm:$0xff]  }
0x2506   : > { %10430 = vmatpush1.bf16.msra.mxu0 %v17773_v7  ;;  %v20110_v7 = vld [vmem:[%s23195_s27 + $0x130] sm:$0xff]  }
0x2507   : > { %10651 = vmatprep.subr.bf16.mxu0 %v17780_v6 }
0x258e   : > { %v10287_v12 = vpop.xlane.xlu1 %10286 }
0x258f   : > { %v10288_v24 = vmul.f32 0.03125, %v10287_v12  ;;  %v20091_v12 = vld [vmem:[%s23195_s27 + $0x188] sm:$0xff]  }
0x2591   : > { %v10289_v45 = vsub.f32 %v10284_v19, %v10288_v24  ;;  %v20088_v19 = vld [vmem:[%s23195_s27 + $0x148] sm:$0xff]   ;;  %v20092_v24 = vld [vmem:[%s23195_s27 + $0x150] sm:$0xff]  }
0x2593   : > { %v10290_v25 = vmul.f32 %v10289_v45, %v10289_v45 }
0x2595   : > { %v10291_v26 = vsel %vm9041_vm9, %v10290_v25, 0.0  ;;  %v20094_v25 = vld [vmem:[%s23195_s27 + $0x110] sm:$0xff]  }
0x2596   : > { %10292 = vadd.xlane.f32.xlu0 %v10291_v26  ;;  %v20095_v26 = vld [vmem:[%s23195_s27 + $0x190] sm:$0xff]  }
0x2623   : > { %v10293_v27 = vpop.xlane.xlu0 %10292 }
0x2624   : > { %v10294_v62 = vmul.f32 0.03125, %v10293_v27 }
0x2626   : > { %v10295_v2 = vadd.f32 1e-05, %v10294_v62 }
0x2628   : > { %20428 = vrsqrt.f32 %v10295_v2  ;;  %v22205_v2 = vld [vmem:[%s23196_s30] sm:$0xf] }
0x2629   : > { %v10330_v4 = vrot.slane %v22205_v2, %v21075_v33  ;;  %v10338_v51 = vrot.slane %v22205_v2, %v21078_v38 }
0x2632   : > { %v20429_v36 = vpop.eup %20428 }
0x2633   : > { %v10297_v0 = vmul.f32 %v20429_v36, %v10289_v45  ;;  %v20093_v45 = vld [vmem:[%s23195_s27 + $0x1d0] sm:$0xff]  }
0x2635   : > { %v10304_v63 = vmul.f32 %v17765_v31, %v10297_v0  ;;  %v10548_v0 = vld [vmem:[%s23196_s30 + $0x4] sm:$0xf] }
0x2636   : > { %v10553_v5 = vrot.slane %v10548_v0, %v21085_v42  ;;  %v10561_v9 = vrot.slane %v10548_v0, %v21088_v43 }
0x2637   : > { %v22150_v30 = vadd.f32 %v17766_v3, %v10304_v63 }
0x2639   : > { %v22154_v11 = vpack.c.bf16 %v22150_v30, %v22150_v30 }
0x263b   : > { %17775 = vmatmul.mubr.msk.bf16.vlgmr.msra.gmra.mrb[144].mxu1 %vm1450_vm1, %v22154_v11  ;;  %17776 = vmatmul.mubr.msk.bf16.vlgmr.msra.gmra.mrb[148].mxu0 %vm1450_vm1, %v22154_v11 }
0x263c   : > { %10611 = vmatpush1.bf16.msra.mxu1 %v17777_v18  ;;  %10652 = vmatpush1.bf16.msra.mxu0 %v17779_v61  ;;  %v20117_v18 = vld [vmem:[%s23195_s27 + $0xc0] sm:$0xff]  }
0x263d   : > { %10612 = vmatprep.subr.bf16.mxu1 %v17782_v47  ;;  %10653 = vmatprep.subr.bf16.mxu0 %v17784_v15  ;;  %v10557_v47 = vrot.slane %v10548_v0, %v21075_v33  ;;  %v10565_v15 = vrot.slane %v10548_v0, %v21078_v38  ;;  %v20132_v0 = vld [vmem:[%s23195_s27 + $0x60] sm:$0xff]  }
0x263e   : > { %10642 = vmatprep.mubr.bf16.mxu1 %v20539_v34  ;;  %10683 = vmatprep.mubr.bf16.mxu0 %v20539_v34 }
0x2640   : > { %10613 = vmatpush1.bf16.msra.mxu1 %v17781_v16  ;;  %10654 = vmatpush1.bf16.msra.mxu0 %v17783_v48 }
0x2641   : > { %18934 = vmatprep.subr.bf16.mxu1 %v20084_v39  ;;  %18956 = vmatprep.subr.bf16.mxu0 %v20085_v13 }
0x2643   : > { %17785 = vmatmul.mubr.msk.bf16.vlgmr.msra.gmra.mrb[148].mxu1 %vm1450_vm1, %v22154_v11  ;;  %17786 = vmatmul.mubr.msk.bf16.vlgmr.msra.gmra.mrb[152].mxu0 %vm1450_vm1, %v22154_v11 }
0x2644   : > { %18935 = vmatpush3.bf16.msra.mxu1 %v20086_v14  ;;  %18957 = vmatpush3.bf16.msra.mxu0 %v20087_v23 }
0x2645   : > { %18936 = vmatprep.subr.bf16.mxu1 %v20088_v19  ;;  %18958 = vmatprep.subr.bf16.mxu0 %v20089_v59 }
0x2648   : > { %18937 = vmatpush3.bf16.msra.mxu1 %v20090_v55  ;;  %18959 = vmatpush3.bf16.msra.mxu0 %v20091_v12 }
0x2649   : > { %18938 = vmatprep.subr.bf16.mxu1 %v20092_v24  ;;  %18960 = vmatprep.subr.bf16.mxu0 %v20093_v45 }
0x264c   : > { %18939 = vmatpush3.bf16.msra.mxu1 %v20094_v25  ;;  %18961 = vmatpush3.bf16.msra.mxu0 %v20095_v26 }
0x264d   : > { %18940 = vmatprep.subr.bf16.mxu1 %v20096_v28  ;;  %18962 = vmatprep.subr.bf16.mxu0 %v20097_v35 }
0x2650   : > { %18941 = vmatpush3.bf16.msra.mxu1 %v20098_v58  ;;  %18963 = vmatpush3.bf16.msra.mxu0 %v20099_v44 }
0x2651   : > { %18942 = vmatprep.subr.bf16.mxu1 %v20100_v57  ;;  %18964 = vmatprep.subr.bf16.mxu0 %v20101_v29 }
0x2654   : > { %18943 = vmatpush3.bf16.msra.mxu1 %v20102_v10  ;;  %18965 = vmatpush3.bf16.msra.mxu0 %v20103_v49 }
0x2655   : > { %18944 = vmatprep.subr.bf16.mxu1 %v20104_v21  ;;  %18966 = vmatprep.subr.bf16.mxu0 %v20105_v40  ;;  %v20118_v21 = vld [vmem:[%s23195_s27] sm:$0xff]  }
0x2656   : > { %v20119_v40 = vld [vmem:[%s23195_s27 + $0x80] sm:$0xff]  }
0x2658   : > { %18945 = vmatpush3.bf16.msra.mxu1 %v20106_v8  ;;  %18967 = vmatpush3.bf16.msra.mxu0 %v20107_v37 }
0x2659   : > { %18946 = vmatprep.subr.bf16.mxu1 %v20108_v52  ;;  %18968 = vmatprep.subr.bf16.mxu0 %v20109_v50  ;;  %v20120_v52 = vld [vmem:[%s23195_s27 + $0x48] sm:$0xff]  }
0x265a   : > { %v20121_v50 = vld [vmem:[%s23195_s27 + $0xc8] sm:$0xff]  }
0x265c   : > { %18947 = vmatpush3.bf16.msra.mxu1 %v20110_v7  ;;  %18969 = vmatpush3.bf16.msra.mxu0 %v20111_v53 }
0x265d   : > { %18948 = vmatprep.subr.bf16.mxu1 %v20112_v17  ;;  %18970 = vmatprep.subr.bf16.mxu0 %v20113_v41  ;;  %v20122_v17 = vld [vmem:[%s23195_s27 + $0x8] sm:$0xff]  }
0x265e   : > { %v20123_v41 = vld [vmem:[%s23195_s27 + $0x88] sm:$0xff]  }
0x2660   : > { %18949 = vmatpush3.bf16.msra.mxu1 %v20114_v54  ;;  %18971 = vmatpush3.bf16.msra.mxu0 %v20115_v56  ;;  %v20124_v54 = vld [vmem:[%s23195_s27 + $0x50] sm:$0xff]  }
0x2661   : > { %18978 = vmatprep.subr.bf16.mxu1 %v20116_v20  ;;  %19000 = vmatprep.subr.bf16.mxu0 %v20117_v18  ;;  %v20125_v56 = vld [vmem:[%s23195_s27 + $0xd0] sm:$0xff]  }
0x2662   : > { %v20126_v20 = vld [vmem:[%s23195_s27 + $0x10] sm:$0xff]  }
0x2663   : > { %v20127_v18 = vld [vmem:[%s23195_s27 + $0x90] sm:$0xff]  }
0x270e   : > { %v22200_v61 = vpop.f32.mrb[144].mxu1  ;;  %v22202_v6 = vpop.f32.mrb[148].mxu0 }
0x270f   : > { %v10422_v27 = vpop.f32.mrb[145].mxu1  ;;  %v10463_v62 = vpop.f32.mrb[149].mxu0 }
0x2710   : > { %v10424_v36 = vpop.f32.mrb[146].mxu1  ;;  %v10465_v31 = vpop.f32.mrb[150].mxu0  ;;  %v10423_v39 = vadd.f32 %v10422_v27, %v10330_v4  ;;  %v10464_v13 = vadd.f32 %v10463_v62, %v10338_v51  ;;  %v20128_v27 = vld [vmem:[%s23195_s27 + $0x58] sm:$0xff]   ;;  %v20135_v4 = vld [vmem:[%s23195_s27 + $0xa0] sm:$0xff]   ;;  %v20136_v51 = vld [vmem:[%s23195_s27 + $0x68] sm:$0xff]  }
0x2711   : > { %v10425_v3 = vpop.f32.mrb[147].mxu1  ;;  %v10466_v63 = vpop.f32.mrb[151].mxu0  ;;  %v20129_v62 = vld [vmem:[%s23195_s27 + $0xd8] sm:$0xff]  }
0x2712   : > { %v10469_v57 = vmax.f32 %v10423_v39, 0.0  ;;  %v10471_v29 = vmax.f32 %v10464_v13, 0.0  ;;  %v20130_v36 = vld [vmem:[%s23195_s27 + $0x18] sm:$0xff]   ;;  %v20133_v3 = vld [vmem:[%s23195_s27 + $0xe0] sm:$0xff]   ;;  %v20141_v39 = vld [vmem:[%s23195_s27 + $0xf0] sm:$0xff]  }
0x2713   : > { %v20131_v31 = vld [vmem:[%s23195_s27 + $0x98] sm:$0xff]   ;;  %v20134_v63 = vld [vmem:[%s23195_s27 + $0x20] sm:$0xff]   ;;  %v20142_v13 = vld [vmem:[%s23195_s27 + $0x30] sm:$0xff]  }
0x2714   : > { %v10473_v7 = vpack.c.bf16 %v10469_v57, %v10469_v57  ;;  %v10475_v53 = vpack.c.bf16 %v10471_v29, %v10471_v29  ;;  %v11313_v57 = vld [vmem:[%s23192_s20 + $0xa8] sm:$0xff] }
0x2715   : > { %v11315_v29 = vld [vmem:[%s23192_s20 + $0xe8] sm:$0xff] }
0x2716   : > { %v10644_v16 = vpop.f32.mrb[148].mxu1  ;;  %v10685_v48 = vpop.f32.mrb[152].mxu0 }
0x2717   : > { %v10645_v14 = vadd.f32 %v10644_v16, %v10553_v5  ;;  %v10686_v23 = vadd.f32 %v10685_v48, %v10561_v9  ;;  %v10646_v19 = vpop.f32.mrb[149].mxu1  ;;  %v10687_v59 = vpop.f32.mrb[153].mxu0  ;;  %v20137_v5 = vld [vmem:[%s23195_s27 + $0xe8] sm:$0xff]   ;;  %v10334_v16 = vrot.slane %v22205_v2, %v21088_v43  ;;  %v20140_v48 = vld [vmem:[%s23195_s27 + $0x70] sm:$0xff]  }
0x2718   : > { %v10647_v55 = vadd.f32 %v10646_v19, %v10557_v47  ;;  %v10688_v12 = vadd.f32 %v10687_v59, %v10565_v15  ;;  %v10648_v24 = vpop.f32.mrb[150].mxu1  ;;  %v10689_v45 = vpop.f32.mrb[154].mxu0  ;;  %v20138_v9 = vld [vmem:[%s23195_s27 + $0x28] sm:$0xff]   ;;  %v10326_v15 = vrot.slane %v22205_v2, %v21085_v42  ;;  %v20144_v2 = vld [vmem:[%s23195_s27 + $0x78] sm:$0xff]  }
0x2719   : > { %v10692_v25 = vmax.f32 %v10645_v14, 0.0  ;;  %v10694_v26 = vmax.f32 %v10686_v23, 0.0  ;;  %v10649_v28 = vpop.f32.mrb[151].mxu1  ;;  %v10690_v35 = vpop.f32.mrb[155].mxu0  ;;  %v20139_v47 = vld [vmem:[%s23195_s27 + $0xa8] sm:$0xff]   ;;  %v20143_v14 = vld [vmem:[%s23195_s27 + $0xb0] sm:$0xff]   ;;  %v10462_v19 = vadd.f32 %v22202_v6, %v10334_v16 }
0x271a   : > { %v10693_v58 = vmax.f32 %v10647_v55, 0.0  ;;  %v10695_v44 = vmax.f32 %v10688_v12, 0.0  ;;  %v10421_v23 = vadd.f32 %v22200_v61, %v10326_v15  ;;  %v20145_v59 = vld [vmem:[%s23195_s27 + $0xf8] sm:$0xff]   ;;  %v11308_v55 = vld [vmem:[%s23192_s20 + $0x20] sm:$0xff]  ;;  %v11309_v24 = vld [vmem:[%s23192_s20 + $0x28] sm:$0xff] }
0x271b   : > { %v10696_v8 = vpack.c.bf16 %v10692_v25, %v10692_v25  ;;  %v10698_v37 = vpack.c.bf16 %v10694_v26, %v10694_v26  ;;  %v11310_v12 = vld [vmem:[%s23192_s20 + $0x60] sm:$0xff]  ;;  %v11311_v45 = vld [vmem:[%s23192_s20 + $0x68] sm:$0xff]  ;;  %v20146_v25 = vld [vmem:[%s23195_s27 + $0x38] sm:$0xff]   ;;  %v10470_v61 = vmax.f32 %v10462_v19, 0.0 }
0x271c   : > { %v10697_v10 = vpack.c.bf16 %v10693_v58, %v10693_v58  ;;  %v10699_v49 = vpack.c.bf16 %v10695_v44, %v10695_v44  ;;  %v20147_v26 = vld [vmem:[%s23195_s27 + $0xb8] sm:$0xff]   ;;  %v10468_v28 = vmax.f32 %v10421_v23, 0.0  ;;  %v17852_v6 = vcombine.high %v11308_v55, %v11310_v12  ;;  %v11312_v58 = vld [vmem:[%s23192_s20 + $0xa0] sm:$0xff]  ;;  %v20168_v15 = vld [vmem:[%s23195_s27 + $0x268] sm:$0xff]  }
0x271d   : > { %v17854_v35 = vcombine.high %v11309_v24, %v11311_v45  ;;  %v11314_v44 = vld [vmem:[%s23192_s20 + $0xe0] sm:$0xff]  ;;  %v20169_v16 = vld [vmem:[%s23195_s27 + $0x2e8] sm:$0xff]   ;;  %v20174_v23 = vld [vmem:[%s23195_s27 + $0x230] sm:$0xff]  }
0x271e   : > { %10988 = vmatprep.mubr.bf16.mxu1 %v10697_v10  ;;  %11028 = vmatprep.mubr.bf16.mxu0 %v10699_v49  ;;  %v17851_v10 = vcombine.low %v11308_v55, %v11310_v12  ;;  %v17853_v49 = vcombine.low %v11309_v24, %v11311_v45  ;;  %v20175_v19 = vld [vmem:[%s23195_s27 + $0x2b0] sm:$0xff]   ;;  %v20178_v55 = vld [vmem:[%s23195_s27 + $0x238] sm:$0xff]  }
0x271f   : > { %10989 = vmatmul.mubr.bf16.vlgmr.msra.gmra.mrb[152].mxu1 %v10696_v8  ;;  %11029 = vmatmul.mubr.bf16.vlgmr.msra.gmra.mrb[156].mxu0 %v10698_v37  ;;  %v10474_v8 = vpack.c.bf16 %v10470_v61, %v10470_v61  ;;  %v17858_v37 = vcombine.high %v11313_v57, %v11315_v29  ;;  %v20179_v12 = vld [vmem:[%s23195_s27 + $0x2b8] sm:$0xff]   ;;  %v22299_v24 = vld [vmem:[%s23192_s20 + $0x30] sm:$0xff] }
0x2720   : > { %18979 = vmatpush3.bf16.msra.mxu1 %v20118_v21  ;;  %19001 = vmatpush3.bf16.msra.mxu0 %v20119_v40  ;;  %v17856_v21 = vcombine.high %v11312_v58, %v11314_v44  ;;  %v10472_v40 = vpack.c.bf16 %v10468_v28, %v10468_v28  ;;  %v22302_v45 = vld [vmem:[%s23192_s20 + $0x70] sm:$0xff]  ;;  %v22310_v28 = vld [vmem:[%s23192_s20 + $0x78] sm:$0xff] }
0x2721   : > { %11260 = vmatprep.mubr.bf16.mxu1 %v10473_v7  ;;  %11300 = vmatprep.mubr.bf16.mxu0 %v10475_v53  ;;  %v20148_v7 = vld [vmem:[%s23195_s27 + $0x240] sm:$0xff]   ;;  %v17893_v61 = vcombine.low %v22299_v24, %v22302_v45 }
0x2722   : > { %18980 = vmatprep.subr.bf16.mxu1 %v20120_v52  ;;  %19002 = vmatprep.subr.bf16.mxu0 %v20121_v50  ;;  %v17855_v52 = vcombine.low %v11312_v58, %v11314_v44  ;;  %v17857_v50 = vcombine.low %v11313_v57, %v11315_v29  ;;  %v20149_v53 = vld [vmem:[%s23195_s27 + $0x2c0] sm:$0xff]  }
0x2724   : > { %18981 = vmatpush3.bf16.msra.mxu1 %v20122_v17  ;;  %19003 = vmatpush3.bf16.msra.mxu0 %v20123_v41  ;;  %v20150_v17 = vld [vmem:[%s23195_s27 + $0x200] sm:$0xff]  }
0x2725   : > { %18982 = vmatprep.subr.bf16.mxu1 %v20124_v54  ;;  %19004 = vmatprep.subr.bf16.mxu0 %v20125_v56  ;;  %v20151_v41 = vld [vmem:[%s23195_s27 + $0x280] sm:$0xff]   ;;  %v20152_v54 = vld [vmem:[%s23195_s27 + $0x248] sm:$0xff]  }
0x2726   : > { %v20153_v56 = vld [vmem:[%s23195_s27 + $0x2c8] sm:$0xff]  }
0x2728   : > { %18983 = vmatpush3.bf16.msra.mxu1 %v20126_v20  ;;  %19005 = vmatpush3.bf16.msra.mxu0 %v20127_v18  ;;  %v20154_v20 = vld [vmem:[%s23195_s27 + $0x208] sm:$0xff]  }
0x2729   : > { %18984 = vmatprep.subr.bf16.mxu1 %v20128_v27  ;;  %19006 = vmatprep.subr.bf16.mxu0 %v20129_v62  ;;  %v20155_v18 = vld [vmem:[%s23195_s27 + $0x288] sm:$0xff]   ;;  %v20156_v27 = vld [vmem:[%s23195_s27 + $0x250] sm:$0xff]  }
0x272a   : > { %v20157_v62 = vld [vmem:[%s23195_s27 + $0x2d0] sm:$0xff]  }
0x272c   : > { %18985 = vmatpush3.bf16.msra.mxu1 %v20130_v36  ;;  %19007 = vmatpush3.bf16.msra.mxu0 %v20131_v31  ;;  %v20158_v36 = vld [vmem:[%s23195_s27 + $0x210] sm:$0xff]  }
0x272d   : > { %18986 = vmatprep.subr.bf16.mxu1 %v20132_v0  ;;  %19008 = vmatprep.subr.bf16.mxu0 %v20133_v3  ;;  %v20159_v31 = vld [vmem:[%s23195_s27 + $0x290] sm:$0xff]   ;;  %v20160_v0 = vld [vmem:[%s23195_s27 + $0x258] sm:$0xff]  }
0x272e   : > { %v20161_v3 = vld [vmem:[%s23195_s27 + $0x2d8] sm:$0xff]  }
0x2730   : > { %18987 = vmatpush3.bf16.msra.mxu1 %v20134_v63  ;;  %19009 = vmatpush3.bf16.msra.mxu0 %v20135_v4  ;;  %v20162_v63 = vld [vmem:[%s23195_s27 + $0x218] sm:$0xff]  }
0x2731   : > { %18988 = vmatprep.subr.bf16.mxu1 %v20136_v51  ;;  %19010 = vmatprep.subr.bf16.mxu0 %v20137_v5  ;;  %v20163_v4 = vld [vmem:[%s23195_s27 + $0x298] sm:$0xff]   ;;  %v20164_v51 = vld [vmem:[%s23195_s27 + $0x260] sm:$0xff]  }
0x2732   : > { %v20165_v5 = vld [vmem:[%s23195_s27 + $0x2e0] sm:$0xff]  }
0x2734   : > { %18989 = vmatpush3.bf16.msra.mxu1 %v20138_v9  ;;  %19011 = vmatpush3.bf16.msra.mxu0 %v20139_v47  ;;  %v20166_v9 = vld [vmem:[%s23195_s27 + $0x220] sm:$0xff]  }
0x2735   : > { %18990 = vmatprep.subr.bf16.mxu1 %v20140_v48  ;;  %19012 = vmatprep.subr.bf16.mxu0 %v20141_v39  ;;  %v20167_v47 = vld [vmem:[%s23195_s27 + $0x2a0] sm:$0xff]   ;;  %v20170_v48 = vld [vmem:[%s23195_s27 + $0x228] sm:$0xff]  }
0x2736   : > { %v20171_v39 = vld [vmem:[%s23195_s27 + $0x2a8] sm:$0xff]  }
0x2738   : > { %18991 = vmatpush3.bf16.msra.mxu1 %v20142_v13  ;;  %19013 = vmatpush3.bf16.msra.mxu0 %v20143_v14  ;;  %v20172_v13 = vld [vmem:[%s23195_s27 + $0x270] sm:$0xff]  }
0x2739   : > { %18992 = vmatprep.subr.bf16.mxu1 %v20144_v2  ;;  %19014 = vmatprep.subr.bf16.mxu0 %v20145_v59  ;;  %v20173_v14 = vld [vmem:[%s23195_s27 + $0x2f0] sm:$0xff]   ;;  %v20176_v2 = vld [vmem:[%s23195_s27 + $0x278] sm:$0xff]  }
0x273a   : > { %v20177_v59 = vld [vmem:[%s23195_s27 + $0x2f8] sm:$0xff]  }
0x273c   : > { %18993 = vmatpush3.bf16.msra.mxu1 %v20146_v25  ;;  %19015 = vmatpush3.bf16.msra.mxu0 %v20147_v26  ;;  %v22305_v25 = vld [vmem:[%s23192_s20 + $0x38] sm:$0xff]  ;;  %v17894_v26 = vcombine.high %v22299_v24, %v22302_v45  ;;  %v11811_v45 = vld [vmem:[%s23192_s20 + $0xf0] sm:$0xff] }
0x273d   : > { %11378 = vmatprep.subr.bf16.mxu1 %v17852_v6  ;;  %11419 = vmatprep.subr.bf16.mxu0 %v17854_v35  ;;  %v17895_v6 = vcombine.low %v22305_v25, %v22310_v28  ;;  %v17896_v35 = vcombine.high %v22305_v25, %v22310_v28  ;;  %v11810_v25 = vld [vmem:[%s23192_s20 + $0xb8] sm:$0xff] }
0x273f   : > { %11261 = vmatmul.mubr.bf16.vlgmr.msra.gmra.mrb[156].mxu1 %v10472_v40  ;;  %11301 = vmatmul.mubr.bf16.vlgmr.msra.gmra.mrb[160].mxu0 %v10474_v8 }
0x2740   : > { %11379 = vmatpush1.bf16.msra.mxu1 %v17851_v10  ;;  %11420 = vmatpush1.bf16.msra.mxu0 %v17853_v49 }
0x2741   : > { %11380 = vmatprep.subr.bf16.mxu1 %v17856_v21  ;;  %11421 = vmatprep.subr.bf16.mxu0 %v17858_v37 }
0x2742   : > { %11410 = vmatprep.mubr.bf16.mxu1 %v20539_v34  ;;  %11451 = vmatprep.mubr.bf16.mxu0 %v20539_v34 }
0x2744   : > { %11381 = vmatpush1.bf16.msra.mxu1 %v17855_v52  ;;  %11422 = vmatpush1.bf16.msra.mxu0 %v17857_v50 }
0x2745   : > { %19022 = vmatprep.subr.bf16.mxu1 %v20148_v7  ;;  %19044 = vmatprep.subr.bf16.mxu0 %v20149_v53 }
0x2747   : > { %17859 = vmatmul.mubr.msk.bf16.vlgmr.msra.gmra.mrb[160].mxu1 %vm1450_vm1, %v22154_v11  ;;  %17860 = vmatmul.mubr.msk.bf16.vlgmr.msra.gmra.mrb[164].mxu0 %vm1450_vm1, %v22154_v11 }
0x2748   : > { %19023 = vmatpush3.bf16.msra.mxu1 %v20150_v17  ;;  %19045 = vmatpush3.bf16.msra.mxu0 %v20151_v41 }
0x2749   : > { %19024 = vmatprep.subr.bf16.mxu1 %v20152_v54  ;;  %19046 = vmatprep.subr.bf16.mxu0 %v20153_v56 }
0x274c   : > { %19025 = vmatpush3.bf16.msra.mxu1 %v20154_v20  ;;  %19047 = vmatpush3.bf16.msra.mxu0 %v20155_v18  ;;  %v11316_v18 = vld [vmem:[%s23196_s30 + $0x8] sm:$0xf] }
0x274d   : > { %19026 = vmatprep.subr.bf16.mxu1 %v20156_v27  ;;  %19048 = vmatprep.subr.bf16.mxu0 %v20157_v62 }
0x2750   : > { %19027 = vmatpush3.bf16.msra.mxu1 %v20158_v36  ;;  %19049 = vmatpush3.bf16.msra.mxu0 %v20159_v31  ;;  %v11321_v31 = vrot.slane %v11316_v18, %v21085_v42 }
0x2751   : > { %19028 = vmatprep.subr.bf16.mxu1 %v20160_v0  ;;  %19050 = vmatprep.subr.bf16.mxu0 %v20161_v3  ;;  %v11329_v0 = vrot.slane %v11316_v18, %v21088_v43 }
0x2754   : > { %19029 = vmatpush3.bf16.msra.mxu1 %v20162_v63  ;;  %19051 = vmatpush3.bf16.msra.mxu0 %v20163_v4  ;;  %v11325_v63 = vrot.slane %v11316_v18, %v21075_v33  ;;  %v11333_v4 = vrot.slane %v11316_v18, %v21078_v38  ;;  %v20196_v18 = vld [vmem:[%s23195_s27 + $0x360] sm:$0xff]  }
0x2755   : > { %19030 = vmatprep.subr.bf16.mxu1 %v20164_v51  ;;  %19052 = vmatprep.subr.bf16.mxu0 %v20165_v5 }
0x2758   : > { %19031 = vmatpush3.bf16.msra.mxu1 %v20166_v9  ;;  %19053 = vmatpush3.bf16.msra.mxu0 %v20167_v47 }
0x2759   : > { %19032 = vmatprep.subr.bf16.mxu1 %v20168_v15  ;;  %19054 = vmatprep.subr.bf16.mxu0 %v20169_v16 }
0x275c   : > { %19033 = vmatpush3.bf16.msra.mxu1 %v20170_v48  ;;  %19055 = vmatpush3.bf16.msra.mxu0 %v20171_v39 }
0x275d   : > { %19034 = vmatprep.subr.bf16.mxu1 %v20172_v13  ;;  %19056 = vmatprep.subr.bf16.mxu0 %v20173_v14 }
0x2760   : > { %19035 = vmatpush3.bf16.msra.mxu1 %v20174_v23  ;;  %19057 = vmatpush3.bf16.msra.mxu0 %v20175_v19 }
0x2761   : > { %19036 = vmatprep.subr.bf16.mxu1 %v20176_v2  ;;  %19058 = vmatprep.subr.bf16.mxu0 %v20177_v59 }
0x2764   : > { %19037 = vmatpush3.bf16.msra.mxu1 %v20178_v55  ;;  %19059 = vmatpush3.bf16.msra.mxu0 %v20179_v12  ;;  %v11809_v55 = vld [vmem:[%s23192_s20 + $0xb0] sm:$0xff] }
0x2765   : > { %11875 = vmatprep.subr.bf16.mxu1 %v17894_v26  ;;  %11916 = vmatprep.subr.bf16.mxu0 %v17896_v35  ;;  %v11812_v26 = vld [vmem:[%s23192_s20 + $0xf8] sm:$0xff] }
0x27f2   : > { %v18950_v58 = vpop.f32.mrb[152].mxu1  ;;  %v18972_v44 = vpop.f32.mrb[156].mxu0 }
0x27f3   : > { %v18951_v57 = vpop.f32.mrb[153].mxu1  ;;  %v18973_v29 = vpop.f32.mrb[157].mxu0 }
0x27f4   : > { %v18952_v10 = vadd.f32 %v18951_v57, %v18950_v58  ;;  %v18974_v49 = vadd.f32 %v18973_v29, %v18972_v44  ;;  %v18953_v21 = vpop.f32.mrb[154].mxu1  ;;  %v18975_v40 = vpop.f32.mrb[158].mxu0  ;;  %v17898_v57 = vcombine.high %v11809_v55, %v11811_v45  ;;  %v17900_v29 = vcombine.high %v11810_v25, %v11812_v26 }
0x27f5   : > { %v18954_v8 = vpop.f32.mrb[155].mxu1  ;;  %v18976_v37 = vpop.f32.mrb[159].mxu0  ;;  %v20180_v21 = vld [vmem:[%s23195_s27 + $0x340] sm:$0xff]  }
0x27f6   : > { %v11031_v52 = vadd.f32 %v18974_v49, %v18952_v10  ;;  %v17897_v10 = vcombine.low %v11809_v55, %v11811_v45  ;;  %v17899_v49 = vcombine.low %v11810_v25, %v11812_v26  ;;  %v20181_v40 = vld [vmem:[%s23195_s27 + $0x3c0] sm:$0xff]   ;;  %v20185_v37 = vld [vmem:[%s23195_s27 + $0x3c8] sm:$0xff]  }
0x27f7   : > { %v20183_v8 = vld [vmem:[%s23195_s27 + $0x380] sm:$0xff]  }
0x2812   : > { %v18994_v50 = vpop.f32.mrb[156].mxu1  ;;  %v19016_v7 = vpop.f32.mrb[160].mxu0 }
0x2813   : > { %v18995_v53 = vpop.f32.mrb[157].mxu1  ;;  %v19017_v17 = vpop.f32.mrb[161].mxu0 }
0x2814   : > { %v18996_v41 = vadd.f32 %v18995_v53, %v18994_v50  ;;  %v19018_v54 = vadd.f32 %v19017_v17, %v19016_v7  ;;  %v18997_v56 = vpop.f32.mrb[158].mxu1  ;;  %v19019_v20 = vpop.f32.mrb[162].mxu0  ;;  %v20187_v50 = vld [vmem:[%s23195_s27 + $0x388] sm:$0xff]   ;;  %v20188_v7 = vld [vmem:[%s23195_s27 + $0x350] sm:$0xff]  }
0x2815   : > { %v18998_v27 = vpop.f32.mrb[159].mxu1  ;;  %v19020_v62 = vpop.f32.mrb[163].mxu0  ;;  %v20189_v53 = vld [vmem:[%s23195_s27 + $0x3d0] sm:$0xff]   ;;  %v20194_v56 = vld [vmem:[%s23195_s27 + $0x318] sm:$0xff]  }
0x2816   : > { %v11263_v36 = vadd.f32 %v18996_v41, %v11031_v52  ;;  %v20186_v52 = vld [vmem:[%s23195_s27 + $0x308] sm:$0xff]   ;;  %v20190_v17 = vld [vmem:[%s23195_s27 + $0x310] sm:$0xff]   ;;  %v20195_v20 = vld [vmem:[%s23195_s27 + $0x398] sm:$0xff]  }
0x2817   : > { %v20191_v41 = vld [vmem:[%s23195_s27 + $0x390] sm:$0xff]   ;;  %v20197_v27 = vld [vmem:[%s23195_s27 + $0x3e0] sm:$0xff]  }
0x2818   : > { %v22321_v3 = vadd.f32 %v19018_v54, %v11263_v36  ;;  %v20193_v54 = vld [vmem:[%s23195_s27 + $0x3d8] sm:$0xff]   ;;  %v20198_v62 = vld [vmem:[%s23195_s27 + $0x320] sm:$0xff]  }
0x2819   : > { %v20199_v36 = vld [vmem:[%s23195_s27 + $0x3a0] sm:$0xff]  }
0x281a   : > { %v11412_v51 = vpop.f32.mrb[160].mxu1  ;;  %v11453_v5 = vpop.f32.mrb[164].mxu0 }
0x281b   : > { %v11413_v9 = vadd.f32 %v11412_v51, %v11321_v31  ;;  %v11454_v47 = vadd.f32 %v11453_v5, %v11329_v0  ;;  %v11414_v15 = vpop.f32.mrb[161].mxu1  ;;  %v11455_v16 = vpop.f32.mrb[165].mxu0  ;;  %v20200_v31 = vld [vmem:[%s23195_s27 + $0x368] sm:$0xff]   ;;  %v20204_v51 = vld [vmem:[%s23195_s27 + $0x370] sm:$0xff]  }
0x281c   : > { %v11415_v48 = vadd.f32 %v11414_v15, %v11325_v63  ;;  %v11456_v39 = vadd.f32 %v11455_v16, %v11333_v4  ;;  %v11416_v13 = vpop.f32.mrb[162].mxu1  ;;  %v11457_v14 = vpop.f32.mrb[166].mxu0  ;;  %v20201_v0 = vld [vmem:[%s23195_s27 + $0x3e8] sm:$0xff]   ;;  %v20205_v5 = vld [vmem:[%s23195_s27 + $0x3f0] sm:$0xff]   ;;  %v20208_v15 = vld [vmem:[%s23195_s27 + $0x378] sm:$0xff]  }
0x281d   : > { %v11460_v23 = vmax.f32 %v11413_v9, 0.0  ;;  %v11462_v19 = vmax.f32 %v11454_v47, 0.0  ;;  %v11417_v2 = vpop.f32.mrb[163].mxu1  ;;  %v11458_v59 = vpop.f32.mrb[167].mxu0  ;;  %v20202_v63 = vld [vmem:[%s23195_s27 + $0x328] sm:$0xff]   ;;  %v20206_v9 = vld [vmem:[%s23195_s27 + $0x330] sm:$0xff]  }
0x281e   : > { %v11461_v12 = vmax.f32 %v11415_v48, 0.0  ;;  %v11463_v24 = vmax.f32 %v11456_v39, 0.0  ;;  %v20203_v4 = vld [vmem:[%s23195_s27 + $0x3a8] sm:$0xff]   ;;  %v20207_v47 = vld [vmem:[%s23195_s27 + $0x3b0] sm:$0xff]   ;;  %v20209_v16 = vld [vmem:[%s23195_s27 + $0x3f8] sm:$0xff]  }
0x281f   : > { %v11464_v58 = vpack.c.bf16 %v11460_v23, %v11460_v23  ;;  %v11466_v44 = vpack.c.bf16 %v11462_v19, %v11462_v19  ;;  %v20210_v48 = vld [vmem:[%s23195_s27 + $0x338] sm:$0xff]  }
0x2820   : > { %v11465_v28 = vpack.c.bf16 %v11461_v12, %v11461_v12  ;;  %v11467_v35 = vpack.c.bf16 %v11463_v24, %v11463_v24  ;;  %v20211_v39 = vld [vmem:[%s23195_s27 + $0x3b8] sm:$0xff]   ;;  %v11813_v24 = vld [vmem:[%s23196_s30 + $0xc] sm:$0xf] }
0x2822   : > { %11756 = vmatprep.mubr.bf16.mxu1 %v11465_v28  ;;  %11796 = vmatprep.mubr.bf16.mxu0 %v11467_v35  ;;  %v11818_v28 = vrot.slane %v11813_v24, %v21085_v42  ;;  %v11826_v35 = vrot.slane %v11813_v24, %v21088_v43 }
0x2823   : > { %11757 = vmatmul.mubr.bf16.vlgmr.msra.gmra.mrb[164].mxu1 %v11464_v58  ;;  %11797 = vmatmul.mubr.bf16.vlgmr.msra.gmra.mrb[168].mxu0 %v11466_v44  ;;  %v11822_v44 = vrot.slane %v11813_v24, %v21075_v33 }
0x2824   : > { %11876 = vmatpush1.bf16.msra.mxu1 %v17893_v61  ;;  %11917 = vmatpush1.bf16.msra.mxu0 %v17895_v6  ;;  %v20182_v61 = vld [vmem:[%s23195_s27 + $0x300] sm:$0xff]   ;;  %v20184_v6 = vld [vmem:[%s23195_s27 + $0x348] sm:$0xff]  }
0x2825   : > { %11877 = vmatprep.subr.bf16.mxu1 %v17898_v57  ;;  %11918 = vmatprep.subr.bf16.mxu0 %v17900_v29  ;;  %v11830_v57 = vrot.slane %v11813_v24, %v21078_v38 }
0x2826   : > { %11907 = vmatprep.mubr.bf16.mxu1 %v20539_v34  ;;  %11948 = vmatprep.mubr.bf16.mxu0 %v20539_v34 }
0x2828   : > { %11878 = vmatpush1.bf16.msra.mxu1 %v17897_v10  ;;  %11919 = vmatpush1.bf16.msra.mxu0 %v17899_v49 }
0x2829   : > { %19066 = vmatprep.subr.bf16.mxu1 %v20180_v21  ;;  %19088 = vmatprep.subr.bf16.mxu0 %v20181_v40 }
0x282b   : > { %17901 = vmatmul.mubr.msk.bf16.vlgmr.msra.gmra.mrb[168].mxu1 %vm1450_vm1, %v22154_v11  ;;  %17902 = vmatmul.mubr.msk.bf16.vlgmr.msra.gmra.mrb[172].mxu0 %vm1450_vm1, %v22154_v11  ;;  %v20192_v11 = vld [vmem:[%s23195_s27 + $0x358] sm:$0xff]  }
0x282c   : > { %19067 = vmatpush3.bf16.msra.mxu1 %v20182_v61  ;;  %19089 = vmatpush3.bf16.msra.mxu0 %v20183_v8 }
0x282d   : > { %19068 = vmatprep.subr.bf16.mxu1 %v20184_v6  ;;  %19090 = vmatprep.subr.bf16.mxu0 %v20185_v37 }
0x2830   : > { %19069 = vmatpush3.bf16.msra.mxu1 %v20186_v52  ;;  %19091 = vmatpush3.bf16.msra.mxu0 %v20187_v50 }
0x2831   : > { %19070 = vmatprep.subr.bf16.mxu1 %v20188_v7  ;;  %19092 = vmatprep.subr.bf16.mxu0 %v20189_v53 }
0x2834   : > { %19071 = vmatpush3.bf16.msra.mxu1 %v20190_v17  ;;  %19093 = vmatpush3.bf16.msra.mxu0 %v20191_v41 }
0x2835   : > { %19072 = vmatprep.subr.bf16.mxu1 %v20192_v11  ;;  %19094 = vmatprep.subr.bf16.mxu0 %v20193_v54 }
0x2838   : > { %19073 = vmatpush3.bf16.msra.mxu1 %v20194_v56  ;;  %19095 = vmatpush3.bf16.msra.mxu0 %v20195_v20 }
0x2839   : > { %19074 = vmatprep.subr.bf16.mxu1 %v20196_v18  ;;  %19096 = vmatprep.subr.bf16.mxu0 %v20197_v27 }
0x283c   : > { %19075 = vmatpush3.bf16.msra.mxu1 %v20198_v62  ;;  %19097 = vmatpush3.bf16.msra.mxu0 %v20199_v36 }
0x283d   : > { %19076 = vmatprep.subr.bf16.mxu1 %v20200_v31  ;;  %19098 = vmatprep.subr.bf16.mxu0 %v20201_v0 }
0x2840   : > { %19077 = vmatpush3.bf16.msra.mxu1 %v20202_v63  ;;  %19099 = vmatpush3.bf16.msra.mxu0 %v20203_v4 }
0x2841   : > { %19078 = vmatprep.subr.bf16.mxu1 %v20204_v51  ;;  %19100 = vmatprep.subr.bf16.mxu0 %v20205_v5 }
0x2844   : > { %19079 = vmatpush3.bf16.msra.mxu1 %v20206_v9  ;;  %19101 = vmatpush3.bf16.msra.mxu0 %v20207_v47  ;;  %v17935_v47 = vld [vmem:[%s23197_s7] ss:$0 sm:$0xff]  ;;  %s23201_s7 = smov 64  }
0x2845   : > { %19080 = vmatprep.subr.bf16.mxu1 %v20208_v15  ;;  %19102 = vmatprep.subr.bf16.mxu0 %v20209_v16 }
0x2848   : > { %19081 = vmatpush3.bf16.msra.mxu1 %v20210_v48  ;;  %19103 = vmatpush3.bf16.msra.mxu0 %v20211_v39 }
0x2849   : > { %19600 = vmatprep.subr.bf16.mxu1 %v20527_v1  ;;  %19608 = vmatprep.subr.bf16.mxu0 %v20527_v1 }
0x28f6   : > { %v19038_v13 = vpop.f32.mrb[164].mxu1  ;;  %v19060_v14 = vpop.f32.mrb[168].mxu0 }
0x28f7   : > { %v19039_v23 = vpop.f32.mrb[165].mxu1  ;;  %v19061_v19 = vpop.f32.mrb[169].mxu0 }
0x28f8   : > { %v19040_v2 = vadd.f32 %v19039_v23, %v19038_v13  ;;  %v19062_v59 = vadd.f32 %v19061_v19, %v19060_v14  ;;  %v19041_v55 = vpop.f32.mrb[166].mxu1  ;;  %v19063_v12 = vpop.f32.mrb[170].mxu0 }
0x28f9   : > { %v19042_v45 = vpop.f32.mrb[167].mxu1  ;;  %v19064_v25 = vpop.f32.mrb[171].mxu0  ;;  %v20213_v55 = vld [vmem:[%s23167_s23 + $0x18] sm:$0xff]  }
0x28fa   : > { %v11799_v26 = vadd.f32 %v19062_v59, %v19040_v2  ;;  %v20212_v59 = vld [vmem:[%s23167_s23 + $0x10] sm:$0xff]   ;;  %v17936_v25 = vld [vmem:[%s23199_s25] ss:$0 sm:$0xff] }
0x28fc   : > { %v11804_v58 = vadd.f32 %v11799_v26, %v22321_v3 }
0x28fe   : > { %v11909_v29 = vpop.f32.mrb[168].mxu1  ;;  %v11950_v10 = vpop.f32.mrb[172].mxu0 }
0x28ff   : > { %v11910_v49 = vadd.f32 %v11909_v29, %v11818_v28  ;;  %v11951_v21 = vadd.f32 %v11950_v10, %v11826_v35  ;;  %v11911_v40 = vpop.f32.mrb[169].mxu1  ;;  %v11952_v61 = vpop.f32.mrb[173].mxu0  ;;  %v17937_v28 = vld [vmem:[%s23200_s10] ss:$0 sm:$0xff] }
0x2900   : > { %v11912_v8 = vadd.f32 %v11911_v40, %v11822_v44  ;;  %v11953_v6 = vadd.f32 %v11952_v61, %v11830_v57  ;;  %v11913_v37 = vpop.f32.mrb[170].mxu1  ;;  %v11954_v52 = vpop.f32.mrb[174].mxu0  ;;  %v17943_v57 = vld [vmem:[%s23169_s28 + $0x1] ss:$0 sm:$0xff] }
0x2901   : > { %v11957_v50 = vmax.f32 %v11910_v49, 0.0  ;;  %v11959_v7 = vmax.f32 %v11951_v21, 0.0  ;;  %v11914_v53 = vpop.f32.mrb[171].mxu1  ;;  %v11955_v17 = vpop.f32.mrb[175].mxu0 }
0x2902   : > { %v11958_v41 = vmax.f32 %v11912_v8, 0.0  ;;  %v11960_v3 = vmax.f32 %v11953_v6, 0.0 }
0x2903   : > { %v11961_v56 = vpack.c.bf16 %v11957_v50, %v11957_v50  ;;  %v11963_v20 = vpack.c.bf16 %v11959_v7, %v11959_v7 }
0x2904   : > { %v11962_v11 = vpack.c.bf16 %v11958_v41, %v11958_v41  ;;  %v11964_v54 = vpack.c.bf16 %v11960_v3, %v11960_v3 }
0x2906   : > { %12253 = vmatprep.mubr.bf16.mxu1 %v11962_v11  ;;  %12293 = vmatprep.mubr.bf16.mxu0 %v11964_v54 }
0x2907   : > { %12254 = vmatmul.mubr.bf16.vlgmr.msra.gmra.mrb[172].mxu1 %v11961_v56  ;;  %12294 = vmatmul.mubr.bf16.vlgmr.msra.gmra.mrb[176].mxu0 %v11963_v20 }
0x2908   : > { %19604 = vmatprep.mubr.msk.bf16.mxu1 %vm20528_vm0, %v20527_v1  ;;  %19610 = vmatprep.mubr.msk.bf16.mxu0 %vm20528_vm0, %v20527_v1 }
0x2909   : > { %19601 = vmatpush3.bf16.msra.mxu1 %v20212_v59 }
0x290a   : > { %19602 = vmatprep.subr.bf16.mxu1 %v20527_v1 }
0x290d   : > { %19603 = vmatpush3.bf16.msra.mxu1 %v20213_v55 }
0x290e   : > { %19614 = vmatprep.subr.bf16.mxu1 %v20527_v1 }
0x29da   : > { %v19082_v18 = vpop.f32.mrb[172].mxu1  ;;  %v19104_v27 = vpop.f32.mrb[176].mxu0 }
0x29db   : > { %v19083_v62 = vpop.f32.mrb[173].mxu1  ;;  %v19105_v36 = vpop.f32.mrb[177].mxu0 }
0x29dc   : > { %v19084_v31 = vadd.f32 %v19083_v62, %v19082_v18  ;;  %v19106_v0 = vadd.f32 %v19105_v36, %v19104_v27  ;;  %v19085_v63 = vpop.f32.mrb[174].mxu1  ;;  %v19107_v4 = vpop.f32.mrb[178].mxu0 }
0x29dd   : > { %v19086_v51 = vpop.f32.mrb[175].mxu1  ;;  %v19108_v5 = vpop.f32.mrb[179].mxu0 }
0x29de   : > { %v12296_v9 = vadd.f32 %v19106_v0, %v19084_v31 }
0x29e0   : > { %v12301_v15 = vadd.f32 %v12296_v9, %v11804_v58 }
0x29e2   : > { %v12309_v16 = vadd.f32 %v17935_v47, %v12301_v15 }
0x29e4   : > { %v12310_v48 = vadd.f32 %v12309_v16, %v22150_v30 }
0x29e6   : > { %v12313_v39 = vsel %vm9041_vm9, %v12310_v48, 0.0 }
0x29e7   : > { %12314 = vadd.xlane.f32.xlu0 %v12313_v39 }
0x2a74   : > { %v12315_v13 = vpop.xlane.xlu0 %12314 }
0x2a75   : > { %v12316_v14 = vmul.f32 0.03125, %v12315_v13 }
0x2a77   : > { %v12317_v23 = vsub.f32 %v12310_v48, %v12316_v14 }
0x2a79   : > { %v12318_v19 = vmul.f32 %v12317_v23, %v12317_v23 }
0x2a7b   : > { %v12319_v2 = vsel %vm9041_vm9, %v12318_v19, 0.0 }
0x2a7c   : > { %12320 = vadd.xlane.f32.xlu1 %v12319_v2 }
0x2b09   : > { %v12321_v30 = vpop.xlane.xlu1 %12320 }
0x2b0a   : > { %v12322_v12 = vmul.f32 0.03125, %v12321_v30 }
0x2b0c   : > { %v12323_v24 = vadd.f32 1e-05, %v12322_v12 }
0x2b0e   : > { %20430 = vrsqrt.f32 %v12323_v24 }
0x2b18   : > { %v20431_v45 = vpop.eup %20430 }
0x2b19   : > { %v12325_v26 = vmul.f32 %v20431_v45, %v12317_v23 }
0x2b1b   : > { %v12332_v35 = vmul.f32 %v17936_v25, %v12325_v26 }
0x2b1d   : > { %v22389_v58 = vadd.f32 %v17937_v28, %v12332_v35 }
0x2b1f   : > { %v12340_v44 = vpack.c.bf16 %v22389_v58, %v22389_v58 }
0x2b21   : > { %19605 = vmatmul.mubr.msk.bf16.vlgmr.msra.gmra.mrb[176].mxu1 %vm1450_vm1, %v12340_v44 }
0x2b22   : > { %19616 = vmatprep.mubr.msk.bf16.mxu1 %vm20528_vm0, %v20527_v1 }
0x2bf4   : > { %v12403_v29 = vpop.f32.mrb[176].mxu1 }
0x2bf5   : > { %v22397_v10 = vadd.f32 %v17943_v57, %v12403_v29  ;;  %v19606_v49 = vpop.f32.mrb[177].mxu1 }
0x2bf6   : > { %v12406_v21 = vpop.f32.mrb[178].mxu1 }
0x2bf7   : > { %12424 = vrot.lane.b32.xlu1 %v22397_v10, %s23186_s16  ;;  %12421 = vrot.lane.b32.xlu0 %v22397_v10, %s23185_s3  ;;  %v19607_v40 = vpop.f32.mrb[179].mxu1 }
0x2bfb   : > { %12427 = vrot.lane.b32.xlu1 %v22397_v10, %s23187_s11  ;;  %12559 = vrot.lane.b32.xlu0 %v22397_v10, %s23189_s12 }
0x2c69   : > { %v22407_v61 = vpop.permute.xlu1 %12424  ;;  %v22409_v8 = vpop.permute.xlu0 %12421 }
0x2c6a   : > { %12563 = vrot.lane.b32.xlu0 %v22407_v61, %s23189_s12  ;;  %12561 = vrot.lane.b32.xlu1 %v22409_v8, %s23189_s12  ;;  %v12430_v50 = vcombine.low %v22397_v10, %v22407_v61  ;;  %v12431_v7 = vcombine.high %v22397_v10, %v22407_v61 }
0x2c6c   : > { %v12438_v3 = vrot.slane %v12430_v50, %v20835_v22  ;;  %v12445_v11 = vrot.slane %v12431_v7, %v20835_v22 }
0x2c6d   : > { %v22415_v6 = vpop.permute.xlu1 %12427  ;;  %v12560_v53 = vpop.permute.xlu0 %12559 }
0x2c6e   : > { %12565 = vrot.lane.b32.xlu1 %v22415_v6, %s23189_s12  ;;  %v12446_v37 = vcombine.low %v22409_v8, %v22415_v6  ;;  %v12447_v52 = vcombine.high %v22409_v8, %v22415_v6 }
0x2c70   : > { %v12454_v17 = vrot.slane %v12446_v37, %v20835_v22  ;;  %v12461_v41 = vrot.slane %v12447_v52, %v20835_v22 }
0x2c72   : > { %v12462_v20 = vcombine.low %v12438_v3, %v12454_v17  ;;  %v12463_v18 = vcombine.high %v12438_v3, %v12454_v17  ;;  %v12478_v27 = vcombine.low %v12445_v11, %v12461_v41 }
0x2c74   : > { %v12470_v4 = vrot.slane %v12462_v20, %v20846_v32  ;;  %v12477_v51 = vrot.slane %v12463_v18, %v20846_v32  ;;  %v12485_v5 = vrot.slane %v12478_v27, %v20846_v32 }
0x2c76   : > { %v12488_v14 = vcombine.low %v12470_v4, %v12477_v51  ;;  %v17954_v23 = vcombine.high %v12470_v4, %v12477_v51  ;;  %v12511_v19 = vcombine.high %v12485_v5, %v20527_v1  ;;  %v12510_v29 = vrot.slane %v12485_v5, %v20835_v22 }
0x2c78   : > { %v12495_v45 = vrot.slane %v12488_v14, %v20835_v22  ;;  %v12503_v25 = vrot.slane %v17954_v23, %v20835_v22  ;;  %v12518_v26 = vrot.slane %v12511_v19, %v20835_v22 }
0x2c7a   : > { %v12535_v52 = vcombine.low %v12510_v29, %v12518_v26  ;;  %v12520_v51 = vcombine.high %v12495_v45, %v12503_v25 }
0x2c7c   : > { %v12543_v18 = vrot.slane %v12535_v52, %v20846_v32 }
0x2cdc   : > { %v12562_v54 = vpop.permute.xlu1 %12561  ;;  %v12564_v56 = vpop.permute.xlu0 %12563 }
0x2cdd   : > { %v12571_v62 = vcombine.low %v12560_v53, %v12564_v56  ;;  %v12572_v36 = vcombine.high %v12560_v53, %v12564_v56  ;;  %v12519_v53 = vcombine.low %v12495_v45, %v12503_v25 }
0x2cdf   : > { %v12579_v9 = vrot.slane %v12571_v62, %v20835_v22  ;;  %v12586_v47 = vrot.slane %v12572_v36, %v20835_v22  ;;  %v12527_v20 = vrot.slane %v12519_v53, %v20846_v32 }
0x2ce0   : > { %v12566_v31 = vpop.permute.xlu1 %12565 }
0x2ce1   : > { %v12587_v0 = vcombine.low %v12562_v54, %v12566_v31  ;;  %v12588_v63 = vcombine.high %v12562_v54, %v12566_v31  ;;  %v12552_v4 = vcombine.high %v12527_v20, %v12543_v18 }
0x2ce3   : > { %v12595_v15 = vrot.slane %v12587_v0, %v20835_v22  ;;  %v12602_v16 = vrot.slane %v12588_v63, %v20835_v22  ;;  %v12536_v0 = vcombine.high %v12510_v29, %v12518_v26  ;;  %v12551_v63 = vcombine.low %v12527_v20, %v12543_v18 }
0x2ce5   : > { %v12603_v48 = vcombine.low %v12579_v9, %v12595_v15  ;;  %v12604_v39 = vcombine.high %v12579_v9, %v12595_v15  ;;  %v12619_v13 = vcombine.low %v12586_v47, %v12602_v16  ;;  %v12555_v47 = vpack.c.bf16 %v12551_v63, %v12551_v63 }
0x2ce6   : > { %v12556_v15 = vpack.c.bf16 %v12552_v4, %v12552_v4  ;;  %v12534_v16 = vrot.slane %v12520_v51, %v20846_v32 }
0x2ce7   : > { %v12611_v2 = vrot.slane %v12603_v48, %v20846_v32  ;;  %v12618_v59 = vrot.slane %v12604_v39, %v20846_v32  ;;  %v12626_v55 = vrot.slane %v12619_v13, %v20846_v32  ;;  %v12550_v48 = vrot.slane %v12536_v0, %v20846_v32 }
0x2ce9   : > { %v12629_v30 = vcombine.low %v12611_v2, %v12618_v59  ;;  %v17955_v12 = vcombine.high %v12611_v2, %v12618_v59  ;;  %v12652_v24 = vcombine.high %v12626_v55, %v20527_v1  ;;  %v12651_v44 = vrot.slane %v12626_v55, %v20835_v22 }
0x2cea   : > { %v12553_v14 = vcombine.low %v12534_v16, %v12550_v48  ;;  %v12554_v23 = vcombine.high %v12534_v16, %v12550_v48 }
0x2ceb   : > { %v12636_v28 = vrot.slane %v12629_v30, %v20835_v22  ;;  %v12644_v35 = vrot.slane %v17955_v12, %v20835_v22  ;;  %v12659_v57 = vrot.slane %v12652_v24, %v20835_v22 }
0x2cec   : > { %v12557_v19 = vpack.c.bf16 %v12553_v14, %v12553_v14  ;;  %v12558_v2 = vpack.c.bf16 %v12554_v23, %v12554_v23 }
0x2ced   : > { %v12660_v49 = vcombine.low %v12636_v28, %v12644_v35  ;;  %v12676_v21 = vcombine.low %v12651_v44, %v12659_v57  ;;  %v12661_v40 = vcombine.high %v12636_v28, %v12644_v35  ;;  %v12677_v37 = vcombine.high %v12651_v44, %v12659_v57 }
0x2cef   : > { %v12668_v50 = vrot.slane %v12660_v49, %v20846_v32  ;;  %v12684_v7 = vrot.slane %v12676_v21, %v20846_v32  ;;  %v12675_v3 = vrot.slane %v12661_v40, %v20846_v32  ;;  %v12691_v11 = vrot.slane %v12677_v37, %v20846_v32 }
0x2cf1   : > { %v12692_v17 = vcombine.low %v12668_v50, %v12684_v7  ;;  %v12693_v41 = vcombine.high %v12668_v50, %v12684_v7  ;;  %v12694_v36 = vcombine.low %v12675_v3, %v12691_v11  ;;  %v12695_v31 = vcombine.high %v12675_v3, %v12691_v11 }
0x2cf3   : > { %v12696_v54 = vpack.c.bf16 %v12692_v17, %v12692_v17  ;;  %v12697_v56 = vpack.c.bf16 %v12693_v41, %v12693_v41  ;;  %v12698_v5 = vpack.c.bf16 %v12694_v36, %v12694_v36  ;;  %v12699_v9 = vpack.c.bf16 %v12695_v31, %v12695_v31 }
0x2cf5   : > { %v12845_v27 = vsel %vm1955_vm2, %v12696_v54, 0  ;;  %v12891_v62 = vsel %vm1955_vm2, %v12697_v56, 0  ;;  %v12937_v39 = vsel %vm1955_vm2, %v12698_v5, 0  ;;  %v12983_v13 = vsel %vm1955_vm2, %v12699_v9, 0 }
0x2cf6   : > { %19609 = vmatpush3.bf16.xpose.msra.mxu0 %v12845_v27  ;;  %19615 = vmatpush3.bf16.xpose.msra.mxu1 %v12891_v62 }
0x2cf7   : > { %19620 = vmatprep.subr.bf16.mxu0 %v20527_v1  ;;  %19626 = vmatprep.subr.bf16.mxu1 %v20527_v1 }
0x2cfd   : > { %19611 = vmatmul.mubr.msk.bf16.vlgmr.msra.gmra.mrb[180].mxu0 %vm1955_vm2, %v12555_v47  ;;  %19617 = vmatmul.mubr.msk.bf16.vlgmr.msra.gmra.mrb[180].mxu1 %vm1955_vm2, %v12556_v15 }
0x2cfe   : > { %19621 = vmatpush3.bf16.xpose.msra.mxu0 %v12937_v39  ;;  %19627 = vmatpush3.bf16.xpose.msra.mxu1 %v12983_v13 }
0x2cff   : > { %19622 = vmatprep.mubr.msk.bf16.mxu0 %vm20528_vm0, %v20527_v1  ;;  %19628 = vmatprep.mubr.msk.bf16.mxu1 %vm20528_vm0, %v20527_v1 }
0x2d00   : > { %19632 = vmatprep.subr.bf16.mxu0 %v20527_v1  ;;  %19638 = vmatprep.subr.bf16.mxu1 %v20527_v1 }
0x2d05   : > { %19623 = vmatmul.mubr.msk.bf16.vlgmr.msra.gmra.mrb[184].mxu0 %vm1955_vm2, %v12557_v19  ;;  %19629 = vmatmul.mubr.msk.bf16.vlgmr.msra.gmra.mrb[184].mxu1 %vm1955_vm2, %v12558_v2 }
0x2d06   : > { %19634 = vmatprep.mubr.msk.bf16.mxu0 %vm20528_vm0, %v20527_v1  ;;  %19640 = vmatprep.mubr.msk.bf16.mxu1 %vm20528_vm0, %v20527_v1 }
0x2dd0   : > { %v12881_v59 = vpop.f32.mrb[180].mxu0  ;;  %v12927_v55 = vpop.f32.mrb[180].mxu1 }
0x2dd1   : > { %v13025_v30 = vmul.f32 0.35355338, %v12881_v59  ;;  %v13026_v12 = vmul.f32 0.35355338, %v12927_v55  ;;  %v19612_v24 = vpop.f32.mrb[181].mxu0  ;;  %v19618_v45 = vpop.f32.mrb[181].mxu1 }
0x2dd2   : > { %v12884_v25 = vpop.f32.mrb[182].mxu0  ;;  %v12930_v26 = vpop.f32.mrb[182].mxu1 }
0x2dd3   : > { %v13029_v28 = vadd.f32 %v13025_v30, %v21810_v46  ;;  %v13030_v35 = vadd.f32 %v13026_v12, %v21810_v46  ;;  %v19613_v44 = vpop.f32.mrb[183].mxu0  ;;  %v19619_v57 = vpop.f32.mrb[183].mxu1 }
0x2dd5   : > { %v13033_v29 = vsel %vm8603_vm6, %v13029_v28, -inf  ;;  %v13036_v49 = vsel %vm8603_vm6, %v13030_v35, -inf }
0x2dd6   : > { %13034 = vmax.xlane.f32.xlu0 %v13033_v29  ;;  %13037 = vmax.xlane.f32.xlu1 %v13036_v49 }
0x2dd8   : > { %v12973_v21 = vpop.f32.mrb[184].mxu0  ;;  %v13019_v40 = vpop.f32.mrb[184].mxu1 }
0x2dd9   : > { %v13027_v37 = vmul.f32 0.35355338, %v12973_v21  ;;  %v13028_v52 = vmul.f32 0.35355338, %v13019_v40  ;;  %v19624_v50 = vpop.f32.mrb[185].mxu0  ;;  %v19630_v7 = vpop.f32.mrb[185].mxu1 }
0x2dda   : > { %v12976_v53 = vpop.f32.mrb[186].mxu0  ;;  %v13022_v17 = vpop.f32.mrb[186].mxu1 }
0x2ddb   : > { %v13031_v41 = vadd.f32 %v13027_v37, %v21810_v46  ;;  %v19625_v3 = vpop.f32.mrb[187].mxu0  ;;  %v19631_v11 = vpop.f32.mrb[187].mxu1  ;;  %v13032_v54 = vadd.f32 %v13028_v52, %v21810_v46 }
0x2ddd   : > { %v13039_v56 = vsel %vm8603_vm6, %v13031_v41, -inf  ;;  %v13042_v20 = vsel %vm8603_vm6, %v13032_v54, -inf }
0x2dde   : > { %13040 = vmax.xlane.f32.xlu0 %v13039_v56 }
0x2de2   : > { %13043 = vmax.xlane.f32.xlu0 %v13042_v20 }
0x2de7   : > { %12700 = vrot.lane.b32.xlu1 %v22397_v10, %s23201_s7 }
0x2e63   : > { %v13035_v18 = vpop.xlane.xlu0 %13034  ;;  %v13038_v27 = vpop.xlane.xlu1 %13037 }
0x2e64   : > { %v13045_v62 = vsub.f32 %v13029_v28, %v13035_v18  ;;  %v13046_v36 = vsub.f32 %v13030_v35, %v13038_v27 }
0x2e66   : > { %v13049_v31 = vmul.f32 1.442695, %v13045_v62  ;;  %v13051_v0 = vmul.f32 1.442695, %v13046_v36 }
0x2e68   : > { %20432 = vpow2.f32 %v13049_v31 }
0x2e69   : > { %20434 = vpow2.f32 %v13051_v0 }
0x2e6b   : > { %v13041_v10 = vpop.xlane.xlu0 %13040 }
0x2e6c   : > { %v13047_v5 = vsub.f32 %v13031_v41, %v13041_v10 }
0x2e6e   : > { %v13053_v15 = vmul.f32 1.442695, %v13047_v5 }
0x2e6f   : > { %v13044_v9 = vpop.xlane.xlu0 %13043 }
0x2e70   : > { %v13048_v47 = vsub.f32 %v13032_v54, %v13044_v9  ;;  %20436 = vpow2.f32 %v13053_v15 }
0x2e72   : > { %v22489_v63 = vpop.eup %20432  ;;  %v13055_v16 = vmul.f32 1.442695, %v13048_v47 }
0x2e73   : > { %v22491_v46 = vpop.eup %20434  ;;  %v13057_v4 = vsel %vm8603_vm6, %v22489_v63, 0.0 }
0x2e74   : > { %13058 = vadd.xlane.f32.xlu1 %v13057_v4  ;;  %v13060_v51 = vsel %vm8603_vm6, %v22491_v46, 0.0  ;;  %20438 = vpow2.f32 %v13055_v16 }
0x2e75   : > { %13061 = vadd.xlane.f32.xlu0 %v13060_v51 }
0x2e7a   : > { %v22503_v48 = vpop.eup %20436 }
0x2e7e   : > { %v22505_v39 = vpop.eup %20438 }
0x2e85   : > { %12704 = vrot.lane.b32.xlu1 %v22407_v61, %s23201_s7  ;;  %v13063_v61 = vsel %vm8603_vm6, %v22503_v48, 0.0 }
0x2e89   : > { %12706 = vrot.lane.b32.xlu1 %v22415_v6, %s23201_s7  ;;  %v13066_v6 = vsel %vm8603_vm6, %v22505_v39, 0.0 }
0x2e8b   : > { %12702 = vrot.lane.b32.xlu0 %v22409_v8, %s23201_s7  ;;  %v12701_v8 = vpop.permute.xlu1 %12700 }
0x2eaa   : > { %13064 = vadd.xlane.f32.xlu0 %v13063_v61 }
0x2ead   : > { %13067 = vadd.xlane.f32.xlu1 %v13066_v6 }
0x2f01   : > { %v13059_v13 = vpop.xlane.xlu1 %13058 }
0x2f02   : > { %v13062_v14 = vpop.xlane.xlu0 %13061  ;;  %20440 = vrcp.f32 %v13059_v13 }
0x2f03   : > { %20442 = vrcp.f32 %v13062_v14 }
0x2f05   : > { %v12705_v23 = vpop.permute.xlu1 %12704 }
0x2f06   : > { %v12712_v19 = vcombine.low %v12701_v8, %v12705_v23  ;;  %v12713_v2 = vcombine.high %v12701_v8, %v12705_v23  ;;  %v12703_v59 = vpop.permute.xlu0 %12702 }
0x2f08   : > { %v12720_v24 = vrot.slane %v12712_v19, %v20835_v22  ;;  %v12727_v45 = vrot.slane %v12713_v2, %v20835_v22 }
0x2f09   : > { %v12707_v55 = vpop.permute.xlu1 %12706 }
0x2f0a   : > { %v12728_v30 = vcombine.low %v12703_v59, %v12707_v55  ;;  %v12729_v12 = vcombine.high %v12703_v59, %v12707_v55 }
0x2f0c   : > { %v12736_v25 = vrot.slane %v12728_v30, %v20835_v22  ;;  %v12743_v26 = vrot.slane %v12729_v12, %v20835_v22  ;;  %v20441_v54 = vpop.eup %20440 }
0x2f0d   : > { %v20443_v62 = vpop.eup %20442  ;;  %v13070_v51 = vmul.f32 %v20441_v54, %v22489_v63 }
0x2f0e   : > { %v12744_v28 = vcombine.low %v12720_v24, %v12736_v25  ;;  %v12745_v35 = vcombine.high %v12720_v24, %v12736_v25  ;;  %v12760_v44 = vcombine.low %v12727_v45, %v12743_v26  ;;  %v13072_v10 = vmul.f32 %v20443_v62, %v22491_v46 }
0x2f0f   : > { %v13077_v6 = vpack.c.bf16 %v13070_v51, %v13070_v51  ;;  %v20215_v51 = vld [vmem:[%s23172_s0 + $0x18] sm:$0xff]  }
0x2f10   : > { %v12752_v57 = vrot.slane %v12744_v28, %v20846_v32  ;;  %v12759_v29 = vrot.slane %v12745_v35, %v20846_v32  ;;  %v12767_v49 = vrot.slane %v12760_v44, %v20846_v32  ;;  %v13078_v8 = vpack.c.bf16 %v13072_v10, %v13072_v10 }
0x2f12   : > { %v12770_v21 = vcombine.low %v12752_v57, %v12759_v29  ;;  %v17956_v40 = vcombine.high %v12752_v57, %v12759_v29  ;;  %v12793_v37 = vcombine.high %v12767_v49, %v20527_v1  ;;  %v12792_v7 = vrot.slane %v12767_v49, %v20835_v22 }
0x2f14   : > { %v12777_v52 = vrot.slane %v12770_v21, %v20835_v22  ;;  %v12785_v50 = vrot.slane %v17956_v40, %v20835_v22  ;;  %v12800_v53 = vrot.slane %v12793_v37, %v20835_v22 }
0x2f16   : > { %v12801_v17 = vcombine.low %v12777_v52, %v12785_v50  ;;  %v12817_v41 = vcombine.low %v12792_v7, %v12800_v53  ;;  %v12802_v3 = vcombine.high %v12777_v52, %v12785_v50  ;;  %v12818_v11 = vcombine.high %v12792_v7, %v12800_v53 }
0x2f18   : > { %v12809_v56 = vrot.slane %v12801_v17, %v20846_v32  ;;  %v12825_v20 = vrot.slane %v12817_v41, %v20846_v32  ;;  %v12816_v18 = vrot.slane %v12802_v3, %v20846_v32  ;;  %v12832_v27 = vrot.slane %v12818_v11, %v20846_v32 }
0x2f1a   : > { %v12833_v36 = vcombine.low %v12809_v56, %v12825_v20  ;;  %v12834_v31 = vcombine.high %v12809_v56, %v12825_v20  ;;  %v12835_v0 = vcombine.low %v12816_v18, %v12832_v27  ;;  %v12836_v4 = vcombine.high %v12816_v18, %v12832_v27  ;;  %v20214_v18 = vld [vmem:[%s23172_s0 + $0x10] sm:$0xff]  }
0x2f1c   : > { %v12837_v5 = vpack.c.bf16 %v12833_v36, %v12833_v36  ;;  %v12838_v9 = vpack.c.bf16 %v12834_v31, %v12834_v31  ;;  %v12839_v16 = vpack.c.bf16 %v12835_v0, %v12835_v0  ;;  %v12840_v61 = vpack.c.bf16 %v12836_v4, %v12836_v4 }
0x2f1e   : > { %v13085_v47 = vsel %vm8656_vm7, %v12837_v5, 0  ;;  %v13131_v15 = vsel %vm8656_vm7, %v12838_v9, 0  ;;  %v13177_v63 = vsel %vm8656_vm7, %v12839_v16, 0  ;;  %v13223_v46 = vsel %vm8656_vm7, %v12840_v61, 0 }
0x2f1f   : > { %19633 = vmatpush3.bf16.msra.mxu0 %v13085_v47  ;;  %19639 = vmatpush3.bf16.msra.mxu1 %v13131_v15 }
0x2f20   : > { %19644 = vmatprep.subr.bf16.mxu0 %v20527_v1  ;;  %19650 = vmatprep.subr.bf16.mxu1 %v20527_v1 }
0x2f22   : > { %19635 = vmatmul.mubr.msk.bf16.vlgmr.msra.gmra.mrb[188].mxu0 %vm8652_vm8, %v13077_v6  ;;  %19641 = vmatmul.mubr.msk.bf16.vlgmr.msra.gmra.mrb[188].mxu1 %vm8652_vm8, %v13078_v8 }
0x2f23   : > { %19645 = vmatpush3.bf16.msra.mxu0 %v13177_v63  ;;  %19651 = vmatpush3.bf16.msra.mxu1 %v13223_v46 }
0x2f24   : > { %19646 = vmatprep.mubr.msk.bf16.mxu0 %vm20528_vm0, %v20527_v1  ;;  %19652 = vmatprep.mubr.msk.bf16.mxu1 %vm20528_vm0, %v20527_v1 }
0x2f25   : > { %19656 = vmatprep.subr.bf16.mxu0 %v20527_v1  ;;  %19664 = vmatprep.subr.bf16.mxu1 %v20527_v1 }
0x2f37   : > { %v13065_v13 = vpop.xlane.xlu0 %13064 }
0x2f38   : > { %20444 = vrcp.f32 %v13065_v13 }
0x2f3a   : > { %v13068_v14 = vpop.xlane.xlu1 %13067 }
0x2f3b   : > { %20446 = vrcp.f32 %v13068_v14 }
0x2f42   : > { %v20445_v23 = vpop.eup %20444 }
0x2f43   : > { %v13074_v19 = vmul.f32 %v20445_v23, %v22503_v48 }
0x2f45   : > { %v20447_v2 = vpop.eup %20446  ;;  %v13079_v59 = vpack.c.bf16 %v13074_v19, %v13074_v19 }
0x2f46   : > { %v13076_v55 = vmul.f32 %v20447_v2, %v22505_v39 }
0x2f47   : > { %19647 = vmatmul.mubr.msk.bf16.vlgmr.msra.gmra.mrb[192].mxu0 %vm8652_vm8, %v13079_v59 }
0x2f48   : > { %v13080_v30 = vpack.c.bf16 %v13076_v55, %v13076_v55  ;;  %19660 = vmatprep.mubr.msk.bf16.mxu0 %vm20528_vm0, %v20527_v1  ;;  %19657 = vmatpush3.bf16.msra.mxu0 %v20214_v18 }
0x2f49   : > { %19658 = vmatprep.subr.bf16.mxu0 %v20527_v1 }
0x2f4a   : > { %19653 = vmatmul.mubr.msk.bf16.vlgmr.msra.gmra.mrb[192].mxu1 %vm8652_vm8, %v13080_v30 }
0x2f4b   : > { %19668 = vmatprep.mubr.msk.bf16.mxu1 %vm20528_vm0, %v20527_v1 }
0x2f4c   : > { %19659 = vmatpush3.bf16.msra.mxu0 %v20215_v51 }
0x2f4d   : > { %19672 = vmatprep.subr.bf16.mxu0 %v20527_v1 }
0x2ff5   : > { %v13121_v12 = vpop.f32.mrb[188].mxu0  ;;  %v13167_v24 = vpop.f32.mrb[188].mxu1 }
0x2ff6   : > { %v19636_v45 = vpop.f32.mrb[189].mxu0  ;;  %v19642_v25 = vpop.f32.mrb[189].mxu1 }
0x2ff7   : > { %v13124_v48 = vpop.f32.mrb[190].mxu0  ;;  %v13170_v26 = vpop.f32.mrb[190].mxu1  ;;  %v20216_v25 = vld [vmem:[%s23177_s15 + $0x10] sm:$0xff]  }
0x2ff8   : > { %v19637_v28 = vpop.f32.mrb[191].mxu0  ;;  %v19643_v35 = vpop.f32.mrb[191].mxu1  ;;  %v20217_v26 = vld [vmem:[%s23177_s15 + $0x18] sm:$0xff]  }
0x2ff9   : > { %v17966_v28 = vld [vmem:[%s23176_s18 + $0x1] ss:$0 sm:$0xff] }
0x301a   : > { %v13213_v39 = vpop.f32.mrb[192].mxu0 }
0x301b   : > { %v13265_v44 = vcombine.low %v13121_v12, %v13213_v39  ;;  %v13266_v57 = vcombine.high %v13121_v12, %v13213_v39  ;;  %v19648_v29 = vpop.f32.mrb[193].mxu0 }
0x301c   : > { %v13216_v49 = vpop.f32.mrb[194].mxu0 }
0x301d   : > { %v19649_v21 = vpop.f32.mrb[195].mxu0  ;;  %v13259_v40 = vpop.f32.mrb[192].mxu1  ;;  %v13273_v53 = vrot.slane %v13265_v44, %v20835_v22  ;;  %v13280_v17 = vrot.slane %v13266_v57, %v20835_v22 }
0x301e   : > { %v13281_v37 = vcombine.low %v13167_v24, %v13259_v40  ;;  %v13282_v52 = vcombine.high %v13167_v24, %v13259_v40  ;;  %v19654_v50 = vpop.f32.mrb[193].mxu1 }
0x301f   : > { %v13262_v7 = vpop.f32.mrb[194].mxu1  ;;  %v17986_v50 = vld [vmem:[%s23183_s6 + $0x1] ss:$0 sm:$0xff] }
0x3020   : > { %v13289_v41 = vrot.slane %v13281_v37, %v20835_v22  ;;  %v13296_v3 = vrot.slane %v13282_v52, %v20835_v22  ;;  %v19655_v11 = vpop.f32.mrb[195].mxu1 }
0x3021   : > { %v20218_v11 = vld [vmem:[%s23178_s22 + $0x10] sm:$0xff]  }
0x3022   : > { %v13297_v54 = vcombine.low %v13273_v53, %v13289_v41  ;;  %v13298_v56 = vcombine.high %v13273_v53, %v13289_v41  ;;  %v13313_v20 = vcombine.low %v13280_v17, %v13296_v3  ;;  %19665 = vmatpush3.bf16.msra.mxu1 %v20218_v11  ;;  %v17977_v11 = vld [vmem:[%s23184_s8 + $0x1] ss:$0 sm:$0xff] }
0x3023   : > { %19666 = vmatprep.subr.bf16.mxu1 %v20527_v1 }
0x3024   : > { %v13305_v27 = vrot.slane %v13297_v54, %v20846_v32  ;;  %v13312_v62 = vrot.slane %v13298_v56, %v20846_v32  ;;  %v13320_v36 = vrot.slane %v13313_v20, %v20846_v32  ;;  %v20219_v54 = vld [vmem:[%s23178_s22 + $0x18] sm:$0xff]  }
0x3026   : > { %v13323_v31 = vcombine.low %v13305_v27, %v13312_v62  ;;  %v17965_v0 = vcombine.high %v13305_v27, %v13312_v62  ;;  %v13346_v4 = vcombine.high %v13320_v36, %v20527_v1  ;;  %v13345_v9 = vrot.slane %v13320_v36, %v20835_v22  ;;  %19667 = vmatpush3.bf16.msra.mxu1 %v20219_v54 }
0x3027   : > { %19680 = vmatprep.subr.bf16.mxu1 %v20527_v1 }
0x3028   : > { %v13330_v10 = vrot.slane %v13323_v31, %v20835_v22  ;;  %v13338_v5 = vrot.slane %v17965_v0, %v20835_v22  ;;  %v13353_v47 = vrot.slane %v13346_v4, %v20835_v22 }
0x302a   : > { %v13355_v15 = vcombine.high %v13330_v10, %v13338_v5  ;;  %v13371_v16 = vcombine.high %v13345_v9, %v13353_v47  ;;  %v13354_v61 = vcombine.low %v13330_v10, %v13338_v5  ;;  %v13370_v6 = vcombine.low %v13345_v9, %v13353_v47 }
0x302c   : > { %v13369_v8 = vrot.slane %v13355_v15, %v20846_v32  ;;  %v13385_v63 = vrot.slane %v13371_v16, %v20846_v32  ;;  %v13362_v46 = vrot.slane %v13354_v61, %v20846_v32  ;;  %v13378_v13 = vrot.slane %v13370_v6, %v20846_v32 }
0x302e   : > { %v13388_v14 = vcombine.low %v13369_v8, %v13385_v63  ;;  %v13387_v23 = vcombine.high %v13362_v46, %v13378_v13  ;;  %v13389_v19 = vcombine.high %v13369_v8, %v13385_v63  ;;  %v13386_v2 = vcombine.low %v13362_v46, %v13378_v13 }
0x3030   : > { %13395 = vrot.lane.b32.xlu1 %v13388_v14, %s23173_s1  ;;  %13391 = vrot.lane.b32.xlu0 %v13387_v23, %s23174_s2 }
0x3034   : > { %13399 = vrot.lane.b32.xlu0 %v13389_v19, %s23175_s26 }
0x30a2   : > { %v13392_v59 = vpop.permute.xlu0 %13391  ;;  %v13396_v55 = vpop.permute.xlu1 %13395 }
0x30a3   : > { %v13402_v30 = vsel %vm1955_vm2, %v13386_v2, %v13392_v59 }
0x30a4   : > { %v13403_v24 = vsel %vm2530_vm4, %v13402_v30, %v13396_v55  ;;  %v17970_v55 = vld [vmem:[%s23181_s4 + $0x1] ss:$0 sm:$0xff] }
0x30a6   : > { %v13400_v12 = vpop.permute.xlu0 %13399 }
0x30a7   : > { %v13404_v45 = vsel %vm2532_vm5, %v13403_v24, %v13400_v12 }
0x30a8   : > { %v13405_v48 = vpack.c.bf16 %v13404_v45, %v13404_v45 }
0x30aa   : > { %19661 = vmatmul.mubr.msk.bf16.vlgmr.msra.gmra.mrb[196].mxu0 %vm1450_vm1, %v13405_v48  ;;  %v17971_v48 = vld [vmem:[%s23182_s5 + $0x1] ss:$0 sm:$0xff] }
0x30ab   : > { %19673 = vmatpush3.bf16.msra.mxu0 %v20216_v25  ;;  %19676 = vmatprep.mubr.msk.bf16.mxu0 %vm20528_vm0, %v20527_v1 }
0x30ac   : > { %19674 = vmatprep.subr.bf16.mxu0 %v20527_v1 }
0x30af   : > { %19675 = vmatpush3.bf16.msra.mxu0 %v20217_v26 }
0x30b0   : > { %19686 = vmatprep.subr.bf16.mxu0 %v20527_v1 }
0x30b2   : > { %19677 = vmatmul.mubr.msk.bf16.vlgmr.msra.gmra.mrb[200].mxu0 %vm1450_vm1, %v21938_v60 }
0x30b3   : > { %19688 = vmatprep.mubr.msk.bf16.mxu0 %vm20528_vm0, %v20527_v1 }
0x317d   : > { %v13461_v35 = vpop.f32.mrb[196].mxu0 }
0x317e   : > { %v13462_v39 = vadd.f32 %v17966_v28, %v13461_v35  ;;  %v19662_v44 = vpop.f32.mrb[197].mxu0 }
0x317f   : > { %v13464_v57 = vpop.f32.mrb[198].mxu0 }
0x3180   : > { %v13467_v29 = vadd.f32 %v13462_v39, %v22389_v58  ;;  %v19663_v49 = vpop.f32.mrb[199].mxu0 }
0x3182   : > { %v13468_v21 = vsel %vm9041_vm9, %v13467_v29, 0.0 }
0x3183   : > { %13469 = vadd.xlane.f32.xlu1 %v13468_v21 }
0x3185   : > { %v13623_v40 = vpop.f32.mrb[200].mxu0 }
0x3186   : > { %v19678_v37 = vpop.f32.mrb[201].mxu0  ;;  %v22592_v7 = vadd.f32 %v17986_v50, %v13623_v40 }
0x3187   : > { %v13626_v52 = vpop.f32.mrb[202].mxu0 }
0x3188   : > { %v19679_v60 = vpop.f32.mrb[203].mxu0 }
0x3194   : > { %13783 = vrot.lane.b32.xlu1 %v22592_v7, %s23186_s16 }
0x3198   : > { %13786 = vrot.lane.b32.xlu1 %v22592_v7, %s23187_s11 }
0x3210   : > { %v13470_v58 = vpop.xlane.xlu1 %13469 }
0x3211   : > { %v13471_v53 = vmul.f32 0.03125, %v13470_v58 }
0x3213   : > { %v13472_v17 = vsub.f32 %v13467_v29, %v13471_v53 }
0x3214   : > { %v22605_v56 = vpop.permute.xlu1 %13783 }
0x3215   : > { %v13473_v41 = vmul.f32 %v13472_v17, %v13472_v17  ;;  %v13789_v27 = vcombine.low %v22592_v7, %v22605_v56  ;;  %v13790_v62 = vcombine.high %v22592_v7, %v22605_v56 }
0x3217   : > { %v13474_v3 = vsel %vm9041_vm9, %v13473_v41, 0.0  ;;  %v13797_v10 = vrot.slane %v13789_v27, %v20835_v22  ;;  %v13804_v5 = vrot.slane %v13790_v62, %v20835_v22 }
0x3218   : > { %13475 = vadd.xlane.f32.xlu0 %v13474_v3  ;;  %v22611_v31 = vpop.permute.xlu1 %13786 }
0x322e   : > { %13780 = vrot.lane.b32.xlu0 %v22592_v7, %s23185_s3 }
0x32a5   : > { %v13476_v20 = vpop.xlane.xlu0 %13475 }
0x32a6   : > { %v13477_v18 = vmul.f32 0.03125, %v13476_v20 }
0x32a8   : > { %v13478_v36 = vadd.f32 1e-05, %v13477_v18 }
0x32a9   : > { %v22613_v0 = vpop.permute.xlu0 %13780 }
0x32aa   : > { %20448 = vrsqrt.f32 %v13478_v36  ;;  %v13805_v4 = vcombine.low %v22613_v0, %v22611_v31  ;;  %v13806_v51 = vcombine.high %v22613_v0, %v22611_v31 }
0x32ac   : > { %v13813_v9 = vrot.slane %v13805_v4, %v20835_v22  ;;  %v13820_v47 = vrot.slane %v13806_v51, %v20835_v22 }
0x32ae   : > { %v13821_v15 = vcombine.low %v13797_v10, %v13813_v9  ;;  %v13822_v16 = vcombine.high %v13797_v10, %v13813_v9  ;;  %v13837_v61 = vcombine.low %v13804_v5, %v13820_v47  ;;  %v13838_v6 = vcombine.high %v13804_v5, %v13820_v47 }
0x32b0   : > { %v13829_v8 = vrot.slane %v13821_v15, %v20846_v32  ;;  %v13836_v63 = vrot.slane %v13822_v16, %v20846_v32  ;;  %v13845_v46 = vrot.slane %v13837_v61, %v20846_v32  ;;  %v13852_v13 = vrot.slane %v13838_v6, %v20846_v32 }
0x32b2   : > { %v13857_v14 = vcombine.low %v13829_v8, %v13836_v63  ;;  %v17998_v23 = vcombine.high %v13829_v8, %v13836_v63  ;;  %v13873_v19 = vcombine.low %v13845_v46, %v13852_v13  ;;  %v17999_v2 = vcombine.high %v13845_v46, %v13852_v13 }
0x32b4   : > { %v20449_v59 = vpop.eup %20448  ;;  %v13864_v30 = vrot.slane %v13857_v14, %v20835_v22  ;;  %v13872_v12 = vrot.slane %v17998_v23, %v20835_v22  ;;  %v13880_v24 = vrot.slane %v13873_v19, %v20835_v22  ;;  %v13888_v45 = vrot.slane %v17999_v2, %v20835_v22 }
0x32b5   : > { %v13480_v25 = vmul.f32 %v20449_v59, %v13472_v17 }
0x32b6   : > { %v13889_v26 = vcombine.low %v13864_v30, %v13872_v12  ;;  %v13905_v28 = vcombine.low %v13880_v24, %v13888_v45  ;;  %v13890_v35 = vcombine.high %v13864_v30, %v13872_v12  ;;  %v13906_v39 = vcombine.high %v13880_v24, %v13888_v45 }
0x32b7   : > { %v13487_v44 = vmul.f32 %v17970_v55, %v13480_v25 }
0x32b8   : > { %v13897_v57 = vrot.slane %v13889_v26, %v20846_v32  ;;  %v13913_v29 = vrot.slane %v13905_v28, %v20846_v32  ;;  %v13904_v49 = vrot.slane %v13890_v35, %v20846_v32  ;;  %v13920_v21 = vrot.slane %v13906_v39, %v20846_v32 }
0x32b9   : > { %v22637_v40 = vadd.f32 %v17971_v48, %v13487_v44 }
0x32ba   : > { %v13921_v37 = vcombine.low %v13897_v57, %v13913_v29  ;;  %v13922_v52 = vcombine.high %v13897_v57, %v13913_v29  ;;  %v22639_v60 = vcombine.low %v13904_v49, %v13920_v21  ;;  %v22641_v50 = vcombine.high %v13904_v49, %v13920_v21 }
0x32bb   : > { %v13495_v58 = vpack.c.bf16 %v22637_v40, %v22637_v40 }
0x32bc   : > { %v13925_v53 = vpack.c.bf16 %v13921_v37, %v13921_v37  ;;  %v13926_v17 = vpack.c.bf16 %v13922_v52, %v13922_v52  ;;  %v13927_v57 = vpack.c.bf16 %v22639_v60, %v22639_v60  ;;  %v13928_v29 = vpack.c.bf16 %v22641_v50, %v22641_v50 }
0x32bd   : > { %19669 = vmatmul.mubr.msk.bf16.vlgmr.msra.gmra.mrb[196].mxu1 %vm1450_vm1, %v13495_v58 }
0x32be   : > { %v14085_v41 = vsel %vm1955_vm2, %v13925_v53, 0  ;;  %v14131_v3 = vsel %vm1955_vm2, %v13926_v17, 0  ;;  %19682 = vmatprep.mubr.msk.bf16.mxu1 %vm20528_vm0, %v20527_v1  ;;  %v14177_v58 = vsel %vm1955_vm2, %v13927_v57, 0  ;;  %v14223_v53 = vsel %vm1955_vm2, %v13928_v29, 0 }
0x32bf   : > { %19681 = vmatpush3.bf16.xpose.msra.mxu1 %v14085_v41  ;;  %19687 = vmatpush3.bf16.xpose.msra.mxu0 %v14131_v3 }
0x32c0   : > { %19692 = vmatprep.subr.bf16.mxu1 %v20527_v1  ;;  %19698 = vmatprep.subr.bf16.mxu0 %v20527_v1 }
0x3390   : > { %v13558_v54 = vpop.f32.mrb[196].mxu1 }
0x3391   : > { %v13559_v20 = vadd.f32 %v17977_v11, %v13558_v54  ;;  %v19670_v18 = vpop.f32.mrb[197].mxu1 }
0x3392   : > { %v13561_v27 = vpop.f32.mrb[198].mxu1 }
0x3393   : > { %13644 = vrot.lane.b32.xlu1 %v13559_v20, %s23186_s16  ;;  %13641 = vrot.lane.b32.xlu0 %v13559_v20, %s23185_s3  ;;  %v19671_v62 = vpop.f32.mrb[199].mxu1 }
0x3397   : > { %13647 = vrot.lane.b32.xlu0 %v13559_v20, %s23187_s11  ;;  %s23204_s11 = sld [smem:[#allocation44_spill]] }
0x3405   : > { %v13645_v36 = vpop.permute.xlu1 %13644  ;;  %v13642_v4 = vpop.permute.xlu0 %13641 }
0x3406   : > { %v13650_v51 = vcombine.low %v13559_v20, %v13645_v36  ;;  %v13651_v10 = vcombine.high %v13559_v20, %v13645_v36 }
0x3408   : > { %v13658_v15 = vrot.slane %v13650_v51, %v20835_v22  ;;  %v13665_v16 = vrot.slane %v13651_v10, %v20835_v22 }
0x3409   : > { %v13648_v5 = vpop.permute.xlu0 %13647 }
0x340a   : > { %v13666_v9 = vcombine.low %v13642_v4, %v13648_v5  ;;  %v13667_v47 = vcombine.high %v13642_v4, %v13648_v5  ;;  %v20473_v4 = vld [vmem:[%s22032_s13] ss:$0 sm:$0xff]  ;;  %s23202_s13 = sld [smem:[#allocation43_spill]] }
0x340c   : > { %v13674_v61 = vrot.slane %v13666_v9, %v20835_v22  ;;  %v13681_v6 = vrot.slane %v13667_v47, %v20835_v22 }
0x340e   : > { %v13682_v8 = vcombine.low %v13658_v15, %v13674_v61  ;;  %v13683_v63 = vcombine.high %v13658_v15, %v13674_v61  ;;  %v13698_v46 = vcombine.low %v13665_v16, %v13681_v6 }
0x3410   : > { %v13690_v13 = vrot.slane %v13682_v8, %v20846_v32  ;;  %v13697_v14 = vrot.slane %v13683_v63, %v20846_v32  ;;  %v13705_v23 = vrot.slane %v13698_v46, %v20846_v32 }
0x3412   : > { %v13708_v19 = vcombine.low %v13690_v13, %v13697_v14  ;;  %v17997_v2 = vcombine.high %v13690_v13, %v13697_v14  ;;  %v13731_v59 = vcombine.high %v13705_v23, %v20527_v1  ;;  %v13730_v12 = vrot.slane %v13705_v23, %v20835_v22 }
0x3414   : > { %v13715_v55 = vrot.slane %v13708_v19, %v20835_v22  ;;  %v13723_v30 = vrot.slane %v17997_v2, %v20835_v22  ;;  %v13738_v24 = vrot.slane %v13731_v59, %v20835_v22 }
0x3416   : > { %v13739_v45 = vcombine.low %v13715_v55, %v13723_v30  ;;  %v13755_v25 = vcombine.low %v13730_v12, %v13738_v24  ;;  %v13740_v48 = vcombine.high %v13715_v55, %v13723_v30  ;;  %v13756_v26 = vcombine.high %v13730_v12, %v13738_v24 }
0x3418   : > { %v13763_v28 = vrot.slane %v13755_v25, %v20846_v32  ;;  %v13747_v35 = vrot.slane %v13739_v45, %v20846_v32  ;;  %v13770_v49 = vrot.slane %v13756_v26, %v20846_v32  ;;  %v13754_v52 = vrot.slane %v13740_v48, %v20846_v32 }
0x341a   : > { %v13771_v39 = vcombine.low %v13747_v35, %v13763_v28  ;;  %v13772_v44 = vcombine.high %v13747_v35, %v13763_v28  ;;  %v13773_v60 = vcombine.low %v13754_v52, %v13770_v49  ;;  %v13774_v50 = vcombine.high %v13754_v52, %v13770_v49 }
0x341c   : > { %v13775_v21 = vpack.c.bf16 %v13771_v39, %v13771_v39  ;;  %v13776_v37 = vpack.c.bf16 %v13772_v44, %v13772_v44  ;;  %v13777_v17 = vpack.c.bf16 %v13773_v60, %v13773_v60  ;;  %v13778_v41 = vpack.c.bf16 %v13774_v50, %v13774_v50 }
0x341e   : > { %19683 = vmatmul.mubr.msk.bf16.vlgmr.msra.gmra.mrb[200].mxu1 %vm1955_vm2, %v13775_v21  ;;  %19689 = vmatmul.mubr.msk.bf16.vlgmr.msra.gmra.mrb[204].mxu0 %vm1955_vm2, %v13776_v37 }
0x341f   : > { %19693 = vmatpush3.bf16.xpose.msra.mxu1 %v14177_v58  ;;  %19699 = vmatpush3.bf16.xpose.msra.mxu0 %v14223_v53 }
0x3420   : > { %19694 = vmatprep.mubr.msk.bf16.mxu1 %vm20528_vm0, %v20527_v1  ;;  %19700 = vmatprep.mubr.msk.bf16.mxu0 %vm20528_vm0, %v20527_v1 }
0x3421   : > { %19704 = vmatprep.subr.bf16.mxu1 %v20527_v1  ;;  %19710 = vmatprep.subr.bf16.mxu0 %v20527_v1 }
0x3426   : > { %19695 = vmatmul.mubr.msk.bf16.vlgmr.msra.gmra.mrb[204].mxu1 %vm1955_vm2, %v13777_v17  ;;  %19701 = vmatmul.mubr.msk.bf16.vlgmr.msra.gmra.mrb[208].mxu0 %vm1955_vm2, %v13778_v41 }
0x3427   : > { %19706 = vmatprep.mubr.msk.bf16.mxu1 %vm20528_vm0, %v20527_v1  ;;  %19712 = vmatprep.mubr.msk.bf16.mxu0 %vm20528_vm0, %v20527_v1 }
0x34f1   : > { %v14121_v3 = vpop.f32.mrb[200].mxu1  ;;  %v14167_v11 = vpop.f32.mrb[204].mxu0 }
0x34f2   : > { %v14265_v54 = vmul.f32 0.35355338, %v14121_v3  ;;  %v14266_v20 = vmul.f32 0.35355338, %v14167_v11  ;;  %v19684_v18 = vpop.f32.mrb[201].mxu1  ;;  %v19690_v27 = vpop.f32.mrb[205].mxu0 }
0x34f3   : > { %v14124_v62 = vpop.f32.mrb[202].mxu1  ;;  %v14170_v36 = vpop.f32.mrb[206].mxu0 }
0x34f4   : > { %v14269_v51 = vadd.f32 %v20473_v4, %v14265_v54  ;;  %v14270_v10 = vadd.f32 %v20473_v4, %v14266_v20  ;;  %v19685_v5 = vpop.f32.mrb[203].mxu1  ;;  %v19691_v9 = vpop.f32.mrb[207].mxu0 }
0x34f6   : > { %v14276_v47 = vsel %vm9849_vm10, %v14270_v10, -inf  ;;  %v14273_v15 = vsel %vm9849_vm10, %v14269_v51, -inf }
0x34f7   : > { %14277 = vmax.xlane.f32.xlu0 %v14276_v47  ;;  %14274 = vmax.xlane.f32.xlu1 %v14273_v15 }
0x34f9   : > { %v14213_v16 = vpop.f32.mrb[204].mxu1  ;;  %v14259_v61 = vpop.f32.mrb[208].mxu0 }
0x34fa   : > { %v14267_v6 = vmul.f32 0.35355338, %v14213_v16  ;;  %v14268_v8 = vmul.f32 0.35355338, %v14259_v61  ;;  %v19696_v63 = vpop.f32.mrb[205].mxu1  ;;  %v19702_v46 = vpop.f32.mrb[209].mxu0 }
0x34fb   : > { %v14216_v13 = vpop.f32.mrb[206].mxu1  ;;  %v14262_v14 = vpop.f32.mrb[210].mxu0 }
0x34fc   : > { %v14271_v23 = vadd.f32 %v20473_v4, %v14267_v6  ;;  %v14272_v19 = vadd.f32 %v20473_v4, %v14268_v8  ;;  %v19697_v2 = vpop.f32.mrb[207].mxu1  ;;  %v19703_v59 = vpop.f32.mrb[211].mxu0 }
0x34fe   : > { %v14282_v55 = vsel %vm9849_vm10, %v14272_v19, -inf  ;;  %v14279_v30 = vsel %vm9849_vm10, %v14271_v23, -inf }
0x34ff   : > { %14283 = vmax.xlane.f32.xlu1 %v14282_v55  ;;  %14280 = vmax.xlane.f32.xlu0 %v14279_v30 }
0x3510   : > { %13931 = vrot.lane.b32.xlu1 %v22613_v0, %s23189_s12 }
0x3515   : > { %13929 = vrot.lane.b32.xlu0 %v22592_v7, %s23189_s12 }
0x3584   : > { %v14278_v12 = vpop.xlane.xlu0 %14277  ;;  %v14275_v24 = vpop.xlane.xlu1 %14274 }
0x3585   : > { %v14286_v45 = vsub.f32 %v14270_v10, %v14278_v12  ;;  %v14285_v25 = vsub.f32 %v14269_v51, %v14275_v24 }
0x3587   : > { %v14291_v48 = vmul.f32 1.442695, %v14286_v45  ;;  %v14289_v26 = vmul.f32 1.442695, %v14285_v25 }
0x3589   : > { %20450 = vpow2.f32 %v14291_v48 }
0x358a   : > { %20452 = vpow2.f32 %v14289_v26 }
0x358c   : > { %v14281_v7 = vpop.xlane.xlu0 %14280  ;;  %v14284_v44 = vpop.xlane.xlu1 %14283 }
0x358d   : > { %v14287_v57 = vsub.f32 %v14271_v23, %v14281_v7  ;;  %v14288_v29 = vsub.f32 %v14272_v19, %v14284_v44 }
0x358f   : > { %v14293_v49 = vmul.f32 1.442695, %v14287_v57  ;;  %v14295_v21 = vmul.f32 1.442695, %v14288_v29 }
0x3590   : > { %v13930_v53 = vpop.permute.xlu0 %13929 }
0x3591   : > { %20454 = vpow2.f32 %v14293_v49 }
0x3592   : > { %20456 = vpow2.f32 %v14295_v21 }
0x3593   : > { %v22701_v28 = vpop.eup %20450 }
0x3594   : > { %v22703_v35 = vpop.eup %20452  ;;  %v14300_v39 = vsel %vm9849_vm10, %v22701_v28, 0.0 }
0x3595   : > { %14301 = vadd.xlane.f32.xlu1 %v14300_v39  ;;  %v14297_v0 = vsel %vm9849_vm10, %v22703_v35, 0.0 }
0x3596   : > { %14298 = vadd.xlane.f32.xlu0 %v14297_v0 }
0x359b   : > { %v22713_v37 = vpop.eup %20454 }
0x359c   : > { %v22715_v52 = vpop.eup %20456  ;;  %v14303_v58 = vsel %vm9849_vm10, %v22713_v37, 0.0 }
0x35a6   : > { %13933 = vrot.lane.b32.xlu1 %v22605_v56, %s23189_s12  ;;  %v14306_v56 = vsel %vm9849_vm10, %v22715_v52, 0.0 }
0x35ac   : > { %13935 = vrot.lane.b32.xlu0 %v22611_v31, %s23189_s12  ;;  %v13932_v31 = vpop.permute.xlu1 %13931 }
0x35ca   : > { %14304 = vadd.xlane.f32.xlu1 %v14303_v58 }
0x35cb   : > { %14307 = vadd.xlane.f32.xlu0 %v14306_v56 }
0x3622   : > { %v14302_v60 = vpop.xlane.xlu1 %14301 }
0x3623   : > { %v14299_v50 = vpop.xlane.xlu0 %14298  ;;  %20458 = vrcp.f32 %v14302_v60 }
0x3624   : > { %20460 = vrcp.f32 %v14299_v50 }
0x3626   : > { %v13934_v17 = vpop.permute.xlu1 %13933 }
0x3627   : > { %v13941_v41 = vcombine.low %v13930_v53, %v13934_v17  ;;  %v13942_v3 = vcombine.high %v13930_v53, %v13934_v17  ;;  %v13936_v11 = vpop.permute.xlu0 %13935 }
0x3628   : > { %v13957_v54 = vcombine.low %v13932_v31, %v13936_v11  ;;  %v13958_v20 = vcombine.high %v13932_v31, %v13936_v11 }
0x3629   : > { %v13949_v18 = vrot.slane %v13941_v41, %v20835_v22  ;;  %v13956_v27 = vrot.slane %v13942_v3, %v20835_v22 }
0x362a   : > { %v13965_v62 = vrot.slane %v13957_v54, %v20835_v22  ;;  %v13972_v36 = vrot.slane %v13958_v20, %v20835_v22 }
0x362c   : > { %v13973_v4 = vcombine.low %v13949_v18, %v13965_v62  ;;  %v13974_v51 = vcombine.high %v13949_v18, %v13965_v62  ;;  %v13989_v10 = vcombine.low %v13956_v27, %v13972_v36  ;;  %v13990_v5 = vcombine.high %v13956_v27, %v13972_v36 }
0x362d   : > { %v20459_v24 = vpop.eup %20458 }
0x362e   : > { %v13981_v9 = vrot.slane %v13973_v4, %v20846_v32  ;;  %v13988_v47 = vrot.slane %v13974_v51, %v20846_v32  ;;  %v13997_v15 = vrot.slane %v13989_v10, %v20846_v32  ;;  %v14004_v16 = vrot.slane %v13990_v5, %v20846_v32  ;;  %v20461_v48 = vpop.eup %20460 }
0x362f   : > { %v14312_v44 = vmul.f32 %v20459_v24, %v22701_v28  ;;  %v14310_v57 = vmul.f32 %v20461_v48, %v22703_v35  ;;  %v20220_v24 = vld [vmem:[%s23190_s14 + $0x10] sm:$0xff]  }
0x3630   : > { %v14009_v61 = vcombine.low %v13981_v9, %v13988_v47  ;;  %v18000_v6 = vcombine.high %v13981_v9, %v13988_v47  ;;  %v14025_v8 = vcombine.low %v13997_v15, %v14004_v16  ;;  %v18001_v63 = vcombine.high %v13997_v15, %v14004_v16 }
0x3631   : > { %v14317_v53 = vpack.c.bf16 %v14310_v57, %v14310_v57  ;;  %v14318_v60 = vpack.c.bf16 %v14312_v44, %v14312_v44 }
0x3632   : > { %v14016_v46 = vrot.slane %v14009_v61, %v20835_v22  ;;  %v14024_v13 = vrot.slane %v18000_v6, %v20835_v22  ;;  %v14032_v14 = vrot.slane %v14025_v8, %v20835_v22  ;;  %v14040_v23 = vrot.slane %v18001_v63, %v20835_v22 }
0x3634   : > { %v14041_v19 = vcombine.low %v14016_v46, %v14024_v13  ;;  %v14042_v2 = vcombine.high %v14016_v46, %v14024_v13  ;;  %v14057_v59 = vcombine.low %v14032_v14, %v14040_v23  ;;  %v14058_v55 = vcombine.high %v14032_v14, %v14040_v23 }
0x3636   : > { %v14049_v30 = vrot.slane %v14041_v19, %v20846_v32  ;;  %v14056_v12 = vrot.slane %v14042_v2, %v20846_v32  ;;  %v14065_v45 = vrot.slane %v14057_v59, %v20846_v32  ;;  %v14072_v25 = vrot.slane %v14058_v55, %v20846_v32 }
0x3638   : > { %v14073_v26 = vcombine.low %v14049_v30, %v14065_v45  ;;  %v14074_v39 = vcombine.high %v14049_v30, %v14065_v45  ;;  %v14075_v0 = vcombine.low %v14056_v12, %v14072_v25  ;;  %v14076_v7 = vcombine.high %v14056_v12, %v14072_v25 }
0x363a   : > { %v14077_v29 = vpack.c.bf16 %v14073_v26, %v14073_v26  ;;  %v14078_v49 = vpack.c.bf16 %v14074_v39, %v14074_v39  ;;  %v14079_v56 = vpack.c.bf16 %v14075_v0, %v14075_v0  ;;  %v14080_v31 = vpack.c.bf16 %v14076_v7, %v14076_v7  ;;  %v20221_v7 = vld [vmem:[%s23190_s14 + $0x18] sm:$0xff]  }
0x363c   : > { %v14325_v21 = vsel %vm2199_vm3, %v14077_v29, 0  ;;  %v14371_v58 = vsel %vm2199_vm3, %v14078_v49, 0  ;;  %v14417_v28 = vsel %vm2199_vm3, %v14079_v56, 0  ;;  %v14463_v35 = vsel %vm2199_vm3, %v14080_v31, 0 }
0x363d   : > { %19705 = vmatpush3.bf16.msra.mxu1 %v14325_v21  ;;  %19711 = vmatpush3.bf16.msra.mxu0 %v14371_v58 }
0x363e   : > { %19716 = vmatprep.subr.bf16.mxu1 %v20527_v1  ;;  %19722 = vmatprep.subr.bf16.mxu0 %v20527_v1 }
0x3640   : > { %19707 = vmatmul.mubr.msk.bf16.vlgmr.msra.gmra.mrb[208].mxu1 %vm1955_vm2, %v14317_v53  ;;  %19713 = vmatmul.mubr.msk.bf16.vlgmr.msra.gmra.mrb[212].mxu0 %vm1955_vm2, %v14318_v60 }
0x3641   : > { %19717 = vmatpush3.bf16.msra.mxu1 %v14417_v28  ;;  %19723 = vmatpush3.bf16.msra.mxu0 %v14463_v35 }
0x3642   : > { %19718 = vmatprep.mubr.msk.bf16.mxu1 %vm20528_vm0, %v20527_v1  ;;  %19724 = vmatprep.mubr.msk.bf16.mxu0 %vm20528_vm0, %v20527_v1 }
0x3643   : > { %19728 = vmatprep.subr.bf16.mxu1 %v20527_v1 }
0x3657   : > { %v14305_v50 = vpop.xlane.xlu1 %14304 }
0x3658   : > { %20462 = vrcp.f32 %v14305_v50  ;;  %v14308_v17 = vpop.xlane.xlu0 %14307 }
0x3659   : > { %20464 = vrcp.f32 %v14308_v17 }
0x3662   : > { %v20463_v41 = vpop.eup %20462 }
0x3663   : > { %v20465_v3 = vpop.eup %20464  ;;  %v14314_v11 = vmul.f32 %v20463_v41, %v22713_v37 }
0x3664   : > { %v14316_v54 = vmul.f32 %v20465_v3, %v22715_v52 }
0x3665   : > { %v14319_v20 = vpack.c.bf16 %v14314_v11, %v14314_v11 }
0x3666   : > { %v14320_v18 = vpack.c.bf16 %v14316_v54, %v14316_v54 }
0x3667   : > { %19719 = vmatmul.mubr.msk.bf16.vlgmr.msra.gmra.mrb[212].mxu1 %vm1955_vm2, %v14319_v20 }
0x3668   : > { %19725 = vmatmul.mubr.msk.bf16.vlgmr.msra.gmra.mrb[216].mxu0 %vm1955_vm2, %v14320_v18  ;;  %19732 = vmatprep.mubr.msk.bf16.mxu1 %vm20528_vm0, %v20527_v1 }
0x3669   : > { %14843 = vmatprep.mubr.bf16.mxu0 %v20539_v34  ;;  %19729 = vmatpush3.bf16.msra.mxu1 %v20220_v24 }
0x366a   : > { %19730 = vmatprep.subr.bf16.mxu1 %v20527_v1 }
0x366d   : > { %19731 = vmatpush3.bf16.msra.mxu1 %v20221_v7 }
0x3713   : > { %v14361_v27 = vpop.f32.mrb[208].mxu1  ;;  %v14407_v62 = vpop.f32.mrb[212].mxu0 }
0x3714   : > { %v19708_v36 = vpop.f32.mrb[209].mxu1  ;;  %v19714_v4 = vpop.f32.mrb[213].mxu0 }
0x3715   : > { %v14364_v51 = vpop.f32.mrb[210].mxu1  ;;  %v14410_v10 = vpop.f32.mrb[214].mxu0 }
0x3716   : > { %v19709_v37 = vpop.f32.mrb[211].mxu1  ;;  %v19715_v5 = vpop.f32.mrb[215].mxu0 }
0x373a   : > { %v14453_v52 = vpop.f32.mrb[212].mxu1 }
0x373b   : > { %v14505_v9 = vcombine.low %v14361_v27, %v14453_v52  ;;  %v14506_v47 = vcombine.high %v14361_v27, %v14453_v52  ;;  %v14499_v15 = vpop.f32.mrb[216].mxu0  ;;  %v19720_v16 = vpop.f32.mrb[213].mxu1 }
0x373c   : > { %v14521_v61 = vcombine.low %v14407_v62, %v14499_v15  ;;  %v14522_v6 = vcombine.high %v14407_v62, %v14499_v15  ;;  %v19726_v8 = vpop.f32.mrb[217].mxu0  ;;  %v14456_v63 = vpop.f32.mrb[214].mxu1  ;;  %v18011_v62 = vld [vmem:[%s23191_s19 + $0x1] ss:$0 sm:$0xff] }
0x373d   : > { %v14513_v46 = vrot.slane %v14505_v9, %v20835_v22  ;;  %v14520_v13 = vrot.slane %v14506_v47, %v20835_v22  ;;  %v14502_v14 = vpop.f32.mrb[218].mxu0  ;;  %v19721_v23 = vpop.f32.mrb[215].mxu1  ;;  %v18019_v8 = vld [vmem:[%s23192_s20 + $0x140] sm:$0xff]  ;;  %v18018_v63 = vld [vmem:[%s23192_s20 + $0x108] sm:$0xff] }
0x373e   : > { %v14529_v19 = vrot.slane %v14521_v61, %v20835_v22  ;;  %v14536_v2 = vrot.slane %v14522_v6, %v20835_v22  ;;  %v19727_v59 = vpop.f32.mrb[219].mxu0  ;;  %v18017_v6 = vld [vmem:[%s23192_s20 + $0x100] sm:$0xff] }
0x373f   : > { %v18022_v59 = vld [vmem:[%s23192_s20 + $0x188] sm:$0xff] }
0x3740   : > { %v14537_v55 = vcombine.low %v14513_v46, %v14529_v19  ;;  %v14538_v30 = vcombine.high %v14513_v46, %v14529_v19  ;;  %v14553_v12 = vcombine.low %v14520_v13, %v14536_v2  ;;  %v18027_v46 = vcombine.high %v18017_v6, %v18019_v8  ;;  %v18021_v19 = vld [vmem:[%s23192_s20 + $0x180] sm:$0xff] }
0x3741   : > { %v18026_v13 = vcombine.low %v18017_v6, %v18019_v8  ;;  %v18023_v2 = vld [vmem:[%s23192_s20 + $0x1c0] sm:$0xff] }
0x3742   : > { %v14545_v45 = vrot.slane %v14537_v55, %v20846_v32  ;;  %v14552_v25 = vrot.slane %v14538_v30, %v20846_v32  ;;  %v14560_v48 = vrot.slane %v14553_v12, %v20846_v32  ;;  %14811 = vmatprep.subr.bf16.mxu0 %v18027_v46  ;;  %v18031_v55 = vcombine.high %v18021_v19, %v18023_v2  ;;  %v18024_v30 = vld [vmem:[%s23192_s20 + $0x1c8] sm:$0xff]  ;;  %v20238_v6 = vld [vmem:[%s23195_s27 + $0x560] sm:$0xff]  }
0x3743   : > { %14812 = vmatpush1.bf16.msra.mxu0 %v18026_v13  ;;  %v18030_v12 = vcombine.low %v18021_v19, %v18023_v2  ;;  %v18032_v24 = vcombine.low %v18022_v59, %v18024_v30  ;;  %v20239_v8 = vld [vmem:[%s23195_s27 + $0x5e0] sm:$0xff]   ;;  %v20243_v13 = vld [vmem:[%s23195_s27 + $0x5e8] sm:$0xff]   ;;  %v20246_v19 = vld [vmem:[%s23195_s27 + $0x570] sm:$0xff]  }
0x3744   : > { %v14563_v26 = vcombine.low %v14545_v45, %v14552_v25  ;;  %v18010_v39 = vcombine.high %v14545_v45, %v14552_v25  ;;  %v14586_v0 = vcombine.high %v14560_v48, %v20527_v1  ;;  %v14585_v29 = vrot.slane %v14560_v48, %v20835_v22  ;;  %14813 = vmatprep.subr.bf16.mxu0 %v18031_v55  ;;  %v18100_v25 = vld [vmem:[%s23192_s20 + $0x110] sm:$0xff]  ;;  %v20241_v46 = vld [vmem:[%s23195_s27 + $0x5a0] sm:$0xff]  }
0x3745   : > { %v18033_v45 = vcombine.high %v18022_v59, %v18024_v30  ;;  %v18102_v48 = vld [vmem:[%s23192_s20 + $0x150] sm:$0xff]  ;;  %v20250_v30 = vld [vmem:[%s23195_s27 + $0x578] sm:$0xff]  }
0x3746   : > { %v14570_v44 = vrot.slane %v14563_v26, %v20835_v22  ;;  %v14578_v57 = vrot.slane %v18010_v39, %v20835_v22  ;;  %v14593_v49 = vrot.slane %v14586_v0, %v20835_v22  ;;  %v18101_v26 = vld [vmem:[%s23192_s20 + $0x118] sm:$0xff]  ;;  %v18110_v39 = vcombine.high %v18100_v25, %v18102_v48  ;;  %v20247_v2 = vld [vmem:[%s23195_s27 + $0x5f0] sm:$0xff]  }
0x3747   : > { %14814 = vmatpush1.bf16.msra.mxu0 %v18030_v12  ;;  %v18103_v0 = vld [vmem:[%s23192_s20 + $0x158] sm:$0xff]  ;;  %v18109_v7 = vcombine.low %v18100_v25, %v18102_v48  ;;  %v20248_v59 = vld [vmem:[%s23195_s27 + $0x530] sm:$0xff]   ;;  %v20254_v25 = vld [vmem:[%s23195_s27 + $0x440] sm:$0xff]  }
0x3748   : > { %v14595_v21 = vcombine.high %v14570_v44, %v14578_v57  ;;  %v14611_v58 = vcombine.high %v14585_v29, %v14593_v49  ;;  %v14594_v56 = vcombine.low %v14570_v44, %v14578_v57  ;;  %v14610_v31 = vcombine.low %v14585_v29, %v14593_v49  ;;  %15036 = vmatprep.subr.bf16.mxu0 %v18110_v39  ;;  %v20249_v55 = vld [vmem:[%s23195_s27 + $0x5b0] sm:$0xff]   ;;  %v20251_v12 = vld [vmem:[%s23195_s27 + $0x5f8] sm:$0xff]   ;;  %v20255_v48 = vld [vmem:[%s23195_s27 + $0x4c0] sm:$0xff]  }
0x3749   : > { %v18111_v44 = vcombine.low %v18101_v26, %v18103_v0  ;;  %v18112_v57 = vcombine.high %v18101_v26, %v18103_v0 }
0x374a   : > { %v14609_v53 = vrot.slane %v14595_v21, %v20846_v32  ;;  %v14625_v60 = vrot.slane %v14611_v58, %v20846_v32  ;;  %v14602_v28 = vrot.slane %v14594_v56, %v20846_v32  ;;  %v14618_v35 = vrot.slane %v14610_v31, %v20846_v32  ;;  %v18015_v56 = vld [vmem:[%s23193_s21 + $0x1] ss:$0 sm:$0xff] }
0x374c   : > { %v14628_v50 = vcombine.low %v14609_v53, %v14625_v60  ;;  %v14627_v17 = vcombine.high %v14602_v28, %v14618_v35  ;;  %v14629_v41 = vcombine.high %v14609_v53, %v14625_v60  ;;  %v14626_v3 = vcombine.low %v14602_v28, %v14618_v35  ;;  %v18016_v53 = vld [vmem:[%s23194_s24 + $0x1] ss:$0 sm:$0xff]  ;;  %v18104_v28 = vld [vmem:[%s23192_s20 + $0x190] sm:$0xff] }
0x374d   : > { %v18106_v35 = vld [vmem:[%s23192_s20 + $0x1d0] sm:$0xff] }
0x374e   : > { %14635 = vrot.lane.b32.xlu1 %v14628_v50, %s23173_s1  ;;  %14631 = vrot.lane.b32.xlu0 %v14627_v17, %s23174_s2  ;;  %v18105_v50 = vld [vmem:[%s23192_s20 + $0x198] sm:$0xff]  ;;  %s23205_s1 = sld [smem:[#allocation45_spill]] }
0x374f   : > { %v18107_v17 = vld [vmem:[%s23192_s20 + $0x1d8] sm:$0xff] }
0x3752   : > { %14639 = vrot.lane.b32.xlu1 %v14629_v41, %s23175_s26  ;;  %s23203_s26 = sld [smem:[#allocation47_spill]] }
0x3758   : > { %s17010_s2 = sshll.u32 %s23203_s26, 3 }
0x3759   : > { %s1404_s3 = scalar_lea.vmem %s23205_s1, %s17010_s2 }
0x37c0   : > { %v14636_v22 = vpop.permute.xlu1 %14635  ;;  %v14632_v11 = vpop.permute.xlu0 %14631 }
0x37c1   : > { %v14642_v54 = vsel %vm1955_vm2, %v14626_v3, %v14632_v11  ;;  %v18116_v11 = vcombine.high %v18105_v50, %v18107_v17 }
0x37c2   : > { %v14643_v18 = vsel %vm2530_vm4, %v14642_v54, %v14636_v22  ;;  %v18114_v22 = vcombine.high %v18104_v28, %v18106_v35  ;;  %v18113_v54 = vcombine.low %v18104_v28, %v18106_v35 }
0x37c4   : > { %v14640_v20 = vpop.permute.xlu1 %14639 }
0x37c5   : > { %v14644_v32 = vsel %vm2532_vm5, %v14643_v18, %v14640_v20  ;;  %v18115_v20 = vcombine.low %v18105_v50, %v18107_v17  ;;  %v20222_v18 = vld [vmem:[%s23195_s27 + $0x540] sm:$0xff]  }
0x37c6   : > { %v14645_v27 = vpack.c.bf16 %v14644_v32, %v14644_v32  ;;  %v20223_v32 = vld [vmem:[%s23195_s27 + $0x5c0] sm:$0xff]  }
0x37c8   : > { %19733 = vmatmul.mubr.msk.bf16.vlgmr.msra.gmra.mrb[216].mxu1 %vm1450_vm1, %v14645_v27  ;;  %v20224_v27 = vld [vmem:[%s23195_s27 + $0x500] sm:$0xff]  }
0x37c9   : > { %14884 = vmatprep.mubr.bf16.mxu1 %v20539_v34 }
0x389b   : > { %v14701_v36 = vpop.f32.mrb[216].mxu1 }
0x389c   : > { %v14702_v4 = vadd.f32 %v18011_v62, %v14701_v36  ;;  %v19734_v51 = vpop.f32.mrb[217].mxu1  ;;  %v20225_v62 = vld [vmem:[%s23195_s27 + $0x580] sm:$0xff]   ;;  %v20226_v36 = vld [vmem:[%s23195_s27 + $0x548] sm:$0xff]  }
0x389d   : > { %v14704_v10 = vpop.f32.mrb[218].mxu1  ;;  %v20228_v51 = vld [vmem:[%s23195_s27 + $0x508] sm:$0xff]  }
0x389e   : > { %v14707_v37 = vadd.f32 %v14702_v4, %v22637_v40  ;;  %v19735_v5 = vpop.f32.mrb[219].mxu1  ;;  %v18020_v40 = vld [vmem:[%s23192_s20 + $0x148] sm:$0xff] }
0x389f   : > { %v18028_v14 = vcombine.low %v18018_v63, %v18020_v40  ;;  %v18029_v23 = vcombine.high %v18018_v63, %v18020_v40  ;;  %v20227_v4 = vld [vmem:[%s23195_s27 + $0x5c8] sm:$0xff]   ;;  %v20231_v5 = vld [vmem:[%s23195_s27 + $0x5d0] sm:$0xff]   ;;  %v20240_v63 = vld [vmem:[%s23195_s27 + $0x520] sm:$0xff]  }
0x38a0   : > { %v14708_v52 = vsel %vm9041_vm9, %v14707_v37, 0.0  ;;  %v20229_v10 = vld [vmem:[%s23195_s27 + $0x588] sm:$0xff]  }
0x38a1   : > { %14709 = vadd.xlane.f32.xlu0 %v14708_v52  ;;  %14852 = vmatprep.subr.bf16.mxu1 %v18029_v23  ;;  %v20232_v52 = vld [vmem:[%s23195_s27 + $0x510] sm:$0xff]   ;;  %v20242_v40 = vld [vmem:[%s23195_s27 + $0x568] sm:$0xff]  }
0x38a2   : > { %14853 = vmatpush1.bf16.msra.mxu1 %v18028_v14  ;;  %v20244_v14 = vld [vmem:[%s23195_s27 + $0x528] sm:$0xff]  }
0x38a3   : > { %14854 = vmatprep.subr.bf16.mxu1 %v18033_v45  ;;  %v20245_v23 = vld [vmem:[%s23195_s27 + $0x5a8] sm:$0xff]   ;;  %v20253_v45 = vld [vmem:[%s23195_s27 + $0x5b8] sm:$0xff]  }
0x38a6   : > { %14855 = vmatpush1.bf16.msra.mxu1 %v18032_v24  ;;  %v20252_v24 = vld [vmem:[%s23195_s27 + $0x538] sm:$0xff]  }
0x38a7   : > { %15077 = vmatprep.subr.bf16.mxu1 %v18112_v57 }
0x392e   : > { %v14710_v9 = vpop.xlane.xlu0 %14709 }
0x392f   : > { %v14711_v47 = vmul.f32 0.03125, %v14710_v9  ;;  %v20233_v9 = vld [vmem:[%s23195_s27 + $0x590] sm:$0xff]  }
0x3931   : > { %v14712_v15 = vsub.f32 %v14707_v37, %v14711_v47  ;;  %v20230_v37 = vld [vmem:[%s23195_s27 + $0x550] sm:$0xff]   ;;  %v20234_v47 = vld [vmem:[%s23195_s27 + $0x558] sm:$0xff]  }
0x3933   : > { %v14713_v16 = vmul.f32 %v14712_v15, %v14712_v15 }
0x3935   : > { %v14714_v61 = vsel %vm9041_vm9, %v14713_v16, 0.0  ;;  %v20236_v16 = vld [vmem:[%s23195_s27 + $0x518] sm:$0xff]  }
0x3936   : > { %14715 = vadd.xlane.f32.xlu1 %v14714_v61  ;;  %v20237_v61 = vld [vmem:[%s23195_s27 + $0x598] sm:$0xff]  }
0x39c3   : > { %v14716_v29 = vpop.xlane.xlu1 %14715 }
0x39c4   : > { %v14717_v49 = vmul.f32 0.03125, %v14716_v29 }
0x39c6   : > { %v14718_v21 = vadd.f32 1e-05, %v14717_v49  ;;  %v18108_v49 = vld [vmem:[%s23196_s30 + $0x14] sm:$0xf] }
0x39c7   : > { %v14983_v28 = vrot.slane %v18108_v49, %v21075_v33  ;;  %v14991_v35 = vrot.slane %v18108_v49, %v21078_v38 }
0x39c8   : > { %20466 = vrsqrt.f32 %v14718_v21 }
0x39d2   : > { %v20467_v58 = vpop.eup %20466 }
0x39d3   : > { %v14720_v31 = vmul.f32 %v20467_v58, %v14712_v15  ;;  %v20235_v15 = vld [vmem:[%s23195_s27 + $0x5d8] sm:$0xff]  }
0x39d5   : > { %v14727_v60 = vmul.f32 %v18015_v56, %v14720_v31 }
0x39d7   : > { %v22808_v41 = vadd.f32 %v18016_v53, %v14727_v60  ;;  %v14979_v53 = vrot.slane %v18108_v49, %v21085_v42  ;;  %v14987_v60 = vrot.slane %v18108_v49, %v21088_v43  ;;  %v20274_v49 = vld [vmem:[%s23195_s27 + $0x468] sm:$0xff]  }
0x39d9   : > { %v22812_v3 = vpack.c.bf16 %v22808_v41, %v22808_v41 }
0x39db   : > { %18034 = vmatmul.mubr.msk.bf16.vlgmr.msra.gmra.mrb[220].mxu0 %vm1450_vm1, %v22812_v3  ;;  %18035 = vmatmul.mubr.msk.bf16.vlgmr.msra.gmra.mrb[220].mxu1 %vm1450_vm1, %v22812_v3 }
0x39dc   : > { %15037 = vmatpush1.bf16.msra.mxu0 %v18109_v7  ;;  %15078 = vmatpush1.bf16.msra.mxu1 %v18111_v44  ;;  %v22863_v44 = vld [vmem:[%s23196_s30 + $0x10] sm:$0xf] }
0x39dd   : > { %15038 = vmatprep.subr.bf16.mxu0 %v18114_v22  ;;  %15079 = vmatprep.subr.bf16.mxu1 %v18116_v11  ;;  %v14755_v56 = vrot.slane %v22863_v44, %v21075_v33  ;;  %v14763_v31 = vrot.slane %v22863_v44, %v21078_v38 }
0x39de   : > { %15068 = vmatprep.mubr.bf16.mxu0 %v20539_v34  ;;  %15109 = vmatprep.mubr.bf16.mxu1 %v20539_v34 }
0x39e0   : > { %15039 = vmatpush1.bf16.msra.mxu0 %v18113_v54  ;;  %15080 = vmatpush1.bf16.msra.mxu1 %v18115_v20 }
0x39e1   : > { %19157 = vmatprep.subr.bf16.mxu0 %v20222_v18  ;;  %19179 = vmatprep.subr.bf16.mxu1 %v20223_v32 }
0x39e3   : > { %18117 = vmatmul.mubr.msk.bf16.vlgmr.msra.gmra.mrb[224].mxu0 %vm1450_vm1, %v22812_v3  ;;  %18118 = vmatmul.mubr.msk.bf16.vlgmr.msra.gmra.mrb[224].mxu1 %vm1450_vm1, %v22812_v3 }
0x39e4   : > { %19158 = vmatpush3.bf16.msra.mxu0 %v20224_v27  ;;  %19180 = vmatpush3.bf16.msra.mxu1 %v20225_v62 }
0x39e5   : > { %19159 = vmatprep.subr.bf16.mxu0 %v20226_v36  ;;  %19181 = vmatprep.subr.bf16.mxu1 %v20227_v4 }
0x39e8   : > { %19160 = vmatpush3.bf16.msra.mxu0 %v20228_v51  ;;  %19182 = vmatpush3.bf16.msra.mxu1 %v20229_v10 }
0x39e9   : > { %19161 = vmatprep.subr.bf16.mxu0 %v20230_v37  ;;  %19183 = vmatprep.subr.bf16.mxu1 %v20231_v5 }
0x39ec   : > { %19162 = vmatpush3.bf16.msra.mxu0 %v20232_v52  ;;  %19184 = vmatpush3.bf16.msra.mxu1 %v20233_v9 }
0x39ed   : > { %19163 = vmatprep.subr.bf16.mxu0 %v20234_v47  ;;  %19185 = vmatprep.subr.bf16.mxu1 %v20235_v15 }
0x39f0   : > { %19164 = vmatpush3.bf16.msra.mxu0 %v20236_v16  ;;  %19186 = vmatpush3.bf16.msra.mxu1 %v20237_v61 }
0x39f1   : > { %19165 = vmatprep.subr.bf16.mxu0 %v20238_v6  ;;  %19187 = vmatprep.subr.bf16.mxu1 %v20239_v8  ;;  %v20256_v6 = vld [vmem:[%s23195_s27 + $0x400] sm:$0xff]  }
0x39f2   : > { %v20257_v8 = vld [vmem:[%s23195_s27 + $0x480] sm:$0xff]  }
0x39f4   : > { %19166 = vmatpush3.bf16.msra.mxu0 %v20240_v63  ;;  %19188 = vmatpush3.bf16.msra.mxu1 %v20241_v46 }
0x39f5   : > { %19167 = vmatprep.subr.bf16.mxu0 %v20242_v40  ;;  %19189 = vmatprep.subr.bf16.mxu1 %v20243_v13  ;;  %v20258_v40 = vld [vmem:[%s23195_s27 + $0x448] sm:$0xff]  }
0x39f6   : > { %v20259_v13 = vld [vmem:[%s23195_s27 + $0x4c8] sm:$0xff]  }
0x39f8   : > { %19168 = vmatpush3.bf16.msra.mxu0 %v20244_v14  ;;  %19190 = vmatpush3.bf16.msra.mxu1 %v20245_v23 }
0x39f9   : > { %19169 = vmatprep.subr.bf16.mxu0 %v20246_v19  ;;  %19191 = vmatprep.subr.bf16.mxu1 %v20247_v2  ;;  %v20260_v19 = vld [vmem:[%s23195_s27 + $0x408] sm:$0xff]  }
0x39fa   : > { %v20261_v2 = vld [vmem:[%s23195_s27 + $0x488] sm:$0xff]  }
0x39fc   : > { %19170 = vmatpush3.bf16.msra.mxu0 %v20248_v59  ;;  %19192 = vmatpush3.bf16.msra.mxu1 %v20249_v55  ;;  %v20262_v59 = vld [vmem:[%s23195_s27 + $0x450] sm:$0xff]  }
0x39fd   : > { %19171 = vmatprep.subr.bf16.mxu0 %v20250_v30  ;;  %19193 = vmatprep.subr.bf16.mxu1 %v20251_v12  ;;  %v20263_v55 = vld [vmem:[%s23195_s27 + $0x4d0] sm:$0xff]  }
0x39fe   : > { %v20264_v30 = vld [vmem:[%s23195_s27 + $0x410] sm:$0xff]  }
0x39ff   : > { %v20265_v12 = vld [vmem:[%s23195_s27 + $0x490] sm:$0xff]  }
0x3a00   : > { %19172 = vmatpush3.bf16.msra.mxu0 %v20252_v24  ;;  %19194 = vmatpush3.bf16.msra.mxu1 %v20253_v45  ;;  %v20266_v24 = vld [vmem:[%s23195_s27 + $0x458] sm:$0xff]  }
0x3a01   : > { %19201 = vmatprep.subr.bf16.mxu0 %v20254_v25  ;;  %19223 = vmatprep.subr.bf16.mxu1 %v20255_v48  ;;  %v20267_v45 = vld [vmem:[%s23195_s27 + $0x4d8] sm:$0xff]  }
0x3a02   : > { %v20268_v25 = vld [vmem:[%s23195_s27 + $0x418] sm:$0xff]  }
0x3a03   : > { %v20269_v48 = vld [vmem:[%s23195_s27 + $0x498] sm:$0xff]  }
0x3aae   : > { %v22858_v26 = vpop.f32.mrb[220].mxu0  ;;  %v22860_v39 = vpop.f32.mrb[220].mxu1 }
0x3aaf   : > { %v14847_v0 = vpop.f32.mrb[221].mxu0  ;;  %v14888_v7 = vpop.f32.mrb[221].mxu1 }
0x3ab0   : > { %v14849_v57 = vpop.f32.mrb[222].mxu0  ;;  %v14890_v29 = vpop.f32.mrb[222].mxu1  ;;  %v14848_v22 = vadd.f32 %v14847_v0, %v14755_v56  ;;  %v14889_v11 = vadd.f32 %v14888_v7, %v14763_v31  ;;  %v20270_v0 = vld [vmem:[%s23195_s27 + $0x460] sm:$0xff]   ;;  %v20277_v56 = vld [vmem:[%s23195_s27 + $0x4a8] sm:$0xff]   ;;  %v14751_v31 = vrot.slane %v22863_v44, %v21085_v42 }
0x3ab1   : > { %v14850_v21 = vpop.f32.mrb[223].mxu0  ;;  %v14891_v58 = vpop.f32.mrb[223].mxu1  ;;  %v20271_v7 = vld [vmem:[%s23195_s27 + $0x4e0] sm:$0xff]  }
0x3ab2   : > { %v14894_v47 = vmax.f32 %v14848_v22, 0.0  ;;  %v14896_v15 = vmax.f32 %v14889_v11, 0.0  ;;  %v20272_v57 = vld [vmem:[%s23195_s27 + $0x420] sm:$0xff]   ;;  %v20275_v21 = vld [vmem:[%s23195_s27 + $0x4e8] sm:$0xff]   ;;  %v20283_v11 = vld [vmem:[%s23195_s27 + $0x4f8] sm:$0xff]  }
0x3ab3   : > { %v20273_v29 = vld [vmem:[%s23195_s27 + $0x4a0] sm:$0xff]   ;;  %v20276_v58 = vld [vmem:[%s23195_s27 + $0x428] sm:$0xff]  }
0x3ab4   : > { %v14898_v14 = vpack.c.bf16 %v14894_v47, %v14894_v47  ;;  %v14900_v23 = vpack.c.bf16 %v14896_v15, %v14896_v15 }
0x3ab6   : > { %v15070_v50 = vpop.f32.mrb[224].mxu0  ;;  %v15111_v17 = vpop.f32.mrb[224].mxu1 }
0x3ab7   : > { %v15071_v54 = vadd.f32 %v15070_v50, %v14979_v53  ;;  %v15112_v20 = vadd.f32 %v15111_v17, %v14987_v60  ;;  %v15072_v18 = vpop.f32.mrb[225].mxu0  ;;  %v15113_v32 = vpop.f32.mrb[225].mxu1  ;;  %v14759_v53 = vrot.slane %v22863_v44, %v21088_v43  ;;  %v20278_v60 = vld [vmem:[%s23195_s27 + $0x470] sm:$0xff]   ;;  %v14846_v17 = vadd.f32 %v22858_v26, %v14751_v31  ;;  %v20282_v44 = vld [vmem:[%s23195_s27 + $0x478] sm:$0xff]  }
0x3ab8   : > { %v15073_v27 = vadd.f32 %v15072_v18, %v14983_v28  ;;  %v15114_v62 = vadd.f32 %v15113_v32, %v14991_v35  ;;  %v15074_v36 = vpop.f32.mrb[226].mxu0  ;;  %v15115_v4 = vpop.f32.mrb[226].mxu1  ;;  %v20279_v28 = vld [vmem:[%s23195_s27 + $0x4f0] sm:$0xff]   ;;  %v18248_v18 = vld [vmem:[%s23192_s20 + $0x128] sm:$0xff] }
0x3ab9   : > { %v15118_v51 = vmax.f32 %v15071_v54, 0.0  ;;  %v15120_v10 = vmax.f32 %v15112_v20, 0.0  ;;  %v15075_v37 = vpop.f32.mrb[227].mxu0  ;;  %v15116_v5 = vpop.f32.mrb[227].mxu1  ;;  %v20280_v35 = vld [vmem:[%s23195_s27 + $0x430] sm:$0xff]   ;;  %v14887_v22 = vadd.f32 %v22860_v39, %v14759_v53  ;;  %v18247_v54 = vld [vmem:[%s23192_s20 + $0x120] sm:$0xff] }
0x3aba   : > { %v15119_v52 = vmax.f32 %v15073_v27, 0.0  ;;  %v15121_v9 = vmax.f32 %v15114_v62, 0.0  ;;  %v20281_v50 = vld [vmem:[%s23195_s27 + $0x4b0] sm:$0xff]   ;;  %v18249_v20 = vld [vmem:[%s23192_s20 + $0x160] sm:$0xff]  ;;  %v18250_v32 = vld [vmem:[%s23192_s20 + $0x168] sm:$0xff]  ;;  %v14893_v36 = vmax.f32 %v14846_v17, 0.0 }
0x3abb   : > { %v15122_v63 = vpack.c.bf16 %v15118_v51, %v15118_v51  ;;  %v15124_v46 = vpack.c.bf16 %v15120_v10, %v15120_v10  ;;  %v20284_v27 = vld [vmem:[%s23195_s27 + $0x438] sm:$0xff]   ;;  %v14895_v26 = vmax.f32 %v14887_v22, 0.0  ;;  %v18257_v39 = vcombine.high %v18247_v54, %v18249_v20  ;;  %v18251_v51 = vld [vmem:[%s23192_s20 + $0x1a0] sm:$0xff]  ;;  %v18252_v37 = vld [vmem:[%s23192_s20 + $0x1a8] sm:$0xff] }
0x3abc   : > { %v15123_v16 = vpack.c.bf16 %v15119_v52, %v15119_v52  ;;  %v15125_v61 = vpack.c.bf16 %v15121_v9, %v15121_v9  ;;  %v20285_v62 = vld [vmem:[%s23195_s27 + $0x4b8] sm:$0xff]   ;;  %v18259_v4 = vcombine.high %v18248_v18, %v18250_v32  ;;  %v18253_v10 = vld [vmem:[%s23192_s20 + $0x1e0] sm:$0xff]  ;;  %v18254_v5 = vld [vmem:[%s23192_s20 + $0x1e8] sm:$0xff]  ;;  %v18256_v52 = vcombine.low %v18247_v54, %v18249_v20 }
0x3abd   : > { %v18258_v9 = vcombine.low %v18248_v18, %v18250_v32  ;;  %v18261_v47 = vcombine.high %v18251_v51, %v18253_v10  ;;  %v14897_v15 = vpack.c.bf16 %v14893_v36, %v14893_v36  ;;  %v20310_v31 = vld [vmem:[%s23195_s27 + $0x670] sm:$0xff]   ;;  %v20316_v17 = vld [vmem:[%s23195_s27 + $0x638] sm:$0xff]  }
0x3abe   : > { %15414 = vmatprep.mubr.bf16.mxu0 %v15123_v16  ;;  %15454 = vmatprep.mubr.bf16.mxu1 %v15125_v61  ;;  %v14899_v16 = vpack.c.bf16 %v14895_v26, %v14895_v26  ;;  %v18263_v61 = vcombine.high %v18252_v37, %v18254_v5  ;;  %v20311_v53 = vld [vmem:[%s23195_s27 + $0x6f0] sm:$0xff]   ;;  %v20317_v22 = vld [vmem:[%s23195_s27 + $0x6b8] sm:$0xff]  }
0x3abf   : > { %15415 = vmatmul.mubr.bf16.vlgmr.msra.gmra.mrb[228].mxu0 %v15122_v63  ;;  %15455 = vmatmul.mubr.bf16.vlgmr.msra.gmra.mrb[228].mxu1 %v15124_v46  ;;  %v20286_v63 = vld [vmem:[%s23195_s27 + $0x640] sm:$0xff]   ;;  %v22963_v54 = vld [vmem:[%s23192_s20 + $0x138] sm:$0xff] }
0x3ac0   : > { %19202 = vmatpush3.bf16.msra.mxu0 %v20256_v6  ;;  %19224 = vmatpush3.bf16.msra.mxu1 %v20257_v8  ;;  %v18260_v6 = vcombine.low %v18251_v51, %v18253_v10  ;;  %v18262_v8 = vcombine.low %v18252_v37, %v18254_v5  ;;  %v20287_v46 = vld [vmem:[%s23195_s27 + $0x6c0] sm:$0xff]   ;;  %v22968_v18 = vld [vmem:[%s23192_s20 + $0x178] sm:$0xff] }
0x3ac1   : > { %15686 = vmatprep.mubr.bf16.mxu0 %v14898_v14  ;;  %15726 = vmatprep.mubr.bf16.mxu1 %v14900_v23  ;;  %v20290_v14 = vld [vmem:[%s23195_s27 + $0x648] sm:$0xff]  }
0x3ac2   : > { %19203 = vmatprep.subr.bf16.mxu0 %v20258_v40  ;;  %19225 = vmatprep.subr.bf16.mxu1 %v20259_v13  ;;  %v20288_v40 = vld [vmem:[%s23195_s27 + $0x600] sm:$0xff]   ;;  %v20291_v23 = vld [vmem:[%s23195_s27 + $0x6c8] sm:$0xff]  }
0x3ac3   : > { %v20289_v13 = vld [vmem:[%s23195_s27 + $0x680] sm:$0xff]  }
0x3ac4   : > { %19204 = vmatpush3.bf16.msra.mxu0 %v20260_v19  ;;  %19226 = vmatpush3.bf16.msra.mxu1 %v20261_v2  ;;  %v20292_v19 = vld [vmem:[%s23195_s27 + $0x608] sm:$0xff]  }
0x3ac5   : > { %19205 = vmatprep.subr.bf16.mxu0 %v20262_v59  ;;  %19227 = vmatprep.subr.bf16.mxu1 %v20263_v55  ;;  %v20293_v2 = vld [vmem:[%s23195_s27 + $0x688] sm:$0xff]   ;;  %v20294_v59 = vld [vmem:[%s23195_s27 + $0x650] sm:$0xff]  }
0x3ac6   : > { %v20295_v55 = vld [vmem:[%s23195_s27 + $0x6d0] sm:$0xff]  }
0x3ac8   : > { %19206 = vmatpush3.bf16.msra.mxu0 %v20264_v30  ;;  %19228 = vmatpush3.bf16.msra.mxu1 %v20265_v12  ;;  %v20296_v30 = vld [vmem:[%s23195_s27 + $0x610] sm:$0xff]  }
0x3ac9   : > { %19207 = vmatprep.subr.bf16.mxu0 %v20266_v24  ;;  %19229 = vmatprep.subr.bf16.mxu1 %v20267_v45  ;;  %v20297_v12 = vld [vmem:[%s23195_s27 + $0x690] sm:$0xff]   ;;  %v20298_v24 = vld [vmem:[%s23195_s27 + $0x658] sm:$0xff]  }
0x3aca   : > { %v20299_v45 = vld [vmem:[%s23195_s27 + $0x6d8] sm:$0xff]  }
0x3acc   : > { %19208 = vmatpush3.bf16.msra.mxu0 %v20268_v25  ;;  %19230 = vmatpush3.bf16.msra.mxu1 %v20269_v48  ;;  %v20300_v25 = vld [vmem:[%s23195_s27 + $0x618] sm:$0xff]  }
0x3acd   : > { %19209 = vmatprep.subr.bf16.mxu0 %v20270_v0  ;;  %19231 = vmatprep.subr.bf16.mxu1 %v20271_v7  ;;  %v20301_v48 = vld [vmem:[%s23195_s27 + $0x698] sm:$0xff]   ;;  %v20302_v0 = vld [vmem:[%s23195_s27 + $0x660] sm:$0xff]  }
0x3ace   : > { %v20303_v7 = vld [vmem:[%s23195_s27 + $0x6e0] sm:$0xff]  }
0x3ad0   : > { %19210 = vmatpush3.bf16.msra.mxu0 %v20272_v57  ;;  %19232 = vmatpush3.bf16.msra.mxu1 %v20273_v29  ;;  %v20304_v57 = vld [vmem:[%s23195_s27 + $0x620] sm:$0xff]  }
0x3ad1   : > { %19211 = vmatprep.subr.bf16.mxu0 %v20274_v49  ;;  %19233 = vmatprep.subr.bf16.mxu1 %v20275_v21  ;;  %v20305_v29 = vld [vmem:[%s23195_s27 + $0x6a0] sm:$0xff]   ;;  %v20306_v49 = vld [vmem:[%s23195_s27 + $0x668] sm:$0xff]  }
0x3ad2   : > { %v20307_v21 = vld [vmem:[%s23195_s27 + $0x6e8] sm:$0xff]  }
0x3ad4   : > { %19212 = vmatpush3.bf16.msra.mxu0 %v20276_v58  ;;  %19234 = vmatpush3.bf16.msra.mxu1 %v20277_v56  ;;  %v20308_v58 = vld [vmem:[%s23195_s27 + $0x628] sm:$0xff]  }
0x3ad5   : > { %19213 = vmatprep.subr.bf16.mxu0 %v20278_v60  ;;  %19235 = vmatprep.subr.bf16.mxu1 %v20279_v28  ;;  %v20309_v56 = vld [vmem:[%s23195_s27 + $0x6a8] sm:$0xff]   ;;  %v20312_v60 = vld [vmem:[%s23195_s27 + $0x630] sm:$0xff]  }
0x3ad6   : > { %v20313_v28 = vld [vmem:[%s23195_s27 + $0x6b0] sm:$0xff]  }
0x3ad8   : > { %19214 = vmatpush3.bf16.msra.mxu0 %v20280_v35  ;;  %19236 = vmatpush3.bf16.msra.mxu1 %v20281_v50  ;;  %v20314_v35 = vld [vmem:[%s23195_s27 + $0x678] sm:$0xff]  }
0x3ad9   : > { %19215 = vmatprep.subr.bf16.mxu0 %v20282_v44  ;;  %19237 = vmatprep.subr.bf16.mxu1 %v20283_v11  ;;  %v20315_v50 = vld [vmem:[%s23195_s27 + $0x6f8] sm:$0xff]   ;;  %v22957_v44 = vld [vmem:[%s23192_s20 + $0x130] sm:$0xff] }
0x3ada   : > { %v22960_v11 = vld [vmem:[%s23192_s20 + $0x170] sm:$0xff] }
0x3adb   : > { %v18372_v20 = vcombine.high %v22957_v44, %v22960_v11  ;;  %v18371_v32 = vcombine.low %v22957_v44, %v22960_v11 }
0x3adc   : > { %19216 = vmatpush3.bf16.msra.mxu0 %v20284_v27  ;;  %19238 = vmatpush3.bf16.msra.mxu1 %v20285_v62  ;;  %v18373_v27 = vcombine.low %v22963_v54, %v22968_v18  ;;  %v18374_v62 = vcombine.high %v22963_v54, %v22968_v18 }
0x3add   : > { %15804 = vmatprep.subr.bf16.mxu0 %v18257_v39  ;;  %15845 = vmatprep.subr.bf16.mxu1 %v18259_v4 }
0x3adf   : > { %15687 = vmatmul.mubr.bf16.vlgmr.msra.gmra.mrb[232].mxu0 %v14897_v15  ;;  %15727 = vmatmul.mubr.bf16.vlgmr.msra.gmra.mrb[232].mxu1 %v14899_v16 }
0x3ae0   : > { %15805 = vmatpush1.bf16.msra.mxu0 %v18256_v52  ;;  %15846 = vmatpush1.bf16.msra.mxu1 %v18258_v9 }
0x3ae1   : > { %15806 = vmatprep.subr.bf16.mxu0 %v18261_v47  ;;  %15847 = vmatprep.subr.bf16.mxu1 %v18263_v61 }
0x3ae2   : > { %15836 = vmatprep.mubr.bf16.mxu0 %v20539_v34  ;;  %15877 = vmatprep.mubr.bf16.mxu1 %v20539_v34 }
0x3ae4   : > { %15807 = vmatpush1.bf16.msra.mxu0 %v18260_v6  ;;  %15848 = vmatpush1.bf16.msra.mxu1 %v18262_v8 }
0x3ae5   : > { %19245 = vmatprep.subr.bf16.mxu0 %v20286_v63  ;;  %19267 = vmatprep.subr.bf16.mxu1 %v20287_v46 }
0x3ae7   : > { %18264 = vmatmul.mubr.msk.bf16.vlgmr.msra.gmra.mrb[236].mxu0 %vm1450_vm1, %v22812_v3  ;;  %18265 = vmatmul.mubr.msk.bf16.vlgmr.msra.gmra.mrb[236].mxu1 %vm1450_vm1, %v22812_v3 }
0x3ae8   : > { %19246 = vmatpush3.bf16.msra.mxu0 %v20288_v40  ;;  %19268 = vmatpush3.bf16.msra.mxu1 %v20289_v13  ;;  %v18255_v13 = vld [vmem:[%s23196_s30 + $0x18] sm:$0xf] }
0x3ae9   : > { %19247 = vmatprep.subr.bf16.mxu0 %v20290_v14  ;;  %19269 = vmatprep.subr.bf16.mxu1 %v20291_v23 }
0x3aec   : > { %19248 = vmatpush3.bf16.msra.mxu0 %v20292_v19  ;;  %19270 = vmatpush3.bf16.msra.mxu1 %v20293_v2  ;;  %v15747_v2 = vrot.slane %v18255_v13, %v21085_v42 }
0x3aed   : > { %19249 = vmatprep.subr.bf16.mxu0 %v20294_v59  ;;  %19271 = vmatprep.subr.bf16.mxu1 %v20295_v55  ;;  %v15755_v59 = vrot.slane %v18255_v13, %v21088_v43 }
0x3af0   : > { %19250 = vmatpush3.bf16.msra.mxu0 %v20296_v30  ;;  %19272 = vmatpush3.bf16.msra.mxu1 %v20297_v12  ;;  %v15751_v30 = vrot.slane %v18255_v13, %v21075_v33  ;;  %v15759_v12 = vrot.slane %v18255_v13, %v21078_v38  ;;  %v20339_v13 = vld [vmem:[%s23195_s27 + $0x7e8] sm:$0xff]  }
0x3af1   : > { %19251 = vmatprep.subr.bf16.mxu0 %v20298_v24  ;;  %19273 = vmatprep.subr.bf16.mxu1 %v20299_v45 }
0x3af4   : > { %19252 = vmatpush3.bf16.msra.mxu0 %v20300_v25  ;;  %19274 = vmatpush3.bf16.msra.mxu1 %v20301_v48 }
0x3af5   : > { %19253 = vmatprep.subr.bf16.mxu0 %v20302_v0  ;;  %19275 = vmatprep.subr.bf16.mxu1 %v20303_v7 }
0x3af8   : > { %19254 = vmatpush3.bf16.msra.mxu0 %v20304_v57  ;;  %19276 = vmatpush3.bf16.msra.mxu1 %v20305_v29 }
0x3af9   : > { %19255 = vmatprep.subr.bf16.mxu0 %v20306_v49  ;;  %19277 = vmatprep.subr.bf16.mxu1 %v20307_v21 }
0x3afc   : > { %19256 = vmatpush3.bf16.msra.mxu0 %v20308_v58  ;;  %19278 = vmatpush3.bf16.msra.mxu1 %v20309_v56 }
0x3afd   : > { %19257 = vmatprep.subr.bf16.mxu0 %v20310_v31  ;;  %19279 = vmatprep.subr.bf16.mxu1 %v20311_v53 }
0x3b00   : > { %19258 = vmatpush3.bf16.msra.mxu0 %v20312_v60  ;;  %19280 = vmatpush3.bf16.msra.mxu1 %v20313_v28  ;;  %v18366_v60 = vld [vmem:[%s23192_s20 + $0x1b0] sm:$0xff] }
0x3b01   : > { %19259 = vmatprep.subr.bf16.mxu0 %v20314_v35  ;;  %19281 = vmatprep.subr.bf16.mxu1 %v20315_v50  ;;  %v18368_v50 = vld [vmem:[%s23192_s20 + $0x1f0] sm:$0xff] }
0x3b02   : > { %v18376_v18 = vcombine.high %v18366_v60, %v18368_v50 }
0x3b04   : > { %19260 = vmatpush3.bf16.msra.mxu0 %v20316_v17  ;;  %19282 = vmatpush3.bf16.msra.mxu1 %v20317_v22  ;;  %v18367_v17 = vld [vmem:[%s23192_s20 + $0x1b8] sm:$0xff] }
0x3b05   : > { %16301 = vmatprep.subr.bf16.mxu0 %v18372_v20  ;;  %16342 = vmatprep.subr.bf16.mxu1 %v18374_v62  ;;  %v18369_v22 = vld [vmem:[%s23192_s20 + $0x1f8] sm:$0xff] }
0x3b06   : > { %v18378_v62 = vcombine.high %v18367_v17, %v18369_v22 }
0x3b92   : > { %v19173_v36 = vpop.f32.mrb[228].mxu0  ;;  %v19195_v26 = vpop.f32.mrb[228].mxu1 }
0x3b93   : > { %v19174_v39 = vpop.f32.mrb[229].mxu0  ;;  %v19196_v4 = vpop.f32.mrb[229].mxu1 }
0x3b94   : > { %v19175_v51 = vadd.f32 %v19174_v39, %v19173_v36  ;;  %v19197_v10 = vadd.f32 %v19196_v4, %v19195_v26  ;;  %v19176_v37 = vpop.f32.mrb[230].mxu0  ;;  %v19198_v5 = vpop.f32.mrb[230].mxu1  ;;  %v18375_v36 = vcombine.low %v18366_v60, %v18368_v50  ;;  %v18377_v26 = vcombine.low %v18367_v17, %v18369_v22  ;;  %v20318_v39 = vld [vmem:[%s23195_s27 + $0x740] sm:$0xff]  }
0x3b95   : > { %v19177_v52 = vpop.f32.mrb[231].mxu0  ;;  %v19199_v9 = vpop.f32.mrb[231].mxu1  ;;  %v20319_v4 = vld [vmem:[%s23195_s27 + $0x7c0] sm:$0xff]   ;;  %v20325_v37 = vld [vmem:[%s23195_s27 + $0x788] sm:$0xff]   ;;  %v20326_v5 = vld [vmem:[%s23195_s27 + $0x750] sm:$0xff]  }
0x3b96   : > { %v15457_v47 = vadd.f32 %v19197_v10, %v19175_v51  ;;  %v20321_v51 = vld [vmem:[%s23195_s27 + $0x780] sm:$0xff]   ;;  %v20323_v10 = vld [vmem:[%s23195_s27 + $0x7c8] sm:$0xff]   ;;  %v20327_v52 = vld [vmem:[%s23195_s27 + $0x7d0] sm:$0xff]  }
0x3b97   : > { %v20328_v9 = vld [vmem:[%s23195_s27 + $0x710] sm:$0xff]  }
0x3bb2   : > { %v19217_v15 = vpop.f32.mrb[232].mxu0  ;;  %v19239_v16 = vpop.f32.mrb[232].mxu1 }
0x3bb3   : > { %v19218_v61 = vpop.f32.mrb[233].mxu0  ;;  %v19240_v6 = vpop.f32.mrb[233].mxu1 }
0x3bb4   : > { %v19219_v8 = vadd.f32 %v19218_v61, %v19217_v15  ;;  %v19241_v63 = vadd.f32 %v19240_v6, %v19239_v16  ;;  %v19220_v46 = vpop.f32.mrb[234].mxu0  ;;  %v19242_v40 = vpop.f32.mrb[234].mxu1  ;;  %v20331_v15 = vld [vmem:[%s23195_s27 + $0x7d8] sm:$0xff]   ;;  %v20334_v6 = vld [vmem:[%s23195_s27 + $0x760] sm:$0xff]  }
0x3bb5   : > { %v19221_v14 = vpop.f32.mrb[235].mxu0  ;;  %v19243_v23 = vpop.f32.mrb[235].mxu1  ;;  %v20332_v16 = vld [vmem:[%s23195_s27 + $0x718] sm:$0xff]   ;;  %v20337_v46 = vld [vmem:[%s23195_s27 + $0x7a0] sm:$0xff]   ;;  %v20338_v40 = vld [vmem:[%s23195_s27 + $0x768] sm:$0xff]  }
0x3bb6   : > { %v15689_v19 = vadd.f32 %v19219_v8, %v15457_v47  ;;  %v20329_v47 = vld [vmem:[%s23195_s27 + $0x790] sm:$0xff]   ;;  %v20333_v61 = vld [vmem:[%s23195_s27 + $0x798] sm:$0xff]   ;;  %v20335_v8 = vld [vmem:[%s23195_s27 + $0x7e0] sm:$0xff]  }
0x3bb7   : > { %v20340_v14 = vld [vmem:[%s23195_s27 + $0x728] sm:$0xff]  }
0x3bb8   : > { %v22979_v55 = vadd.f32 %v19241_v63, %v15689_v19  ;;  %v20336_v63 = vld [vmem:[%s23195_s27 + $0x720] sm:$0xff]   ;;  %v20341_v23 = vld [vmem:[%s23195_s27 + $0x7a8] sm:$0xff]   ;;  %v20342_v19 = vld [vmem:[%s23195_s27 + $0x770] sm:$0xff]  }
0x3bba   : > { %v15838_v24 = vpop.f32.mrb[236].mxu0  ;;  %v15879_v45 = vpop.f32.mrb[236].mxu1 }
0x3bbb   : > { %v15839_v25 = vadd.f32 %v15838_v24, %v15747_v2  ;;  %v15880_v48 = vadd.f32 %v15879_v45, %v15755_v59  ;;  %v15840_v0 = vpop.f32.mrb[237].mxu0  ;;  %v15881_v7 = vpop.f32.mrb[237].mxu1  ;;  %v20343_v2 = vld [vmem:[%s23195_s27 + $0x7f0] sm:$0xff]   ;;  %v20347_v24 = vld [vmem:[%s23195_s27 + $0x7f8] sm:$0xff]  }
0x3bbc   : > { %v15841_v57 = vadd.f32 %v15840_v0, %v15751_v30  ;;  %v15882_v29 = vadd.f32 %v15881_v7, %v15759_v12  ;;  %v15842_v49 = vpop.f32.mrb[238].mxu0  ;;  %v15883_v21 = vpop.f32.mrb[238].mxu1  ;;  %v20344_v59 = vld [vmem:[%s23195_s27 + $0x730] sm:$0xff]   ;;  %v20346_v12 = vld [vmem:[%s23195_s27 + $0x778] sm:$0xff]  }
0x3bbd   : > { %v15886_v58 = vmax.f32 %v15839_v25, 0.0  ;;  %v15888_v56 = vmax.f32 %v15880_v48, 0.0  ;;  %v15843_v31 = vpop.f32.mrb[239].mxu0  ;;  %v15884_v53 = vpop.f32.mrb[239].mxu1  ;;  %v20345_v30 = vld [vmem:[%s23195_s27 + $0x7b0] sm:$0xff]   ;;  %v20348_v45 = vld [vmem:[%s23195_s27 + $0x738] sm:$0xff]  }
0x3bbe   : > { %v15887_v28 = vmax.f32 %v15841_v57, 0.0  ;;  %v15889_v35 = vmax.f32 %v15882_v29, 0.0  ;;  %v20349_v25 = vld [vmem:[%s23195_s27 + $0x7b8] sm:$0xff]  }
0x3bbf   : > { %v15890_v54 = vpack.c.bf16 %v15886_v58, %v15886_v58  ;;  %v15892_v20 = vpack.c.bf16 %v15888_v56, %v15888_v56  ;;  %v18370_v56 = vld [vmem:[%s23196_s30 + $0x1c] sm:$0xf] }
0x3bc0   : > { %v15891_v44 = vpack.c.bf16 %v15887_v28, %v15887_v28  ;;  %v15893_v11 = vpack.c.bf16 %v15889_v35, %v15889_v35  ;;  %v16244_v28 = vrot.slane %v18370_v56, %v21085_v42  ;;  %v16252_v35 = vrot.slane %v18370_v56, %v21088_v43 }
0x3bc1   : > { %v16248_v17 = vrot.slane %v18370_v56, %v21075_v33  ;;  %v16256_v22 = vrot.slane %v18370_v56, %v21078_v38 }
0x3bc2   : > { %16182 = vmatprep.mubr.bf16.mxu0 %v15891_v44  ;;  %16222 = vmatprep.mubr.bf16.mxu1 %v15893_v11 }
0x3bc3   : > { %16183 = vmatmul.mubr.bf16.vlgmr.msra.gmra.mrb[240].mxu0 %v15890_v54  ;;  %16223 = vmatmul.mubr.bf16.vlgmr.msra.gmra.mrb[240].mxu1 %v15892_v20 }
0x3bc4   : > { %16302 = vmatpush1.bf16.msra.mxu0 %v18371_v32  ;;  %16343 = vmatpush1.bf16.msra.mxu1 %v18373_v27  ;;  %v20320_v32 = vld [vmem:[%s23195_s27 + $0x700] sm:$0xff]   ;;  %v20322_v27 = vld [vmem:[%s23195_s27 + $0x748] sm:$0xff]  }
0x3bc5   : > { %16303 = vmatprep.subr.bf16.mxu0 %v18376_v18  ;;  %16344 = vmatprep.subr.bf16.mxu1 %v18378_v62 }
0x3bc6   : > { %16333 = vmatprep.mubr.bf16.mxu0 %v20539_v34  ;;  %16374 = vmatprep.mubr.bf16.mxu1 %v20539_v34  ;;  %v20324_v34 = vld [vmem:[%s23195_s27 + $0x708] sm:$0xff]  }
0x3bc8   : > { %16304 = vmatpush1.bf16.msra.mxu0 %v18375_v36  ;;  %16345 = vmatpush1.bf16.msra.mxu1 %v18377_v26 }
0x3bc9   : > { %19289 = vmatprep.subr.bf16.mxu0 %v20318_v39  ;;  %19311 = vmatprep.subr.bf16.mxu1 %v20319_v4 }
0x3bcb   : > { %18379 = vmatmul.mubr.msk.bf16.vlgmr.msra.gmra.mrb[244].mxu0 %vm1450_vm1, %v22812_v3  ;;  %18380 = vmatmul.mubr.msk.bf16.vlgmr.msra.gmra.mrb[244].mxu1 %vm1450_vm1, %v22812_v3  ;;  %v20330_v3 = vld [vmem:[%s23195_s27 + $0x758] sm:$0xff]  }
0x3bcc   : > { %19290 = vmatpush3.bf16.msra.mxu0 %v20320_v32  ;;  %19312 = vmatpush3.bf16.msra.mxu1 %v20321_v51 }
0x3bcd   : > { %19291 = vmatprep.subr.bf16.mxu0 %v20322_v27  ;;  %19313 = vmatprep.subr.bf16.mxu1 %v20323_v10 }
0x3bd0   : > { %19292 = vmatpush3.bf16.msra.mxu0 %v20324_v34  ;;  %19314 = vmatpush3.bf16.msra.mxu1 %v20325_v37 }
0x3bd1   : > { %19293 = vmatprep.subr.bf16.mxu0 %v20326_v5  ;;  %19315 = vmatprep.subr.bf16.mxu1 %v20327_v52 }
0x3bd4   : > { %19294 = vmatpush3.bf16.msra.mxu0 %v20328_v9  ;;  %19316 = vmatpush3.bf16.msra.mxu1 %v20329_v47 }
0x3bd5   : > { %19295 = vmatprep.subr.bf16.mxu0 %v20330_v3  ;;  %19317 = vmatprep.subr.bf16.mxu1 %v20331_v15 }
0x3bd8   : > { %19296 = vmatpush3.bf16.msra.mxu0 %v20332_v16  ;;  %19318 = vmatpush3.bf16.msra.mxu1 %v20333_v61 }
0x3bd9   : > { %19297 = vmatprep.subr.bf16.mxu0 %v20334_v6  ;;  %19319 = vmatprep.subr.bf16.mxu1 %v20335_v8 }
0x3bdc   : > { %19298 = vmatpush3.bf16.msra.mxu0 %v20336_v63  ;;  %19320 = vmatpush3.bf16.msra.mxu1 %v20337_v46  ;;  %v18478_v63 = vld [vmem:[%s23198_s9 + $0x1] ss:$0 sm:$0xff] }
0x3bdd   : > { %19299 = vmatprep.subr.bf16.mxu0 %v20338_v40  ;;  %19321 = vmatprep.subr.bf16.mxu1 %v20339_v13 }
0x3be0   : > { %19300 = vmatpush3.bf16.msra.mxu0 %v20340_v14  ;;  %19322 = vmatpush3.bf16.msra.mxu1 %v20341_v23 }
0x3be1   : > { %19301 = vmatprep.subr.bf16.mxu0 %v20342_v19  ;;  %19323 = vmatprep.subr.bf16.mxu1 %v20343_v2 }
0x3be4   : > { %19302 = vmatpush3.bf16.msra.mxu0 %v20344_v59  ;;  %19324 = vmatpush3.bf16.msra.mxu1 %v20345_v30 }
0x3be5   : > { %19303 = vmatprep.subr.bf16.mxu0 %v20346_v12  ;;  %19325 = vmatprep.subr.bf16.mxu1 %v20347_v24 }
0x3be8   : > { %19304 = vmatpush3.bf16.msra.mxu0 %v20348_v45  ;;  %19326 = vmatpush3.bf16.msra.mxu1 %v20349_v25 }
0x3be9   : > { %19736 = vmatprep.subr.bf16.mxu0 %v20527_v1 }
0x3c96   : > { %v19261_v48 = vpop.f32.mrb[240].mxu0  ;;  %v19283_v0 = vpop.f32.mrb[240].mxu1 }
0x3c97   : > { %v19262_v7 = vpop.f32.mrb[241].mxu0  ;;  %v19284_v57 = vpop.f32.mrb[241].mxu1 }
0x3c98   : > { %v19263_v29 = vadd.f32 %v19262_v7, %v19261_v48  ;;  %v19285_v49 = vadd.f32 %v19284_v57, %v19283_v0  ;;  %v19264_v21 = vpop.f32.mrb[242].mxu0  ;;  %v19286_v58 = vpop.f32.mrb[242].mxu1  ;;  %v18481_v48 = vld [vmem:[%s23199_s25 + $0x1] ss:$0 sm:$0xff] }
0x3c99   : > { %v19265_v31 = vpop.f32.mrb[243].mxu0  ;;  %v19287_v53 = vpop.f32.mrb[243].mxu1  ;;  %v18482_v0 = vld [vmem:[%s23200_s10 + $0x1] ss:$0 sm:$0xff] }
0x3c9a   : > { %v16225_v60 = vadd.f32 %v19285_v49, %v19263_v29  ;;  %v20350_v53 = vld [vmem:[%s20763_s17] sm:$0xff]  }
0x3c9c   : > { %v16230_v50 = vadd.f32 %v16225_v60, %v22979_v55  ;;  %v20351_v60 = vld [vmem:[%s20763_s17 + $0x8] sm:$0xff]  }
0x3c9e   : > { %v16335_v44 = vpop.f32.mrb[244].mxu0  ;;  %v16376_v11 = vpop.f32.mrb[244].mxu1 }
0x3c9f   : > { %v16336_v54 = vadd.f32 %v16335_v44, %v16244_v28  ;;  %v16377_v20 = vadd.f32 %v16376_v11, %v16252_v35  ;;  %v16337_v18 = vpop.f32.mrb[245].mxu0  ;;  %v16378_v62 = vpop.f32.mrb[245].mxu1  ;;  %v18484_v11 = vld [vmem:[%s20758_s29] ss:$0 sm:$0xff] }
0x3ca0   : > { %v16338_v36 = vadd.f32 %v16337_v18, %v16248_v17  ;;  %v16379_v26 = vadd.f32 %v16378_v62, %v16256_v22  ;;  %v16339_v39 = vpop.f32.mrb[246].mxu0  ;;  %v16380_v4 = vpop.f32.mrb[246].mxu1  ;;  %v18483_v22 = vld [vmem:[%s23202_s13] ss:$0 sm:$0xff] }
0x3ca1   : > { %v16383_v32 = vmax.f32 %v16336_v54, 0.0  ;;  %v16385_v42 = vmax.f32 %v16377_v20, 0.0  ;;  %v16340_v51 = vpop.f32.mrb[247].mxu0  ;;  %v16381_v43 = vpop.f32.mrb[247].mxu1  ;;  %v18485_v62 = vld [vmem:[%s23204_s11] ss:$0 sm:$0xff] }
0x3ca2   : > { %v16384_v27 = vmax.f32 %v16338_v36, 0.0  ;;  %v16386_v55 = vmax.f32 %v16379_v26, 0.0 }
0x3ca3   : > { %v16387_v34 = vpack.c.bf16 %v16383_v32, %v16383_v32  ;;  %v16389_v38 = vpack.c.bf16 %v16385_v42, %v16385_v42 }
0x3ca4   : > { %v16388_v10 = vpack.c.bf16 %v16384_v27, %v16384_v27  ;;  %v16390_v33 = vpack.c.bf16 %v16386_v55, %v16386_v55 }
0x3ca6   : > { %16679 = vmatprep.mubr.bf16.mxu0 %v16388_v10  ;;  %16719 = vmatprep.mubr.bf16.mxu1 %v16390_v33 }
0x3ca7   : > { %16680 = vmatmul.mubr.bf16.vlgmr.msra.gmra.mrb[248].mxu0 %v16387_v34  ;;  %16720 = vmatmul.mubr.bf16.vlgmr.msra.gmra.mrb[248].mxu1 %v16389_v38 }
0x3ca8   : > { %19740 = vmatprep.mubr.msk.bf16.mxu0 %vm20528_vm0, %v20527_v1  ;;  %19737 = vmatpush3.bf16.msra.mxu0 %v20350_v53 }
0x3ca9   : > { %19738 = vmatprep.subr.bf16.mxu0 %v20527_v1 }
0x3cac   : > { %19739 = vmatpush3.bf16.msra.mxu0 %v20351_v60 }
0x3d7a   : > { %v19305_v37 = vpop.f32.mrb[248].mxu0  ;;  %v19327_v5 = vpop.f32.mrb[248].mxu1 }
0x3d7b   : > { %v19306_v52 = vpop.f32.mrb[249].mxu0  ;;  %v19328_v9 = vpop.f32.mrb[249].mxu1 }
0x3d7c   : > { %v19307_v47 = vadd.f32 %v19306_v52, %v19305_v37  ;;  %v19329_v3 = vadd.f32 %v19328_v9, %v19327_v5  ;;  %v19308_v15 = vpop.f32.mrb[250].mxu0  ;;  %v19330_v16 = vpop.f32.mrb[250].mxu1 }
0x3d7d   : > { %v19309_v61 = vpop.f32.mrb[251].mxu0  ;;  %v19331_v6 = vpop.f32.mrb[251].mxu1 }
0x3d7e   : > { %v16722_v8 = vadd.f32 %v19329_v3, %v19307_v47 }
0x3d80   : > { %v16727_v46 = vadd.f32 %v16722_v8, %v16230_v50 }
0x3d82   : > { %v16736_v40 = vadd.f32 %v18478_v63, %v16727_v46 }
0x3d84   : > { %v16737_v13 = vadd.f32 %v16736_v40, %v22808_v41 }
0x3d86   : > { %v16742_v14 = vsel %vm9041_vm9, %v16737_v13, 0.0 }
0x3d87   : > { %16743 = vadd.xlane.f32.xlu0 %v16742_v14 }
0x3e14   : > { %v16744_v23 = vpop.xlane.xlu0 %16743 }
0x3e15   : > { %v16745_v19 = vmul.f32 0.03125, %v16744_v23 }
0x3e17   : > { %v16746_v2 = vsub.f32 %v16737_v13, %v16745_v19 }
0x3e19   : > { %v16747_v59 = vmul.f32 %v16746_v2, %v16746_v2 }
0x3e1b   : > { %v16748_v30 = vsel %vm9041_vm9, %v16747_v59, 0.0 }
0x3e1c   : > { %16749 = vadd.xlane.f32.xlu0 %v16748_v30 }
0x3ea9   : > { %v16750_v12 = vpop.xlane.xlu0 %16749 }
0x3eaa   : > { %v16751_v24 = vmul.f32 0.03125, %v16750_v12 }
0x3eac   : > { %v16752_v45 = vadd.f32 1e-05, %v16751_v24 }
0x3eae   : > { %20468 = vrsqrt.f32 %v16752_v45 }
0x3eb8   : > { %v20469_v25 = vpop.eup %20468 }
0x3eb9   : > { %v16754_v41 = vmul.f32 %v20469_v25, %v16746_v2 }
0x3ebb   : > { %v16761_v7 = vmul.f32 %v18481_v48, %v16754_v41 }
0x3ebd   : > { %v16768_v57 = vadd.f32 %v18482_v0, %v16761_v7 }
0x3ebf   : > { %v16771_v29 = vsel %vm9041_vm9, %v16768_v57, 0.0 }
0x3ec0   : > { %16772 = vadd.xlane.f32.xlu1 %v16771_v29 }
0x3f4d   : > { %v16773_v49 = vpop.xlane.xlu1 %16772 }
0x3f4e   : > { %v16774_v21 = vmul.f32 0.03125, %v16773_v49 }
0x3f50   : > { %v16775_v58 = vsub.f32 %v16768_v57, %v16774_v21 }
0x3f52   : > { %v16776_v56 = vmul.f32 %v16775_v58, %v16775_v58 }
0x3f54   : > { %v16777_v31 = vsel %vm9041_vm9, %v16776_v56, 0.0 }
0x3f55   : > { %16778 = vadd.xlane.f32.xlu0 %v16777_v31 }
0x3fe2   : > { %v16779_v28 = vpop.xlane.xlu0 %16778 }
0x3fe3   : > { %v16780_v35 = vmul.f32 0.03125, %v16779_v28 }
0x3fe5   : > { %v16781_v50 = vadd.f32 1e-05, %v16780_v35 }
0x3fe7   : > { %20470 = vrsqrt.f32 %v16781_v50 }
0x3ff1   : > { %v20471_v17 = vpop.eup %20470 }
0x3ff2   : > { %v16783_v44 = vmul.f32 %v20471_v17, %v16775_v58 }
0x3ff4   : > { %v16790_v54 = vmul.f32 %v18483_v22, %v16783_v44 }
0x3ff6   : > { %v16797_v20 = vadd.f32 %v18484_v11, %v16790_v54 }
0x3ff8   : > { %v16798_v18 = vpack.c.bf16 %v16797_v20, %v16797_v20 }
0x3ffa   : > { %19741 = vmatmul.mubr.msk.bf16.vlgmr.msra.gmra.mrb[252].mxu0 %vm1450_vm1, %v16798_v18 }
0x40cd   : > { %v16859_v1 = vpop.f32.mrb[252].mxu0 }
0x40ce   : > { %v16860_v36 = vadd.f32 %v18485_v62, %v16859_v1  ;;  %v19742_v26 = vpop.f32.mrb[253].mxu0 }
0x40cf   : > { %v16862_v39 = vpop.f32.mrb[254].mxu0 }
0x40d0   : > { %16865 = vst [vmem:[%s1404_s3] sm:$0x3f] %v16860_v36  ;;  %v19743_v4 = vpop.f32.mrb[255].mxu0 }
0x40d1 PF: > { %s23206_s16 = sld [smem:[#allocation46_spill]] }
0x40d7   : > { %s101_s7 = sadd.s32 1, %s23206_s16  }
0x40d8   : > { %p98_p4 = scmp.ge.s32.totalorder %s101_s7, 4  }
0x40da   :  { %100 = sbr.rel (!%p98_p4) target bundleno = 107 (0x6b), region = 319 }

</bundles_post_ra>
